<compile_context>
chip_gen: v5e
topology: v5e:2x2
jax: 0.10.0
libtpu: 0.0.40
codegen_flags: <defaults>
</compile_context>

<pallas_src>
import functools
import math

import jax
import jax.numpy as jnp
from jax import lax
from jax.experimental import pallas as pl
from jax.experimental.pallas import tpu as pltpu


# -----------------------------------------------------------------------------
# Pallas kernel: one (batch, query-tile) block, channel-major [C, S_tile].
# -----------------------------------------------------------------------------
def fusion_kernel(num_heads, head_dim, kv_tile, n_kv,
                  cn_ref, nn_ref,
                  wq, bq, wk, bk, wv, bv,
                  wo, bo, g1, be1, wm, bm,
                  w1, b1, w2, b2, g2, be2,
                  out_ref, kp_sc, vp_sc):
    eps = 1e-5
    bf16 = jnp.bfloat16
    f32 = jnp.float32

    # --- K/V projection: once per batch element, cached in VMEM scratch -------
    # (query-tile grid axis is "arbitrary", so the scratch persists across qi).
    @pl.when(pl.program_id(1) == 0)
    def _():
        nn_b = nn_ref[0]                                        # [C_nn, S] bf16 (cast in wrapper)
        kp = jnp.dot(wk[...], nn_b, preferred_element_type=f32) + bk[...]
        vp = jnp.dot(wv[...], nn_b, preferred_element_type=f32) + bv[...]
        kp_sc[...] = kp.astype(bf16)
        vp_sc[...] = vp.astype(bf16)

    cn = cn_ref[0]                                              # [C_cn, TQ] f32 (residual stays f32)
    TQ = cn.shape[-1]

    # Fused (1x1 conv o MHA in_proj) q projection; 1/sqrt(head_dim) is folded
    # into wq/bq by the wrapper.  Heads sit on the sublane axis -> cheap views.
    qp = jnp.dot(wq[...], cn.astype(bf16), preferred_element_type=f32) + bq[...]
    qh = qp.reshape(num_heads, head_dim, TQ).astype(bf16)       # [H, hd, TQ] (no transpose)

    # --- flash-style online softmax over KV tiles ------------------------------
    # Scores are kept in [H, TKV, TQ] layout: softmax stats are sublane
    # reductions and the m/l/alpha rescales broadcast over sublanes, so the
    # whole attention path needs no lane/sublane transposes.
    m0 = jnp.full((num_heads, 1, TQ), -jnp.inf, f32)
    l0 = jnp.zeros((num_heads, 1, TQ), f32)
    acc0 = jnp.zeros((num_heads, head_dim, TQ), f32)

    def kv_step(start, carry):
        m_prev, l_prev, acc_prev = carry
        k_blk = kp_sc[:, pl.ds(start, kv_tile)].reshape(num_heads, head_dim, kv_tile)
        v_blk = vp_sc[:, pl.ds(start, kv_tile)].reshape(num_heads, head_dim, kv_tile)
        # Transposed-LHS contraction over head_dim (dim 1 of both operands).
        s = lax.dot_general(k_blk, qh, (((1,), (1,)), ((0,), (0,))),
                            preferred_element_type=f32)          # [H, TKV, TQ]
        m_new = jnp.maximum(m_prev, jnp.max(s, axis=1, keepdims=True))
        p = jnp.exp(s - m_new)                                    # fused temporaries
        alpha = jnp.exp(m_prev - m_new)                           # [H, 1, TQ]
        l_new = alpha * l_prev + jnp.sum(p, axis=1, keepdims=True)
        pv = lax.dot_general(v_blk, p.astype(bf16), (((2,), (1,)), ((0,), (0,))),
                             preferred_element_type=f32)          # [H, hd, TQ]
        acc_new = acc_prev * alpha + pv
        return m_new, l_new, acc_new

    carry = (m0, l0, acc0)
    if n_kv <= 4:                                                 # short loops: static unroll
        for i in range(n_kv):
            carry = kv_step(i * kv_tile, carry)
    else:
        carry = lax.fori_loop(
            0, n_kv,
            lambda i, c: kv_step(pl.multiple_of(i * kv_tile, kv_tile), c),
            carry)
    _, l_f, acc = carry

    inv_l = pl.reciprocal(l_f, approx=True)                       # EUP slot
    ctx = (acc * inv_l).reshape(num_heads * head_dim, TQ)         # [proj_c, TQ]

    attn = jnp.dot(wo[...], ctx.astype(bf16), preferred_element_type=f32) + bo[...]

    # LayerNorm over channels (sublane axis).
    mu = jnp.mean(attn, axis=0, keepdims=True)
    var = jnp.mean((attn - mu) ** 2, axis=0, keepdims=True)
    ln1 = (attn - mu) * lax.rsqrt(var + eps) * g1[...] + be1[...]

    # O = mlp(norm_qkv(attn_out)) + cn
    O = jnp.dot(wm[...], ln1.astype(bf16), preferred_element_type=f32) + bm[...] + cn

    # FFN: Linear -> GELU (exact erf, nn.GELU default) -> Linear.
    h1 = jnp.dot(w1[...], O.astype(bf16), preferred_element_type=f32) + b1[...]
    h1 = 0.5 * h1 * (1.0 + lax.erf(h1 * (1.0 / math.sqrt(2.0))))
    h2 = jnp.dot(w2[...], h1.astype(bf16), preferred_element_type=f32) + b2[...]

    # LayerNorm over channels, then final residual.
    mu2 = jnp.mean(h2, axis=0, keepdims=True)
    var2 = jnp.mean((h2 - mu2) ** 2, axis=0, keepdims=True)
    ln2 = (h2 - mu2) * lax.rsqrt(var2 + eps) * g2[...] + be2[...]

    out_ref[0] = (ln2 + O).astype(out_ref.dtype)


# -----------------------------------------------------------------------------
# Wrapper-side parameter fusion / layout prep.
# Params are stored PyTorch-style: weights [out, in], biases [out].
# -----------------------------------------------------------------------------
def _prepare_params(params, num_heads):
    f32 = jnp.float32
    proj_c = params["wiq"].shape[0]
    head_dim = proj_c // num_heads
    scale = 1.0 / math.sqrt(head_dim)

    # Fuse 1x1-conv projection with the MHA in_proj (pure affine composition);
    # fold the attention scale into the q branch.
    wq_f = (params["wiq"] @ params["wq"]) * scale
    bq_f = (params["wiq"] @ params["bq"] + params["biq"]) * scale
    wk_f = params["wik"] @ params["wk"]
    bk_f = params["wik"] @ params["bk"] + params["bik"]
    wv_f = params["wiv"] @ params["wv"]
    bv_f = params["wiv"] @ params["bv"] + params["biv"]

    col = lambda v: v.astype(f32).reshape(-1, 1)      # [n] -> [n, 1] lane broadcast
    bf = lambda w: w.astype(jnp.bfloat16)             # MXU operands in bf16

    fused = [
        bf(wq_f), col(bq_f), bf(wk_f), col(bk_f), bf(wv_f), col(bv_f),
        bf(params["wo"]), col(params["bo"]),
        col(params["g1"]), col(params["be1"]),
        bf(params["wm"]), col(params["bm"]),
        bf(params["w1"]), col(params["b1"]),
        bf(params["w2"]), col(params["b2"]),
        col(params["g2"]), col(params["be2"]),
    ]
    return fused, head_dim


# -----------------------------------------------------------------------------
# Generation-aware VMEM budget + tile selection.
# -----------------------------------------------------------------------------
def _vmem_budget_bytes():
    # ~80% of physical per-core VMEM leaves headroom for compiler scratch:
    # v7x ~51 MiB of 64; v5e/v6e ~102 MiB of 128.
    try:
        phys = int(pltpu.get_tpu_info().vmem_capacity_bytes)
    except Exception:
        phys = 128 * 2 ** 20
    return max(int(0.80 * phys), 32 * 2 ** 20)


def _vmem_estimate(C_cn, C_nn, S, TQ, TKV, proj_c, hidden, num_heads, weight_bytes):
    F32, BF16 = 4, 2
    io = 2 * 2 * C_cn * TQ * F32              # cn in + f32 out, double-buffered
    io += C_nn * S * BF16                     # bf16 token block, single-buffered
    kv_cache = 2 * proj_c * S * BF16          # kp / vp VMEM scratch
    attn = (2 * num_heads * TKV * TQ * F32    # score tile + exp (≈2 live f32 copies)
            + num_heads * TKV * TQ * BF16     # p cast for the PV matmul
            + 4 * num_heads * TQ * F32        # m / l / alpha
            + 2 * proj_c * TQ * F32           # acc + pv
            + proj_c * TQ * (F32 + BF16))     # qp / qh
    tail = (4 * max(proj_c, C_cn) + 2 * hidden) * TQ * F32
    return io + weight_bytes + kv_cache + attn + tail


def _choose_tiles(S, C_cn, C_nn, proj_c, hidden, num_heads, weight_bytes, budget,
                  q_tile=None, kv_tile=None):
    def fits(tq, tkv):
        est = _vmem_estimate(C_cn, C_nn, S, tq, tkv, proj_c, hidden,
                             num_heads, weight_bytes)
        return int(1.25 * est) <= budget

    tq_cands = ([q_tile] if q_tile is not None
                else ([t for t in (512, 256, 128) if S % t == 0] or [S]))
    kv_cands = ([kv_tile] if kv_tile is not None
                else [S] + [t for t in (1024, 512, 256, 128) if S % t == 0 and t < S])

    # Prefer the largest query tile; only shrink the KV tile (flash path) when
    # the full-S score working set would not fit the generation's VMEM budget.
    for tq in tq_cands:
        for tkv in kv_cands:
            if fits(tq, tkv):
                return tq, tkv
    return tq_cands[-1], kv_cands[-1]   # best effort for extreme shapes


# -----------------------------------------------------------------------------
# Wrapper: reshape-only NCHW glue + pallas_call plumbing.
# -----------------------------------------------------------------------------
def feature_fusion(cn_feat, nn_feat, params, *, num_heads, q_tile=None,
                   kv_tile=None, out_dtype=jnp.float32):
    B, C_cn, H, W = cn_feat.shape
    _, C_nn, _, _ = nn_feat.shape
    S = H * W
    proj_c = params["wiq"].shape[0]
    hidden = params["w1"].shape[0]
    assert proj_c % num_heads == 0, "proj_c must be divisible by num_heads"

    fused, head_dim = _prepare_params(params, num_heads)
    weight_bytes = sum(int(p.size) * p.dtype.itemsize for p in fused)

    # Channel-major tokens: pure reshapes (S stays in lanes).  K/V tokens are
    # cast to bf16 here (the kernel consumed them as bf16 anyway) -> half DMA.
    cn_tok = cn_feat.reshape(B, C_cn, S)
    nn_tok = nn_feat.reshape(B, C_nn, S).astype(jnp.bfloat16)

    budget = _vmem_budget_bytes()
    TQ, TKV = _choose_tiles(S, C_cn, C_nn, proj_c, hidden, num_heads,
                            weight_bytes, budget, q_tile, kv_tile)
    assert S % TQ == 0 and (TQ % 128 == 0 or TQ == S), (S, TQ)
    assert S % TKV == 0 and (TKV % 128 == 0 or TKV == S), (S, TKV)
    n_q, n_kv = S // TQ, S // TKV

    est = _vmem_estimate(C_cn, C_nn, S, TQ, TKV, proj_c, hidden,
                         num_heads, weight_bytes)
    vmem_limit = int(min(max(2 * est, 32 * 2 ** 20), budget))

    single = pl.Buffered(1)   # grid-invariant blocks: no double-buffer VMEM tax

    def const_spec(p):
        zeros = (0,) * p.ndim
        return pl.BlockSpec(p.shape, lambda b, qi, _z=zeros: _z,
                            pipeline_mode=single)

    in_specs = [
        # query-row tile of cn (f32, also the residual)
        pl.BlockSpec((1, C_cn, TQ), lambda b, qi: (b, 0, qi)),
        # full K/V token block (bf16); only re-DMA'd at batch boundaries
        pl.BlockSpec((1, C_nn, S), lambda b, qi: (b, 0, 0), pipeline_mode=single),
    ] + [const_spec(p) for p in fused]

    out = pl.pallas_call(
        functools.partial(fusion_kernel, num_heads, head_dim, TKV, n_kv),
        out_shape=jax.ShapeDtypeStruct((B, C_cn, S), out_dtype),
        grid=(B, n_q),
        in_specs=in_specs,
        out_specs=pl.BlockSpec((1, C_cn, TQ), lambda b, qi: (b, 0, qi)),
        scratch_shapes=[pltpu.VMEM((proj_c, S), jnp.bfloat16),   # kp cache
                        pltpu.VMEM((proj_c, S), jnp.bfloat16)],  # vp cache
        compiler_params=pltpu.CompilerParams(
            # qi is "arbitrary": the K/V cache written at qi==0 must persist
            # across the remaining query tiles of the same batch element.
            dimension_semantics=("parallel", "arbitrary"),
            vmem_limit_bytes=vmem_limit),
    )(cn_tok, nn_tok, *fused)

    return out.reshape(B, C_cn, H, W)


# -----------------------------------------------------------------------------
# Pure-JAX f32 reference (PyTorch-faithful math) for the correctness check.
# -----------------------------------------------------------------------------
def feature_fusion_ref(cn_feat, nn_feat, p, *, num_heads):
    B, C_cn, H, W = cn_feat.shape
    C_nn = nn_feat.shape[1]
    S = H * W
    proj_c = p["wiq"].shape[0]
    hd = proj_c // num_heads
    eps = 1e-5

    cn = cn_feat.reshape(B, C_cn, S).transpose(0, 2, 1)   # [B, S, C]
    nn_ = nn_feat.reshape(B, C_nn, S).transpose(0, 2, 1)

    lin = lambda x, w, b: jnp.einsum("bsc,oc->bso", x, w) + b   # w: [out, in]
    q = lin(cn, p["wq"], p["bq"])
    k = lin(nn_, p["wk"], p["bk"])
    v = lin(nn_, p["wv"], p["bv"])
    qp = lin(q, p["wiq"], p["biq"])
    kp = lin(k, p["wik"], p["bik"])
    vp = lin(v, p["wiv"], p["biv"])

    qh = qp.reshape(B, S, num_heads, hd).transpose(0, 2, 1, 3)
    kh = kp.reshape(B, S, num_heads, hd).transpose(0, 2, 1, 3)
    vh = vp.reshape(B, S, num_heads, hd).transpose(0, 2, 1, 3)
    scores = jnp.einsum("bhqd,bhkd->bhqk", qh, kh) / math.sqrt(hd)
    w_attn = jax.nn.softmax(scores, axis=-1)
    ctx = jnp.einsum("bhqk,bhkd->bhqd", w_attn, vh)
    ctx = ctx.transpose(0, 2, 1, 3).reshape(B, S, proj_c)
    attn = lin(ctx, p["wo"], p["bo"])

    def ln(x, g, b):
        mu = jnp.mean(x, axis=-1, keepdims=True)
        var = jnp.mean((x - mu) ** 2, axis=-1, keepdims=True)
        return (x - mu) * lax.rsqrt(var + eps) * g + b

    O = lin(ln(attn, p["g1"], p["be1"]), p["wm"], p["bm"]) + cn
    h1 = lin(O, p["w1"], p["b1"])
    h1 = 0.5 * h1 * (1.0 + lax.erf(h1 / math.sqrt(2.0)))
    h2 = lin(h1, p["w2"], p["b2"])
    F = ln(h2, p["g2"], p["be2"]) + O
    return F.transpose(0, 2, 1).reshape(B, C_cn, H, W)


# -----------------------------------------------------------------------------
# Deterministic synthetic checkpoint (PyTorch layout: weight [out, in], bias [out]).
# -----------------------------------------------------------------------------
def make_params(key, in_c_cn, in_c_nn, proj_c, ffn_ratio):
    hidden = in_c_cn * ffn_ratio
    ks = jax.random.split(key, 20)
    n = lambda k, shape, s=0.1: jax.random.normal(k, shape, jnp.float32) * s
    return {
        "wq": n(ks[0], (proj_c, in_c_cn)), "bq": n(ks[1], (proj_c,)),
        "wk": n(ks[2], (proj_c, in_c_nn)), "bk": n(ks[3], (proj_c,)),
        "wv": n(ks[4], (proj_c, in_c_nn)), "bv": n(ks[5], (proj_c,)),
        "wiq": n(ks[6], (proj_c, proj_c)), "biq": n(ks[7], (proj_c,)),
        "wik": n(ks[8], (proj_c, proj_c)), "bik": n(ks[9], (proj_c,)),
        "wiv": n(ks[10], (proj_c, proj_c)), "biv": n(ks[11], (proj_c,)),
        "wo": n(ks[12], (proj_c, proj_c)), "bo": n(ks[13], (proj_c,)),
        "g1": jnp.ones((proj_c,), jnp.float32), "be1": jnp.zeros((proj_c,), jnp.float32),
        "wm": n(ks[14], (in_c_cn, proj_c)), "bm": n(ks[15], (in_c_cn,)),
        "w1": n(ks[16], (hidden, in_c_cn)), "b1": n(ks[17], (hidden,)),
        "w2": n(ks[18], (in_c_cn, hidden)), "b2": n(ks[19], (in_c_cn,)),
        "g2": jnp.ones((in_c_cn,), jnp.float32), "be2": jnp.zeros((in_c_cn,), jnp.float32),
    }


if __name__ == "__main__":
    B, C_cn, C_nn, H, W = 2, 8, 16, 16, 16
    proj_c, num_heads, ffn_ratio = 32, 4, 2

    key = jax.random.PRNGKey(0)
    k_cn, k_nn, k_par = jax.random.split(key, 3)
    cn_feat = jax.random.normal(k_cn, (B, C_cn, H, W), jnp.float32)
    nn_feat = jax.random.normal(k_nn, (B, C_nn, H, W), jnp.float32)
    params = make_params(k_par, C_cn, C_nn, proj_c, ffn_ratio)

    ref = jax.block_until_ready(
        feature_fusion_ref(cn_feat, nn_feat, params, num_heads=num_heads))

    # Default tile choice: single query tile / single KV tile per batch element.
    out_full = jax.block_until_ready(
        feature_fusion(cn_feat, nn_feat, params, num_heads=num_heads))
    # Forced q_tile=128 / kv_tile=128 at S=256: exercises the cached K/V
    # projection across query tiles AND the online-softmax KV loop (n_kv=2).
    out_tiled = jax.block_until_ready(
        feature_fusion(cn_feat, nn_feat, params, num_heads=num_heads,
                       q_tile=128, kv_tile=128))

    for out in (out_full, out_tiled):
        assert out.shape == (B, C_cn, H, W)
        assert bool(jnp.all(jnp.isfinite(out)))
        # bf16 MXU inputs (f32 accumulation) + approx reciprocal => small drift
        # vs the pure-f32 reference.
        err = float(jnp.max(jnp.abs(out - ref)))
        assert err < 5e-2, err

    print("KERNEL_OK")
</pallas_src>

<mosaic_0001>
module attributes {stable_mosaic.version = 11 : i64} {
  func.func @fusion_kernel(%arg0: i32, %arg1: i32, %arg2: memref<1x8x256xf32, #tpu.memory_space<vmem>>, %arg3: memref<1x16x256xbf16, #tpu.memory_space<vmem>>, %arg4: memref<32x8xbf16, #tpu.memory_space<vmem>>, %arg5: memref<32x1xf32, #tpu.memory_space<vmem>>, %arg6: memref<32x16xbf16, #tpu.memory_space<vmem>>, %arg7: memref<32x1xf32, #tpu.memory_space<vmem>>, %arg8: memref<32x16xbf16, #tpu.memory_space<vmem>>, %arg9: memref<32x1xf32, #tpu.memory_space<vmem>>, %arg10: memref<32x32xbf16, #tpu.memory_space<vmem>>, %arg11: memref<32x1xf32, #tpu.memory_space<vmem>>, %arg12: memref<32x1xf32, #tpu.memory_space<vmem>>, %arg13: memref<32x1xf32, #tpu.memory_space<vmem>>, %arg14: memref<8x32xbf16, #tpu.memory_space<vmem>>, %arg15: memref<8x1xf32, #tpu.memory_space<vmem>>, %arg16: memref<16x8xbf16, #tpu.memory_space<vmem>>, %arg17: memref<16x1xf32, #tpu.memory_space<vmem>>, %arg18: memref<8x16xbf16, #tpu.memory_space<vmem>>, %arg19: memref<8x1xf32, #tpu.memory_space<vmem>>, %arg20: memref<8x1xf32, #tpu.memory_space<vmem>>, %arg21: memref<8x1xf32, #tpu.memory_space<vmem>>, %arg22: memref<1x8x256xf32, #tpu.memory_space<vmem>>, %arg23: memref<32x256xbf16, #tpu.memory_space<vmem>>, %arg24: memref<32x256xbf16, #tpu.memory_space<vmem>>) attributes {dimension_semantics = [#tpu.dimension_semantics<parallel>, #tpu.dimension_semantics<arbitrary>], iteration_bounds = array<i64: 2, 1>, scalar_prefetch = 0 : i64, scratch_operands = 2 : i64, tpu.core_type = #tpu.core_type<tc>, window_params = [{transform_indices = @transform_0, window_bounds = array<i64: 1, 8, 256>}, {pipeline_mode = #tpu.pipeline_mode<synchronous>, transform_indices = @transform_1, window_bounds = array<i64: 1, 16, 256>}, {pipeline_mode = #tpu.pipeline_mode<synchronous>, transform_indices = @transform_2, window_bounds = array<i64: 32, 8>}, {pipeline_mode = #tpu.pipeline_mode<synchronous>, transform_indices = @transform_3, window_bounds = array<i64: 32, 1>}, {pipeline_mode = #tpu.pipeline_mode<synchronous>, transform_indices = @transform_4, window_bounds = array<i64: 32, 16>}, {pipeline_mode = #tpu.pipeline_mode<synchronous>, transform_indices = @transform_5, window_bounds = array<i64: 32, 1>}, {pipeline_mode = #tpu.pipeline_mode<synchronous>, transform_indices = @transform_6, window_bounds = array<i64: 32, 16>}, {pipeline_mode = #tpu.pipeline_mode<synchronous>, transform_indices = @transform_7, window_bounds = array<i64: 32, 1>}, {pipeline_mode = #tpu.pipeline_mode<synchronous>, transform_indices = @transform_8, window_bounds = array<i64: 32, 32>}, {pipeline_mode = #tpu.pipeline_mode<synchronous>, transform_indices = @transform_9, window_bounds = array<i64: 32, 1>}, {pipeline_mode = #tpu.pipeline_mode<synchronous>, transform_indices = @transform_10, window_bounds = array<i64: 32, 1>}, {pipeline_mode = #tpu.pipeline_mode<synchronous>, transform_indices = @transform_11, window_bounds = array<i64: 32, 1>}, {pipeline_mode = #tpu.pipeline_mode<synchronous>, transform_indices = @transform_12, window_bounds = array<i64: 8, 32>}, {pipeline_mode = #tpu.pipeline_mode<synchronous>, transform_indices = @transform_13, window_bounds = array<i64: 8, 1>}, {pipeline_mode = #tpu.pipeline_mode<synchronous>, transform_indices = @transform_14, window_bounds = array<i64: 16, 8>}, {pipeline_mode = #tpu.pipeline_mode<synchronous>, transform_indices = @transform_15, window_bounds = array<i64: 16, 1>}, {pipeline_mode = #tpu.pipeline_mode<synchronous>, transform_indices = @transform_16, window_bounds = array<i64: 8, 16>}, {pipeline_mode = #tpu.pipeline_mode<synchronous>, transform_indices = @transform_17, window_bounds = array<i64: 8, 1>}, {pipeline_mode = #tpu.pipeline_mode<synchronous>, transform_indices = @transform_18, window_bounds = array<i64: 8, 1>}, {pipeline_mode = #tpu.pipeline_mode<synchronous>, transform_indices = @transform_19, window_bounds = array<i64: 8, 1>}, {transform_indices = @transform_20, window_bounds = array<i64: 1, 8, 256>}]} {
    %c0_i32 = arith.constant 0 : i32
    %0 = arith.cmpi eq, %arg1, %c0_i32 : i32
    %1 = arith.extui %0 : i1 to i32
    %c0_i32_0 = arith.constant 0 : i32
    %2 = arith.cmpi ne, %1, %c0_i32_0 : i32
    scf.if %2 {
      %c0_62 = arith.constant 0 : index
      %c0_63 = arith.constant 0 : index
      %c0_64 = arith.constant 0 : index
      %127 = vector.load %arg3[%c0_62, %c0_63, %c0_64] : memref<1x16x256xbf16, #tpu.memory_space<vmem>>, vector<1x16x256xbf16>
      %128 = vector.shape_cast %127 : vector<1x16x256xbf16> to vector<16x256xbf16>
      %c0_65 = arith.constant 0 : index
      %c0_66 = arith.constant 0 : index
      %129 = vector.load %arg6[%c0_65, %c0_66] : memref<32x16xbf16, #tpu.memory_space<vmem>>, vector<32x16xbf16>
      %cst_67 = arith.constant dense<0.000000e+00> : vector<32x256xf32>
      %130 = tpu.matmul %129, %128, %cst_67 {dimension_numbers = #tpu.dot_dimension_numbers<[1], [0], [0], [1], [0, 0, 1, 1], [], []>} : vector<32x16xbf16>, vector<16x256xbf16>, vector<32x256xf32> -> vector<32x256xf32>
      %c0_68 = arith.constant 0 : index
      %c0_69 = arith.constant 0 : index
      %131 = vector.load %arg7[%c0_68, %c0_69] : memref<32x1xf32, #tpu.memory_space<vmem>>, vector<32x1xf32>
      %132 = vector.broadcast %131 : vector<32x1xf32> to vector<32x256xf32>
      %133 = arith.addf %130, %132 : vector<32x256xf32>
      %c0_70 = arith.constant 0 : index
      %c0_71 = arith.constant 0 : index
      %134 = vector.load %arg8[%c0_70, %c0_71] : memref<32x16xbf16, #tpu.memory_space<vmem>>, vector<32x16xbf16>
      %cst_72 = arith.constant dense<0.000000e+00> : vector<32x256xf32>
      %135 = tpu.matmul %134, %128, %cst_72 {dimension_numbers = #tpu.dot_dimension_numbers<[1], [0], [0], [1], [0, 0, 1, 1], [], []>} : vector<32x16xbf16>, vector<16x256xbf16>, vector<32x256xf32> -> vector<32x256xf32>
      %c0_73 = arith.constant 0 : index
      %c0_74 = arith.constant 0 : index
      %136 = vector.load %arg9[%c0_73, %c0_74] : memref<32x1xf32, #tpu.memory_space<vmem>>, vector<32x1xf32>
      %137 = vector.broadcast %136 : vector<32x1xf32> to vector<32x256xf32>
      %138 = arith.addf %135, %137 : vector<32x256xf32>
      %139 = arith.truncf %133 : vector<32x256xf32> to vector<32x256xbf16>
      %c0_75 = arith.constant 0 : index
      %c0_76 = arith.constant 0 : index
      %140 = vector.load %arg23[%c0_75, %c0_76] : memref<32x256xbf16, #tpu.memory_space<vmem>>, vector<32x256xbf16>
      tpu.vector_store %arg23[%c0_75, %c0_76], %139 {strides = array<i32>} : memref<32x256xbf16, #tpu.memory_space<vmem>>, vector<32x256xbf16>,
      %141 = arith.truncf %138 : vector<32x256xf32> to vector<32x256xbf16>
      %c0_77 = arith.constant 0 : index
      %c0_78 = arith.constant 0 : index
      %142 = vector.load %arg24[%c0_77, %c0_78] : memref<32x256xbf16, #tpu.memory_space<vmem>>, vector<32x256xbf16>
      tpu.vector_store %arg24[%c0_77, %c0_78], %141 {strides = array<i32>} : memref<32x256xbf16, #tpu.memory_space<vmem>>, vector<32x256xbf16>,
    } else {
    }
    %c0 = arith.constant 0 : index
    %c0_1 = arith.constant 0 : index
    %c0_2 = arith.constant 0 : index
    %3 = vector.load %arg2[%c0, %c0_1, %c0_2] : memref<1x8x256xf32, #tpu.memory_space<vmem>>, vector<1x8x256xf32>
    %4 = vector.shape_cast %3 : vector<1x8x256xf32> to vector<8x256xf32>
    %c0_3 = arith.constant 0 : index
    %c0_4 = arith.constant 0 : index
    %5 = vector.load %arg4[%c0_3, %c0_4] : memref<32x8xbf16, #tpu.memory_space<vmem>>, vector<32x8xbf16>
    %6 = arith.truncf %4 : vector<8x256xf32> to vector<8x256xbf16>
    %cst = arith.constant dense<0.000000e+00> : vector<32x256xf32>
    %7 = tpu.matmul %5, %6, %cst {dimension_numbers = #tpu.dot_dimension_numbers<[1], [0], [0], [1], [0, 0, 1, 1], [], []>} : vector<32x8xbf16>, vector<8x256xbf16>, vector<32x256xf32> -> vector<32x256xf32>
    %c0_5 = arith.constant 0 : index
    %c0_6 = arith.constant 0 : index
    %8 = vector.load %arg5[%c0_5, %c0_6] : memref<32x1xf32, #tpu.memory_space<vmem>>, vector<32x1xf32>
    %9 = vector.broadcast %8 : vector<32x1xf32> to vector<32x256xf32>
    %10 = arith.addf %7, %9 : vector<32x256xf32>
    %11 = vector.shape_cast %10 : vector<32x256xf32> to vector<4x8x256xf32>
    %12 = arith.truncf %11 : vector<4x8x256xf32> to vector<4x8x256xbf16>
    %cst_7 = arith.constant 0xFF800000 : f32
    %13 = vector.broadcast %cst_7 : f32 to vector<4x1x256xf32>
    %cst_8 = arith.constant 0.000000e+00 : f32
    %14 = vector.broadcast %cst_8 : f32 to vector<4x1x256xf32>
    %cst_9 = arith.constant 0.000000e+00 : f32
    %15 = vector.broadcast %cst_9 : f32 to vector<4x8x256xf32>
    %c0_10 = arith.constant 0 : index
    %c0_11 = arith.constant 0 : index
    %16 = vector.load %arg23[%c0_10, %c0_11] : memref<32x256xbf16, #tpu.memory_space<vmem>>, vector<32x256xbf16>
    %17 = vector.shape_cast %16 : vector<32x256xbf16> to vector<4x8x256xbf16>
    %c0_12 = arith.constant 0 : index
    %c0_13 = arith.constant 0 : index
    %18 = vector.load %arg24[%c0_12, %c0_13] : memref<32x256xbf16, #tpu.memory_space<vmem>>, vector<32x256xbf16>
    %19 = vector.shape_cast %18 : vector<32x256xbf16> to vector<4x8x256xbf16>
    %cst_14 = arith.constant dense<0.000000e+00> : vector<4x256x256xf32>
    %20 = tpu.matmul %17, %12, %cst_14 {dimension_numbers = #tpu.dot_dimension_numbers<[1], [1], [2], [2], [0, 0, 0, 2, 1, 2], [0], [0]>} : vector<4x8x256xbf16>, vector<4x8x256xbf16>, vector<4x256x256xf32> -> vector<4x256x256xf32>
    %cst_15 = arith.constant dense<0xFF800000> : vector<4x256xf32>
    %21 = vector.multi_reduction <maximumf>, %20, %cst_15 [1] : vector<4x256x256xf32> to vector<4x256xf32>
    %22 = vector.shape_cast %21 : vector<4x256xf32> to vector<4x1x256xf32>
    %23 = arith.maximumf %13, %22 : vector<4x1x256xf32>
    %24 = vector.broadcast %23 : vector<4x1x256xf32> to vector<4x256x256xf32>
    %25 = arith.subf %20, %24 : vector<4x256x256xf32>
    %26 = math.exp %25 : vector<4x256x256xf32>
    %27 = arith.subf %13, %23 : vector<4x1x256xf32>
    %28 = math.exp %27 : vector<4x1x256xf32>
    %29 = arith.mulf %28, %14 : vector<4x1x256xf32>
    %cst_16 = arith.constant dense<0.000000e+00> : vector<4x256xf32>
    %30 = vector.multi_reduction <add>, %26, %cst_16 [1] : vector<4x256x256xf32> to vector<4x256xf32>
    %31 = vector.shape_cast %30 : vector<4x256xf32> to vector<4x1x256xf32>
    %32 = arith.addf %29, %31 : vector<4x1x256xf32>
    %33 = arith.truncf %26 : vector<4x256x256xf32> to vector<4x256x256xbf16>
    %cst_17 = arith.constant dense<0.000000e+00> : vector<4x8x256xf32>
    %34 = tpu.matmul %19, %33, %cst_17 {dimension_numbers = #tpu.dot_dimension_numbers<[2], [1], [1], [2], [0, 0, 0, 1, 1, 2], [0], [0]>} : vector<4x8x256xbf16>, vector<4x256x256xbf16>, vector<4x8x256xf32> -> vector<4x8x256xf32>
    %35 = vector.broadcast %28 : vector<4x1x256xf32> to vector<4x8x256xf32>
    %36 = arith.mulf %15, %35 : vector<4x8x256xf32>
    %37 = arith.addf %36, %34 : vector<4x8x256xf32>
    %38 = tpu.reciprocal %32 {approx = true} : vector<4x1x256xf32> -> vector<4x1x256xf32>
    %39 = vector.broadcast %38 : vector<4x1x256xf32> to vector<4x8x256xf32>
    %40 = arith.mulf %37, %39 : vector<4x8x256xf32>
    %41 = vector.shape_cast %40 : vector<4x8x256xf32> to vector<32x256xf32>
    %c0_18 = arith.constant 0 : index
    %c0_19 = arith.constant 0 : index
    %42 = vector.load %arg10[%c0_18, %c0_19] : memref<32x32xbf16, #tpu.memory_space<vmem>>, vector<32x32xbf16>
    %43 = arith.truncf %41 : vector<32x256xf32> to vector<32x256xbf16>
    %cst_20 = arith.constant dense<0.000000e+00> : vector<32x256xf32>
    %44 = tpu.matmul %42, %43, %cst_20 {dimension_numbers = #tpu.dot_dimension_numbers<[1], [0], [0], [1], [0, 0, 1, 1], [], []>} : vector<32x32xbf16>, vector<32x256xbf16>, vector<32x256xf32> -> vector<32x256xf32>
    %c0_21 = arith.constant 0 : index
    %c0_22 = arith.constant 0 : index
    %45 = vector.load %arg11[%c0_21, %c0_22] : memref<32x1xf32, #tpu.memory_space<vmem>>, vector<32x1xf32>
    %46 = vector.broadcast %45 : vector<32x1xf32> to vector<32x256xf32>
    %47 = arith.addf %44, %46 : vector<32x256xf32>
    %cst_23 = arith.constant dense<0.000000e+00> : vector<256xf32>
    %48 = vector.multi_reduction <add>, %47, %cst_23 [0] : vector<32x256xf32> to vector<256xf32>
    %49 = vector.shape_cast %48 : vector<256xf32> to vector<1x256xf32>
    %cst_24 = arith.constant 3.200000e+01 : f32
    %50 = vector.broadcast %cst_24 : f32 to vector<1x256xf32>
    %51 = arith.divf %49, %50 : vector<1x256xf32>
    %52 = vector.broadcast %51 : vector<1x256xf32> to vector<32x256xf32>
    %53 = arith.subf %47, %52 : vector<32x256xf32>
    %54 = arith.mulf %53, %53 : vector<32x256xf32>
    %cst_25 = arith.constant dense<0.000000e+00> : vector<256xf32>
    %55 = vector.multi_reduction <add>, %54, %cst_25 [0] : vector<32x256xf32> to vector<256xf32>
    %56 = vector.shape_cast %55 : vector<256xf32> to vector<1x256xf32>
    %cst_26 = arith.constant 3.200000e+01 : f32
    %57 = vector.broadcast %cst_26 : f32 to vector<1x256xf32>
    %58 = arith.divf %56, %57 : vector<1x256xf32>
    %59 = vector.broadcast %51 : vector<1x256xf32> to vector<32x256xf32>
    %60 = arith.subf %47, %59 : vector<32x256xf32>
    %cst_27 = arith.constant 9.99999974E-6 : f32
    %61 = vector.broadcast %cst_27 : f32 to vector<1x256xf32>
    %62 = arith.addf %58, %61 : vector<1x256xf32>
    %63 = math.rsqrt %62 : vector<1x256xf32>
    %64 = vector.broadcast %63 : vector<1x256xf32> to vector<32x256xf32>
    %65 = arith.mulf %60, %64 : vector<32x256xf32>
    %c0_28 = arith.constant 0 : index
    %c0_29 = arith.constant 0 : index
    %66 = vector.load %arg12[%c0_28, %c0_29] : memref<32x1xf32, #tpu.memory_space<vmem>>, vector<32x1xf32>
    %67 = vector.broadcast %66 : vector<32x1xf32> to vector<32x256xf32>
    %68 = arith.mulf %65, %67 : vector<32x256xf32>
    %c0_30 = arith.constant 0 : index
    %c0_31 = arith.constant 0 : index
    %69 = vector.load %arg13[%c0_30, %c0_31] : memref<32x1xf32, #tpu.memory_space<vmem>>, vector<32x1xf32>
    %70 = vector.broadcast %69 : vector<32x1xf32> to vector<32x256xf32>
    %71 = arith.addf %68, %70 : vector<32x256xf32>
    %c0_32 = arith.constant 0 : index
    %c0_33 = arith.constant 0 : index
    %72 = vector.load %arg14[%c0_32, %c0_33] : memref<8x32xbf16, #tpu.memory_space<vmem>>, vector<8x32xbf16>
    %73 = arith.truncf %71 : vector<32x256xf32> to vector<32x256xbf16>
    %cst_34 = arith.constant dense<0.000000e+00> : vector<8x256xf32>
    %74 = tpu.matmul %72, %73, %cst_34 {dimension_numbers = #tpu.dot_dimension_numbers<[1], [0], [0], [1], [0, 0, 1, 1], [], []>} : vector<8x32xbf16>, vector<32x256xbf16>, vector<8x256xf32> -> vector<8x256xf32>
    %c0_35 = arith.constant 0 : index
    %c0_36 = arith.constant 0 : index
    %75 = vector.load %arg15[%c0_35, %c0_36] : memref<8x1xf32, #tpu.memory_space<vmem>>, vector<8x1xf32>
    %76 = vector.broadcast %75 : vector<8x1xf32> to vector<8x256xf32>
    %77 = arith.addf %74, %76 : vector<8x256xf32>
    %78 = arith.addf %77, %4 : vector<8x256xf32>
    %c0_37 = arith.constant 0 : index
    %c0_38 = arith.constant 0 : index
    %79 = vector.load %arg16[%c0_37, %c0_38] : memref<16x8xbf16, #tpu.memory_space<vmem>>, vector<16x8xbf16>
    %80 = arith.truncf %78 : vector<8x256xf32> to vector<8x256xbf16>
    %cst_39 = arith.constant dense<0.000000e+00> : vector<16x256xf32>
    %81 = tpu.matmul %79, %80, %cst_39 {dimension_numbers = #tpu.dot_dimension_numbers<[1], [0], [0], [1], [0, 0, 1, 1], [], []>} : vector<16x8xbf16>, vector<8x256xbf16>, vector<16x256xf32> -> vector<16x256xf32>
    %c0_40 = arith.constant 0 : index
    %c0_41 = arith.constant 0 : index
    %82 = vector.load %arg17[%c0_40, %c0_41] : memref<16x1xf32, #tpu.memory_space<vmem>>, vector<16x1xf32>
    %83 = vector.broadcast %82 : vector<16x1xf32> to vector<16x256xf32>
    %84 = arith.addf %81, %83 : vector<16x256xf32>
    %cst_42 = arith.constant 5.000000e-01 : f32
    %85 = vector.broadcast %cst_42 : f32 to vector<16x256xf32>
    %86 = arith.mulf %85, %84 : vector<16x256xf32>
    %cst_43 = arith.constant 0.707106769 : f32
    %87 = vector.broadcast %cst_43 : f32 to vector<16x256xf32>
    %88 = arith.mulf %84, %87 : vector<16x256xf32>
    %89 = math.erf %88 : vector<16x256xf32>
    %cst_44 = arith.constant 1.000000e+00 : f32
    %90 = vector.broadcast %cst_44 : f32 to vector<16x256xf32>
    %91 = arith.addf %90, %89 : vector<16x256xf32>
    %92 = arith.mulf %86, %91 : vector<16x256xf32>
    %c0_45 = arith.constant 0 : index
    %c0_46 = arith.constant 0 : index
    %93 = vector.load %arg18[%c0_45, %c0_46] : memref<8x16xbf16, #tpu.memory_space<vmem>>, vector<8x16xbf16>
    %94 = arith.truncf %92 : vector<16x256xf32> to vector<16x256xbf16>
    %cst_47 = arith.constant dense<0.000000e+00> : vector<8x256xf32>
    %95 = tpu.matmul %93, %94, %cst_47 {dimension_numbers = #tpu.dot_dimension_numbers<[1], [0], [0], [1], [0, 0, 1, 1], [], []>} : vector<8x16xbf16>, vector<16x256xbf16>, vector<8x256xf32> -> vector<8x256xf32>
    %c0_48 = arith.constant 0 : index
    %c0_49 = arith.constant 0 : index
    %96 = vector.load %arg19[%c0_48, %c0_49] : memref<8x1xf32, #tpu.memory_space<vmem>>, vector<8x1xf32>
    %97 = vector.broadcast %96 : vector<8x1xf32> to vector<8x256xf32>
    %98 = arith.addf %95, %97 : vector<8x256xf32>
    %cst_50 = arith.constant dense<0.000000e+00> : vector<256xf32>
    %99 = vector.multi_reduction <add>, %98, %cst_50 [0] : vector<8x256xf32> to vector<256xf32>
    %100 = vector.shape_cast %99 : vector<256xf32> to vector<1x256xf32>
    %cst_51 = arith.constant 8.000000e+00 : f32
    %101 = vector.broadcast %cst_51 : f32 to vector<1x256xf32>
    %102 = arith.divf %100, %101 : vector<1x256xf32>
    %103 = vector.broadcast %102 : vector<1x256xf32> to vector<8x256xf32>
    %104 = arith.subf %98, %103 : vector<8x256xf32>
    %105 = arith.mulf %104, %104 : vector<8x256xf32>
    %cst_52 = arith.constant dense<0.000000e+00> : vector<256xf32>
    %106 = vector.multi_reduction <add>, %105, %cst_52 [0] : vector<8x256xf32> to vector<256xf32>
    %107 = vector.shape_cast %106 : vector<256xf32> to vector<1x256xf32>
    %cst_53 = arith.constant 8.000000e+00 : f32
    %108 = vector.broadcast %cst_53 : f32 to vector<1x256xf32>
    %109 = arith.divf %107, %108 : vector<1x256xf32>
    %110 = vector.broadcast %102 : vector<1x256xf32> to vector<8x256xf32>
    %111 = arith.subf %98, %110 : vector<8x256xf32>
    %cst_54 = arith.constant 9.99999974E-6 : f32
    %112 = vector.broadcast %cst_54 : f32 to vector<1x256xf32>
    %113 = arith.addf %109, %112 : vector<1x256xf32>
    %114 = math.rsqrt %113 : vector<1x256xf32>
    %115 = vector.broadcast %114 : vector<1x256xf32> to vector<8x256xf32>
    %116 = arith.mulf %111, %115 : vector<8x256xf32>
    %c0_55 = arith.constant 0 : index
    %c0_56 = arith.constant 0 : index
    %117 = vector.load %arg20[%c0_55, %c0_56] : memref<8x1xf32, #tpu.memory_space<vmem>>, vector<8x1xf32>
    %118 = vector.broadcast %117 : vector<8x1xf32> to vector<8x256xf32>
    %119 = arith.mulf %116, %118 : vector<8x256xf32>
    %c0_57 = arith.constant 0 : index
    %c0_58 = arith.constant 0 : index
    %120 = vector.load %arg21[%c0_57, %c0_58] : memref<8x1xf32, #tpu.memory_space<vmem>>, vector<8x1xf32>
    %121 = vector.broadcast %120 : vector<8x1xf32> to vector<8x256xf32>
    %122 = arith.addf %119, %121 : vector<8x256xf32>
    %123 = arith.addf %122, %78 : vector<8x256xf32>
    %c0_59 = arith.constant 0 : index
    %c0_60 = arith.constant 0 : index
    %c0_61 = arith.constant 0 : index
    %124 = vector.load %arg22[%c0_59, %c0_60, %c0_61] : memref<1x8x256xf32, #tpu.memory_space<vmem>>, vector<1x8x256xf32>
    %125 = vector.shape_cast %124 : vector<1x8x256xf32> to vector<8x256xf32>
    %126 = vector.shape_cast %123 : vector<8x256xf32> to vector<1x8x256xf32>
    tpu.vector_store %arg22[%c0_59, %c0_60, %c0_61], %126 {strides = array<i32>} : memref<1x8x256xf32, #tpu.memory_space<vmem>>, vector<1x8x256xf32>,
    return
  }
  func.func @transform_0(%arg0: i32, %arg1: i32) -> (i32, i32, i32) {
    %c0_i32 = arith.constant 0 : i32
    %c0_i32_0 = arith.constant 0 : i32
    return %arg0, %c0_i32, %arg1 : i32, i32, i32
  }
  func.func @transform_1(%arg0: i32, %arg1: i32) -> (i32, i32, i32) {
    %c0_i32 = arith.constant 0 : i32
    %c0_i32_0 = arith.constant 0 : i32
    %c0_i32_1 = arith.constant 0 : i32
    return %arg0, %c0_i32, %c0_i32_0 : i32, i32, i32
  }
  func.func @transform_2(%arg0: i32, %arg1: i32) -> (i32, i32) {
    %c0_i32 = arith.constant 0 : i32
    %c0_i32_0 = arith.constant 0 : i32
    %c0_i32_1 = arith.constant 0 : i32
    return %c0_i32, %c0_i32_0 : i32, i32
  }
  func.func @transform_3(%arg0: i32, %arg1: i32) -> (i32, i32) {
    %c0_i32 = arith.constant 0 : i32
    %c0_i32_0 = arith.constant 0 : i32
    %c0_i32_1 = arith.constant 0 : i32
    return %c0_i32, %c0_i32_0 : i32, i32
  }
  func.func @transform_4(%arg0: i32, %arg1: i32) -> (i32, i32) {
    %c0_i32 = arith.constant 0 : i32
    %c0_i32_0 = arith.constant 0 : i32
    %c0_i32_1 = arith.constant 0 : i32
    return %c0_i32, %c0_i32_0 : i32, i32
  }
  func.func @transform_5(%arg0: i32, %arg1: i32) -> (i32, i32) {
    %c0_i32 = arith.constant 0 : i32
    %c0_i32_0 = arith.constant 0 : i32
    %c0_i32_1 = arith.constant 0 : i32
    return %c0_i32, %c0_i32_0 : i32, i32
  }
  func.func @transform_6(%arg0: i32, %arg1: i32) -> (i32, i32) {
    %c0_i32 = arith.constant 0 : i32
    %c0_i32_0 = arith.constant 0 : i32
    %c0_i32_1 = arith.constant 0 : i32
    return %c0_i32, %c0_i32_0 : i32, i32
  }
  func.func @transform_7(%arg0: i32, %arg1: i32) -> (i32, i32) {
    %c0_i32 = arith.constant 0 : i32
    %c0_i32_0 = arith.constant 0 : i32
    %c0_i32_1 = arith.constant 0 : i32
    return %c0_i32, %c0_i32_0 : i32, i32
  }
  func.func @transform_8(%arg0: i32, %arg1: i32) -> (i32, i32) {
    %c0_i32 = arith.constant 0 : i32
    %c0_i32_0 = arith.constant 0 : i32
    %c0_i32_1 = arith.constant 0 : i32
    return %c0_i32, %c0_i32_0 : i32, i32
  }
  func.func @transform_9(%arg0: i32, %arg1: i32) -> (i32, i32) {
    %c0_i32 = arith.constant 0 : i32
    %c0_i32_0 = arith.constant 0 : i32
    %c0_i32_1 = arith.constant 0 : i32
    return %c0_i32, %c0_i32_0 : i32, i32
  }
  func.func @transform_10(%arg0: i32, %arg1: i32) -> (i32, i32) {
    %c0_i32 = arith.constant 0 : i32
    %c0_i32_0 = arith.constant 0 : i32
    %c0_i32_1 = arith.constant 0 : i32
    return %c0_i32, %c0_i32_0 : i32, i32
  }
  func.func @transform_11(%arg0: i32, %arg1: i32) -> (i32, i32) {
    %c0_i32 = arith.constant 0 : i32
    %c0_i32_0 = arith.constant 0 : i32
    %c0_i32_1 = arith.constant 0 : i32
    return %c0_i32, %c0_i32_0 : i32, i32
  }
  func.func @transform_12(%arg0: i32, %arg1: i32) -> (i32, i32) {
    %c0_i32 = arith.constant 0 : i32
    %c0_i32_0 = arith.constant 0 : i32
    %c0_i32_1 = arith.constant 0 : i32
    return %c0_i32, %c0_i32_0 : i32, i32
  }
  func.func @transform_13(%arg0: i32, %arg1: i32) -> (i32, i32) {
    %c0_i32 = arith.constant 0 : i32
    %c0_i32_0 = arith.constant 0 : i32
    %c0_i32_1 = arith.constant 0 : i32
    return %c0_i32, %c0_i32_0 : i32, i32
  }
  func.func @transform_14(%arg0: i32, %arg1: i32) -> (i32, i32) {
    %c0_i32 = arith.constant 0 : i32
    %c0_i32_0 = arith.constant 0 : i32
    %c0_i32_1 = arith.constant 0 : i32
    return %c0_i32, %c0_i32_0 : i32, i32
  }
  func.func @transform_15(%arg0: i32, %arg1: i32) -> (i32, i32) {
    %c0_i32 = arith.constant 0 : i32
    %c0_i32_0 = arith.constant 0 : i32
    %c0_i32_1 = arith.constant 0 : i32
    return %c0_i32, %c0_i32_0 : i32, i32
  }
  func.func @transform_16(%arg0: i32, %arg1: i32) -> (i32, i32) {
    %c0_i32 = arith.constant 0 : i32
    %c0_i32_0 = arith.constant 0 : i32
    %c0_i32_1 = arith.constant 0 : i32
    return %c0_i32, %c0_i32_0 : i32, i32
  }
  func.func @transform_17(%arg0: i32, %arg1: i32) -> (i32, i32) {
    %c0_i32 = arith.constant 0 : i32
    %c0_i32_0 = arith.constant 0 : i32
    %c0_i32_1 = arith.constant 0 : i32
    return %c0_i32, %c0_i32_0 : i32, i32
  }
  func.func @transform_18(%arg0: i32, %arg1: i32) -> (i32, i32) {
    %c0_i32 = arith.constant 0 : i32
    %c0_i32_0 = arith.constant 0 : i32
    %c0_i32_1 = arith.constant 0 : i32
    return %c0_i32, %c0_i32_0 : i32, i32
  }
  func.func @transform_19(%arg0: i32, %arg1: i32) -> (i32, i32) {
    %c0_i32 = arith.constant 0 : i32
    %c0_i32_0 = arith.constant 0 : i32
    %c0_i32_1 = arith.constant 0 : i32
    return %c0_i32, %c0_i32_0 : i32, i32
  }
  func.func @transform_20(%arg0: i32, %arg1: i32) -> (i32, i32, i32) {
    %c0_i32 = arith.constant 0 : i32
    %c0_i32_0 = arith.constant 0 : i32
    return %arg0, %c0_i32, %arg1 : i32, i32, i32
  }
}

</mosaic_0001>

<bundles_post_ra>
// kernel: tpu_custom_call.1
= control target key start
LH: loop header
LB: loop body
LE: loop exit
PB: predicated region body
PF: predicated region fallthrough
CT: control target
= control target key end

     0   :  { %s9602_s0 = inlined_call_operand.vmem [shape: f32[2,8,256], index: 0, kind: input, shape index: {}]   ;;  %s9603_s1 = inlined_call_operand.vmem [shape: bf16[2,16,256], index: 1, kind: input, shape index: {}]   ;;  %s9604_s2 = inlined_call_operand.vmem [shape: bf16[32,8], index: 2, kind: input, shape index: {}]   ;;  %s9605_s3 = inlined_call_operand.vmem [shape: f32[32,1], index: 3, kind: input, shape index: {}]   ;;  %s9606_s4 = inlined_call_operand.vmem [shape: bf16[32,16], index: 4, kind: input, shape index: {}]   ;;  %s9607_s5 = inlined_call_operand.vmem [shape: f32[32,1], index: 5, kind: input, shape index: {}]   ;;  %s9608_s6 = inlined_call_operand.vmem [shape: bf16[32,16], index: 6, kind: input, shape index: {}]   ;;  %s9609_s7 = inlined_call_operand.vmem [shape: f32[32,1], index: 7, kind: input, shape index: {}]   ;;  %s9610_s8 = inlined_call_operand.vmem [shape: bf16[32,32], index: 8, kind: input, shape index: {}]   ;;  %s9611_s9 = inlined_call_operand.vmem [shape: f32[32,1], index: 9, kind: input, shape index: {}]   ;;  %s9612_s10 = inlined_call_operand.vmem [shape: f32[32,1], index: 10, kind: input, shape index: {}]   ;;  %s9613_s11 = inlined_call_operand.vmem [shape: f32[32,1], index: 11, kind: input, shape index: {}]   ;;  %s9614_s12 = inlined_call_operand.vmem [shape: bf16[8,32], index: 12, kind: input, shape index: {}]   ;;  %s9615_s13 = inlined_call_operand.vmem [shape: f32[8,1], index: 13, kind: input, shape index: {}]   ;;  %s9616_s14 = inlined_call_operand.vmem [shape: bf16[16,8], index: 14, kind: input, shape index: {}]   ;;  %s9617_s15 = inlined_call_operand.vmem [shape: f32[16,1], index: 15, kind: input, shape index: {}]   ;;  %s9618_s16 = inlined_call_operand.vmem [shape: bf16[8,16], index: 16, kind: input, shape index: {}]   ;;  %s9619_s17 = inlined_call_operand.vmem [shape: f32[8,1], index: 17, kind: input, shape index: {}]   ;;  %s9620_s18 = inlined_call_operand.vmem [shape: f32[8,1], index: 18, kind: input, shape index: {}]   ;;  %s9621_s19 = inlined_call_operand.vmem [shape: f32[8,1], index: 19, kind: input, shape index: {}]   ;;  %s9622_s20 = inlined_call_operand.hbm [shape: f32[2,8,256], index: 20, kind: output, shape index: {}]  }
   0x1   :  { %9920 = sst [smem:[#allocation107_spill]] %s9602_s0 }
   0x2   :  { %9921 = sst [smem:[#allocation108_spill]] %s9603_s1 }
   0x3   :  { %9922 = sst [smem:[#allocation109_spill]] %s9604_s2 }
   0x4   :  { %9923 = sst [smem:[#allocation110_spill]] %s9605_s3 }
   0x5   :  { %9924 = sst [smem:[#allocation111_spill]] %s9606_s4 }
   0x6   :  { %9925 = sst [smem:[#allocation112_spill]] %s9607_s5 }
   0x7   :  { %9926 = sst [smem:[#allocation113_spill]] %s9618_s16 }
   0x8   :  { %9927 = sst [smem:[#allocation114_spill]] %s9622_s20 }
   0x9   :  { %25 = vsyncpa [#allocation5], 0 }
   0xa   :  { %27 = vsyncpa [#allocation5 + $0x1], 0  ;;  %s6277_s1 = smov 0   ;;  %s6279_s22 = smov 0  }
   0xb   :  { %s6281_s23 = smov 0   ;;  %s6283_s24 = smov 0  }
   0xc   :  { %s6285_s2 = smov 0   ;;  %s6287_s25 = smov 0  }
   0xd LB: > { %9928 = sst [smem:[#allocation7_spill]] %s6147_s1  ;;  %s5235_s3 = sadd.s32 4294967295, %s6167_s25   ;;  %s6167_s25 = sphi %s6287_s25, %s33_s25   ;;  %s6163_s2 = sphi %s6285_s2, %s10578_s2   ;;  %s6159_s24 = sphi %s6283_s24, %s10577_s24   ;;  %s6155_s23 = sphi %s6281_s23, %s10576_s23   ;;  %s6151_s22 = sphi %s6279_s22, %s10575_s22   ;;  %s6147_s1 = sphi %s6277_s1, %s10574_s1  }
   0xe   : > { %9929 = sst [smem:[#allocation8_spill]] %s6151_s22  ;;  %s5236_s26 = sadd.s32 4294967294, %s6167_s25  }
   0xf   : > { %9930 = sst [smem:[#allocation9_spill]] %s6155_s23  ;;  %s45_s27 = sadd.s32 1, %s6163_s2 }
  0x10   : > { %9931 = sst [smem:[#allocation10_spill]] %s6163_s2  ;;  %s486_s28 = sadd.s32 1, %s6155_s23 }
  0x11   : > { %9932 = sst [smem:[#allocation11_spill]] %s6167_s25  ;;  %p47_p0 = scmp.ge.s32.totalorder %s45_s27, 2 }
  0x12   : > { %p496_p1 = scmp.ne.s32.totalorder %s6155_s23, %s6151_s22  ;;  %p497_p2 = scmp.eq.s32.totalorder %s5235_s3, 1 }
  0x13   : > { %p502_p3 = scmp.ne.s32.totalorder %s6151_s22, %s6147_s1  ;;  %s10580_s27 = smov (%p47_p0, %s45_s27), 0 }
  0x14   : > { %9933 = sst [smem:[#allocation12_spill]] %s10580_s27  ;;  %p6317_p4 = por %p497_p2, %p496_p1 }
  0x15   : > { %p503_p5 = scmp.eq.s32.totalorder %s5236_s26, 1  ;;  %s481_s29 = ssub.s32 %s6163_s2, %s10580_s27 }
  0x16   : > { %s9934_s4 = scalar_select %p6317_p4, 1, 0 }
  0x17   : > { %p5239_p6 = scmp.ge.s32.totalorder %s6167_s25, 1  ;;  %p484_p7 = scmp.eq.s32.totalorder %s481_s29, 0 }
  0x18   : > { %9935 = sst [smem:[#allocation13_spill]] %s9934_s4  ;;  %p6324_p8 = por %p503_p5, %p502_p3 }
  0x19   : > { %p596_p9 = scmp.lt.s32.totalorder %s6167_s25, 3 }
  0x1a   : > { %s9936_s30 = scalar_select %p6324_p8, 1, 0 }
  0x1b   : > { %s6330_s0 = scalar_select %p484_p7, %s6155_s23, %s486_s28  }
  0x1c   : > { %9937 = sst [smem:[#allocation14_spill]] %s9936_s30  ;;  %p597_p10 = pnand %p5239_p6, %p596_p9 }
  0x1d   : > { %9938 = sst [smem:[#allocation15_spill]] %s6330_s0 }
  0x1e   : > { %600 = sbr.rel (%p597_p10) target bundleno = 2298 (0x8fa), region = 100 }
  0x23   : > { %s9939_s5 = sld [smem:[#allocation112_spill]]  ;;  %p664_p11 = scmp.lt.s32.totalorder %s6159_s24, 1  ;;  %v6169_v1 = vmov 0   ;;  %vm926_vm0 = vcmask 1043456   ;;  %vm734_vm1 = vcmask 130048   ;;  %vm919_vm2 = vcmask 64512  }
  0x24   : > { %5520 = vset.pattern.permute.xlu0 %v6169_v1  ;;  %5521 = vset.pattern.permute.xlu1 %v6169_v1  ;;  %s9940_s21 = sld [smem:[#allocation108_spill]]  ;;  %vm4525_vm3 = vcmask 261120  }
  0x25   : > { %s665_s26 = scalar_select %p664_p11, %s6159_s24, 1 }
  0x26   : > { %s9941_s1 = sld [smem:[#allocation110_spill]] }
  0x27   : > { %s5448_s28 = sshll.u32 %s665_s26, 4  ;;  %s9943_s22 = sld [smem:[#allocation107_spill]] }
  0x28   : > { %s9944_s23 = sld [smem:[#allocation111_spill]] }
  0x29   : > { %v690_v0 = vld [vmem:[%s9939_s5] sm:$0xff]  ;;  %v691_v2 = vld [vmem:[%s9939_s5 + $0x8] sm:$0xff]  ;;  %v692_v18 = vld [vmem:[%s9939_s5 + $0x10] sm:$0xff]  ;;  %s10568_s25 = sld [smem:[#allocation8_spill]] }
  0x2a   : > { %696 = vperm.xlu0 %5520, %v690_v0   ;;  %701 = vperm.xlu1 %5521, %v691_v2   ;;  %s677_s3 = scalar_lea.vmem %s9940_s21, %s5448_s28  ;;  %v693_v20 = vld [vmem:[%s9939_s5 + $0x18] sm:$0xff]  ;;  %s10570_s27 = sld [smem:[#allocation114_spill]] }
  0x2b   : > { %v5255_v4 = vld [vmem:[%s677_s3] sm:$0xf]  ;;  %v5451_v5 = vld [vmem:[%s677_s3 + $0x4] sm:$0xf0]  ;;  %v5450_v6 = vld [vmem:[%s677_s3 + $0x4] sm:$0xf] }
  0x2c   : > { %s9942_s20 = smov %s9941_s1  ;;  %v885_v3 = vld [vmem:[%s9941_s1] sm:$0xff]  ;;  %v5256_v7 = vor.u32 %v5451_v5, %v5255_v4  ;;  %v5257_v8 = vld [vmem:[%s677_s3 + $0x8] sm:$0xf0] }
  0x2d   : > { %s6351_s16 = scalar_lea.vmem %s9943_s22, %s5448_s28  ;;  %v5260_v11 = vor.u32 %v5450_v6, %v5257_v8  ;;  %v886_v17 = vld [vmem:[%s9942_s20 + $0x8] sm:$0xff]  ;;  %v887_v19 = vld [vmem:[%s9942_s20 + $0x10] sm:$0xff]  ;;  %v888_v23 = vld [vmem:[%s9942_s20 + $0x18] sm:$0xff]  ;;  %s10567_s22 = sld [smem:[#allocation113_spill]] }
  0x2e   : > { %v877_v9 = vld [vmem:[%s6351_s16] sm:$0xff]  ;;  %v878_v10 = vld [vmem:[%s6351_s16 + $0x8] sm:$0xff]  ;;  %s9945_s30 = smov %s9944_s23  ;;  %748 = vmatpush.bf16.msra.mxu0 %v5256_v7  ;;  %830 = vmatpush.bf16.msra.mxu2 %v5256_v7  ;;  %s5461_s28 = sshll.u32 %s6159_s24, 4 }
  0x2f   : > { %v5452_v12 = vld [vmem:[%s9944_s23] sm:$0xff]  ;;  %v883_v13 = vpack.c.bf16 %v877_v9, %v877_v9  ;;  %v884_v14 = vpack.c.bf16 %v878_v10, %v878_v10  ;;  %767 = vmatpush.bf16.msra.mxu1 %v5260_v11  ;;  %849 = vmatpush.bf16.msra.mxu3 %v5260_v11  ;;  %v5453_v21 = vld [vmem:[%s9945_s30 + $0x8] sm:$0xff]  ;;  %s9946_s23 = sld [smem:[#allocation109_spill]]  ;;  %s660_s0 = sand.u32 1, %s10568_s25  }
  0x30   : > { %s5240_s26 = sshll.u32 %s660_s0, 4  ;;  %s6109_s2 = scalar_lea.hbm %s10570_s27, 32 }
  0x31   : > { %v928_v15 = vsel %vm926_vm0, %v883_v13, 0  ;;  %v931_v16 = vsel %vm926_vm0, %v884_v14, 0  ;;  %5261 = vmatmul.msk.bf16.vlgmr.msra.gmra.mxu0 %vm734_vm1, %v5452_v12  ;;  %s662_s29 = scalar_lea.vmem [#allocation4], %s5240_s26 }
  0x32   : > { %891 = vperm.xlu0 %5520, %v885_v3   ;;  %940 = vmatpush.bf16.msrb.mxu0 %v928_v15 }
  0x33   : > { %959 = vmatpush.bf16.msrb.mxu1 %v931_v16  ;;  %896 = vperm.xlu1 %5521, %v886_v17  }
  0x34   : > { %5263 = vmatmul.msk.bf16.vlgmr.msra.gmra.mxu1 %vm734_vm1, %v5452_v12 }
  0x35   : > { %s9947_s4 = smov %s9946_s23  ;;  %v5456_v22 = vld [vmem:[%s9946_s23] sm:$0xff]  ;;  %s5139_s23 = scalar_lea.hbm %s10570_s27, %s5461_s28 }
  0x36   : > { %v5457_v24 = vld [vmem:[%s9947_s4 + $0x8] sm:$0xff]  ;;  %s5143_s1 = sshll.u32 %s5139_s23, 4  ;;  %s5144_s1 = int_to_ptr.hbm [resolvable:$true] %s5143_s1 }
  0x37   : > { %s6103_s24 = sshra.s32 %s5144_s1, 4  ;;  %s6104_s24 = int_to_ptr.hbm [resolvable:$true] %s6103_s24 }
  0x38   : > { %s6105_s26 = scalar_lea.hbm %s6104_s24, 16  ;;  %p6110_p1 = scmp.lt.s32.totalorder %s6104_s24, %s10570_s27 }
  0x39   : > { %p6106_p12 = scmp.ne.s32.totalorder %s6104_s24, %s6105_s26  ;;  %p6111_p2 = scmp.lt.s32.totalorder %s6109_s2, %s6105_s26 }
  0x3a   : > { %706 = vperm.xlu0 %5520, %v692_v18  }
  0x3b   : > { %901 = vperm.xlu1 %5521, %v887_v19   ;;  %p6107_p13 = pnand %p6106_p12, %p6317_p4  ;;  %p6112_p3 = por %p6111_p2, %p6110_p1 }
  0x3d   : > { %p6108_p0 = pneg %p6107_p13 }
  0x3f   : > { %p6113_p5 = pnand %p6112_p3, %p6108_p0 }
  0x41   : > { %5262 = vmatmul.msk.bf16.gmra.mxu0 %vm734_vm1, %v5453_v21 }
  0x42   : > { %711 = vperm.xlu0 %5520, %v693_v20  }
  0x43   : > { %906 = vperm.xlu1 %5521, %v888_v23  }
  0x44   : > { %5264 = vmatmul.msk.bf16.gmra.mxu1 %vm734_vm1, %v5453_v21 }
  0x51   : > { %5285 = vmatmul.msk.bf16.vlgmr.msrb.gmra.mxu0 %vm919_vm2, %v5456_v22 }
  0x54   : > { %5287 = vmatmul.msk.bf16.vlgmr.msrb.gmra.mxu1 %vm919_vm2, %v5456_v22 }
  0x61   : > { %5286 = vmatmul.msk.bf16.gmra.mxu0 %vm919_vm2, %v5457_v24 }
  0x64   : > { %5288 = vmatmul.msk.bf16.gmra.mxu1 %vm919_vm2, %v5457_v24 }
  0x9c   : > { %v697_v25 = vpop.permute.xlu0 %696  ;;  %v702_v6 = vpop.permute.xlu1 %701 }
  0xa4   : > { %v892_v30 = vpop.permute.xlu0 %891 }
  0xa5   : > { %v897_v7 = vpop.permute.xlu1 %896 }
  0xac   : > { %v707_v38 = vpop.permute.xlu0 %706 }
  0xad   : > { %v902_v10 = vpop.permute.xlu1 %901 }
  0xae   : > { %v750_v26 = vpop.f32.mrf.mxu0 }
  0xaf   : > { %v751_v27 = vadd.f32 %v750_v26, %v697_v25 }
  0xb1   : > { %v769_v28 = vpop.f32.mrf.mxu1 }
  0xb2   : > { %v770_v29 = vadd.f32 %v769_v28, %v697_v25 }
  0xb4   : > { %v861_v31 = vpack.c.bf16 %v770_v29, %v751_v27  ;;  %v712_v46 = vpop.permute.xlu0 %711 }
  0xb5   : > { %v907_v19 = vpop.permute.xlu1 %906 }
  0xb6   : > { %v984_v32 = vunpack.c.l.b16 %v861_v31  ;;  %v985_v33 = vunpack.c.h.b16 %v861_v31  ;;  %v6392_v34 = vpop.f32.mrf.mxu0 }
  0xb8   : > { %v986_v35 = vpack.c.b16 %v984_v32, %v984_v32  ;;  %v987_v36 = vpack.c.b16 %v985_v33, %v985_v33 }
  0xb9   : > { %v6394_v37 = vpop.f32.mrf.mxu1 }
  0xba   : > { %990 = vxpose.binary.xlu2.c.b16.start.end [1/2] (short) %v987_v36, %v986_v35, 128 }
  0xbe   : > { %v755_v39 = vpop.f32.mrf.mxu0 }
  0xbf   : > { %v756_v40 = vadd.f32 %v755_v39, %v707_v38 }
  0xc1   : > { %v774_v41 = vpop.f32.mrf.mxu1 }
  0xc2   : > { %v775_v42 = vadd.f32 %v774_v41, %v707_v38  ;;  %v5454_v41 = vld [vmem:[%s9608_s6] sm:$0xff] }
  0xc3   : > { %5273 = vmatmul.msk.bf16.vlgmr.msra.gmra.mxu2 %vm734_vm1, %v5454_v41  ;;  %5275 = vmatmul.msk.bf16.vlgmr.msra.gmra.mxu3 %vm734_vm1, %v5454_v41 }
  0xc4   : > { %v863_v43 = vpack.c.bf16 %v775_v42, %v756_v40 }
  0xc6   : > { %v1520_v44 = vunpack.c.l.b16 %v863_v43  ;;  %v1521_v45 = vunpack.c.h.b16 %v863_v43  ;;  %v757_v49 = vpop.f32.mrf.mxu0 }
  0xc7   : > { %v758_v50 = vadd.f32 %v757_v49, %v712_v46 }
  0xc8   : > { %v1522_v47 = vpack.c.b16 %v1520_v44, %v1520_v44  ;;  %v1523_v48 = vpack.c.b16 %v1521_v45, %v1521_v45 }
  0xc9   : > { %v776_v51 = vpop.f32.mrf.mxu1 }
  0xca   : > { %v777_v52 = vadd.f32 %v776_v51, %v712_v46  ;;  %1526 = vxpose.binary.xlu0.c.b16.start.end [1/2] (short) %v1523_v48, %v1522_v47, 128  ;;  %v5455_v46 = vld [vmem:[%s9608_s6 + $0x8] sm:$0xff]  ;;  %v753_v47 = vadd.f32 %v6392_v34, %v702_v6  ;;  %v772_v48 = vadd.f32 %v6394_v37, %v702_v6  ;;  %v783_v6 = vld [vmem:[%s9609_s7] sm:$0xff] }
  0xcc   : > { %v864_v53 = vpack.c.bf16 %v777_v52, %v758_v50  ;;  %v862_v49 = vpack.c.bf16 %v772_v48, %v753_v47  ;;  %v4774_v48 = vld [vmem:[%s9617_s15 + $0x8] sm:$0xff] }
  0xce   : > { %v1788_v54 = vunpack.c.l.b16 %v864_v53  ;;  %v1789_v55 = vunpack.c.h.b16 %v864_v53  ;;  %v942_v58 = vpop.f32.mrf.mxu0  ;;  %v1252_v50 = vunpack.c.l.b16 %v862_v49  ;;  %v1253_v51 = vunpack.c.h.b16 %v862_v49 }
  0xcf   : > { %v943_v59 = vadd.f32 %v942_v58, %v892_v30 }
  0xd0   : > { %v1790_v56 = vpack.c.b16 %v1788_v54, %v1788_v54  ;;  %v1791_v57 = vpack.c.b16 %v1789_v55, %v1789_v55  ;;  %v1254_v52 = vpack.c.b16 %v1252_v50, %v1252_v50  ;;  %v1255_v53 = vpack.c.b16 %v1253_v51, %v1253_v51 }
  0xd1   : > { %v961_v60 = vpop.f32.mrf.mxu1 }
  0xd2   : > { %v962_v61 = vadd.f32 %v961_v60, %v892_v30  ;;  %1794 = vxpose.binary.xlu1.c.b16.start.end [1/2] (short) %v1791_v57, %v1790_v56, 128 }
  0xd3   : > { %5274 = vmatmul.msk.bf16.gmra.mxu2 %vm734_vm1, %v5455_v46  ;;  %5276 = vmatmul.msk.bf16.gmra.mxu3 %vm734_vm1, %v5455_v46  ;;  %v5006_v46 = vld [vmem:[%s9619_s17] sm:$0xff] }
  0xd4   : > { %v971_v62 = vpack.c.bf16 %v962_v61, %v943_v59 }
  0xd6   : > { %v1015_v63 = vunpack.c.l.b16 %v971_v62  ;;  %v1016_v0 = vunpack.c.h.b16 %v971_v62  ;;  %v944_v8 = vpop.f32.mrf.mxu0 }
  0xd7   : > { %v945_v15 = vadd.f32 %v944_v8, %v897_v7 }
  0xd8   : > { %v1017_v2 = vpack.c.b16 %v1015_v63, %v1015_v63  ;;  %v1018_v3 = vpack.c.b16 %v1016_v0, %v1016_v0  ;;  %v784_v0 = vld [vmem:[%s9609_s7 + $0x8] sm:$0xff] }
  0xd9   : > { %v963_v9 = vpop.f32.mrf.mxu1 }
  0xda   : > { %v1068_v4 = vsel %vm926_vm0, %v1017_v2, 0  ;;  %v1071_v5 = vsel %vm926_vm0, %v1018_v3, 0  ;;  %v964_v16 = vadd.f32 %v963_v9, %v897_v7  ;;  %v4491_v9 = vld [vmem:[%s9611_s9] sm:$0xff] }
  0xdb   : > { %1080 = vmatpush.bf16.msrb.mxu2 %v1068_v4  ;;  %1169 = vmatpush.bf16.msrb.mxu3 %v1071_v5  ;;  %v786_v4 = vld [vmem:[%s9609_s7 + $0x18] sm:$0xff] }
  0xdc   : > { %v972_v18 = vpack.c.bf16 %v964_v16, %v945_v15 }
  0xde   : > { %v947_v11 = vpop.f32.mrf.mxu0  ;;  %v1283_v26 = vunpack.c.l.b16 %v972_v18  ;;  %v1284_v27 = vunpack.c.h.b16 %v972_v18 }
  0xdf   : > { %v948_v13 = vadd.f32 %v947_v11, %v902_v10  ;;  %v4494_v11 = vld [vmem:[%s9611_s9 + $0x18] sm:$0xff] }
  0xe0   : > { %v1285_v33 = vpack.c.b16 %v1283_v26, %v1283_v26  ;;  %v1286_v35 = vpack.c.b16 %v1284_v27, %v1284_v27  ;;  %v4664_v27 = vld [vmem:[%s9612_s10 + $0x8] sm:$0xff] }
  0xe1   : > { %v966_v12 = vpop.f32.mrf.mxu1 }
  0xe2   : > { %v967_v14 = vadd.f32 %v966_v12, %v902_v10  ;;  %v1336_v39 = vsel %vm926_vm0, %v1285_v33, 0  ;;  %v1339_v40 = vsel %vm926_vm0, %v1286_v35, 0 }
  0xe3   : > { %1348 = vmatpush.bf16.msra.mxu0 %v1336_v39  ;;  %1437 = vmatpush.bf16.msra.mxu1 %v1339_v40  ;;  %v4695_v39 = vld [vmem:[%s9613_s11] sm:$0xff] }
  0xe4   : > { %v973_v17 = vpack.c.bf16 %v967_v14, %v948_v13  ;;  %v4493_v13 = vld [vmem:[%s9611_s9 + $0x10] sm:$0xff]  ;;  %v4773_v40 = vld [vmem:[%s9617_s15] sm:$0xff] }
  0xe6   : > { %v949_v20 = vpop.f32.mrf.mxu0  ;;  %v1551_v22 = vunpack.c.l.b16 %v973_v17  ;;  %v1552_v23 = vunpack.c.h.b16 %v973_v17  ;;  %v4666_v17 = vld [vmem:[%s9612_s10 + $0x18] sm:$0xff] }
  0xe7   : > { %v950_v24 = vadd.f32 %v949_v20, %v907_v19 }
  0xe8   : > { %v1553_v29 = vpack.c.b16 %v1551_v22, %v1551_v22  ;;  %v1554_v30 = vpack.c.b16 %v1552_v23, %v1552_v23  ;;  %v4698_v22 = vld [vmem:[%s9613_s11 + $0x18] sm:$0xff] }
  0xe9   : > { %v968_v21 = vpop.f32.mrf.mxu1 }
  0xea   : > { %v969_v25 = vadd.f32 %v968_v21, %v907_v19  ;;  %v1604_v42 = vsel %vm926_vm0, %v1553_v29, 0  ;;  %v1607_v43 = vsel %vm926_vm0, %v1554_v30, 0  ;;  %v4665_v19 = vld [vmem:[%s9612_s10 + $0x10] sm:$0xff] }
  0xeb   : > { %1616 = vmatpush.bf16.msra.mxu2 %v1604_v42  ;;  %1705 = vmatpush.bf16.msra.mxu3 %v1607_v43  ;;  %v4732_v43 = vld [vmem:[%s9615_s13] sm:$0xff] }
  0xec   : > { %v974_v28 = vpack.c.bf16 %v969_v25, %v950_v24  ;;  %v4697_v25 = vld [vmem:[%s9613_s11 + $0x10] sm:$0xff] }
  0xee   : > { %v1819_v31 = vunpack.c.l.b16 %v974_v28  ;;  %v1820_v32 = vunpack.c.h.b16 %v974_v28 }
  0xf0   : > { %v1821_v36 = vpack.c.b16 %v1819_v31, %v1819_v31  ;;  %v1822_v38 = vpack.c.b16 %v1820_v32, %v1820_v32  ;;  %v4663_v31 = vld [vmem:[%s9612_s10] sm:$0xff]  ;;  %v4696_v32 = vld [vmem:[%s9613_s11 + $0x8] sm:$0xff] }
  0xf2   : > { %v1872_v44 = vsel %vm926_vm0, %v1821_v36, 0  ;;  %v1875_v45 = vsel %vm926_vm0, %v1822_v38, 0 }
  0xf3   : > { %1884 = vmatpush.bf16.msrb.mxu0 %v1872_v44  ;;  %1973 = vmatpush.bf16.msrb.mxu1 %v1875_v45 }
 0x13a   : > { %1258 = vxpose.binary.xlu2.c.b16.start.end [1/2] (short) %v1255_v53, %v1254_v52, 128  ;;  %v5105_v53 = vld [vmem:[%s9620_s18] sm:$0xff] }
 0x146   : > { %v6476_v14 = vpop.f32.mrf.mxu2  ;;  %v6480_v16 = vpop.f32.mrf.mxu3 }
 0x147   : > { %9954 = vst [vmem:[#allocation22_spill] sm:$0xff] %v6476_v14 }
 0x148   : > { %9956 = vst [vmem:[#allocation24_spill] sm:$0xff] %v6480_v16 }
 0x14e   : > { %v6492_v21 = vpop.f32.mrf.mxu2  ;;  %v6497_v23 = vpop.f32.mrf.mxu3 }
 0x14f   : > { %9958 = vst [vmem:[#allocation26_spill] sm:$0xff] %v6492_v21 }
 0x150   : > { %9959 = vst [vmem:[#allocation27_spill] sm:$0xff] %v6497_v23 }
 0x156   : > { %v6509_v28 = vpop.f32.mrf.mxu2  ;;  %v6511_v30 = vpop.f32.mrf.mxu3 }
 0x157   : > { %9961 = vst [vmem:[#allocation29_spill] sm:$0xff] %v6509_v28 }
 0x158   : > { %9962 = vst [vmem:[#allocation30_spill] sm:$0xff] %v6511_v30 }
 0x15b   : > { %v998_v54 = vpop.trf.xlu2 }
 0x15c   : > { %5289 = vmatmul.msk.bf16.vlgmr.msrb.gmra.mxu2 %vm919_vm2, %v998_v54  ;;  %5305 = vmatmul.msk.bf16.vlgmr.msrb.gmra.mxu3 %vm919_vm2, %v998_v54 }
 0x15e   : > { %v839_v36 = vpop.f32.mrf.mxu2  ;;  %v858_v38 = vpop.f32.mrf.mxu3 }
 0x163   : > { %v6418_v55 = vpop.trf.xlu2 }
 0x16b   : > { %v1000_v56 = vpop.trf.xlu2 }
 0x16c   : > { %5290 = vmatmul.msk.bf16.gmra.mxu2 %vm919_vm2, %v1000_v56  ;;  %5306 = vmatmul.msk.bf16.gmra.mxu3 %vm919_vm2, %v1000_v56 }
 0x173   : > { %v6422_v34 = vpop.trf.xlu2 }
 0x17b   : > { %v1002_v37 = vpop.trf.xlu2 }
 0x17c   : > { %5291 = vmatmul.msk.bf16.gmra.mxu2 %vm919_vm2, %v1002_v37  ;;  %5307 = vmatmul.msk.bf16.gmra.mxu3 %vm919_vm2, %v1002_v37 }
 0x17e   : > { %v6426_v57 = vpop.trf.xlu1 }
 0x183   : > { %v6428_v58 = vpop.trf.xlu2 }
 0x186   : > { %v6430_v59 = vpop.trf.xlu1 }
 0x187   : > { %9948 = vst [vmem:[#allocation16_spill] sm:$0xff] %v6430_v59 }
 0x18b   : > { %v1004_v60 = vpop.trf.xlu2 }
 0x18c   : > { %5292 = vmatmul.msk.bf16.gmra.mxu2 %vm919_vm2, %v1004_v60  ;;  %5308 = vmatmul.msk.bf16.gmra.mxu3 %vm919_vm2, %v1004_v60 }
 0x18e   : > { %v6434_v61 = vpop.trf.xlu1 }
 0x18f   : > { %9949 = vst [vmem:[#allocation17_spill] sm:$0xff] %v6434_v61 }
 0x193   : > { %v6436_v62 = vpop.trf.xlu2 }
 0x196   : > { %v6438_v63 = vpop.trf.xlu1 }
 0x197   : > { %9950 = vst [vmem:[#allocation18_spill] sm:$0xff] %v6438_v63 }
 0x19b   : > { %v1006_v2 = vpop.trf.xlu2 }
 0x19c   : > { %794 = vperm.xlu1 %5521, %v784_v0   ;;  %5293 = vmatmul.msk.bf16.gmra.mxu2 %vm919_vm2, %v1006_v2 }
 0x19d   : > { %5309 = vmatmul.msk.bf16.gmra.mxu3 %vm919_vm2, %v1006_v2  ;;  %5522 = vset.pattern.permute.xlu2 %v6169_v1  ;;  %v4492_v1 = vld [vmem:[%s9611_s9 + $0x8] sm:$0xff] }
 0x19e   : > { %v6446_v3 = vpop.trf.xlu1 }
 0x19f   : > { %9951 = vst [vmem:[#allocation19_spill] sm:$0xff] %v6446_v3 }
 0x1a3   : > { %v6451_v5 = vpop.trf.xlu2 }
 0x1a4   : > { %804 = vperm.xlu1 %5521, %v786_v4  }
 0x1a6   : > { %v6456_v7 = vpop.trf.xlu1 }
 0x1a7   : > { %9952 = vst [vmem:[#allocation20_spill] sm:$0xff] %v6456_v7 }
 0x1a8   : > { %789 = vperm.xlu0 %5520, %v783_v6  }
 0x1ab   : > { %v1008_v8 = vpop.trf.xlu2 }
 0x1ac   : > { %4502 = vperm.xlu1 %5521, %v4492_v1   ;;  %5294 = vmatmul.msk.bf16.gmra.mxu2 %vm919_vm2, %v1008_v8 }
 0x1ad   : > { %5310 = vmatmul.msk.bf16.gmra.mxu3 %vm919_vm2, %v1008_v8 }
 0x1ae   : > { %v6466_v10 = vpop.trf.xlu1 }
 0x1af   : > { %9953 = vst [vmem:[#allocation21_spill] sm:$0xff] %v6466_v10 }
 0x1b0   : > { %4497 = vperm.xlu0 %5520, %v4491_v9  }
 0x1b3   : > { %v6471_v12 = vpop.trf.xlu2 }
 0x1b4   : > { %4512 = vperm.xlu1 %5521, %v4494_v11  }
 0x1b6   : > { %v6478_v15 = vpop.trf.xlu1 }
 0x1b7   : > { %9955 = vst [vmem:[#allocation23_spill] sm:$0xff] %v6478_v15 }
 0x1b8   : > { %4507 = vperm.xlu0 %5520, %v4493_v13  }
 0x1bb   : > { %v1010_v18 = vpop.trf.xlu2 }
 0x1bc   : > { %4684 = vperm.xlu1 %5521, %v4666_v17   ;;  %5295 = vmatmul.msk.bf16.gmra.mxu2 %vm919_vm2, %v1010_v18 }
 0x1bd   : > { %5311 = vmatmul.msk.bf16.gmra.mxu3 %vm919_vm2, %v1010_v18 }
 0x1be   : > { %v6490_v20 = vpop.trf.xlu1 }
 0x1bf   : > { %9957 = vst [vmem:[#allocation25_spill] sm:$0xff] %v6490_v20 }
 0x1c0   : > { %4679 = vperm.xlu0 %5520, %v4665_v19   ;;  %v785_v19 = vld [vmem:[%s9609_s7 + $0x10] sm:$0xff] }
 0x1c3   : > { %v6499_v24 = vpop.trf.xlu2 }
 0x1c4   : > { %4716 = vperm.xlu1 %5521, %v4698_v22  }
 0x1c6   : > { %v6504_v26 = vpop.trf.xlu1 }
 0x1c7   : > { %9960 = vst [vmem:[#allocation28_spill] sm:$0xff] %v6504_v26 }
 0x1c8   : > { %4711 = vperm.xlu0 %5520, %v4697_v25  }
 0x1cb   : > { %v1012_v29 = vpop.trf.xlu2 }
 0x1cc   : > { %4674 = vperm.xlu1 %5521, %v4664_v27   ;;  %5296 = vmatmul.msk.bf16.gmra.mxu2 %vm919_vm2, %v1012_v29 }
 0x1cd   : > { %5312 = vmatmul.msk.bf16.gmra.mxu3 %vm919_vm2, %v1012_v29 }
 0x1ce   : > { %v6521_v33 = vpop.trf.xlu1 }
 0x1cf   : > { %9963 = vst [vmem:[#allocation31_spill] sm:$0xff] %v6521_v33 }
 0x1d0   : > { %4669 = vperm.xlu0 %5520, %v4663_v31  }
 0x1d3   : > { %v6523_v35 = vpop.trf.xlu2 }
 0x1d4   : > { %4706 = vperm.xlu1 %5521, %v4696_v32  }
 0x1d6   : > { %v6533_v42 = vpop.trf.xlu1 }
 0x1d7   : > { %9964 = vst [vmem:[#allocation32_spill] sm:$0xff] %v6533_v42 }
 0x1d8   : > { %4701 = vperm.xlu0 %5520, %v4695_v39  }
 0x1db   : > { %v1266_v41 = vpop.trf.xlu2 }
 0x1dc   : > { %4777 = vperm.xlu1 %5521, %v4773_v40   ;;  %5297 = vmatmul.msk.bf16.gmra.mxu2 %vm919_vm2, %v6418_v55 }
 0x1dd   : > { %5313 = vmatmul.msk.bf16.gmra.mxu3 %vm919_vm2, %v6418_v55  ;;  %5321 = vmatmul.msk.bf16.vlgmr.msra.gmra.mxu0 %vm919_vm2, %v1266_v41 }
 0x1de   : > { %5337 = vmatmul.msk.bf16.vlgmr.msra.gmra.mxu1 %vm919_vm2, %v1266_v41  ;;  %v6554_v49 = vpop.trf.xlu1 }
 0x1df   : > { %v6542_v44 = vpop.f32.mrf.mxu2  ;;  %v6544_v45 = vpop.f32.mrf.mxu3  ;;  %9967 = vst [vmem:[#allocation35_spill] sm:$0xff] %v6554_v49 }
 0x1e0   : > { %9965 = vst [vmem:[#allocation33_spill] sm:$0xff] %v6542_v44  ;;  %4735 = vperm.xlu0 %5520, %v4732_v43  }
 0x1e1   : > { %9966 = vst [vmem:[#allocation34_spill] sm:$0xff] %v6544_v45 }
 0x1e3   : > { %v6549_v47 = vpop.trf.xlu2 }
 0x1e4   : > { %5009 = vperm.xlu1 %5521, %v5006_v46  }
 0x1e6   : > { %v6573_v56 = vpop.trf.xlu1 }
 0x1e7   : > { %v6556_v50 = vpop.f32.mrf.mxu2  ;;  %v6558_v51 = vpop.f32.mrf.mxu3  ;;  %9971 = vst [vmem:[#allocation39_spill] sm:$0xff] %v6573_v56 }
 0x1e8   : > { %9968 = vst [vmem:[#allocation36_spill] sm:$0xff] %v6556_v50  ;;  %4782 = vperm.xlu0 %5520, %v4774_v48  }
 0x1e9   : > { %9969 = vst [vmem:[#allocation37_spill] sm:$0xff] %v6558_v51 }
 0x1eb   : > { %v1268_v52 = vpop.trf.xlu2 }
 0x1ec   : > { %5298 = vmatmul.msk.bf16.gmra.mxu2 %vm919_vm2, %v6422_v34 }
 0x1ed   : > { %5314 = vmatmul.msk.bf16.gmra.mxu3 %vm919_vm2, %v6422_v34  ;;  %5322 = vmatmul.msk.bf16.gmra.mxu0 %vm919_vm2, %v1268_v52 }
 0x1ee   : > { %5338 = vmatmul.msk.bf16.gmra.mxu1 %vm919_vm2, %v1268_v52  ;;  %v6581_v0 = vpop.trf.xlu1 }
 0x1ef   : > { %v6569_v54 = vpop.f32.mrf.mxu2  ;;  %v6571_v55 = vpop.f32.mrf.mxu3  ;;  %9972 = vst [vmem:[#allocation40_spill] sm:$0xff] %v6581_v0 }
 0x1f0   : > { %9970 = vst [vmem:[#allocation38_spill] sm:$0xff] %v6569_v54  ;;  %5108 = vperm.xlu0 %5520, %v5105_v53  }
 0x1f3   : > { %v6575_v37 = vpop.trf.xlu2 }
 0x1f6   : > { %v6595_v8 = vpop.trf.xlu1 }
 0x1f7   : > { %v6577_v60 = vpop.f32.mrf.mxu2  ;;  %v6579_v34 = vpop.f32.mrf.mxu3  ;;  %9974 = vst [vmem:[#allocation42_spill] sm:$0xff] %v6595_v8 }
 0x1fb   : > { %v1270_v2 = vpop.trf.xlu2 }
 0x1fc   : > { %5299 = vmatmul.msk.bf16.gmra.mxu2 %vm919_vm2, %v6428_v58 }
 0x1fd   : > { %5315 = vmatmul.msk.bf16.gmra.mxu3 %vm919_vm2, %v6428_v58  ;;  %5323 = vmatmul.msk.bf16.gmra.mxu0 %vm919_vm2, %v1270_v2 }
 0x1fe   : > { %5339 = vmatmul.msk.bf16.gmra.mxu1 %vm919_vm2, %v1270_v2 }
 0x1ff   : > { %v6589_v4 = vpop.f32.mrf.mxu2  ;;  %v6591_v6 = vpop.f32.mrf.mxu3 }
 0x200   : > { %9973 = vst [vmem:[#allocation41_spill] sm:$0xff] %v6589_v4 }
 0x203   : > { %v6593_v1 = vpop.trf.xlu2 }
 0x207   : > { %v6597_v9 = vpop.f32.mrf.mxu2  ;;  %v6599_v11 = vpop.f32.mrf.mxu3 }
 0x20b   : > { %v1272_v13 = vpop.trf.xlu2 }
 0x20c   : > { %5300 = vmatmul.msk.bf16.gmra.mxu2 %vm919_vm2, %v6436_v62 }
 0x20d   : > { %5316 = vmatmul.msk.bf16.gmra.mxu3 %vm919_vm2, %v6436_v62  ;;  %5324 = vmatmul.msk.bf16.gmra.mxu0 %vm919_vm2, %v1272_v13 }
 0x20e   : > { %5340 = vmatmul.msk.bf16.gmra.mxu1 %vm919_vm2, %v1272_v13  ;;  %v6607_v58 = vpop.permute.xlu1 %794 }
 0x20f   : > { %9975 = vst [vmem:[#allocation43_spill] sm:$0xff] %v6607_v58  ;;  %v6609_v17 = vpop.f32.mrf.mxu2  ;;  %v6611_v18 = vpop.f32.mrf.mxu3 }
 0x210   : > { %9976 = vst [vmem:[#allocation44_spill] sm:$0xff] %v6611_v18 }
 0x213   : > { %799 = vperm.xlu2 %5522, %v785_v19   ;;  %v6616_v22 = vpop.trf.xlu2 }
 0x216   : > { %v805_v25 = vpop.permute.xlu1 %804 }
 0x217   : > { %v840_v27 = vadd.f32 %v839_v36, %v805_v25  ;;  %v859_v62 = vadd.f32 %v858_v38, %v805_v25  ;;  %v6618_v29 = vpop.f32.mrf.mxu2  ;;  %v6620_v31 = vpop.f32.mrf.mxu3 }
 0x218   : > { %9977 = vst [vmem:[#allocation45_spill] sm:$0xff] %v6620_v31 }
 0x219   : > { %v6622_v32 = vpack.c.bf16 %v859_v62, %v840_v27 }
 0x21b   : > { %9978 = vst [vmem:[#allocation46_spill] sm:$0xff] %v6622_v32  ;;  %v1274_v39 = vpop.trf.xlu2 }
 0x21c   : > { %5301 = vmatmul.msk.bf16.gmra.mxu2 %vm919_vm2, %v6451_v5 }
 0x21d   : > { %5317 = vmatmul.msk.bf16.gmra.mxu3 %vm919_vm2, %v6451_v5  ;;  %5325 = vmatmul.msk.bf16.gmra.mxu0 %vm919_vm2, %v1274_v39 }
 0x21e   : > { %5341 = vmatmul.msk.bf16.gmra.mxu1 %vm919_vm2, %v1274_v39 }
 0x21f   : > { %v6630_v40 = vpop.f32.mrf.mxu2 }
 0x220   : > { %9979 = vst [vmem:[#allocation47_spill] sm:$0xff] %v6630_v40  ;;  %v6632_v36 = vpop.f32.mrf.mxu3 }
 0x221   : > { %9980 = vst [vmem:[#allocation48_spill] sm:$0xff] %v6632_v36 }
 0x223   : > { %v6634_v38 = vpop.trf.xlu2 }
 0x227   : > { %v6636_v41 = vpop.f32.mrf.mxu2 }
 0x228   : > { %9981 = vst [vmem:[#allocation49_spill] sm:$0xff] %v6636_v41  ;;  %v6638_v43 = vpop.f32.mrf.mxu3 }
 0x229   : > { %9982 = vst [vmem:[#allocation50_spill] sm:$0xff] %v6638_v43 }
 0x22b   : > { %v1276_v46 = vpop.trf.xlu2 }
 0x22c   : > { %5302 = vmatmul.msk.bf16.gmra.mxu2 %vm919_vm2, %v6471_v12 }
 0x22d   : > { %5318 = vmatmul.msk.bf16.gmra.mxu3 %vm919_vm2, %v6471_v12  ;;  %5326 = vmatmul.msk.bf16.gmra.mxu0 %vm919_vm2, %v1276_v46  ;;  %v1534_v12 = vpop.trf.xlu0 }
 0x22e   : > { %5342 = vmatmul.msk.bf16.gmra.mxu1 %vm919_vm2, %v1276_v46 }
 0x22f   : > { %v6646_v5 = vpop.f32.mrf.mxu2 }
 0x230   : > { %9983 = vst [vmem:[#allocation51_spill] sm:$0xff] %v6646_v5  ;;  %v6648_v48 = vpop.f32.mrf.mxu3 }
 0x231   : > { %9984 = vst [vmem:[#allocation52_spill] sm:$0xff] %v6648_v48 }
 0x233   : > { %v6650_v52 = vpop.trf.xlu2 }
 0x235   : > { %v6670_v39 = vpop.trf.xlu0 }
 0x237   : > { %v6652_v53 = vpop.f32.mrf.mxu2 }
 0x238   : > { %v6654_v2 = vpop.f32.mrf.mxu3 }
 0x23b   : > { %v1278_v13 = vpop.trf.xlu2 }
 0x23c   : > { %5303 = vmatmul.msk.bf16.gmra.mxu2 %vm919_vm2, %v6499_v24 }
 0x23d   : > { %5319 = vmatmul.msk.bf16.gmra.mxu3 %vm919_vm2, %v6499_v24  ;;  %5327 = vmatmul.msk.bf16.gmra.mxu0 %vm919_vm2, %v1278_v13  ;;  %v1536_v30 = vpop.trf.xlu0 }
 0x23e   : > { %5343 = vmatmul.msk.bf16.gmra.mxu1 %vm919_vm2, %v1278_v13 }
 0x23f   : > { %v6662_v19 = vpop.f32.mrf.mxu2 }
 0x240   : > { %v6664_v25 = vpop.f32.mrf.mxu3 }
 0x241   : > { %9985 = vst [vmem:[#allocation53_spill] sm:$0xff] %v6664_v25 }
 0x243   : > { %v6666_v27 = vpop.trf.xlu2 }
 0x245   : > { %v6688_v23 = vpop.trf.xlu0 }
 0x246   : > { %9987 = vst [vmem:[#allocation55_spill] sm:$0xff] %v6688_v23 }
 0x247   : > { %v6668_v62 = vpop.f32.mrf.mxu2 }
 0x248   : > { %v6672_v46 = vpop.f32.mrf.mxu3 }
 0x24b   : > { %v1280_v32 = vpop.trf.xlu2 }
 0x24c   : > { %5304 = vmatmul.msk.bf16.gmra.mxu2 %vm919_vm2, %v6523_v35 }
 0x24d   : > { %5320 = vmatmul.msk.bf16.gmra.mxu3 %vm919_vm2, %v6523_v35  ;;  %5328 = vmatmul.msk.bf16.gmra.mxu0 %vm919_vm2, %v1280_v32  ;;  %v1538_v26 = vpop.trf.xlu0 }
 0x24e   : > { %5344 = vmatmul.msk.bf16.gmra.mxu1 %vm919_vm2, %v1280_v32 }
 0x24f   : > { %v6680_v24 = vpop.f32.mrf.mxu2 }
 0x250   : > { %v6682_v13 = vpop.f32.mrf.mxu3 }
 0x257   : > { %v6684_v28 = vpop.f32.mrf.mxu2 }
 0x258   : > { %v6686_v8 = vpop.f32.mrf.mxu3 }
 0x259   : > { %9986 = vst [vmem:[#allocation54_spill] sm:$0xff] %v6686_v8 }
 0x25a   : > { %v6691_v56 = vpop.f32.mrf.mxu0 }
 0x25b   : > { %9988 = vst [vmem:[#allocation56_spill] sm:$0xff] %v6691_v56  ;;  %v6696_v35 = vpop.f32.mrf.mxu1 }
 0x25c   : > { %5353 = vmatmul.msk.bf16.vlgmr.msra.gmra.mxu2 %vm919_vm2, %v1534_v12  ;;  %9989 = vst [vmem:[#allocation57_spill] sm:$0xff] %v6696_v35 }
 0x25d   : > { %5329 = vmatmul.msk.bf16.gmra.mxu0 %vm919_vm2, %v6549_v47  ;;  %5369 = vmatmul.msk.bf16.vlgmr.msra.gmra.mxu3 %vm919_vm2, %v1534_v12  ;;  %v6720_v12 = vpop.trf.xlu0 }
 0x25e   : > { %5345 = vmatmul.msk.bf16.gmra.mxu1 %vm919_vm2, %v6549_v47  ;;  %9994 = vst [vmem:[#allocation62_spill] sm:$0xff] %v6720_v12 }
 0x25f   : > { %v6700_v32 = vpop.f32.mrf.mxu2 }
 0x260   : > { %v6702_v42 = vpop.f32.mrf.mxu3 }
 0x261   : > { %9990 = vst [vmem:[#allocation58_spill] sm:$0xff] %v6702_v42 }
 0x262   : > { %v6704_v21 = vpop.f32.mrf.mxu0 }
 0x263   : > { %9991 = vst [vmem:[#allocation59_spill] sm:$0xff] %v6704_v21  ;;  %v6708_v15 = vpop.f32.mrf.mxu1 }
 0x264   : > { %9992 = vst [vmem:[#allocation60_spill] sm:$0xff] %v6708_v15 }
 0x265   : > { %v1540_v0 = vpop.trf.xlu0 }
 0x267   : > { %v6706_v58 = vpop.f32.mrf.mxu2 }
 0x268   : > { %v6710_v7 = vpop.f32.mrf.mxu3 }
 0x269   : > { %9993 = vst [vmem:[#allocation61_spill] sm:$0xff] %v6710_v7 }
 0x26a   : > { %v6724_v59 = vpop.f32.mrf.mxu0 }
 0x26b   : > { %9995 = vst [vmem:[#allocation63_spill] sm:$0xff] %v6724_v59  ;;  %v6726_v35 = vpop.f32.mrf.mxu1 }
 0x26c   : > { %5354 = vmatmul.msk.bf16.gmra.mxu2 %vm919_vm2, %v1536_v30  ;;  %9996 = vst [vmem:[#allocation64_spill] sm:$0xff] %v6726_v35 }
 0x26d   : > { %5330 = vmatmul.msk.bf16.gmra.mxu0 %vm919_vm2, %v6575_v37  ;;  %5370 = vmatmul.msk.bf16.gmra.mxu3 %vm919_vm2, %v1536_v30  ;;  %v6746_v49 = vpop.trf.xlu0 }
 0x26e   : > { %5346 = vmatmul.msk.bf16.gmra.mxu1 %vm919_vm2, %v6575_v37  ;;  %10001 = vst [vmem:[#allocation69_spill] sm:$0xff] %v6746_v49 }
 0x26f   : > { %v6718_v47 = vpop.f32.mrf.mxu2 }
 0x270   : > { %v6722_v63 = vpop.f32.mrf.mxu3 }
 0x272   : > { %v6732_v14 = vpop.f32.mrf.mxu0 }
 0x273   : > { %9998 = vst [vmem:[#allocation66_spill] sm:$0xff] %v6732_v14  ;;  %v6734_v30 = vpop.f32.mrf.mxu1 }
 0x274   : > { %9999 = vst [vmem:[#allocation67_spill] sm:$0xff] %v6734_v30 }
 0x277   : > { %v6728_v15 = vpop.f32.mrf.mxu2 }
 0x278   : > { %v6730_v16 = vpop.f32.mrf.mxu3 }
 0x279   : > { %9997 = vst [vmem:[#allocation65_spill] sm:$0xff] %v6730_v16 }
 0x27a   : > { %v6748_v33 = vpop.f32.mrf.mxu0 }
 0x27b   : > { %10002 = vst [vmem:[#allocation70_spill] sm:$0xff] %v6748_v33  ;;  %v6750_v20 = vpop.f32.mrf.mxu1 }
 0x27c   : > { %5355 = vmatmul.msk.bf16.gmra.mxu2 %vm919_vm2, %v1538_v26  ;;  %10003 = vst [vmem:[#allocation71_spill] sm:$0xff] %v6750_v20 }
 0x27d   : > { %5331 = vmatmul.msk.bf16.gmra.mxu0 %vm919_vm2, %v6593_v1  ;;  %5371 = vmatmul.msk.bf16.gmra.mxu3 %vm919_vm2, %v1538_v26  ;;  %v1542_v26 = vpop.trf.xlu0 }
 0x27e   : > { %5347 = vmatmul.msk.bf16.gmra.mxu1 %vm919_vm2, %v6593_v1 }
 0x27f   : > { %v6742_v37 = vpop.f32.mrf.mxu2 }
 0x280   : > { %v6744_v35 = vpop.f32.mrf.mxu3 }
 0x281   : > { %10000 = vst [vmem:[#allocation68_spill] sm:$0xff] %v6744_v35 }
 0x282   : > { %v6762_v1 = vpop.f32.mrf.mxu0 }
 0x283   : > { %10005 = vst [vmem:[#allocation73_spill] sm:$0xff] %v6762_v1  ;;  %v6766_v20 = vpop.f32.mrf.mxu1 }
 0x284   : > { %10006 = vst [vmem:[#allocation74_spill] sm:$0xff] %v6766_v20 }
 0x285   : > { %v6774_v23 = vpop.trf.xlu0 }
 0x286   : > { %10009 = vst [vmem:[#allocation77_spill] sm:$0xff] %v6774_v23 }
 0x287   : > { %v6752_v30 = vpop.f32.mrf.mxu2 }
 0x288   : > { %v6754_v10 = vpop.f32.mrf.mxu3 }
 0x289   : > { %10004 = vst [vmem:[#allocation72_spill] sm:$0xff] %v6754_v10 }
 0x28a   : > { %v6776_v33 = vpop.f32.mrf.mxu0 }
 0x28b   : > { %10010 = vst [vmem:[#allocation78_spill] sm:$0xff] %v6776_v33 }
 0x28c   : > { %5356 = vmatmul.msk.bf16.gmra.mxu2 %vm919_vm2, %v1540_v0 }
 0x28d   : > { %5332 = vmatmul.msk.bf16.gmra.mxu0 %vm919_vm2, %v6616_v22  ;;  %5372 = vmatmul.msk.bf16.gmra.mxu3 %vm919_vm2, %v1540_v0  ;;  %v6778_v0 = vpop.f32.mrf.mxu1 }
 0x28e   : > { %5348 = vmatmul.msk.bf16.gmra.mxu1 %vm919_vm2, %v6616_v22  ;;  %10011 = vst [vmem:[#allocation79_spill] sm:$0xff] %v6778_v0  ;;  %v2055_v22 = vmax.f32 %v6542_v44, %v6556_v50  ;;  %v1544_v50 = vpop.trf.xlu0 }
 0x28f   : > { %v6764_v49 = vpop.f32.mrf.mxu2 }
 0x290   : > { %v6768_v3 = vpop.f32.mrf.mxu3  ;;  %v2056_v20 = vmax.f32 %v2055_v22, %v6569_v54 }
 0x291   : > { %10007 = vst [vmem:[#allocation75_spill] sm:$0xff] %v6768_v3 }
 0x292   : > { %v2057_v33 = vmax.f32 %v2056_v20, %v6577_v60  ;;  %v6796_v14 = vpop.f32.mrf.mxu0 }
 0x293   : > { %10013 = vst [vmem:[#allocation81_spill] sm:$0xff] %v6796_v14 }
 0x294   : > { %v2058_v0 = vmax.f32 %v2057_v33, %v6589_v4 }
 0x295   : > { %v6798_v59 = vpop.f32.mrf.mxu1 }
 0x296   : > { %v2059_v44 = vmax.f32 %v2058_v0, %v6597_v9  ;;  %10014 = vst [vmem:[#allocation82_spill] sm:$0xff] %v6798_v59  ;;  %v6809_v4 = vpop.trf.xlu0 }
 0x297   : > { %v6770_v12 = vpop.f32.mrf.mxu2  ;;  %10016 = vst [vmem:[#allocation84_spill] sm:$0xff] %v6809_v4 }
 0x298   : > { %v6772_v61 = vpop.f32.mrf.mxu3 }
 0x299   : > { %10008 = vst [vmem:[#allocation76_spill] sm:$0xff] %v6772_v61 }
 0x29a   : > { %v6815_v0 = vpop.f32.mrf.mxu0 }
 0x29b   : > { %10017 = vst [vmem:[#allocation85_spill] sm:$0xff] %v6815_v0 }
 0x29c   : > { %5357 = vmatmul.msk.bf16.gmra.mxu2 %vm919_vm2, %v1542_v26 }
 0x29d   : > { %5333 = vmatmul.msk.bf16.gmra.mxu0 %vm919_vm2, %v6634_v38  ;;  %5373 = vmatmul.msk.bf16.gmra.mxu3 %vm919_vm2, %v1542_v26  ;;  %v2060_v26 = vmax.f32 %v2059_v44, %v6609_v17 }
 0x29e   : > { %5349 = vmatmul.msk.bf16.gmra.mxu1 %vm919_vm2, %v6634_v38 }
 0x29f   : > { %v6789_v23 = vpop.f32.mrf.mxu2  ;;  %v2061_v38 = vmax.f32 %v2060_v26, %v6618_v29  ;;  %v6817_v26 = vpop.f32.mrf.mxu1 }
 0x2a0   : > { %v6793_v1 = vpop.f32.mrf.mxu3  ;;  %10018 = vst [vmem:[#allocation86_spill] sm:$0xff] %v6817_v26 }
 0x2a1   : > { %10012 = vst [vmem:[#allocation80_spill] sm:$0xff] %v6793_v1  ;;  %v2062_v54 = vmax.f32 %v2061_v38, %v6630_v40  ;;  %v1546_v40 = vpop.trf.xlu0 }
 0x2a3   : > { %v2063_v20 = vmax.f32 %v2062_v54, %v6636_v41  ;;  %v2092_v54 = vmax.f32 %v6544_v45, %v6558_v51 }
 0x2a5   : > { %v2064_v44 = vmax.f32 %v2063_v20, %v6646_v5  ;;  %v2093_v4 = vmax.f32 %v2092_v54, %v6571_v55  ;;  %v6838_v54 = vpop.f32.mrf.mxu0 }
 0x2a6   : > { %10019 = vst [vmem:[#allocation87_spill] sm:$0xff] %v6838_v54 }
 0x2a7   : > { %v6801_v22 = vpop.f32.mrf.mxu2  ;;  %v2065_v59 = vmax.f32 %v2064_v44, %v6652_v53  ;;  %v2094_v20 = vmax.f32 %v2093_v4, %v6579_v34 }
 0x2a8   : > { %v6806_v33 = vpop.f32.mrf.mxu3 }
 0x2a9   : > { %10015 = vst [vmem:[#allocation83_spill] sm:$0xff] %v6806_v33  ;;  %v2095_v26 = vmax.f32 %v2094_v20, %v6591_v6 }
 0x2ab   : > { %v2096_v51 = vmax.f32 %v2095_v26, %v6599_v11 }
 0x2ac   : > { %5358 = vmatmul.msk.bf16.gmra.mxu2 %vm919_vm2, %v1544_v50 }
 0x2ad   : > { %5334 = vmatmul.msk.bf16.gmra.mxu0 %vm919_vm2, %v6650_v52  ;;  %5374 = vmatmul.msk.bf16.gmra.mxu3 %vm919_vm2, %v1544_v50  ;;  %v2066_v50 = vmax.f32 %v2065_v59, %v6662_v19  ;;  %v6840_v59 = vpop.f32.mrf.mxu1  ;;  %v2097_v4 = vmax.f32 %v2096_v51, %v6611_v18 }
 0x2ae   : > { %5350 = vmatmul.msk.bf16.gmra.mxu1 %vm919_vm2, %v6650_v52  ;;  %10020 = vst [vmem:[#allocation88_spill] sm:$0xff] %v6840_v59  ;;  %v6860_v59 = vpop.trf.xlu0 }
 0x2af   : > { %v6823_v38 = vpop.f32.mrf.mxu2  ;;  %v2067_v5 = vmax.f32 %v2066_v50, %v6668_v62  ;;  %v2098_v20 = vmax.f32 %v2097_v4, %v6620_v31  ;;  %10021 = vst [vmem:[#allocation89_spill] sm:$0xff] %v6860_v59 }
 0x2b0   : > { %v6832_v52 = vpop.f32.mrf.mxu3 }
 0x2b1   : > { %v2068_v41 = vmax.f32 %v2067_v5, %v6680_v24  ;;  %v2099_v26 = vmax.f32 %v2098_v20, %v6632_v36 }
 0x2b3   : > { %v2069_v44 = vmax.f32 %v2068_v41, %v6684_v28  ;;  %v2100_v51 = vmax.f32 %v2099_v26, %v6638_v43 }
 0x2b5   : > { %v2070_v50 = vmax.f32 %v2069_v44, %v6700_v32  ;;  %v2101_v20 = vmax.f32 %v2100_v51, %v6648_v48 }
 0x2b7   : > { %v6835_v45 = vpop.f32.mrf.mxu2  ;;  %v2071_v5 = vmax.f32 %v2070_v50, %v6706_v58 }
 0x2b8   : > { %v6858_v50 = vpop.f32.mrf.mxu3 }
 0x2b9   : > { %v2072_v41 = vmax.f32 %v2071_v5, %v6718_v47  ;;  %v6866_v5 = vpop.f32.mrf.mxu1 }
 0x2ba   : > { %10023 = vst [vmem:[#allocation91_spill] sm:$0xff] %v6866_v5  ;;  %v1548_v5 = vpop.trf.xlu0 }
 0x2bb   : > { %v2073_v4 = vmax.f32 %v2072_v41, %v6728_v15 }
 0x2bc   : > { %5359 = vmatmul.msk.bf16.gmra.mxu2 %vm919_vm2, %v1546_v40 }
 0x2bd   : > { %5335 = vmatmul.msk.bf16.gmra.mxu0 %vm919_vm2, %v6666_v27  ;;  %5375 = vmatmul.msk.bf16.gmra.mxu3 %vm919_vm2, %v1546_v40  ;;  %v2074_v36 = vmax.f32 %v2073_v4, %v6742_v37  ;;  %v6864_v40 = vpop.f32.mrf.mxu0 }
 0x2be   : > { %5351 = vmatmul.msk.bf16.gmra.mxu1 %vm919_vm2, %v6666_v27  ;;  %10022 = vst [vmem:[#allocation90_spill] sm:$0xff] %v6864_v40  ;;  %v2102_v27 = vmax.f32 %v2101_v20, %v6654_v2 }
 0x2bf   : > { %v6855_v44 = vpop.f32.mrf.mxu2  ;;  %v2075_v26 = vmax.f32 %v2074_v36, %v6752_v30  ;;  %v1281_v36 = vpop.trf.xlu2 }
 0x2c0   : > { %v2103_v43 = vmax.f32 %v2102_v27, %v6664_v25  ;;  %v6878_v48 = vpop.f32.mrf.mxu3 }
 0x2c1   : > { %v2076_v41 = vmax.f32 %v2075_v26, %v6764_v49  ;;  %v6884_v26 = vpop.f32.mrf.mxu1 }
 0x2c2   : > { %v2104_v31 = vmax.f32 %v2103_v43, %v6672_v46  ;;  %10025 = vst [vmem:[#allocation93_spill] sm:$0xff] %v6884_v26 }
 0x2c3   : > { %v2077_v51 = vmax.f32 %v2076_v41, %v6770_v12 }
 0x2c4   : > { %v2105_v4 = vmax.f32 %v2104_v31, %v6682_v13 }
 0x2c5   : > { %v2078_v59 = vmax.f32 %v2077_v51, %v6789_v23  ;;  %v6882_v25 = vpop.f32.mrf.mxu0 }
 0x2c6   : > { %v2106_v20 = vmax.f32 %v2105_v4, %v6686_v8  ;;  %10024 = vst [vmem:[#allocation92_spill] sm:$0xff] %v6882_v25 }
 0x2c7   : > { %v6873_v18 = vpop.f32.mrf.mxu2  ;;  %v2079_v27 = vmax.f32 %v2078_v59, %v6801_v22 }
 0x2c8   : > { %v2107_v43 = vmax.f32 %v2106_v20, %v6702_v42  ;;  %v6900_v8 = vpop.f32.mrf.mxu3 }
 0x2c9   : > { %v2080_v31 = vmax.f32 %v2079_v27, %v6823_v38 }
 0x2ca   : > { %v2108_v41 = vmax.f32 %v2107_v43, %v6710_v7 }
 0x2cb   : > { %v2081_v59 = vmax.f32 %v2080_v31, %v6835_v45 }
 0x2cc   : > { %5360 = vmatmul.msk.bf16.gmra.mxu2 %vm919_vm2, %v1548_v5  ;;  %v2109_v4 = vmax.f32 %v2108_v41, %v6722_v63 }
 0x2cd   : > { %5336 = vmatmul.msk.bf16.gmra.mxu0 %vm919_vm2, %v1281_v36  ;;  %5376 = vmatmul.msk.bf16.gmra.mxu3 %vm919_vm2, %v1548_v5  ;;  %v2082_v26 = vmax.f32 %v2081_v59, %v6855_v44  ;;  %v6903_v27 = vpop.f32.mrf.mxu0 }
 0x2ce   : > { %5352 = vmatmul.msk.bf16.gmra.mxu1 %vm919_vm2, %v1281_v36  ;;  %v2110_v20 = vmax.f32 %v2109_v4, %v6730_v16  ;;  %10026 = vst [vmem:[#allocation94_spill] sm:$0xff] %v6903_v27  ;;  %v6905_v36 = vpop.f32.mrf.mxu1 }
 0x2cf   : > { %v6893_v51 = vpop.f32.mrf.mxu2  ;;  %v2083_v42 = vmax.f32 %v2082_v26, %v6873_v18  ;;  %10027 = vst [vmem:[#allocation95_spill] sm:$0xff] %v6905_v36 }
 0x2d0   : > { %v2111_v5 = vmax.f32 %v2110_v20, %v6744_v35  ;;  %v10033_v35 = vld [vmem:[#allocation73_spill] sm:$0xff] }
 0x2d1   : > { %v2084_v43 = vmax.f32 %v2083_v42, %v6893_v51  ;;  %v2129_v42 = vmax.f32 %v6691_v56, %v6704_v21 }
 0x2d2   : > { %v2112_v31 = vmax.f32 %v2111_v5, %v6754_v10  ;;  %v6923_v5 = vpop.f32.mrf.mxu3 }
 0x2d4   : > { %v2113_v59 = vmax.f32 %v2112_v31, %v6768_v3  ;;  %v10032_v3 = vld [vmem:[#allocation70_spill] sm:$0xff] }
 0x2d6   : > { %v2114_v26 = vmax.f32 %v2113_v59, %v6772_v61 }
 0x2d7   : > { %v6909_v7 = vpop.f32.mrf.mxu2 }
 0x2d8   : > { %v2085_v41 = vmax.f32 %v2084_v43, %v6909_v7  ;;  %v2115_v20 = vmax.f32 %v2114_v26, %v6793_v1  ;;  %v6931_v26 = vpop.f32.mrf.mxu1  ;;  %v10031_v1 = vld [vmem:[#allocation66_spill] sm:$0xff] }
 0x2d9   : > { %10030 = vst [vmem:[#allocation97_spill] sm:$0xff] %v6931_v26 }
 0x2da   : > { %v2086_v4 = vrot.slane %v2085_v41, 4  ;;  %v2116_v31 = vmax.f32 %v2115_v20, %v6806_v33 }
 0x2dc   : > { %v2087_v16 = vmax.f32 %v2085_v41, %v2086_v4  ;;  %5361 = vmatmul.msk.bf16.gmra.mxu2 %vm919_vm2, %v6670_v39  ;;  %v10028_v41 = vld [vmem:[#allocation63_spill] sm:$0xff]  ;;  %v6929_v4 = vpop.f32.mrf.mxu0  ;;  %v2117_v36 = vmax.f32 %v2116_v31, %v6832_v52 }
 0x2dd   : > { %5377 = vmatmul.msk.bf16.gmra.mxu3 %vm919_vm2, %v6670_v39  ;;  %5385 = vmatmul.msk.bf16.vlgmr.msrb.gmra.mxu0 %vm919_vm2, %v6426_v57  ;;  %v2130_v59 = vmax.f32 %v2129_v42, %v10028_v41  ;;  %10029 = vst [vmem:[#allocation96_spill] sm:$0xff] %v6929_v4  ;;  %v10035_v41 = vld [vmem:[#allocation78_spill] sm:$0xff] }
 0x2de   : > { %v2088_v43 = vrot.slane %v2087_v16, 2  ;;  %5401 = vmatmul.msk.bf16.vlgmr.msrb.gmra.mxu1 %vm919_vm2, %v6426_v57  ;;  %v2118_v56 = vmax.f32 %v2117_v36, %v6858_v50 }
 0x2df   : > { %v2131_v61 = vmax.f32 %v2130_v59, %v10031_v1 }
 0x2e0   : > { %v2089_v39 = vmax.f32 %v2087_v16, %v2088_v43  ;;  %v2119_v57 = vmax.f32 %v2118_v56, %v6878_v48  ;;  %v6943_v16 = vpop.f32.mrf.mxu3  ;;  %v6949_v36 = vpop.f32.mrf.mxu1 }
 0x2e1   : > { %v2132_v10 = vmax.f32 %v2131_v61, %v10032_v3  ;;  %10037 = vst [vmem:[#allocation100_spill] sm:$0xff] %v6949_v36  ;;  %v10038_v61 = vld [vmem:[#allocation33_spill] sm:$0xff] }
 0x2e2   : > { %v2090_v21 = vrot.slane %v2089_v39, 1  ;;  %v2120_v42 = vmax.f32 %v2119_v57, %v6900_v8 }
 0x2e3   : > { %v2133_v20 = vmax.f32 %v2132_v10, %v10033_v35  ;;  %v10039_v10 = vld [vmem:[#allocation36_spill] sm:$0xff] }
 0x2e4   : > { %v6939_v33 = vmax.f32 %v2089_v39, %v2090_v21  ;;  %v2121_v43 = vmax.f32 %v2120_v42, %v6923_v5  ;;  %v6947_v59 = vpop.f32.mrf.mxu0  ;;  %v10040_v39 = vld [vmem:[#allocation38_spill] sm:$0xff]  ;;  %v10041_v42 = vld [vmem:[#allocation55_spill] sm:$0xff] }
 0x2e5   : > { %v2134_v26 = vmax.f32 %v2133_v20, %v10035_v41  ;;  %10036 = vst [vmem:[#allocation99_spill] sm:$0xff] %v6947_v59 }
 0x2e6   : > { %10034 = vst [vmem:[#allocation98_spill] sm:$0xff] %v6939_v33  ;;  %v2351_v56 = vsub.f32 %v10038_v61, %v6939_v33  ;;  %v2353_v21 = vsub.f32 %v10039_v10, %v6939_v33  ;;  %v2355_v57 = vsub.f32 %v10040_v39, %v6939_v33  ;;  %v2122_v20 = vmax.f32 %v2121_v43, %v6943_v16 }
 0x2e7   : > { %v2135_v31 = vmax.f32 %v2134_v26, %v6796_v14  ;;  %v2357_v26 = vsub.f32 %v6577_v60, %v6939_v33  ;;  %v10042_v14 = vld [vmem:[#allocation41_spill] sm:$0xff]  ;;  %v2361_v10 = vsub.f32 %v6597_v9, %v6939_v33  ;;  %v2363_v60 = vsub.f32 %v6609_v17, %v6939_v33 }
 0x2e8   : > { %v2359_v35 = vsub.f32 %v10042_v14, %v6939_v33  ;;  %v2607_v43 = vmul.f32 1.442695, %v2351_v56  ;;  %v2611_v39 = vmul.f32 1.442695, %v2353_v21  ;;  %v2615_v14 = vmul.f32 1.442695, %v2355_v57 }
 0x2e9   : > { %v2136_v41 = vmax.f32 %v2135_v31, %v6815_v0  ;;  %v10043_v31 = vld [vmem:[#allocation17_spill] sm:$0xff]  ;;  %v2123_v0 = vrot.slane %v2122_v20, 4  ;;  %v2619_v9 = vmul.f32 1.442695, %v2357_v26  ;;  %v10044_v56 = vld [vmem:[#allocation47_spill] sm:$0xff] }
 0x2ea   : > { %5523 = vpow2.f32 %v2607_v43  ;;  %v2367_v21 = vsub.f32 %v10044_v56, %v6939_v33  ;;  %v2627_v17 = vmul.f32 1.442695, %v2361_v10  ;;  %v10046_v57 = vld [vmem:[#allocation51_spill] sm:$0xff]  ;;  %v6989_v43 = vpop.f32.mrf.mxu1  ;;  %v2375_v10 = vsub.f32 %v6662_v19, %v6939_v33 }
 0x2eb   : > { %v2137_v61 = vmax.f32 %v2136_v41, %v6838_v54  ;;  %v2365_v41 = vsub.f32 %v6618_v29, %v6939_v33  ;;  %5525 = vpow2.f32 %v2611_v39  ;;  %v2623_v54 = vmul.f32 1.442695, %v2359_v35  ;;  %10047 = vst [vmem:[#allocation33_spill] sm:$0xff] %v6989_v43 }
 0x2ec   : > { %5362 = vmatmul.msk.bf16.gmra.mxu2 %vm919_vm2, %v10041_v42  ;;  %v2371_v36 = vsub.f32 %v10046_v57, %v6939_v33  ;;  %5527 = vpow2.f32 %v2615_v14  ;;  %v6987_v26 = vpop.f32.mrf.mxu0  ;;  %v2373_v35 = vsub.f32 %v6652_v53, %v6939_v33  ;;  %v2379_v53 = vsub.f32 %v6680_v24, %v6939_v33 }
 0x2ed   : > { %5378 = vmatmul.msk.bf16.gmra.mxu3 %vm919_vm2, %v10041_v42  ;;  %5386 = vmatmul.msk.bf16.gmra.mxu0 %vm919_vm2, %v10043_v31  ;;  %v2138_v42 = vmax.f32 %v2137_v61, %v6864_v40  ;;  %v2631_v61 = vmul.f32 1.442695, %v2363_v60  ;;  %v2124_v40 = vmax.f32 %v2122_v20, %v2123_v0  ;;  %5529 = vpow2.f32 %v2619_v9 }
 0x2ee   : > { %5402 = vmatmul.msk.bf16.gmra.mxu1 %vm919_vm2, %v10043_v31  ;;  %v10045_v31 = vld [vmem:[#allocation49_spill] sm:$0xff]  ;;  %v2635_v39 = vmul.f32 1.442695, %v2365_v41  ;;  %5531 = vpow2.f32 %v2623_v54  ;;  %v2647_v14 = vmul.f32 1.442695, %v2371_v36  ;;  %v2381_v19 = vsub.f32 %v6684_v28, %v6939_v33 }
 0x2ef   : > { %v2139_v3 = vmax.f32 %v2138_v42, %v6882_v25  ;;  %v2369_v1 = vsub.f32 %v10045_v31, %v6939_v33  ;;  %v2639_v42 = vmul.f32 1.442695, %v2367_v21  ;;  %5533 = vpow2.f32 %v2627_v17  ;;  %v10079_v25 = vld [vmem:[#allocation21_spill] sm:$0xff] }
 0x2f0   : > { %v6995_v56 = vpop.eup %5523  ;;  %5535 = vpow2.f32 %v2631_v61  ;;  %v2125_v41 = vrot.slane %v2124_v40, 2  ;;  %v2651_v54 = vmul.f32 1.442695, %v2373_v35  ;;  %v2655_v24 = vmul.f32 1.442695, %v2375_v10 }
 0x2f1   : > { %v2140_v29 = vmax.f32 %v2139_v3, %v6903_v27  ;;  %10048 = vst [vmem:[#allocation36_spill] sm:$0xff] %v6995_v56  ;;  %v2377_v3 = vsub.f32 %v6668_v62, %v6939_v33  ;;  %v2643_v20 = vmul.f32 1.442695, %v2369_v1  ;;  %v7000_v60 = vpop.eup %5525  ;;  %5537 = vpow2.f32 %v2635_v39  ;;  %v10068_v27 = vld [vmem:[#allocation37_spill] sm:$0xff] }
 0x2f2   : > { %10049 = vst [vmem:[#allocation38_spill] sm:$0xff] %v7000_v60  ;;  %v3151_v9 = vadd.f32 %v7000_v60, %v6995_v56  ;;  %v7008_v21 = vpop.eup %5527  ;;  %v2383_v1 = vsub.f32 %v6700_v32, %v6939_v33  ;;  %5539 = vpow2.f32 %v2639_v42  ;;  %v2385_v28 = vsub.f32 %v6706_v58, %v6939_v33  ;;  %v10054_v42 = vld [vmem:[#allocation62_spill] sm:$0xff] }
 0x2f3   : > { %v2141_v0 = vmax.f32 %v2140_v29, %v6929_v4  ;;  %10050 = vst [vmem:[#allocation55_spill] sm:$0xff] %v7008_v21  ;;  %v7015_v36 = vpop.eup %5529  ;;  %5541 = vpow2.f32 %v2643_v20  ;;  %v2659_v31 = vmul.f32 1.442695, %v2377_v3  ;;  %v2387_v61 = vsub.f32 %v6718_v47, %v6939_v33 }
 0x2f4   : > { %10051 = vst [vmem:[#allocation41_spill] sm:$0xff] %v7015_v36  ;;  %v3152_v17 = vadd.f32 %v7008_v21, %v3151_v9  ;;  %v7020_v57 = vpop.eup %5531  ;;  %5543 = vpow2.f32 %v2647_v14  ;;  %v2663_v29 = vmul.f32 1.442695, %v2379_v53  ;;  %v2126_v35 = vmax.f32 %v2124_v40, %v2125_v41  ;;  %v7044_v41 = vpop.f32.mrf.mxu0  ;;  %v10089_v21 = vld [vmem:[#allocation75_spill] sm:$0xff] }
 0x2f5   : > { %v7011_v62 = vmax.f32 %v2141_v0, %v6947_v59  ;;  %10052 = vst [vmem:[#allocation17_spill] sm:$0xff] %v7020_v57  ;;  %v7024_v32 = vpop.eup %5533  ;;  %v2389_v39 = vsub.f32 %v6728_v15, %v6939_v33  ;;  %5545 = vpow2.f32 %v2651_v54  ;;  %v2667_v10 = vmul.f32 1.442695, %v2381_v19  ;;  %v10058_v19 = vld [vmem:[#allocation19_spill] sm:$0xff] }
 0x2f6   : > { %10053 = vst [vmem:[#allocation47_spill] sm:$0xff] %v7024_v32  ;;  %v3153_v58 = vadd.f32 %v7015_v36, %v3152_v17  ;;  %v7031_v0 = vpop.eup %5535  ;;  %v2391_v47 = vsub.f32 %v6742_v37, %v6939_v33  ;;  %v2393_v40 = vsub.f32 %v6752_v30, %v6939_v33  ;;  %5547 = vpow2.f32 %v2655_v24  ;;  %v7046_v37 = vpop.f32.mrf.mxu1  ;;  %v10085_v36 = vld [vmem:[#allocation61_spill] sm:$0xff] }
 0x2f7   : > { %10055 = vst [vmem:[#allocation49_spill] sm:$0xff] %v7031_v0  ;;  %v2671_v3 = vmul.f32 1.442695, %v2383_v1  ;;  %v7039_v15 = vpop.eup %5537  ;;  %v2395_v20 = vsub.f32 %v6764_v49, %v6939_v33  ;;  %5549 = vpow2.f32 %v2659_v31  ;;  %v2675_v53 = vmul.f32 1.442695, %v2385_v28 }
 0x2f8   : > { %10056 = vst [vmem:[#allocation51_spill] sm:$0xff] %v7039_v15  ;;  %v3154_v14 = vadd.f32 %v7020_v57, %v3153_v58  ;;  %v7052_v30 = vpop.eup %5539  ;;  %v2397_v54 = vsub.f32 %v6770_v12, %v6939_v33  ;;  %v2399_v49 = vsub.f32 %v6789_v23, %v6939_v33  ;;  %5551 = vpow2.f32 %v2663_v29 }
 0x2f9   : > { %10057 = vst [vmem:[#allocation62_spill] sm:$0xff] %v7046_v37  ;;  %v2679_v9 = vmul.f32 1.442695, %v2387_v61  ;;  %v7058_v1 = vpop.eup %5541  ;;  %5553 = vpow2.f32 %v2667_v10  ;;  %v2683_v24 = vmul.f32 1.442695, %v2389_v39  ;;  %v2127_v31 = vrot.slane %v2126_v35, 1 }
 0x2fa   : > { %v3155_v28 = vadd.f32 %v7024_v32, %v3154_v14  ;;  %v7061_v17 = vpop.eup %5543  ;;  %v2401_v58 = vsub.f32 %v6801_v22, %v6939_v33  ;;  %v2403_v12 = vsub.f32 %v6823_v38, %v6939_v33  ;;  %5555 = vpow2.f32 %v2671_v3 }
 0x2fb   : > { %v7067_v23 = vpop.eup %5545  ;;  %v2405_v61 = vsub.f32 %v6835_v45, %v6939_v33  ;;  %5557 = vpow2.f32 %v2675_v53  ;;  %v2691_v29 = vmul.f32 1.442695, %v2393_v40  ;;  %v2407_v14 = vsub.f32 %v6855_v44, %v6939_v33  ;;  %v7083_v40 = vpop.f32.mrf.mxu2 }
 0x2fc   : > { %5363 = vmatmul.msk.bf16.gmra.mxu2 %vm919_vm2, %v10054_v42  ;;  %v3156_v39 = vadd.f32 %v7031_v0, %v3155_v28  ;;  %v7072_v10 = vpop.eup %5547  ;;  %v2409_v22 = vsub.f32 %v6873_v18, %v6939_v33  ;;  %5559 = vpow2.f32 %v2679_v9  ;;  %v2695_v38 = vmul.f32 1.442695, %v2395_v20  ;;  %10060 = vst [vmem:[#allocation101_spill] sm:$0xff] %v7083_v40  ;;  %v7091_v9 = vpop.f32.mrf.mxu3 }
 0x2fd   : > { %5379 = vmatmul.msk.bf16.gmra.mxu3 %vm919_vm2, %v10054_v42  ;;  %5387 = vmatmul.msk.bf16.gmra.mxu0 %vm919_vm2, %v10058_v19  ;;  %v2687_v42 = vmul.f32 1.442695, %v2391_v47  ;;  %v7078_v47 = vpop.eup %5549  ;;  %5561 = vpow2.f32 %v2683_v24  ;;  %v2699_v3 = vmul.f32 1.442695, %v2397_v54  ;;  %v7081_v53 = vmax.f32 %v2126_v35, %v2127_v31  ;;  %10061 = vst [vmem:[#allocation102_spill] sm:$0xff] %v7091_v9  ;;  %v7098_v31 = vpop.f32.mrf.mxu0 }
 0x2fe   : > { %5403 = vmatmul.msk.bf16.gmra.mxu1 %vm919_vm2, %v10058_v19  ;;  %v3157_v45 = vadd.f32 %v7039_v15, %v3156_v39  ;;  %v7085_v19 = vpop.eup %5551  ;;  %v2411_v44 = vsub.f32 %v6893_v51, %v6939_v33  ;;  %v2413_v18 = vsub.f32 %v6909_v7, %v6939_v33  ;;  %v2703_v20 = vmul.f32 1.442695, %v2399_v49  ;;  %10062 = vst [vmem:[#allocation103_spill] sm:$0xff] %v7098_v31  ;;  %v7100_v39 = vpop.f32.mrf.mxu1 }
 0x2ff   : > { %10059 = vst [vmem:[#allocation19_spill] sm:$0xff] %v7081_v53  ;;  %5563 = vpow2.f32 %v2687_v42  ;;  %v7093_v24 = vpop.eup %5553  ;;  %v2707_v54 = vmul.f32 1.442695, %v2401_v58  ;;  %v2711_v7 = vmul.f32 1.442695, %v2403_v12  ;;  %v10066_v58 = vld [vmem:[#allocation34_spill] sm:$0xff] }
 0x300   : > { %5565 = vpow2.f32 %v2691_v29  ;;  %v3158_v28 = vadd.f32 %v7052_v30, %v3157_v45  ;;  %10063 = vst [vmem:[#allocation104_spill] sm:$0xff] %v7100_v39  ;;  %v7102_v51 = vpop.eup %5555  ;;  %v2715_v49 = vmul.f32 1.442695, %v2405_v61  ;;  %v2719_v42 = vmul.f32 1.442695, %v2407_v14 }
 0x301   : > { %10064 = vst [vmem:[#allocation105_spill] sm:$0xff] %v7102_v51  ;;  %5567 = vpow2.f32 %v2695_v38  ;;  %v7104_v33 = vpop.eup %5557  ;;  %v2723_v9 = vmul.f32 1.442695, %v2409_v22  ;;  %v2352_v29 = vsub.f32 %v10066_v58, %v7081_v53  ;;  %v2727_v59 = vmul.f32 1.442695, %v2411_v44  ;;  %v10073_v58 = vld [vmem:[#allocation69_spill] sm:$0xff] }
 0x302   : > { %10065 = vst [vmem:[#allocation106_spill] sm:$0xff] %v7104_v33  ;;  %5569 = vpow2.f32 %v2699_v3  ;;  %v3159_v35 = vadd.f32 %v7058_v1, %v3158_v28  ;;  %v7109_v45 = vpop.eup %5559  ;;  %v2731_v4 = vmul.f32 1.442695, %v2413_v18  ;;  %v2354_v38 = vsub.f32 %v10068_v27, %v7081_v53  ;;  %v10070_v18 = vld [vmem:[#allocation44_spill] sm:$0xff] }
 0x303   : > { %10067 = vst [vmem:[#allocation34_spill] sm:$0xff] %v7109_v45  ;;  %5571 = vpow2.f32 %v2703_v20  ;;  %v7113_v12 = vpop.eup %5561  ;;  %v2356_v14 = vsub.f32 %v6571_v55, %v7081_v53  ;;  %v2358_v22 = vsub.f32 %v6579_v34, %v7081_v53  ;;  %v2360_v44 = vsub.f32 %v6591_v6, %v7081_v53  ;;  %v10074_v6 = vld [vmem:[#allocation48_spill] sm:$0xff]  ;;  %v7150_v39 = vpop.f32.mrf.mxu2 }
 0x304   : > { %10069 = vst [vmem:[#allocation37_spill] sm:$0xff] %v7113_v12  ;;  %5573 = vpow2.f32 %v2707_v54  ;;  %v3160_v61 = vadd.f32 %v7061_v17, %v3159_v35  ;;  %v2362_v27 = vsub.f32 %v6599_v11, %v7081_v53  ;;  %v2364_v20 = vsub.f32 %v10070_v18, %v7081_v53  ;;  %v10072_v35 = vld [vmem:[#allocation45_spill] sm:$0xff]  ;;  %v10075_v18 = vld [vmem:[#allocation50_spill] sm:$0xff] }
 0x305   : > { %v7120_v3 = vpop.eup %5563  ;;  %5575 = vpow2.f32 %v2711_v7  ;;  %v2366_v34 = vsub.f32 %v10072_v35, %v7081_v53  ;;  %v2609_v28 = vmul.f32 1.442695, %v2352_v29  ;;  %v2368_v11 = vsub.f32 %v10074_v6, %v7081_v53  ;;  %10077 = vst [vmem:[#allocation45_spill] sm:$0xff] %v7150_v39  ;;  %v7152_v6 = vpop.f32.mrf.mxu0 }
 0x306   : > { %v7128_v54 = vpop.eup %5565  ;;  %5577 = vpow2.f32 %v2715_v49  ;;  %v3161_v55 = vadd.f32 %v7067_v23, %v3160_v61  ;;  %v2613_v40 = vmul.f32 1.442695, %v2354_v38  ;;  %v10076_v61 = vld [vmem:[#allocation52_spill] sm:$0xff]  ;;  %10078 = vst [vmem:[#allocation69_spill] sm:$0xff] %v7152_v6  ;;  %v7166_v39 = vpop.f32.mrf.mxu1  ;;  %v10094_v6 = vld [vmem:[#allocation83_spill] sm:$0xff] }
 0x307   : > { %10071 = vst [vmem:[#allocation44_spill] sm:$0xff] %v7128_v54  ;;  %v7135_v7 = vpop.eup %5567  ;;  %5579 = vpow2.f32 %v2719_v42  ;;  %v2372_v35 = vsub.f32 %v10076_v61, %v7081_v53  ;;  %v2374_v42 = vsub.f32 %v6654_v2, %v7081_v53  ;;  %v2617_v2 = vmul.f32 1.442695, %v2356_v14  ;;  %v7164_v61 = vpop.f32.mrf.mxu3  ;;  %v10093_v14 = vld [vmem:[#allocation80_spill] sm:$0xff] }
 0x308   : > { %v7143_v49 = vpop.eup %5569  ;;  %5581 = vpow2.f32 %v2723_v9  ;;  %v3162_v29 = vadd.f32 %v7072_v10, %v3161_v55  ;;  %v10080_v9 = vld [vmem:[#allocation53_spill] sm:$0xff]  ;;  %10081 = vst [vmem:[#allocation48_spill] sm:$0xff] %v7164_v61  ;;  %v2625_v61 = vmul.f32 1.442695, %v2360_v44  ;;  %v2400_v31 = vsub.f32 %v10093_v14, %v7081_v53 }
 0x309   : > { %v7158_v38 = vpop.eup %5571  ;;  %5583 = vpow2.f32 %v2727_v59  ;;  %v2376_v55 = vsub.f32 %v10080_v9, %v7081_v53  ;;  %10082 = vst [vmem:[#allocation50_spill] sm:$0xff] %v7166_v39  ;;  %v2621_v59 = vmul.f32 1.442695, %v2358_v22  ;;  %v10083_v9 = vld [vmem:[#allocation54_spill] sm:$0xff]  ;;  %v2402_v57 = vsub.f32 %v10094_v6, %v7081_v53 }
 0x30a   : > { %v7168_v37 = vpop.eup %5573  ;;  %v3163_v43 = vadd.f32 %v7078_v47, %v3162_v29  ;;  %5585 = vpow2.f32 %v2609_v28  ;;  %v2382_v56 = vsub.f32 %v10083_v9, %v7081_v53  ;;  %v2629_v28 = vmul.f32 1.442695, %v2362_v27  ;;  %v10086_v9 = vld [vmem:[#allocation65_spill] sm:$0xff] }
 0x30b   : > { %v7173_v60 = vpop.eup %5575  ;;  %5587 = vpow2.f32 %v2613_v40  ;;  %v2633_v40 = vmul.f32 1.442695, %v2364_v20  ;;  %v2404_v6 = vsub.f32 %v6832_v52, %v7081_v53  ;;  %v2408_v52 = vsub.f32 %v6878_v48, %v7081_v53 }
 0x30c   : > { %5364 = vmatmul.msk.bf16.gmra.mxu2 %vm919_vm2, %v10073_v58  ;;  %v7179_v39 = vpop.eup %5577  ;;  %5589 = vpow2.f32 %v2731_v4  ;;  %v3164_v29 = vadd.f32 %v7085_v19, %v3163_v43  ;;  %v10087_v43 = vld [vmem:[#allocation68_spill] sm:$0xff]  ;;  %v10101_v48 = vsub.f32 %v10075_v18, %v7081_v53 }
 0x30d   : > { %5380 = vmatmul.msk.bf16.gmra.mxu3 %vm919_vm2, %v10073_v58  ;;  %5388 = vmatmul.msk.bf16.gmra.mxu0 %vm919_vm2, %v10079_v25  ;;  %v2378_v58 = vsub.f32 %v6672_v46, %v7081_v53  ;;  %v10084_v46 = vld [vmem:[#allocation58_spill] sm:$0xff]  ;;  %v7184_v22 = vpop.eup %5579  ;;  %5591 = vpow2.f32 %v2617_v2  ;;  %v2641_v2 = vmul.f32 1.442695, %v2368_v11 }
 0x30e   : > { %5404 = vmatmul.msk.bf16.gmra.mxu1 %vm919_vm2, %v10079_v25  ;;  %v2380_v25 = vsub.f32 %v6682_v13, %v7081_v53  ;;  %v7190_v44 = vpop.eup %5581  ;;  %v3165_v4 = vadd.f32 %v7093_v24, %v3164_v29  ;;  %5593 = vpow2.f32 %v2621_v59  ;;  %v2637_v13 = vmul.f32 1.442695, %v2366_v34  ;;  %v10091_v29 = vld [vmem:[#allocation76_spill] sm:$0xff] }
 0x30f   : > { %v7195_v27 = vpop.eup %5583  ;;  %5595 = vpow2.f32 %v2625_v61  ;;  %v2398_v0 = vsub.f32 %v10091_v29, %v7081_v53  ;;  %v2649_v59 = vmul.f32 1.442695, %v2372_v35  ;;  %v2653_v61 = vmul.f32 1.442695, %v2374_v42  ;;  %v7217_v35 = vpop.f32.mrf.mxu2 }
 0x310   : > { %v7201_v20 = vpop.eup %5585  ;;  %v3166_v32 = vadd.f32 %v7102_v51, %v3165_v4  ;;  %5597 = vpow2.f32 %v2629_v28  ;;  %v2657_v4 = vmul.f32 1.442695, %v2376_v55  ;;  %10095 = vst [vmem:[#allocation53_spill] sm:$0xff] %v7217_v35  ;;  %v7219_v29 = vpop.f32.mrf.mxu0  ;;  %v2406_v42 = vsub.f32 %v6858_v50, %v7081_v53 }
 0x311   : > { %10090 = vst [vmem:[#allocation52_spill] sm:$0xff] %v7201_v20  ;;  %v7206_v34 = vpop.eup %5587  ;;  %5599 = vpow2.f32 %v2633_v40  ;;  %v2661_v14 = vmul.f32 1.442695, %v2378_v58  ;;  %v7229_v55 = vpop.f32.mrf.mxu1  ;;  %v2665_v35 = vmul.f32 1.442695, %v2380_v25  ;;  %v2410_v50 = vsub.f32 %v6900_v8, %v7081_v53 }
 0x312   : > { %10092 = vst [vmem:[#allocation21_spill] sm:$0xff] %v7206_v34  ;;  %v7212_v11 = vpop.eup %5589  ;;  %v3167_v15 = vadd.f32 %v7104_v33, %v3166_v32  ;;  %5601 = vpow2.f32 %v2637_v13  ;;  %v3188_v28 = vadd.f32 %v7206_v34, %v7201_v20  ;;  %v7227_v32 = vpop.f32.mrf.mxu3  ;;  %v2669_v58 = vmul.f32 1.442695, %v2382_v56 }
 0x313   : > { %v7221_v51 = vpop.eup %5591  ;;  %5603 = vpow2.f32 %v2641_v2  ;;  %10097 = vst [vmem:[#allocation58_spill] sm:$0xff] %v7227_v32  ;;  %v2414_v8 = vsub.f32 %v6943_v16, %v7081_v53  ;;  %v2645_v56 = vmul.f32 1.442695, %v10101_v48  ;;  %v10103_v16 = vsub.f32 %v10085_v36, %v7081_v53  ;;  %v10104_v48 = vld [vmem:[#allocation25_spill] sm:$0xff] }
 0x314   : > { %10096 = vst [vmem:[#allocation54_spill] sm:$0xff] %v7221_v51  ;;  %v7231_v13 = vpop.eup %5593  ;;  %v3168_v40 = vadd.f32 %v7109_v45, %v3167_v15  ;;  %5605 = vpow2.f32 %v2649_v59  ;;  %v3189_v33 = vadd.f32 %v7221_v51, %v3188_v28  ;;  %v2412_v15 = vsub.f32 %v6923_v5, %v7081_v53  ;;  %v10100_v59 = vld [vmem:[#allocation77_spill] sm:$0xff] }
 0x315   : > { %10098 = vst [vmem:[#allocation61_spill] sm:$0xff] %v7229_v55  ;;  %v7235_v34 = vpop.eup %5595  ;;  %5607 = vpow2.f32 %v2653_v61  ;;  %v10102_v61 = vsub.f32 %v10084_v46, %v7081_v53  ;;  %v10107_v36 = vsub.f32 %v10087_v43, %v7081_v53  ;;  %v2713_v20 = vmul.f32 1.442695, %v2404_v6 }
 0x316   : > { %10099 = vst [vmem:[#allocation65_spill] sm:$0xff] %v7231_v13  ;;  %v7241_v2 = vpop.eup %5597  ;;  %v3169_v32 = vadd.f32 %v7113_v12, %v3168_v40  ;;  %5609 = vpow2.f32 %v2657_v4  ;;  %v3190_v25 = vadd.f32 %v7231_v13, %v3189_v33  ;;  %v2677_v40 = vmul.f32 1.442695, %v10103_v16 }
 0x317   : > { %v7249_v28 = vpop.eup %5599  ;;  %5611 = vpow2.f32 %v2661_v14  ;;  %v2673_v5 = vmul.f32 1.442695, %v10102_v61  ;;  %v10105_v14 = vsub.f32 %v6722_v63, %v7081_v53  ;;  %v2721_v12 = vmul.f32 1.442695, %v2408_v52 }
 0x318   : > { %v7261_v33 = vpop.eup %5601  ;;  %v3170_v4 = vadd.f32 %v7120_v3, %v3169_v32  ;;  %5613 = vpow2.f32 %v2665_v35  ;;  %v3191_v18 = vadd.f32 %v7235_v34, %v3190_v25  ;;  %v10106_v35 = vsub.f32 %v10086_v9, %v7081_v53 }
 0x319   : > { %v5604_v46 = vpop.eup %5603  ;;  %5615 = vpow2.f32 %v2669_v58  ;;  %v2689_v25 = vmul.f32 1.442695, %v10107_v36  ;;  %v7287_v58 = vmul.f32 1.442695, %v2398_v0  ;;  %v2705_v9 = vmul.f32 1.442695, %v2400_v31  ;;  %v7298_v0 = vpop.f32.mrf.mxu0 }
 0x31a   : > { %v2685_v32 = vmul.f32 1.442695, %v10106_v35  ;;  %v5606_v61 = vpop.eup %5605  ;;  %v3171_v16 = vadd.f32 %v7128_v54, %v3170_v4  ;;  %v3192_v63 = vadd.f32 %v7241_v2, %v3191_v18  ;;  %5617 = vpow2.f32 %v2645_v56  ;;  %v7304_v6 = vpop.f32.mrf.mxu3 }
 0x31b   : > { %v7290_v35 = vmul.f32 1.442695, %v2402_v57  ;;  %v2717_v4 = vmul.f32 1.442695, %v2406_v42  ;;  %5619 = vpow2.f32 %v2673_v5  ;;  %v2725_v56 = vmul.f32 1.442695, %v2410_v50  ;;  %v7306_v18 = vpop.f32.mrf.mxu1 }
 0x31c   : > { %5365 = vmatmul.msk.bf16.gmra.mxu2 %vm919_vm2, %v10100_v59  ;;  %v3172_v36 = vadd.f32 %v7135_v7, %v3171_v16  ;;  %v2729_v31 = vmul.f32 1.442695, %v2412_v15  ;;  %v7302_v57 = vmul.f32 1.442695, %v2414_v8  ;;  %10110 = vst [vmem:[#allocation75_spill] sm:$0xff] %v7304_v6  ;;  %5621 = vpow2.f32 %v2677_v40 }
 0x31d   : > { %5381 = vmatmul.msk.bf16.gmra.mxu3 %vm919_vm2, %v10100_v59  ;;  %5389 = vmatmul.msk.bf16.gmra.mxu0 %vm919_vm2, %v10104_v48  ;;  %v2681_v59 = vmul.f32 1.442695, %v10105_v14  ;;  %v5608_v14 = vpop.eup %5607  ;;  %10111 = vst [vmem:[#allocation76_spill] sm:$0xff] %v7306_v18  ;;  %v7324_v5 = vpack.c.bf16 %v5606_v61, %v7061_v17 }
 0x31e   : > { %5405 = vmatmul.msk.bf16.gmra.mxu1 %vm919_vm2, %v10104_v48  ;;  %v10108_v48 = vsub.f32 %v10089_v21, %v7081_v53  ;;  %v7292_v43 = vpop.eup %5609  ;;  %v3193_v21 = vadd.f32 %v7249_v28, %v3192_v63  ;;  %v3173_v42 = vadd.f32 %v7143_v49, %v3172_v36  ;;  %v7313_v63 = vpack.c.bf16 %v5604_v46, %v7052_v30 }
 0x31f   : > { %v7300_v45 = vpop.eup %5611  ;;  %v3467_v15 = vpack.c.bf16 %v7292_v43, %v7072_v10  ;;  %5623 = vpow2.f32 %v2681_v59  ;;  %v7330_v18 = vpack.c.bf16 %v5608_v14, %v7067_v23 }
 0x320   : > { %v7285_v55 = vmul.f32 1.442695, %v10108_v48  ;;  %v7296_v48 = vpop.f32.mrf.mxu2  ;;  %v7308_v16 = vpop.eup %5613  ;;  %v3194_v52 = vadd.f32 %v7261_v33, %v3193_v21  ;;  %v3468_v8 = vpack.c.bf16 %v7300_v45, %v7078_v47  ;;  %v3174_v40 = vadd.f32 %v7158_v38, %v3173_v42 }
 0x321   : > { %10109 = vst [vmem:[#allocation68_spill] sm:$0xff] %v7296_v48  ;;  %v7315_v48 = vpop.eup %5615  ;;  %v3469_v50 = vpack.c.bf16 %v7308_v16, %v7085_v19  ;;  %5625 = vpow2.f32 %v2685_v32  ;;  %v3647_v51 = vunpack.c.h.b16 %v3467_v15  ;;  %v7343_v54 = vpop.f32.mrf.mxu0 }
 0x322   : > { %v3195_v36 = vadd.f32 %v5604_v46, %v3194_v52  ;;  %v3470_v30 = vpack.c.bf16 %v7315_v48, %v7093_v24  ;;  %v5618_v21 = vpop.eup %5617  ;;  %v3175_v10 = vadd.f32 %v7168_v37, %v3174_v40  ;;  %5627 = vpow2.f32 %v2689_v25 }
 0x323   : > { %v3650_v6 = vunpack.c.l.b16 %v3469_v50  ;;  %v3651_v19 = vunpack.c.h.b16 %v3469_v50  ;;  %v7333_v13 = vpop.eup %5619  ;;  %5629 = vpow2.f32 %v2705_v9  ;;  %v3646_v46 = vunpack.c.l.b16 %v3467_v15  ;;  %v7358_v15 = vpop.f32.mrf.mxu1 }
 0x324   : > { %v3196_v47 = vadd.f32 %v5618_v21, %v3195_v36  ;;  %v3652_v17 = vunpack.c.l.b16 %v3470_v30  ;;  %v3653_v59 = vunpack.c.h.b16 %v3470_v30  ;;  %v3648_v42 = vunpack.c.l.b16 %v3468_v8  ;;  %v7335_v52 = vpop.eup %5621  ;;  %10115 = vst [vmem:[#allocation77_spill] sm:$0xff] %v7358_v15 }
 0x325   : > { %v3176_v24 = vadd.f32 %v7173_v60, %v3175_v10  ;;  %5631 = vpow2.f32 %v2713_v20  ;;  %v3649_v40 = vunpack.c.h.b16 %v3468_v8  ;;  %v7338_v25 = vpop.eup %5623  ;;  %v3464_v10 = vpack.c.bf16 %v5618_v21, %v7058_v1  ;;  %v10116_v8 = vld [vmem:[#allocation84_spill] sm:$0xff] }
 0x326   : > { %v3197_v32 = vadd.f32 %v5606_v61, %v3196_v47  ;;  %v3700_v50 = vpack.c.b16 %v3652_v17, %v3650_v6  ;;  %5633 = vpow2.f32 %v2717_v4  ;;  %v3701_v23 = vpack.c.b16 %v3653_v59, %v3651_v19  ;;  %v7354_v6 = vpop.f32.mrf.mxu3  ;;  %v10117_v19 = vld [vmem:[#allocation31_spill] sm:$0xff] }
 0x327   : > { %v3177_v36 = vadd.f32 %v7179_v39, %v3176_v24  ;;  %5635 = vpow2.f32 %v2721_v12  ;;  %v7346_v20 = vpop.eup %5625  ;;  %v10113_v61 = vmax.f32 %v7011_v62, %v6987_v26  ;;  %10114 = vst [vmem:[#allocation83_spill] sm:$0xff] %v7354_v6  ;;  %v3642_v12 = vunpack.c.l.b16 %v7324_v5 }
 0x328   : > { %v3198_v9 = vadd.f32 %v5608_v14, %v3197_v32  ;;  %3750 = vmatpush.bf16.msrb.mxu2 %v3700_v50  ;;  %v7341_v30 = vpop.f32.mrf.mxu2  ;;  %5637 = vpow2.f32 %v2725_v56  ;;  %3776 = vmatpush.bf16.msra.mxu0 %v3701_v23  ;;  %v3644_v14 = vunpack.c.l.b16 %v7330_v18  ;;  %v7362_v1 = vpop.eup %5627  ;;  %v3698_v21 = vpack.c.b16 %v3648_v42, %v3646_v46 }
 0x329   : > { %10112 = vst [vmem:[#allocation80_spill] sm:$0xff] %v7341_v30  ;;  %v7352_v4 = vmax.f32 %v10113_v61, %v7044_v41  ;;  %v3178_v56 = vadd.f32 %v7184_v22, %v3177_v36  ;;  %5639 = vpow2.f32 %v2729_v31  ;;  %v7370_v47 = vpop.eup %5629  ;;  %v3699_v17 = vpack.c.b16 %v3649_v40, %v3647_v51 }
 0x32a   : > { %v3199_v62 = vadd.f32 %v7292_v43, %v3198_v9  ;;  %5641 = vpow2.f32 %v7302_v57  ;;  %v3643_v59 = vunpack.c.h.b16 %v7324_v5  ;;  %v3645_v24 = vunpack.c.h.b16 %v7330_v18 }
 0x32b   : > { %v7377_v43 = vpop.eup %5631  ;;  %v3179_v31 = vadd.f32 %v7190_v44, %v3178_v56  ;;  %v3638_v42 = vunpack.c.l.b16 %v7313_v63  ;;  %v3640_v32 = vunpack.c.l.b16 %v3464_v10  ;;  %5643 = vpow2.f32 %v7285_v55  ;;  %v10118_v55 = vld [vmem:[#allocation72_spill] sm:$0xff] }
 0x32c   : > { %5366 = vmatmul.msk.bf16.gmra.mxu2 %vm919_vm2, %v10116_v8  ;;  %v3200_v46 = vadd.f32 %v7300_v45, %v3199_v62  ;;  %v7382_v50 = vpop.eup %5633  ;;  %3777 = vmatpush.bf16.msra.mxu0 %v3699_v17  ;;  %v3696_v51 = vpack.c.b16 %v3644_v14, %v3642_v12  ;;  %v3481_v57 = vpack.c.bf16 %v7377_v43, %v7173_v60  ;;  %v3639_v18 = vunpack.c.h.b16 %v7313_v63  ;;  %v10120_v60 = vld [vmem:[#allocation103_spill] sm:$0xff] }
 0x32d   : > { %5382 = vmatmul.msk.bf16.gmra.mxu3 %vm919_vm2, %v10116_v8  ;;  %5390 = vmatmul.msk.bf16.gmra.mxu0 %vm919_vm2, %v10117_v19  ;;  %v7388_v5 = vpop.eup %5635  ;;  %v3180_v23 = vadd.f32 %v7195_v27, %v3179_v31  ;;  %v3482_v40 = vpack.c.bf16 %v7382_v50, %v7179_v39  ;;  %v3641_v36 = vunpack.c.h.b16 %v3464_v10  ;;  %v10119_v61 = vsub.f32 %v10118_v55, %v7081_v53 }
 0x32e   : > { %5406 = vmatmul.msk.bf16.gmra.mxu1 %vm919_vm2, %v10117_v19  ;;  %3751 = vmatpush.bf16.msrb.mxu2 %v3698_v21  ;;  %v3201_v45 = vadd.f32 %v7308_v16, %v3200_v46  ;;  %v7394_v9 = vpop.eup %5637  ;;  %5645 = vpow2.f32 %v7290_v35  ;;  %v2145_v63 = vmax.f32 %v7352_v4, %v10120_v60  ;;  %v3697_v14 = vpack.c.b16 %v3645_v24, %v3643_v59  ;;  %v7420_v24 = vpop.f32.mrf.mxu0 }
 0x32f   : > { %v2693_v12 = vmul.f32 1.442695, %v10119_v61  ;;  %v7402_v8 = vpop.eup %5639  ;;  %v7405_v16 = vadd.f32 %v7212_v11, %v3180_v23  ;;  %5647 = vpow2.f32 %v7287_v58  ;;  %v3694_v10 = vpack.c.b16 %v3640_v32, %v3638_v42  ;;  %v7424_v32 = vpop.f32.mrf.mxu3  ;;  %v10125_v23 = vld [vmem:[#allocation51_spill] sm:$0xff] }
 0x330   : > { %v3202_v39 = vadd.f32 %v7315_v48, %v3201_v45  ;;  %v7409_v56 = vpop.eup %5641  ;;  %v3485_v35 = vpack.c.bf16 %v7402_v8, %v7195_v27  ;;  %v3483_v4 = vpack.c.bf16 %v7388_v5, %v7184_v22  ;;  %v3674_v62 = vunpack.c.l.b16 %v3481_v57  ;;  %3778 = vmatpush.bf16.msra.mxu0 %v3697_v14  ;;  %v7418_v59 = vpop.f32.mrf.mxu2  ;;  %10122 = vst [vmem:[#allocation84_spill] sm:$0xff] %v7424_v32  ;;  %v10186_v32 = vld [vmem:[#allocation20_spill] sm:$0xff] }
 0x331   : > { %10121 = vst [vmem:[#allocation25_spill] sm:$0xff] %v7405_v16  ;;  %v3676_v21 = vunpack.c.l.b16 %v3482_v40  ;;  %v3484_v58 = vpack.c.bf16 %v7394_v9, %v7190_v44  ;;  %v3675_v17 = vunpack.c.h.b16 %v3481_v57  ;;  %v3695_v48 = vpack.c.b16 %v3641_v36, %v3639_v18  ;;  %v5644_v31 = vpop.eup %5643  ;;  %v10124_v57 = vld [vmem:[#allocation49_spill] sm:$0xff] }
 0x332   : > { %3752 = vmatpush.bf16.msrb.mxu2 %v3696_v51  ;;  %v3203_v19 = vadd.f32 %v7333_v13, %v3202_v39  ;;  %v3486_v27 = vpack.c.bf16 %v7409_v56, %v7212_v11  ;;  %v3682_v46 = vunpack.c.l.b16 %v3485_v35  ;;  %v3683_v22 = vunpack.c.h.b16 %v3485_v35  ;;  %v7426_v51 = vpop.f32.mrf.mxu1 }
 0x333   : > { %v3677_v42 = vunpack.c.h.b16 %v3482_v40  ;;  %10123 = vst [vmem:[#allocation31_spill] sm:$0xff] %v7426_v51  ;;  %5649 = vpow2.f32 %v2693_v12  ;;  %v3461_v18 = vpack.c.bf16 %v7249_v28, %v10124_v57  ;;  %v3462_v45 = vpack.c.bf16 %v7261_v33, %v10125_v23 }
 0x334   : > { %v3204_v44 = vadd.f32 %v7335_v52, %v3203_v19  ;;  %v7433_v36 = vpop.eup %5645  ;;  %v3684_v11 = vunpack.c.l.b16 %v3486_v27  ;;  %v3685_v55 = vunpack.c.h.b16 %v3486_v27  ;;  %v3712_v61 = vpack.c.b16 %v3676_v21, %v3674_v62  ;;  %3779 = vmatpush.bf16.msra.mxu0 %v3695_v48 }
 0x335   : > { %v7437_v40 = vpack.c.bf16 %v7370_v47, %v7158_v38  ;;  %v5648_v12 = vpop.eup %5647  ;;  %v3678_v39 = vunpack.c.l.b16 %v3483_v4  ;;  %v3679_v35 = vunpack.c.h.b16 %v3483_v4  ;;  %v3681_v57 = vunpack.c.h.b16 %v3484_v58  ;;  %v10126_v38 = vld [vmem:[#allocation69_spill] sm:$0xff] }
 0x336   : > { %3753 = vmatpush.bf16.msrb.mxu2 %v3694_v10  ;;  %v3205_v14 = vadd.f32 %v7338_v25, %v3204_v44  ;;  %v3680_v10 = vunpack.c.l.b16 %v3484_v58  ;;  %v3716_v28 = vpack.c.b16 %v3684_v11, %v3682_v46  ;;  %v3717_v19 = vpack.c.b16 %v3685_v55, %v3683_v22  ;;  %v7451_v46 = vpop.f32.mrf.mxu0 }
 0x337   : > { %v3713_v33 = vpack.c.b16 %v3677_v42, %v3675_v17  ;;  %v3480_v62 = vpack.c.bf16 %v7433_v36, %v7168_v37  ;;  %v3634_v21 = vunpack.c.l.b16 %v3461_v18  ;;  %v3635_v27 = vunpack.c.h.b16 %v3461_v18  ;;  %v10127_v37 = vld [vmem:[#allocation89_spill] sm:$0xff] }
 0x338   : > { %v3206_v23 = vadd.f32 %v7346_v20, %v3205_v14  ;;  %v2146_v53 = vmax.f32 %v2145_v63, %v10126_v38  ;;  %3763 = vmatpush.bf16.msrb.mxu3 %v3716_v28  ;;  %3789 = vmatpush.bf16.msra.mxu1 %v3717_v19  ;;  %v3636_v48 = vunpack.c.l.b16 %v3462_v45  ;;  %v7446_v4 = vpack.c.bf16 %v5644_v31, %v7135_v7  ;;  %v10128_v7 = vld [vmem:[#allocation35_spill] sm:$0xff]  ;;  %v7463_v14 = vpop.f32.mrf.mxu2 }
 0x339   : > { %v5650_v44 = vpop.eup %5649  ;;  %v7449_v58 = vpack.c.bf16 %v5648_v12, %v7143_v49  ;;  %v3637_v17 = vunpack.c.h.b16 %v3462_v45  ;;  %v3714_v22 = vpack.c.b16 %v3680_v10, %v3678_v39  ;;  %v3715_v42 = vpack.c.b16 %v3681_v57, %v3679_v35  ;;  %10129 = vst [vmem:[#allocation72_spill] sm:$0xff] %v7463_v14  ;;  %v7467_v10 = vpop.f32.mrf.mxu3 }
 0x33a   : > { %v3207_v16 = vadd.f32 %v7362_v1, %v3206_v23  ;;  %v2147_v63 = vmax.f32 %v2146_v53, %v7219_v29  ;;  %v3670_v18 = vunpack.c.l.b16 %v7437_v40  ;;  %v3672_v45 = vunpack.c.l.b16 %v3480_v62  ;;  %10130 = vst [vmem:[#allocation103_spill] sm:$0xff] %v7467_v10  ;;  %v7469_v35 = vpop.f32.mrf.mxu1  ;;  %v10132_v23 = vld [vmem:[#allocation17_spill] sm:$0xff] }
 0x33b   : > { %v3692_v11 = vpack.c.b16 %v3636_v48, %v3634_v21  ;;  %v3693_v55 = vpack.c.b16 %v3637_v17, %v3635_v27  ;;  %v3671_v53 = vunpack.c.h.b16 %v7437_v40  ;;  %v3673_v39 = vunpack.c.h.b16 %v3480_v62  ;;  %10131 = vst [vmem:[#allocation49_spill] sm:$0xff] %v7469_v35  ;;  %v7475_v27 = vpop.trf.xlu0  ;;  %v10133_v40 = vld [vmem:[#allocation47_spill] sm:$0xff] }
 0x33c   : > { %5367 = vmatmul.msk.bf16.gmra.mxu2 %vm919_vm2, %v10127_v37  ;;  %v3208_v49 = vadd.f32 %v5650_v44, %v3207_v16  ;;  %v2148_v28 = vmax.f32 %v2147_v63, %v7298_v0  ;;  %3764 = vmatpush.bf16.msrb.mxu3 %v3714_v22  ;;  %v3666_v16 = vunpack.c.l.b16 %v7446_v4  ;;  %v3668_v57 = vunpack.c.l.b16 %v7449_v58 }
 0x33d   : > { %5383 = vmatmul.msk.bf16.gmra.mxu3 %vm919_vm2, %v10127_v37  ;;  %5391 = vmatmul.msk.bf16.gmra.mxu0 %vm919_vm2, %v10128_v7  ;;  %v3459_v21 = vpack.c.bf16 %v7235_v34, %v10132_v23  ;;  %v3460_v62 = vpack.c.bf16 %v7241_v2, %v10133_v40  ;;  %v3475_v17 = vpack.c.bf16 %v7362_v1, %v7120_v3  ;;  %v3667_v34 = vunpack.c.h.b16 %v7446_v4  ;;  %v10135_v40 = vld [vmem:[#allocation55_spill] sm:$0xff]  ;;  %v10136_v3 = vld [vmem:[#allocation54_spill] sm:$0xff] }
 0x33e   : > { %5407 = vmatmul.msk.bf16.gmra.mxu1 %vm919_vm2, %v10128_v7  ;;  %v3209_v19 = vadd.f32 %v5644_v31, %v3208_v49  ;;  %3754 = vmatpush.bf16.msrb.mxu2 %v3692_v11  ;;  %v2149_v48 = vmax.f32 %v2148_v28, %v7343_v54  ;;  %v10134_v31 = vld [vmem:[#allocation44_spill] sm:$0xff]  ;;  %v3710_v22 = vpack.c.b16 %v3672_v45, %v3670_v18  ;;  %v3669_v2 = vunpack.c.h.b16 %v7449_v58 }
 0x33f   : > { %3790 = vmatpush.bf16.msra.mxu1 %v3715_v42  ;;  %3780 = vmatpush.bf16.msra.mxu0 %v3693_v55  ;;  %v3476_v37 = vpack.c.bf16 %v5650_v44, %v10134_v31  ;;  %v3630_v42 = vunpack.c.l.b16 %v3459_v21  ;;  %v3631_v7 = vunpack.c.h.b16 %v3459_v21  ;;  %v3711_v49 = vpack.c.b16 %v3673_v39, %v3671_v53  ;;  %v7488_v44 = vpop.f32.mrf.mxu0  ;;  %v10139_v21 = vld [vmem:[#allocation34_spill] sm:$0xff] }
 0x340   : > { %v3210_v63 = vadd.f32 %v5648_v12, %v3209_v19  ;;  %3765 = vmatpush.bf16.msrb.mxu3 %v3712_v61  ;;  %v3632_v11 = vunpack.c.l.b16 %v3460_v62  ;;  %v3633_v55 = vunpack.c.h.b16 %v3460_v62  ;;  %v3708_v23 = vpack.c.b16 %v3668_v57, %v3666_v16  ;;  %v10137_v61 = vld [vmem:[#allocation41_spill] sm:$0xff] }
 0x341   : > { %v3457_v1 = vpack.c.bf16 %v10136_v3, %v10135_v40  ;;  %v3662_v18 = vunpack.c.l.b16 %v3475_v17  ;;  %v3664_v45 = vunpack.c.l.b16 %v3476_v37  ;;  %v10140_v16 = vld [vmem:[#allocation37_spill] sm:$0xff]  ;;  %v10144_v3 = vld [vmem:[#allocation36_spill] sm:$0xff] }
 0x342   : > { %v3211_v28 = vadd.f32 %v7370_v47, %v3210_v63  ;;  %v3690_v12 = vpack.c.b16 %v3632_v11, %v3630_v42  ;;  %v3691_v39 = vpack.c.b16 %v3633_v55, %v3631_v7  ;;  %v3473_v47 = vpack.c.bf16 %v7338_v25, %v10139_v21  ;;  %v10149_v21 = vld [vmem:[#allocation106_spill] sm:$0xff] }
 0x343   : > { %3791 = vmatpush.bf16.msra.mxu1 %v3713_v33  ;;  %v10138_v33 = vld [vmem:[#allocation65_spill] sm:$0xff]  ;;  %v3626_v19 = vunpack.c.l.b16 %v3457_v1  ;;  %v3474_v57 = vpack.c.bf16 %v7346_v20, %v10140_v16  ;;  %v3627_v62 = vunpack.c.h.b16 %v3457_v1  ;;  %v3709_v42 = vpack.c.b16 %v3669_v2, %v3667_v34  ;;  %v10146_v2 = vld [vmem:[#allocation38_spill] sm:$0xff] }
 0x344   : > { %v3458_v53 = vpack.c.bf16 %v10138_v33, %v10137_v61  ;;  %v3212_v4 = vadd.f32 %v7433_v36, %v3211_v28  ;;  %3766 = vmatpush.bf16.msrb.mxu3 %v3710_v22  ;;  %v2150_v11 = vmax.f32 %v2149_v48, %v7420_v24  ;;  %3755 = vmatpush.bf16.msrb.mxu2 %v3690_v12  ;;  %v7499_v36 = vpop.f32.mrf.mxu2  ;;  %v3663_v55 = vunpack.c.h.b16 %v3475_v17  ;;  %v7503_v28 = vpop.f32.mrf.mxu1  ;;  %v10147_v48 = vld [vmem:[#allocation21_spill] sm:$0xff] }
 0x345   : > { %3781 = vmatpush.bf16.msra.mxu0 %v3691_v39  ;;  %10141 = vst [vmem:[#allocation51_spill] sm:$0xff] %v7499_v36  ;;  %v3706_v7 = vpack.c.b16 %v3664_v45, %v3662_v18  ;;  %v3665_v25 = vunpack.c.h.b16 %v3476_v37  ;;  %v3456_v1 = vpack.c.bf16 %v10147_v48, %v10146_v2  ;;  %v790_v12 = vpop.permute.xlu0 %789  ;;  %v3658_v18 = vunpack.c.l.b16 %v3473_v47 }
 0x346   : > { %v3628_v58 = vunpack.c.l.b16 %v3458_v53  ;;  %v3629_v31 = vunpack.c.h.b16 %v3458_v53  ;;  %v3213_v63 = vadd.f32 %v7377_v43, %v3212_v4  ;;  %10143 = vst [vmem:[#allocation89_spill] sm:$0xff] %v7503_v28  ;;  %v10145_v43 = vld [vmem:[#allocation52_spill] sm:$0xff]  ;;  %v3660_v17 = vunpack.c.l.b16 %v3474_v57  ;;  %v10148_v53 = vld [vmem:[#allocation105_spill] sm:$0xff] }
 0x347   : > { %3792 = vmatpush.bf16.msra.mxu1 %v3711_v49  ;;  %v7501_v49 = vpop.f32.mrf.mxu3  ;;  %v3455_v34 = vpack.c.bf16 %v10145_v43, %v10144_v3  ;;  %v3659_v37 = vunpack.c.h.b16 %v3473_v47  ;;  %v3661_v45 = vunpack.c.h.b16 %v3474_v57  ;;  %v3471_v4 = vpack.c.bf16 %v7333_v13, %v10148_v53  ;;  %v7513_v39 = vpop.f32.mrf.mxu0  ;;  %v10151_v13 = vld [vmem:[#allocation40_spill] sm:$0xff] }
 0x348   : > { %v3688_v22 = vpack.c.b16 %v3628_v58, %v3626_v19  ;;  %10142 = vst [vmem:[#allocation69_spill] sm:$0xff] %v7501_v49  ;;  %v3214_v20 = vadd.f32 %v7382_v50, %v3213_v63  ;;  %v3689_v40 = vpack.c.b16 %v3629_v31, %v3627_v62  ;;  %3767 = vmatpush.bf16.msrb.mxu3 %v3708_v23  ;;  %v3624_v50 = vunpack.c.l.b16 %v3456_v1  ;;  %v10184_v49 = vld [vmem:[#allocation62_spill] sm:$0xff] }
 0x349   : > { %v3622_v33 = vunpack.c.l.b16 %v3455_v34  ;;  %v3707_v19 = vpack.c.b16 %v3665_v25, %v3663_v55  ;;  %v3472_v23 = vpack.c.bf16 %v7335_v52, %v10149_v21  ;;  %v3623_v58 = vunpack.c.h.b16 %v3455_v34  ;;  %v10152_v52 = vld [vmem:[#allocation24_spill] sm:$0xff] }
 0x34a   : > { %v3215_v61 = vadd.f32 %v7388_v5, %v3214_v20  ;;  %3756 = vmatpush.bf16.msrb.mxu2 %v3688_v22  ;;  %3782 = vmatpush.bf16.msra.mxu0 %v3689_v40  ;;  %v3625_v16 = vunpack.c.h.b16 %v3456_v1  ;;  %v10150_v5 = vld [vmem:[#allocation22_spill] sm:$0xff]  ;;  %v852_v31 = vadd.f32 %v10152_v52, %v790_v12  ;;  %v2151_v63 = vmax.f32 %v2150_v11, %v7451_v46 }
 0x34b   : > { %3793 = vmatpush.bf16.msra.mxu1 %v3709_v42  ;;  %v833_v47 = vadd.f32 %v10150_v5, %v790_v12  ;;  %v3686_v62 = vpack.c.b16 %v3624_v50, %v3622_v33  ;;  %v3704_v55 = vpack.c.b16 %v3660_v17, %v3658_v18  ;;  %v3705_v25 = vpack.c.b16 %v3661_v45, %v3659_v37  ;;  %v10166_v5 = vld [vmem:[#allocation67_spill] sm:$0xff]  ;;  %v10168_v52 = vld [vmem:[#allocation74_spill] sm:$0xff] }
 0x34c   : > { %5368 = vmatmul.msk.bf16.gmra.mxu2 %vm919_vm2, %v7475_v27  ;;  %v3216_v57 = vadd.f32 %v7394_v9, %v3215_v61  ;;  %3768 = vmatpush.bf16.msrb.mxu3 %v3706_v7  ;;  %v3687_v42 = vpack.c.b16 %v3625_v16, %v3623_v58  ;;  %v3654_v9 = vunpack.c.l.b16 %v3471_v4  ;;  %v3656_v22 = vunpack.c.l.b16 %v3472_v23  ;;  %v7534_v7 = vpop.f32.mrf.mxu2  ;;  %v7539_v2 = vpop.f32.mrf.mxu1  ;;  %v10165_v58 = vld [vmem:[#allocation64_spill] sm:$0xff] }
 0x34d   : > { %5384 = vmatmul.msk.bf16.gmra.mxu3 %vm919_vm2, %v7475_v27  ;;  %5392 = vmatmul.msk.bf16.gmra.mxu0 %vm919_vm2, %v10151_v13  ;;  %v3655_v20 = vunpack.c.h.b16 %v3471_v4  ;;  %v3657_v40 = vunpack.c.h.b16 %v3472_v23  ;;  %v2152_v3 = vmax.f32 %v2151_v63, %v7488_v44  ;;  %10154 = vst [vmem:[#allocation17_spill] sm:$0xff] %v7534_v7  ;;  %v869_v34 = vpack.c.bf16 %v852_v31, %v833_v47  ;;  %v10162_v4 = vld [vmem:[#allocation60_spill] sm:$0xff] }
 0x34e   : > { %5408 = vmatmul.msk.bf16.gmra.mxu1 %vm919_vm2, %v10151_v13  ;;  %v3217_v27 = vadd.f32 %v7402_v8, %v3216_v57  ;;  %3757 = vmatpush.bf16.msrb.mxu2 %v3686_v62  ;;  %10156 = vst [vmem:[#allocation44_spill] sm:$0xff] %v7539_v2  ;;  %v3702_v1 = vpack.c.b16 %v3656_v22, %v3654_v9  ;;  %v10164_v23 = vld [vmem:[#allocation16_spill] sm:$0xff]  ;;  %v10167_v57 = vld [vmem:[#allocation71_spill] sm:$0xff]  ;;  %v10171_v9 = vld [vmem:[#allocation86_spill] sm:$0xff] }
 0x34f   : > { %3794 = vmatpush.bf16.msra.mxu1 %v3707_v19  ;;  %3783 = vmatpush.bf16.msra.mxu0 %v3687_v42  ;;  %v7536_v11 = vpop.f32.mrf.mxu3  ;;  %v2153_v8 = vmax.f32 %v2152_v3, %v7513_v39  ;;  %v7541_v48 = vpop.f32.mrf.mxu0  ;;  %v3703_v12 = vpack.c.b16 %v3657_v40, %v3655_v20  ;;  %v3584_v17 = vunpack.c.l.b16 %v869_v34  ;;  %v10163_v19 = vld [vmem:[#allocation57_spill] sm:$0xff]  ;;  %v10169_v42 = vld [vmem:[#allocation79_spill] sm:$0xff]  ;;  %v10172_v40 = vld [vmem:[#allocation88_spill] sm:$0xff] }
 0x350   : > { %v7532_v43 = vadd.f32 %v7409_v56, %v3217_v27  ;;  %3769 = vmatpush.bf16.msrb.mxu3 %v3704_v55  ;;  %10155 = vst [vmem:[#allocation47_spill] sm:$0xff] %v7536_v11  ;;  %v3585_v56 = vunpack.c.h.b16 %v869_v34  ;;  %v2166_v21 = vmax.f32 %v10163_v19, %v10162_v4  ;;  %v10170_v55 = vld [vmem:[#allocation82_spill] sm:$0xff] }
 0x351   : > { %v2154_v18 = vmax.f32 %v2153_v8, %v7541_v48  ;;  %v7544_v37 = vpack.c.b16 %v3584_v17, %v3584_v17  ;;  %v10173_v34 = vld [vmem:[#allocation18_spill] sm:$0xff]  ;;  %v10174_v8 = vld [vmem:[#allocation91_spill] sm:$0xff]  ;;  %v10176_v17 = vld [vmem:[#allocation93_spill] sm:$0xff] }
 0x352   : > { %10153 = vst [vmem:[#allocation35_spill] sm:$0xff] %v7532_v43  ;;  %v7546_v45 = vpack.c.b16 %v3585_v56, %v3585_v56  ;;  %v2167_v16 = vmax.f32 %v2166_v21, %v10165_v58  ;;  %v10177_v21 = vld [vmem:[#allocation95_spill] sm:$0xff] }
 0x353   : > { %3795 = vmatpush.bf16.msra.mxu1 %v3705_v25  ;;  %10157 = vst [vmem:[#allocation55_spill] sm:$0xff] %v7544_v37 }
 0x354   : > { %3770 = vmatpush.bf16.msrb.mxu3 %v3702_v1  ;;  %10158 = vst [vmem:[#allocation54_spill] sm:$0xff] %v7546_v45  ;;  %v7548_v61 = vpop.f32.mrf.mxu2  ;;  %v7554_v53 = vpop.f32.mrf.mxu1  ;;  %v2168_v47 = vmax.f32 %v2167_v16, %v10166_v5 }
 0x355   : > { %10159 = vst [vmem:[#allocation41_spill] sm:$0xff] %v7548_v61 }
 0x356   : > { %10161 = vst [vmem:[#allocation34_spill] sm:$0xff] %v7554_v53  ;;  %v2169_v62 = vmax.f32 %v2168_v47, %v10167_v57 }
 0x357   : > { %3796 = vmatpush.bf16.msra.mxu1 %v3703_v12  ;;  %v7550_v33 = vpop.f32.mrf.mxu0  ;;  %v7552_v50 = vpop.f32.mrf.mxu3 }
 0x358   : > { %10160 = vst [vmem:[#allocation65_spill] sm:$0xff] %v7552_v50  ;;  %v2170_v31 = vmax.f32 %v2169_v62, %v10168_v52  ;;  %v2155_v47 = vmax.f32 %v2154_v18, %v7550_v33  ;;  %v10178_v62 = vld [vmem:[#allocation97_spill] sm:$0xff] }
 0x359   : > { %v10182_v50 = vld [vmem:[#allocation33_spill] sm:$0xff] }
 0x35a   : > { %v2171_v27 = vmax.f32 %v2170_v31, %v10169_v42 }
 0x35c   : > { %3758 = vmatmul.bf16.vlgmr.msrb.gmra.mxu2 %v7544_v37  ;;  %v7570_v63 = vpop.f32.mrf.mxu1  ;;  %v2172_v25 = vmax.f32 %v2171_v27, %v10170_v55  ;;  %v7593_v43 = vpop.f32.mrf.mxu2 }
 0x35d   : > { %3771 = vmatmul.bf16.vlgmr.msrb.gmra.mxu3 %v7546_v45  ;;  %5393 = vmatmul.msk.bf16.gmra.mxu0 %vm919_vm2, %v10164_v23  ;;  %10180 = vst [vmem:[#allocation36_spill] sm:$0xff] %v7593_v43  ;;  %v10188_v43 = vld [vmem:[#allocation61_spill] sm:$0xff] }
 0x35e   : > { %5409 = vmatmul.msk.bf16.gmra.mxu1 %vm919_vm2, %v10164_v23  ;;  %v2173_v22 = vmax.f32 %v2172_v25, %v10171_v9  ;;  %v10179_v25 = vld [vmem:[#allocation100_spill] sm:$0xff] }
 0x35f   : > { %v7567_v13 = vpop.f32.mrf.mxu0 }
 0x360   : > { %v2174_v3 = vmax.f32 %v2173_v22, %v10172_v40  ;;  %v2156_v27 = vmax.f32 %v2155_v47, %v7567_v13  ;;  %v10185_v47 = vld [vmem:[#allocation104_spill] sm:$0xff] }
 0x362   : > { %v2175_v1 = vmax.f32 %v2174_v3, %v10174_v8 }
 0x364   : > { %v7583_v12 = vpop.f32.mrf.mxu1  ;;  %v2176_v56 = vmax.f32 %v2175_v1, %v10176_v17  ;;  %v7613_v45 = vpop.f32.mrf.mxu2 }
 0x365   : > { %10175 = vst [vmem:[#allocation37_spill] sm:$0xff] %v7583_v12 }
 0x366   : > { %v2177_v23 = vmax.f32 %v2176_v56, %v10177_v21  ;;  %10189 = vst [vmem:[#allocation21_spill] sm:$0xff] %v7613_v45  ;;  %v10196_v45 = vld [vmem:[#allocation23_spill] sm:$0xff] }
 0x367   : > { %v7575_v20 = vpop.f32.mrf.mxu0 }
 0x368   : > { %v2178_v31 = vmax.f32 %v2177_v23, %v10178_v62  ;;  %v2157_v3 = vmax.f32 %v2156_v27, %v7575_v20 }
 0x36a   : > { %v2179_v22 = vmax.f32 %v2178_v31, %v10179_v25 }
 0x36c   : > { %v2180_v1 = vmax.f32 %v2179_v22, %v10182_v50  ;;  %v7599_v11 = vpop.f32.mrf.mxu1  ;;  %v10187_v22 = vld [vmem:[#allocation50_spill] sm:$0xff] }
 0x36d   : > { %5394 = vmatmul.msk.bf16.gmra.mxu0 %vm919_vm2, %v10173_v34  ;;  %10183 = vst [vmem:[#allocation38_spill] sm:$0xff] %v7599_v11 }
 0x36e   : > { %5410 = vmatmul.msk.bf16.gmra.mxu1 %vm919_vm2, %v10173_v34  ;;  %v7595_v34 = vpop.f32.mrf.mxu3  ;;  %v2181_v18 = vmax.f32 %v2180_v1, %v10184_v49 }
 0x36f   : > { %v7587_v16 = vpop.f32.mrf.mxu0  ;;  %10181 = vst [vmem:[#allocation52_spill] sm:$0xff] %v7595_v34 }
 0x370   : > { %v2158_v56 = vmax.f32 %v2157_v3, %v7587_v16  ;;  %v2182_v31 = vmax.f32 %v2181_v18, %v10185_v47 }
 0x372   : > { %v2183_v34 = vmax.f32 %v2182_v31, %v10187_v22 }
 0x374   : > { %v2184_v3 = vmax.f32 %v2183_v34, %v10188_v43  ;;  %v7618_v18 = vpop.f32.mrf.mxu1 }
 0x375   : > { %10192 = vst [vmem:[#allocation106_spill] sm:$0xff] %v7618_v18 }
 0x376   : > { %v7615_v1 = vpop.f32.mrf.mxu3 }
 0x377   : > { %v7603_v10 = vpop.f32.mrf.mxu0  ;;  %10190 = vst [vmem:[#allocation105_spill] sm:$0xff] %v7615_v1 }
 0x378   : > { %v2159_v23 = vmax.f32 %v2158_v56, %v7603_v10  ;;  %v10191_v56 = vld [vmem:[#allocation76_spill] sm:$0xff] }
 0x379   : > { %v2185_v61 = vmax.f32 %v2184_v3, %v10191_v56 }
 0x37a   : > { %v2160_v27 = vrot.slane %v2159_v23, 4 }
 0x37b   : > { %v2186_v36 = vmax.f32 %v2185_v61, %v7358_v15  ;;  %v10205_v15 = vld [vmem:[#allocation70_spill] sm:$0xff] }
 0x37c   : > { %v2161_v6 = vmax.f32 %v2159_v23, %v2160_v27  ;;  %v7626_v27 = vpop.f32.mrf.mxu2 }
 0x37d   : > { %5395 = vmatmul.msk.bf16.gmra.mxu0 %vm919_vm2, %v10186_v32  ;;  %10194 = vst [vmem:[#allocation40_spill] sm:$0xff] %v7626_v27 }
 0x37e   : > { %5411 = vmatmul.msk.bf16.gmra.mxu1 %vm919_vm2, %v10186_v32  ;;  %v2162_v37 = vrot.slane %v2161_v6, 2  ;;  %v2187_v32 = vmax.f32 %v2186_v36, %v7426_v51  ;;  %v7628_v1 = vpop.f32.mrf.mxu3  ;;  %v10199_v36 = vld [vmem:[#allocation56_spill] sm:$0xff] }
 0x37f   : > { %10195 = vst [vmem:[#allocation24_spill] sm:$0xff] %v7628_v1 }
 0x380   : > { %v2163_v7 = vmax.f32 %v2161_v6, %v2162_v37  ;;  %v2188_v31 = vmax.f32 %v2187_v32, %v7469_v35  ;;  %v10197_v6 = vld [vmem:[#allocation45_spill] sm:$0xff]  ;;  %v7639_v32 = vpop.f32.mrf.mxu1 }
 0x381   : > { %v10198_v37 = vld [vmem:[#allocation101_spill] sm:$0xff]  ;;  %10201 = vst [vmem:[#allocation60_spill] sm:$0xff] %v7639_v32 }
 0x382   : > { %v2164_v14 = vrot.slane %v2163_v7, 1  ;;  %v2189_v34 = vmax.f32 %v2188_v31, %v7503_v28  ;;  %v2203_v61 = vmax.f32 %v10198_v37, %v10197_v6  ;;  %v10203_v6 = vld [vmem:[#allocation66_spill] sm:$0xff] }
 0x384   : > { %v7623_v23 = vmax.f32 %v2163_v7, %v2164_v14  ;;  %v2190_v3 = vmax.f32 %v2189_v34, %v7539_v2  ;;  %v10200_v14 = vld [vmem:[#allocation59_spill] sm:$0xff]  ;;  %v10204_v2 = vld [vmem:[#allocation53_spill] sm:$0xff] }
 0x385   : > { %v10202_v34 = vld [vmem:[#allocation63_spill] sm:$0xff] }
 0x386   : > { %10193 = vst [vmem:[#allocation22_spill] sm:$0xff] %v7623_v23  ;;  %v2415_v51 = vsub.f32 %v10199_v36, %v7623_v23  ;;  %v2417_v7 = vsub.f32 %v10200_v14, %v7623_v23  ;;  %v2191_v31 = vmax.f32 %v2190_v3, %v7554_v53  ;;  %v2419_v1 = vsub.f32 %v10202_v34, %v7623_v23  ;;  %v7654_v53 = vpop.f32.mrf.mxu2  ;;  %v7656_v34 = vpop.f32.mrf.mxu3 }
 0x387   : > { %v2421_v37 = vsub.f32 %v10203_v6, %v7623_v23  ;;  %v2204_v36 = vmax.f32 %v2203_v61, %v10204_v2  ;;  %v2423_v56 = vsub.f32 %v10205_v15, %v7623_v23  ;;  %10206 = vst [vmem:[#allocation57_spill] sm:$0xff] %v7654_v53  ;;  %v10212_v53 = vld [vmem:[#allocation85_spill] sm:$0xff] }
 0x388   : > { %v2192_v27 = vmax.f32 %v2191_v31, %v7570_v63  ;;  %v2735_v28 = vmul.f32 1.442695, %v2415_v51  ;;  %v2739_v35 = vmul.f32 1.442695, %v2417_v7  ;;  %10207 = vst [vmem:[#allocation16_spill] sm:$0xff] %v7656_v34  ;;  %v10208_v31 = vld [vmem:[#allocation73_spill] sm:$0xff]  ;;  %v2431_v34 = vsub.f32 %v10212_v53, %v7623_v23 }
 0x389   : > { %v2425_v6 = vsub.f32 %v10208_v31, %v7623_v23  ;;  %v2747_v61 = vmul.f32 1.442695, %v2421_v37  ;;  %v10209_v51 = vld [vmem:[#allocation68_spill] sm:$0xff] }
 0x38a   : > { %v2193_v14 = vmax.f32 %v2192_v27, %v7583_v12  ;;  %5651 = vpow2.f32 %v2735_v28  ;;  %v2205_v7 = vmax.f32 %v2204_v36, %v10209_v51  ;;  %v10210_v27 = vld [vmem:[#allocation78_spill] sm:$0xff]  ;;  %v10211_v28 = vld [vmem:[#allocation81_spill] sm:$0xff] }
 0x38b   : > { %5653 = vpow2.f32 %v2739_v35  ;;  %v2427_v2 = vsub.f32 %v10210_v27, %v7623_v23  ;;  %v2755_v35 = vmul.f32 1.442695, %v2425_v6  ;;  %v10215_v27 = vld [vmem:[#allocation43_spill] sm:$0xff]  ;;  %v10216_v51 = vld [vmem:[#allocation26_spill] sm:$0xff] }
 0x38c   : > { %v2194_v3 = vmax.f32 %v2193_v14, %v7599_v11  ;;  %v2751_v14 = vmul.f32 1.442695, %v2423_v56  ;;  %v10213_v11 = vld [vmem:[#allocation87_spill] sm:$0xff]  ;;  %v10218_v56 = vld [vmem:[#allocation90_spill] sm:$0xff] }
 0x38d   : > { %5396 = vmatmul.msk.bf16.gmra.mxu0 %vm919_vm2, %v10196_v45  ;;  %v2433_v31 = vsub.f32 %v10213_v11, %v7623_v23  ;;  %v2759_v53 = vmul.f32 1.442695, %v2427_v2  ;;  %v10220_v11 = vld [vmem:[#allocation92_spill] sm:$0xff] }
 0x38e   : > { %5412 = vmatmul.msk.bf16.gmra.mxu1 %vm919_vm2, %v10196_v45  ;;  %v2743_v45 = vmul.f32 1.442695, %v2419_v1  ;;  %v2195_v15 = vmax.f32 %v2194_v3, %v7618_v18  ;;  %v2429_v1 = vsub.f32 %v10211_v28, %v7623_v23  ;;  %v7675_v3 = vadd.f32 %v10216_v51, %v10215_v27  ;;  %v10222_v51 = vld [vmem:[#allocation96_spill] sm:$0xff] }
 0x38f   : > { %v7678_v28 = vmax.f32 %v2205_v7, %v7341_v30  ;;  %v2437_v6 = vsub.f32 %v10220_v11, %v7623_v23  ;;  %v10223_v7 = vld [vmem:[#allocation99_spill] sm:$0xff]  ;;  %v2767_v27 = vmul.f32 1.442695, %v2431_v34  ;;  %v2445_v11 = vsub.f32 %v6987_v26, %v7623_v23  ;;  %v7703_v34 = vpop.f32.mrf.mxu2 }
 0x390   : > { %5655 = vpow2.f32 %v2743_v45  ;;  %v2196_v37 = vmax.f32 %v2195_v15, %v7639_v32  ;;  %v7671_v36 = vpop.eup %5651  ;;  %10217 = vst [vmem:[#allocation67_spill] sm:$0xff] %v7675_v3  ;;  %v2435_v45 = vsub.f32 %v10218_v56, %v7623_v23  ;;  %v2763_v32 = vmul.f32 1.442695, %v2429_v1 }
 0x391   : > { %5657 = vpow2.f32 %v2747_v61  ;;  %10214 = vst [vmem:[#allocation64_spill] sm:$0xff] %v7671_v36  ;;  %v7682_v18 = vpop.eup %5653  ;;  %v10221_v61 = vld [vmem:[#allocation94_spill] sm:$0xff]  ;;  %v2441_v3 = vsub.f32 %v10222_v51, %v7623_v23  ;;  %v2443_v30 = vsub.f32 %v10223_v7, %v7623_v23  ;;  %v2771_v12 = vmul.f32 1.442695, %v2433_v31 }
 0x392   : > { %10219 = vst [vmem:[#allocation71_spill] sm:$0xff] %v7682_v18  ;;  %v2439_v15 = vsub.f32 %v10221_v61, %v7623_v23  ;;  %5659 = vpow2.f32 %v2751_v14  ;;  %v3225_v2 = vadd.f32 %v7682_v18, %v7671_v36  ;;  %v2197_v61 = vrot.slane %v2196_v37, 4  ;;  %v7705_v18 = vpop.f32.mrf.mxu3 }
 0x393   : > { %5661 = vpow2.f32 %v2755_v35  ;;  %v2447_v1 = vsub.f32 %v7044_v41, %v7623_v23  ;;  %v2775_v14 = vmul.f32 1.442695, %v2435_v45  ;;  %10226 = vst [vmem:[#allocation82_spill] sm:$0xff] %v7703_v34  ;;  %v2449_v36 = vsub.f32 %v10120_v60, %v7623_v23 }
 0x394   : > { %5663 = vpow2.f32 %v2759_v53  ;;  %10227 = vst [vmem:[#allocation86_spill] sm:$0xff] %v7705_v18  ;;  %v2779_v26 = vmul.f32 1.442695, %v2437_v6  ;;  %v2198_v31 = vmax.f32 %v2196_v37, %v2197_v61  ;;  %v2451_v35 = vsub.f32 %v10126_v38, %v7623_v23 }
 0x395   : > { %5665 = vpow2.f32 %v2763_v32  ;;  %v2783_v41 = vmul.f32 1.442695, %v2439_v15  ;;  %v2787_v18 = vmul.f32 1.442695, %v2441_v3  ;;  %v2455_v60 = vsub.f32 %v7298_v0, %v7623_v23 }
 0x396   : > { %v7694_v56 = vpop.eup %5655  ;;  %5667 = vpow2.f32 %v2767_v27  ;;  %v2199_v34 = vrot.slane %v2198_v31, 2  ;;  %v2791_v32 = vmul.f32 1.442695, %v2443_v30  ;;  %v2457_v27 = vsub.f32 %v7343_v54, %v7623_v23 }
 0x397   : > { %10224 = vst [vmem:[#allocation74_spill] sm:$0xff] %v7694_v56  ;;  %v3226_v51 = vadd.f32 %v7694_v56, %v3225_v2  ;;  %v7701_v7 = vpop.eup %5657  ;;  %v2453_v2 = vsub.f32 %v7219_v29, %v7623_v23  ;;  %5669 = vpow2.f32 %v2771_v12  ;;  %v2795_v6 = vmul.f32 1.442695, %v2445_v11 }
 0x398   : > { %10225 = vst [vmem:[#allocation79_spill] sm:$0xff] %v7701_v7  ;;  %v7712_v53 = vpop.eup %5659  ;;  %5671 = vpow2.f32 %v2775_v14  ;;  %v2200_v15 = vmax.f32 %v2198_v31, %v2199_v34  ;;  %v2459_v29 = vsub.f32 %v7420_v24, %v7623_v23  ;;  %v2799_v12 = vmul.f32 1.442695, %v2447_v1 }
 0x399   : > { %v3227_v45 = vadd.f32 %v7701_v7, %v3226_v51  ;;  %v7719_v38 = vpop.eup %5661  ;;  %5673 = vpow2.f32 %v2779_v26  ;;  %v2461_v3 = vsub.f32 %v7451_v46, %v7623_v23  ;;  %v2463_v54 = vsub.f32 %v7488_v44, %v7623_v23 }
 0x39a   : > { %v7723_v61 = vpop.eup %5663  ;;  %5675 = vpow2.f32 %v2783_v41  ;;  %v2803_v11 = vmul.f32 1.442695, %v2449_v36  ;;  %v2465_v51 = vsub.f32 %v7513_v39, %v7623_v23  ;;  %v2807_v24 = vmul.f32 1.442695, %v2451_v35 }
 0x39b   : > { %v3228_v37 = vadd.f32 %v7712_v53, %v3227_v45  ;;  %v7728_v30 = vpop.eup %5665  ;;  %5677 = vpow2.f32 %v2787_v18  ;;  %v2467_v26 = vsub.f32 %v7541_v48, %v7623_v23  ;;  %v2811_v46 = vmul.f32 1.442695, %v2453_v2  ;;  %v7754_v2 = vpop.f32.mrf.mxu2 }
 0x39c   : > { %v7734_v14 = vpop.eup %5667  ;;  %5679 = vpow2.f32 %v2791_v32  ;;  %v2201_v31 = vrot.slane %v2200_v15, 1  ;;  %v2469_v18 = vsub.f32 %v7550_v33, %v7623_v23  ;;  %v2815_v36 = vmul.f32 1.442695, %v2455_v60  ;;  %10228 = vst [vmem:[#allocation88_spill] sm:$0xff] %v7754_v2  ;;  %v7756_v32 = vpop.f32.mrf.mxu3 }
 0x39d   : > { %v3229_v0 = vadd.f32 %v7719_v38, %v3228_v37  ;;  %v7739_v34 = vpop.eup %5669  ;;  %5681 = vpow2.f32 %v2795_v6  ;;  %v2471_v41 = vsub.f32 %v7567_v13, %v7623_v23  ;;  %v2473_v48 = vsub.f32 %v7575_v20, %v7623_v23  ;;  %10229 = vst [vmem:[#allocation18_spill] sm:$0xff] %v7756_v32 }
 0x39e   : > { %v7743_v44 = vpop.eup %5671  ;;  %5683 = vpow2.f32 %v2799_v12  ;;  %v2819_v45 = vmul.f32 1.442695, %v2457_v27  ;;  %v2475_v33 = vsub.f32 %v7587_v16, %v7623_v23  ;;  %v2823_v60 = vmul.f32 1.442695, %v2459_v29 }
 0x39f   : > { %v3230_v1 = vadd.f32 %v7723_v61, %v3229_v0  ;;  %v7748_v35 = vpop.eup %5673  ;;  %5685 = vpow2.f32 %v2803_v11  ;;  %v2477_v13 = vsub.f32 %v7603_v10, %v7623_v23  ;;  %v2827_v20 = vmul.f32 1.442695, %v2461_v3  ;;  %v7769_v0 = vpop.f32.mrf.mxu0 }
 0x3a0   : > { %v7758_v37 = vpop.eup %5675  ;;  %5687 = vpow2.f32 %v2807_v24  ;;  %v7767_v27 = vmax.f32 %v2200_v15, %v2201_v31  ;;  %10231 = vst [vmem:[#allocation93_spill] sm:$0xff] %v7769_v0  ;;  %v7771_v11 = vpop.f32.mrf.mxu1  ;;  %v2831_v29 = vmul.f32 1.442695, %v2463_v54  ;;  %v2835_v10 = vmul.f32 1.442695, %v2465_v51 }
 0x3a1   : > { %v3231_v39 = vadd.f32 %v7728_v30, %v3230_v1  ;;  %v7763_v12 = vpop.eup %5677  ;;  %5689 = vpow2.f32 %v2811_v46  ;;  %10232 = vst [vmem:[#allocation95_spill] sm:$0xff] %v7771_v11  ;;  %v2839_v3 = vmul.f32 1.442695, %v2467_v26  ;;  %v2843_v15 = vmul.f32 1.442695, %v2469_v18 }
 0x3a2   : > { %10230 = vst [vmem:[#allocation91_spill] sm:$0xff] %v7767_v27  ;;  %v7773_v1 = vpop.eup %5679  ;;  %5691 = vpow2.f32 %v2815_v36  ;;  %v2847_v31 = vmul.f32 1.442695, %v2471_v41  ;;  %v2851_v11 = vmul.f32 1.442695, %v2473_v48  ;;  %v2418_v26 = vsub.f32 %v10162_v4, %v7767_v27 }
 0x3a3   : > { %v3232_v6 = vadd.f32 %v7734_v14, %v3231_v39  ;;  %v7778_v39 = vpop.eup %5681  ;;  %5693 = vpow2.f32 %v2819_v45  ;;  %v2855_v36 = vmul.f32 1.442695, %v2475_v33  ;;  %v2859_v54 = vmul.f32 1.442695, %v2477_v13  ;;  %v7802_v33 = vpop.f32.mrf.mxu2 }
 0x3a4   : > { %v7780_v46 = vpop.eup %5683  ;;  %5695 = vpow2.f32 %v2823_v60  ;;  %v2420_v18 = vsub.f32 %v10165_v58, %v7767_v27  ;;  %v2422_v48 = vsub.f32 %v10166_v5, %v7767_v27  ;;  %v2426_v45 = vsub.f32 %v10168_v52, %v7767_v27  ;;  %10237 = vst [vmem:[#allocation104_spill] sm:$0xff] %v7802_v33  ;;  %v7811_v5 = vpop.f32.mrf.mxu3 }
 0x3a5   : > { %v3233_v24 = vadd.f32 %v7739_v34, %v3232_v6  ;;  %10233 = vst [vmem:[#allocation97_spill] sm:$0xff] %v7780_v46  ;;  %v7783_v23 = vpop.eup %5685  ;;  %5697 = vpow2.f32 %v2827_v20  ;;  %v2416_v6 = vsub.f32 %v10163_v19, %v7767_v27  ;;  %v2424_v19 = vsub.f32 %v10167_v57, %v7767_v27 }
 0x3a6   : > { %10234 = vst [vmem:[#allocation100_spill] sm:$0xff] %v7783_v23  ;;  %v7787_v16 = vpop.eup %5687  ;;  %5699 = vpow2.f32 %v2831_v29  ;;  %v2428_v58 = vsub.f32 %v10169_v42, %v7767_v27  ;;  %v2430_v13 = vsub.f32 %v10170_v55, %v7767_v27  ;;  %v2432_v57 = vsub.f32 %v10171_v9, %v7767_v27 }
 0x3a7   : > { %v3234_v0 = vadd.f32 %v7743_v44, %v3233_v24  ;;  %10235 = vst [vmem:[#allocation33_spill] sm:$0xff] %v7787_v16  ;;  %v7794_v41 = vpop.eup %5689  ;;  %5701 = vpow2.f32 %v2835_v10  ;;  %v2434_v52 = vsub.f32 %v10172_v40, %v7767_v27  ;;  %v7821_v29 = vpop.f32.mrf.mxu0  ;;  %v10243_v24 = vld [vmem:[#allocation28_spill] sm:$0xff]  ;;  %v2745_v40 = vmul.f32 1.442695, %v2420_v18 }
 0x3a8   : > { %10236 = vst [vmem:[#allocation62_spill] sm:$0xff] %v7794_v41  ;;  %v7804_v60 = vpop.eup %5691  ;;  %5703 = vpow2.f32 %v2839_v3  ;;  %v7823_v42 = vpop.f32.mrf.mxu1  ;;  %5397 = vmatmul.msk.bf16.gmra.mxu0 %vm919_vm2, %v10243_v24  ;;  %5413 = vmatmul.msk.bf16.gmra.mxu1 %vm919_vm2, %v10243_v24  ;;  %v2442_v3 = vsub.f32 %v10178_v62, %v7767_v27  ;;  %v2749_v62 = vmul.f32 1.442695, %v2422_v48  ;;  %v2769_v33 = vmul.f32 1.442695, %v2432_v57 }
 0x3a9   : > { %v3235_v51 = vadd.f32 %v7748_v35, %v3234_v0  ;;  %10238 = vst [vmem:[#allocation20_spill] sm:$0xff] %v7804_v60  ;;  %v7813_v20 = vpop.eup %5693  ;;  %5705 = vpow2.f32 %v2843_v15  ;;  %v2436_v0 = vsub.f32 %v10174_v8, %v7767_v27  ;;  %v2440_v8 = vsub.f32 %v10177_v21, %v7767_v27 }
 0x3aa   : > { %10239 = vst [vmem:[#allocation50_spill] sm:$0xff] %v7811_v5  ;;  %v7829_v55 = vpop.eup %5695  ;;  %5707 = vpow2.f32 %v2847_v31  ;;  %v2737_v15 = vmul.f32 1.442695, %v2416_v6  ;;  %v2446_v21 = vsub.f32 %v10182_v50, %v7767_v27  ;;  %v10248_v5 = vld [vmem:[#allocation31_spill] sm:$0xff]  ;;  %v10253_v50 = vld [vmem:[#allocation89_spill] sm:$0xff] }
 0x3ab   : > { %v3236_v4 = vadd.f32 %v7758_v37, %v3235_v51  ;;  %10240 = vst [vmem:[#allocation61_spill] sm:$0xff] %v7813_v20  ;;  %v7836_v10 = vpop.eup %5697  ;;  %5709 = vpow2.f32 %v2851_v11  ;;  %v2741_v51 = vmul.f32 1.442695, %v2418_v26  ;;  %v7862_v48 = vpop.f32.mrf.mxu2  ;;  %v10246_v26 = vld [vmem:[#allocation76_spill] sm:$0xff]  ;;  %v2777_v57 = vmul.f32 1.442695, %v2436_v0 }
 0x3ac   : > { %10241 = vst [vmem:[#allocation23_spill] sm:$0xff] %v7821_v29  ;;  %v7840_v24 = vpop.eup %5699  ;;  %5711 = vpow2.f32 %v2855_v36 }
 0x3ad   : > { %10242 = vst [vmem:[#allocation56_spill] sm:$0xff] %v7823_v42  ;;  %v3237_v9 = vadd.f32 %v7763_v12, %v3236_v4  ;;  %v2444_v4 = vsub.f32 %v10179_v25, %v7767_v27  ;;  %v7845_v42 = vpop.eup %5701  ;;  %5713 = vpow2.f32 %v2737_v15  ;;  %v2753_v25 = vmul.f32 1.442695, %v2424_v19 }
 0x3ae   : > { %10244 = vst [vmem:[#allocation59_spill] sm:$0xff] %v7836_v10  ;;  %v7851_v6 = vpop.eup %5703  ;;  %5715 = vpow2.f32 %v2741_v51  ;;  %v2757_v15 = vmul.f32 1.442695, %v2426_v45  ;;  %v2761_v19 = vmul.f32 1.442695, %v2428_v58  ;;  %v10251_v58 = vld [vmem:[#allocation49_spill] sm:$0xff] }
 0x3af   : > { %v3238_v31 = vadd.f32 %v7773_v1, %v3237_v9  ;;  %v7856_v18 = vpop.eup %5705  ;;  %5717 = vpow2.f32 %v2859_v54  ;;  %10245 = vst [vmem:[#allocation63_spill] sm:$0xff] %v7862_v48  ;;  %v10247_v54 = vld [vmem:[#allocation77_spill] sm:$0xff]  ;;  %v2765_v45 = vmul.f32 1.442695, %v2430_v13  ;;  %v7875_v32 = vpop.f32.mrf.mxu0  ;;  %v2464_v9 = vsub.f32 %v10253_v50, %v7767_v27  ;;  %v10254_v13 = vld [vmem:[#allocation44_spill] sm:$0xff] }
 0x3b0   : > { %v7864_v11 = vpop.eup %5707  ;;  %5719 = vpow2.f32 %v2745_v40  ;;  %10249 = vst [vmem:[#allocation66_spill] sm:$0xff] %v7875_v32  ;;  %v7877_v48 = vpop.f32.mrf.mxu1  ;;  %v2462_v40 = vsub.f32 %v10251_v58, %v7767_v27  ;;  %v2773_v32 = vmul.f32 1.442695, %v2434_v52  ;;  %v10257_v58 = vld [vmem:[#allocation34_spill] sm:$0xff]  ;;  %v2470_v50 = vsub.f32 %v7570_v63, %v7767_v27 }
 0x3b1   : > { %v3239_v36 = vadd.f32 %v7778_v39, %v3238_v31  ;;  %v7869_v29 = vpop.eup %5709  ;;  %5721 = vpow2.f32 %v2749_v62  ;;  %10250 = vst [vmem:[#allocation70_spill] sm:$0xff] %v7877_v48  ;;  %v2466_v62 = vsub.f32 %v10254_v13, %v7767_v27  ;;  %v7890_v48 = vpop.f32.mrf.mxu3  ;;  %v10258_v13 = vld [vmem:[#allocation37_spill] sm:$0xff]  ;;  %v2785_v52 = vmul.f32 1.442695, %v2440_v8 }
 0x3b2   : > { %5723 = vpow2.f32 %v2753_v25  ;;  %10255 = vst [vmem:[#allocation78_spill] sm:$0xff] %v7890_v48  ;;  %v2468_v25 = vsub.f32 %v10257_v58, %v7767_v27  ;;  %v10262_v58 = vld [vmem:[#allocation106_spill] sm:$0xff]  ;;  %v2793_v63 = vmul.f32 1.442695, %v2444_v4 }
 0x3b3   : > { %v3240_v31 = vadd.f32 %v7780_v46, %v3239_v36  ;;  %v7879_v36 = vpop.eup %5711  ;;  %5725 = vpow2.f32 %v2757_v15  ;;  %v2472_v15 = vsub.f32 %v10258_v13, %v7767_v27  ;;  %v2476_v56 = vsub.f32 %v10262_v58, %v7767_v27  ;;  %v7914_v8 = vpop.f32.mrf.mxu2 }
 0x3b4   : > { %v7884_v2 = vpop.eup %5713  ;;  %5727 = vpow2.f32 %v2761_v19  ;;  %v2789_v19 = vmul.f32 1.442695, %v2442_v3  ;;  %10263 = vst [vmem:[#allocation26_spill] sm:$0xff] %v7914_v8  ;;  %v2797_v3 = vmul.f32 1.442695, %v2446_v21  ;;  %v10267_v58 = vsub.f32 %v10184_v49, %v7767_v27 }
 0x3b5   : > { %v3241_v51 = vadd.f32 %v7783_v23, %v3240_v31  ;;  %10252 = vst [vmem:[#allocation73_spill] sm:$0xff] %v7884_v2  ;;  %v7892_v46 = vpop.eup %5715  ;;  %5729 = vpow2.f32 %v2765_v45  ;;  %v10271_v49 = vsub.f32 %v10185_v47, %v7767_v27 }
 0x3b6   : > { %10256 = vst [vmem:[#allocation81_spill] sm:$0xff] %v7892_v46  ;;  %v7897_v23 = vpop.eup %5717  ;;  %5731 = vpow2.f32 %v2769_v33  ;;  %v3262_v45 = vadd.f32 %v7892_v46, %v7884_v2  ;;  %v2801_v8 = vmul.f32 1.442695, %v10267_v58  ;;  %v10273_v58 = vsub.f32 %v10188_v43, %v7767_v27 }
 0x3b7   : > { %v3242_v31 = vadd.f32 %v7787_v16, %v3241_v51  ;;  %v7903_v48 = vpop.eup %5719  ;;  %v10260_v51 = vld [vmem:[#allocation38_spill] sm:$0xff]  ;;  %5733 = vpow2.f32 %v2773_v32  ;;  %v10266_v32 = vsub.f32 %v10176_v17, %v7767_v27  ;;  %v7930_v2 = vpop.f32.mrf.mxu0  ;;  %v2833_v43 = vmul.f32 1.442695, %v2464_v9 }
 0x3b8   : > { %10259 = vst [vmem:[#allocation85_spill] sm:$0xff] %v7903_v48  ;;  %v2474_v16 = vsub.f32 %v10260_v51, %v7767_v27  ;;  %v7908_v0 = vpop.eup %5721  ;;  %v10264_v51 = vld [vmem:[#allocation60_spill] sm:$0xff]  ;;  %5735 = vpow2.f32 %v2777_v57  ;;  %v3263_v46 = vadd.f32 %v7903_v48, %v3262_v45  ;;  %v2805_v57 = vmul.f32 1.442695, %v10271_v49 }
 0x3b9   : > { %v3243_v7 = vadd.f32 %v7794_v41, %v3242_v31  ;;  %10261 = vst [vmem:[#allocation87_spill] sm:$0xff] %v7908_v0  ;;  %v7916_v13 = vpop.eup %5723  ;;  %v2478_v33 = vsub.f32 %v10264_v51, %v7767_v27  ;;  %v2781_v4 = vmul.f32 1.442695, %v10266_v32  ;;  %5737 = vpow2.f32 %v2785_v52  ;;  %v10270_v51 = vld [vmem:[#allocation32_spill] sm:$0xff] }
 0x3ba   : > { %v7921_v41 = vpop.eup %5725  ;;  %10268 = vst [vmem:[#allocation92_spill] sm:$0xff] %v7930_v2  ;;  %5398 = vmatmul.msk.bf16.gmra.mxu0 %vm919_vm2, %v10270_v51  ;;  %5739 = vpow2.f32 %v2789_v19  ;;  %v10272_v52 = vsub.f32 %v10187_v22, %v7767_v27  ;;  %v3264_v19 = vadd.f32 %v7908_v0, %v3263_v46  ;;  %v10275_v22 = vsub.f32 %v10248_v5, %v7767_v27 }
 0x3bb   : > { %v3244_v31 = vadd.f32 %v7804_v60, %v3243_v7  ;;  %10265 = vst [vmem:[#allocation90_spill] sm:$0xff] %v7921_v41  ;;  %v7932_v7 = vpop.f32.mrf.mxu1  ;;  %5414 = vmatmul.msk.bf16.gmra.mxu1 %vm919_vm2, %v10270_v51  ;;  %v7938_v21 = vpop.eup %5727  ;;  %5741 = vpow2.f32 %v2793_v63  ;;  %v2813_v51 = vmul.f32 1.442695, %v10273_v58  ;;  %v2829_v63 = vmul.f32 1.442695, %v2462_v40 }
 0x3bc   : > { %10269 = vst [vmem:[#allocation94_spill] sm:$0xff] %v7932_v7  ;;  %v2809_v45 = vmul.f32 1.442695, %v10272_v52  ;;  %v7947_v32 = vpop.eup %5729  ;;  %v10274_v7 = vsub.f32 %v10246_v26, %v7767_v27  ;;  %5743 = vpow2.f32 %v2797_v3  ;;  %v2825_v49 = vmul.f32 1.442695, %v10275_v22 }
 0x3bd   : > { %v3245_v17 = vadd.f32 %v7813_v20, %v3244_v31  ;;  %v7956_v2 = vpop.eup %5731  ;;  %5745 = vpow2.f32 %v2781_v4  ;;  %v7964_v58 = vmul.f32 1.442695, %v2466_v62  ;;  %v3265_v26 = vadd.f32 %v7916_v13, %v3264_v19 }
 0x3be   : > { %v2817_v31 = vmul.f32 1.442695, %v10274_v7  ;;  %v7962_v52 = vpop.eup %5733  ;;  %v7967_v7 = vpop.f32.mrf.mxu3  ;;  %5747 = vpow2.f32 %v2801_v8  ;;  %v2841_v3 = vmul.f32 1.442695, %v2468_v25  ;;  %v2849_v5 = vmul.f32 1.442695, %v2472_v15 }
 0x3bf   : > { %v3246_v47 = vadd.f32 %v7829_v55, %v3245_v17  ;;  %10276 = vst [vmem:[#allocation96_spill] sm:$0xff] %v7967_v7  ;;  %v5736_v46 = vpop.eup %5735  ;;  %v2845_v17 = vmul.f32 1.442695, %v2470_v50  ;;  %5749 = vpow2.f32 %v2805_v57  ;;  %v2853_v40 = vmul.f32 1.442695, %v2474_v16  ;;  %v7987_v8 = vpop.f32.mrf.mxu0 }
 0x3c0   : > { %v7970_v48 = vpop.eup %5737  ;;  %v3266_v4 = vadd.f32 %v7921_v41, %v3265_v26  ;;  %5751 = vpow2.f32 %v2809_v45  ;;  %v2857_v19 = vmul.f32 1.442695, %v2476_v56  ;;  %v7982_v50 = vmul.f32 1.442695, %v2478_v33  ;;  %10278 = vst [vmem:[#allocation28_spill] sm:$0xff] %v7987_v8 }
 0x3c1   : > { %v3247_v0 = vadd.f32 %v7836_v10, %v3246_v47  ;;  %v7973_v9 = vpop.eup %5739  ;;  %v3499_v22 = vpack.c.bf16 %v7970_v48, %v7758_v37  ;;  %v7978_v47 = vpop.f32.mrf.mxu2  ;;  %5753 = vpow2.f32 %v2813_v51  ;;  %v7997_v33 = vpack.c.bf16 %v5736_v46, %v7743_v44 }
 0x3c2   : > { %10277 = vst [vmem:[#allocation99_spill] sm:$0xff] %v7978_v47  ;;  %v7980_v25 = vpop.eup %5741  ;;  %v3267_v16 = vadd.f32 %v7938_v21, %v3266_v4  ;;  %v3500_v15 = vpack.c.bf16 %v7973_v9, %v7763_v12  ;;  %5755 = vpow2.f32 %v2817_v31 }
 0x3c3   : > { %v3248_v62 = vadd.f32 %v7840_v24, %v3247_v0  ;;  %v7989_v0 = vpop.f32.mrf.mxu1  ;;  %v7991_v56 = vpop.eup %5743  ;;  %v3501_v57 = vpack.c.bf16 %v7980_v25, %v7773_v1  ;;  %5757 = vpow2.f32 %v2825_v49  ;;  %v3865_v26 = vunpack.c.l.b16 %v3499_v22 }
 0x3c4   : > { %10279 = vst [vmem:[#allocation76_spill] sm:$0xff] %v7989_v0  ;;  %v5746_v45 = vpop.eup %5745  ;;  %v3268_v51 = vadd.f32 %v7947_v32, %v3267_v16  ;;  %v3502_v12 = vpack.c.bf16 %v7991_v56, %v7778_v39  ;;  %v3867_v8 = vunpack.c.l.b16 %v3500_v15  ;;  %5759 = vpow2.f32 %v2829_v63 }
 0x3c5   : > { %v3249_v37 = vadd.f32 %v7845_v42, %v3248_v62  ;;  %v8002_v4 = vpop.eup %5747  ;;  %v3869_v62 = vunpack.c.l.b16 %v3501_v57  ;;  %v3870_v31 = vunpack.c.h.b16 %v3501_v57  ;;  %5761 = vpow2.f32 %v2833_v43 }
 0x3c6   : > { %v8005_v7 = vpop.eup %5749  ;;  %v3269_v44 = vadd.f32 %v7956_v2, %v3268_v51  ;;  %v3871_v1 = vunpack.c.l.b16 %v3502_v12  ;;  %v3872_v49 = vunpack.c.h.b16 %v3502_v12  ;;  %v3866_v39 = vunpack.c.h.b16 %v3499_v22  ;;  %v8015_v63 = vpop.f32.mrf.mxu3 }
 0x3c7   : > { %v3250_v0 = vadd.f32 %v7851_v6, %v3249_v37  ;;  %v8008_v47 = vpop.eup %5751  ;;  %v3498_v20 = vpack.c.bf16 %v5746_v45, %v7748_v35  ;;  %5763 = vpow2.f32 %v2841_v3  ;;  %10280 = vst [vmem:[#allocation77_spill] sm:$0xff] %v8015_v63  ;;  %v3868_v41 = vunpack.c.h.b16 %v3500_v15 }
 0x3c8   : > { %v8012_v60 = vpop.eup %5753  ;;  %v3270_v37 = vadd.f32 %v7962_v52, %v3269_v44  ;;  %v3919_v57 = vpack.c.b16 %v3871_v1, %v3869_v62  ;;  %v3920_v10 = vpack.c.b16 %v3872_v49, %v3870_v31  ;;  %5765 = vpow2.f32 %v2845_v17 }
 0x3c9   : > { %v3251_v16 = vadd.f32 %v7856_v18, %v3250_v0  ;;  %v8017_v51 = vpop.eup %5755  ;;  %v8022_v43 = vpack.c.bf16 %v7956_v2, %v7734_v14  ;;  %5767 = vpow2.f32 %v2849_v5  ;;  %v3917_v22 = vpack.c.b16 %v3867_v8, %v3865_v26  ;;  %v8028_v17 = vpop.f32.mrf.mxu2  ;;  %v10283_v8 = vld [vmem:[#allocation39_spill] sm:$0xff] }
 0x3ca   : > { %v8024_v35 = vpop.eup %5757  ;;  %v3271_v3 = vadd.f32 %v5736_v46, %v3270_v37  ;;  %3969 = vmatpush.bf16.msra.mxu2 %v3919_v57  ;;  %3995 = vmatpush.bf16.msrb.mxu0 %v3920_v10  ;;  %v3861_v0 = vunpack.c.l.b16 %v7997_v33  ;;  %5769 = vpow2.f32 %v2853_v40  ;;  %v3918_v31 = vpack.c.b16 %v3868_v41, %v3866_v39  ;;  %v8033_v46 = vpop.f32.mrf.mxu0  ;;  %v10284_v40 = vld [vmem:[#allocation43_spill] sm:$0xff] }
 0x3cb   : > { %v3252_v12 = vadd.f32 %v7864_v11, %v3251_v16  ;;  %v3863_v44 = vunpack.c.l.b16 %v3498_v20  ;;  %v8030_v15 = vpop.eup %5759  ;;  %5771 = vpow2.f32 %v2857_v19  ;;  %v3862_v2 = vunpack.c.h.b16 %v7997_v33  ;;  %10281 = vst [vmem:[#allocation31_spill] sm:$0xff] %v8033_v46  ;;  %v8035_v10 = vpop.f32.mrf.mxu1  ;;  %5399 = vmatmul.msk.bf16.gmra.mxu0 %vm919_vm2, %v10283_v8  ;;  %5415 = vmatmul.msk.bf16.gmra.mxu1 %vm919_vm2, %v10283_v8  ;;  %v10285_v26 = vld [vmem:[#allocation27_spill] sm:$0xff]  ;;  %v10358_v46 = vld [vmem:[#allocation50_spill] sm:$0xff] }
 0x3cc   : > { %v3272_v14 = vadd.f32 %v5746_v45, %v3271_v3  ;;  %v3864_v5 = vunpack.c.h.b16 %v3498_v20  ;;  %10282 = vst [vmem:[#allocation49_spill] sm:$0xff] %v8035_v10  ;;  %v8041_v41 = vpop.eup %5761  ;;  %v8045_v1 = vadd.f32 %v10285_v26, %v10284_v40  ;;  %5773 = vpow2.f32 %v7982_v50  ;;  %v10286_v45 = vld [vmem:[#allocation72_spill] sm:$0xff] }
 0x3cd   : > { %v3253_v62 = vadd.f32 %v7869_v29, %v3252_v12  ;;  %v3496_v20 = vpack.c.bf16 %v7962_v52, %v7739_v34  ;;  %v8051_v33 = vpop.eup %5763  ;;  %v10287_v49 = vmax.f32 %v7678_v28, %v7418_v59  ;;  %v10288_v39 = vsub.f32 %v10247_v54, %v7767_v27 }
 0x3ce   : > { %5775 = vpow2.f32 %v7964_v58  ;;  %v3273_v57 = vadd.f32 %v7970_v48, %v3272_v14  ;;  %3970 = vmatpush.bf16.msra.mxu2 %v3917_v22  ;;  %3996 = vmatpush.bf16.msrb.mxu0 %v3918_v31  ;;  %v8064_v50 = vpop.eup %5765  ;;  %v3513_v28 = vpack.c.bf16 %v8051_v33, %v7851_v6  ;;  %v3857_v52 = vunpack.c.l.b16 %v8022_v43 }
 0x3cf   : > { %v3254_v19 = vadd.f32 %v7879_v36, %v3253_v62  ;;  %v8057_v16 = vmax.f32 %v10287_v49, %v10286_v45  ;;  %v2821_v37 = vmul.f32 1.442695, %v10288_v39  ;;  %v3859_v12 = vunpack.c.l.b16 %v3496_v20  ;;  %v8072_v3 = vpop.eup %5767 }
 0x3d0   : > { %v3274_v54 = vadd.f32 %v7973_v9, %v3273_v57  ;;  %v3915_v58 = vpack.c.b16 %v3863_v44, %v3861_v0  ;;  %v3514_v48 = vpack.c.bf16 %v8064_v50, %v7856_v18  ;;  %v3916_v22 = vpack.c.b16 %v3864_v5, %v3862_v2  ;;  %v8077_v62 = vpop.eup %5769  ;;  %v8087_v44 = vpop.f32.mrf.mxu3 }
 0x3d1   : > { %v8067_v34 = vadd.f32 %v7897_v23, %v3254_v19  ;;  %v3515_v31 = vpack.c.bf16 %v8072_v3, %v7864_v11  ;;  %v3893_v14 = vunpack.c.l.b16 %v3513_v28  ;;  %v3894_v8 = vunpack.c.h.b16 %v3513_v28  ;;  %v8082_v40 = vpop.eup %5771 }
 0x3d2   : > { %v3858_v6 = vunpack.c.h.b16 %v8022_v43  ;;  %v3275_v26 = vadd.f32 %v7980_v25, %v3274_v54  ;;  %v3516_v9 = vpack.c.bf16 %v8077_v62, %v7869_v29  ;;  %3971 = vmatpush.bf16.msra.mxu2 %v3915_v58  ;;  %v3895_v0 = vunpack.c.l.b16 %v3514_v48  ;;  %3997 = vmatpush.bf16.msrb.mxu0 %v3916_v22  ;;  %v8089_v2 = vpop.eup %5773 }
 0x3d3   : > { %v3896_v18 = vunpack.c.h.b16 %v3514_v48  ;;  %v3517_v11 = vpack.c.bf16 %v8082_v40, %v7879_v36  ;;  %v3897_v5 = vunpack.c.l.b16 %v3515_v31  ;;  %v3898_v43 = vunpack.c.h.b16 %v3515_v31 }
 0x3d4   : > { %v3913_v19 = vpack.c.b16 %v3859_v12, %v3857_v52  ;;  %v8093_v49 = vpop.eup %5775  ;;  %v3276_v25 = vadd.f32 %v7991_v56, %v3275_v26  ;;  %v3518_v29 = vpack.c.bf16 %v8089_v2, %v7897_v23  ;;  %v3899_v39 = vunpack.c.l.b16 %v3516_v9  ;;  %v8103_v12 = vpop.f32.mrf.mxu2 }
 0x3d5   : > { %v3900_v57 = vunpack.c.h.b16 %v3516_v9  ;;  %v3901_v28 = vunpack.c.l.b16 %v3517_v11  ;;  %v3902_v54 = vunpack.c.h.b16 %v3517_v11  ;;  %v8098_v58 = vpack.c.b16 %v3895_v0, %v3893_v14  ;;  %v8109_v14 = vpop.f32.mrf.mxu0 }
 0x3d6   : > { %v8100_v48 = vpack.c.b16 %v3896_v18, %v3894_v8  ;;  %v3277_v36 = vadd.f32 %v8002_v4, %v3276_v25  ;;  %v3903_v22 = vunpack.c.l.b16 %v3518_v29  ;;  %v3904_v31 = vunpack.c.h.b16 %v3518_v29  ;;  %3972 = vmatpush.bf16.msra.mxu2 %v3913_v19  ;;  %10289 = vst [vmem:[#allocation89_spill] sm:$0xff] %v8109_v14  ;;  %v8111_v8 = vpop.f32.mrf.mxu1  ;;  %v10291_v19 = vld [vmem:[#allocation67_spill] sm:$0xff] }
 0x3d7   : > { %v3933_v52 = vpack.c.b16 %v3899_v39, %v3897_v5  ;;  %v3934_v56 = vpack.c.b16 %v3900_v57, %v3898_v43  ;;  %v3511_v23 = vpack.c.bf16 %v8041_v41, %v7840_v24  ;;  %v3512_v26 = vpack.c.bf16 %v8093_v49, %v7845_v42  ;;  %10290 = vst [vmem:[#allocation44_spill] sm:$0xff] %v8111_v8  ;;  %v10292_v25 = vld [vmem:[#allocation51_spill] sm:$0xff]  ;;  %v10293_v57 = vld [vmem:[#allocation90_spill] sm:$0xff] }
 0x3d8   : > { %v3860_v9 = vunpack.c.h.b16 %v3496_v20  ;;  %5777 = vpow2.f32 %v2821_v37  ;;  %v3278_v0 = vadd.f32 %v8005_v7, %v3277_v36  ;;  %v3935_v18 = vpack.c.b16 %v3903_v22, %v3901_v28 }
 0x3d9   : > { %v3936_v11 = vpack.c.b16 %v3904_v31, %v3902_v54  ;;  %v8116_v43 = vpack.c.bf16 %v8045_v1, %v10291_v19  ;;  %v2209_v24 = vmax.f32 %v8057_v16, %v10292_v25  ;;  %v3889_v20 = vunpack.c.l.b16 %v3511_v23  ;;  %v8134_v54 = vpop.f32.mrf.mxu3 }
 0x3da   : > { %v3914_v5 = vpack.c.b16 %v3860_v9, %v3858_v6  ;;  %v3279_v42 = vadd.f32 %v8008_v47, %v3278_v0  ;;  %3982 = vmatpush.bf16.msra.mxu3 %v3935_v18  ;;  %v3891_v29 = vunpack.c.l.b16 %v3512_v26  ;;  %v3493_v37 = vpack.c.bf16 %v7938_v21, %v7723_v61  ;;  %v10294_v61 = vld [vmem:[#allocation59_spill] sm:$0xff]  ;;  %v10296_v0 = vld [vmem:[#allocation102_spill] sm:$0xff] }
 0x3db   : > { %4008 = vmatpush.bf16.msrb.mxu1 %v3936_v11  ;;  %v3494_v6 = vpack.c.bf16 %v7947_v32, %v7728_v30  ;;  %v8128_v1 = vpack.c.bf16 %v8024_v35, %v7829_v55  ;;  %v3491_v16 = vpack.c.bf16 %v7916_v13, %v7712_v53  ;;  %v3492_v28 = vpack.c.bf16 %v10293_v57, %v7719_v38  ;;  %v10295_v38 = vld [vmem:[#allocation48_spill] sm:$0xff] }
 0x3dc   : > { %3998 = vmatpush.bf16.msrb.mxu0 %v3914_v5  ;;  %v3280_v39 = vadd.f32 %v8012_v60, %v3279_v42  ;;  %v3853_v36 = vunpack.c.l.b16 %v3493_v37  ;;  %v8138_v21 = vpack.c.bf16 %v8030_v15, %v10294_v61  ;;  %v3854_v30 = vunpack.c.h.b16 %v3493_v37  ;;  %v8141_v13 = vpop.f32.mrf.mxu2  ;;  %v10299_v37 = vld [vmem:[#allocation42_spill] sm:$0xff]  ;;  %v10302_v61 = vld [vmem:[#allocation61_spill] sm:$0xff] }
 0x3dd   : > { %v3855_v22 = vunpack.c.l.b16 %v3494_v6  ;;  %v3890_v55 = vunpack.c.h.b16 %v3511_v23  ;;  %v3892_v9 = vunpack.c.h.b16 %v3512_v26  ;;  %v3856_v53 = vunpack.c.h.b16 %v3494_v6  ;;  %v8145_v42 = vpop.f32.mrf.mxu0  ;;  %5400 = vmatmul.msk.bf16.gmra.mxu0 %vm919_vm2, %v10299_v37  ;;  %v10301_v6 = vld [vmem:[#allocation20_spill] sm:$0xff] }
 0x3de   : > { %v5778_v32 = vpop.eup %5777  ;;  %v3281_v31 = vadd.f32 %v8017_v51, %v3280_v39  ;;  %3983 = vmatpush.bf16.msra.mxu3 %v3933_v52  ;;  %v3849_v5 = vunpack.c.l.b16 %v3491_v16  ;;  %v3851_v19 = vunpack.c.l.b16 %v3492_v28  ;;  %10297 = vst [vmem:[#allocation34_spill] sm:$0xff] %v8145_v42  ;;  %v8147_v57 = vpop.f32.mrf.mxu1  ;;  %5416 = vmatmul.msk.bf16.gmra.mxu1 %vm919_vm2, %v10299_v37  ;;  %v10300_v52 = vld [vmem:[#allocation17_spill] sm:$0xff]  ;;  %v3885_v26 = vunpack.c.l.b16 %v8128_v1 }
 0x3df   : > { %4009 = vmatpush.bf16.msrb.mxu1 %v3934_v56  ;;  %v3911_v11 = vpack.c.b16 %v3855_v22, %v3853_v36  ;;  %10298 = vst [vmem:[#allocation37_spill] sm:$0xff] %v8147_v57  ;;  %v8154_v56 = vmax.f32 %v2209_v24, %v10300_v52  ;;  %v3507_v39 = vpack.c.bf16 %v8017_v51, %v10301_v6  ;;  %v3887_v36 = vunpack.c.l.b16 %v8138_v21 }
 0x3e0   : > { %v3282_v23 = vadd.f32 %v5778_v32, %v3281_v31  ;;  %v3912_v22 = vpack.c.b16 %v3856_v53, %v3854_v30  ;;  %v3508_v18 = vpack.c.bf16 %v5778_v32, %v10302_v61  ;;  %v3850_v27 = vunpack.c.h.b16 %v3491_v16 }
 0x3e1   : > { %3973 = vmatpush.bf16.msra.mxu2 %v3911_v11  ;;  %v3929_v24 = vpack.c.b16 %v3891_v29, %v3889_v20  ;;  %v3930_v31 = vpack.c.b16 %v3892_v9, %v3890_v55  ;;  %v3852_v37 = vunpack.c.h.b16 %v3492_v28  ;;  %v3886_v8 = vunpack.c.h.b16 %v8128_v1  ;;  %v10305_v29 = vld [vmem:[#allocation79_spill] sm:$0xff] }
 0x3e2   : > { %v3283_v57 = vadd.f32 %v8024_v35, %v3282_v23  ;;  %3984 = vmatpush.bf16.msra.mxu3 %v8098_v58  ;;  %3999 = vmatpush.bf16.msrb.mxu0 %v3912_v22  ;;  %v3888_v51 = vunpack.c.h.b16 %v8138_v21  ;;  %v3909_v11 = vpack.c.b16 %v3851_v19, %v3849_v5  ;;  %v3881_v6 = vunpack.c.l.b16 %v3507_v39  ;;  %v10303_v23 = vld [vmem:[#allocation74_spill] sm:$0xff]  ;;  %v10306_v28 = vld [vmem:[#allocation87_spill] sm:$0xff]  ;;  %v10307_v21 = vld [vmem:[#allocation33_spill] sm:$0xff] }
 0x3e3   : > { %4010 = vmatpush.bf16.msrb.mxu1 %v8100_v48  ;;  %v3883_v32 = vunpack.c.l.b16 %v3508_v18  ;;  %v3882_v16 = vunpack.c.h.b16 %v3507_v39  ;;  %v3884_v53 = vunpack.c.h.b16 %v3508_v18  ;;  %v3927_v35 = vpack.c.b16 %v3887_v36, %v3885_v26  ;;  %v10304_v48 = vld [vmem:[#allocation85_spill] sm:$0xff]  ;;  %v8176_v18 = vpop.f32.mrf.mxu3 }
 0x3e4   : > { %v3284_v30 = vadd.f32 %v8030_v15, %v3283_v57  ;;  %v3910_v58 = vpack.c.b16 %v3852_v37, %v3850_v27  ;;  %v3489_v20 = vpack.c.bf16 %v10304_v48, %v10303_v23  ;;  %v3490_v55 = vpack.c.bf16 %v10306_v28, %v10305_v29  ;;  %v10308_v15 = vld [vmem:[#allocation62_spill] sm:$0xff]  ;;  %10309 = vst [vmem:[#allocation38_spill] sm:$0xff] %v8176_v18  ;;  %v8178_v19 = vpop.f32.mrf.mxu2  ;;  %v10314_v29 = vld [vmem:[#allocation71_spill] sm:$0xff]  ;;  %v10315_v28 = vld [vmem:[#allocation81_spill] sm:$0xff] }
 0x3e5   : > { %3974 = vmatpush.bf16.msra.mxu2 %v3909_v11  ;;  %v3505_v9 = vpack.c.bf16 %v8008_v47, %v10307_v21  ;;  %v3506_v5 = vpack.c.bf16 %v8012_v60, %v10308_v15  ;;  %v8180_v36 = vpop.f32.mrf.mxu0  ;;  %v3928_v61 = vpack.c.b16 %v3888_v51, %v3886_v8  ;;  %v3925_v47 = vpack.c.b16 %v3883_v32, %v3881_v6  ;;  %v10312_v11 = vld [vmem:[#allocation64_spill] sm:$0xff]  ;;  %v10316_v51 = vld [vmem:[#allocation97_spill] sm:$0xff] }
 0x3e6   : > { %v3285_v1 = vadd.f32 %v8041_v41, %v3284_v30  ;;  %3985 = vmatpush.bf16.msra.mxu3 %v3929_v24  ;;  %4000 = vmatpush.bf16.msrb.mxu0 %v3910_v58  ;;  %v3845_v27 = vunpack.c.l.b16 %v3489_v20  ;;  %v3847_v57 = vunpack.c.l.b16 %v3490_v55  ;;  %v3846_v26 = vunpack.c.h.b16 %v3489_v20  ;;  %10310 = vst [vmem:[#allocation106_spill] sm:$0xff] %v8180_v36  ;;  %v8182_v41 = vpop.f32.mrf.mxu1  ;;  %v10313_v30 = vld [vmem:[#allocation73_spill] sm:$0xff]  ;;  %v10317_v32 = vld [vmem:[#allocation100_spill] sm:$0xff] }
 0x3e7   : > { %4011 = vmatpush.bf16.msrb.mxu1 %v3930_v31  ;;  %v3848_v39 = vunpack.c.h.b16 %v3490_v55  ;;  %10311 = vst [vmem:[#allocation60_spill] sm:$0xff] %v8182_v41  ;;  %v3926_v24 = vpack.c.b16 %v3884_v53, %v3882_v16  ;;  %v3877_v60 = vunpack.c.l.b16 %v3505_v9  ;;  %v3487_v23 = vpack.c.bf16 %v10313_v30, %v10312_v11  ;;  %v10323_v11 = vld [vmem:[#allocation55_spill] sm:$0xff] }
 0x3e8   : > { %v3286_v22 = vadd.f32 %v8093_v49, %v3285_v1  ;;  %v3907_v31 = vpack.c.b16 %v3847_v57, %v3845_v27  ;;  %v3879_v48 = vunpack.c.l.b16 %v3506_v5  ;;  %v3878_v20 = vunpack.c.h.b16 %v3505_v9  ;;  %v10318_v9 = vld [vmem:[#allocation58_spill] sm:$0xff] }
 0x3e9   : > { %v3908_v37 = vpack.c.b16 %v3848_v39, %v3846_v26  ;;  %v3488_v55 = vpack.c.bf16 %v10315_v28, %v10314_v29  ;;  %v3880_v49 = vunpack.c.h.b16 %v3506_v5  ;;  %v3841_v8 = vunpack.c.l.b16 %v3487_v23 }
 0x3ea   : > { %v3287_v58 = vadd.f32 %v8051_v33, %v3286_v22  ;;  %3986 = vmatpush.bf16.msra.mxu3 %v3927_v35  ;;  %3975 = vmatpush.bf16.msra.mxu2 %v3907_v31  ;;  %v3503_v6 = vpack.c.bf16 %v8002_v4, %v10316_v51  ;;  %v3504_v16 = vpack.c.bf16 %v8005_v7, %v10317_v32  ;;  %v3842_v35 = vunpack.c.h.b16 %v3487_v23  ;;  %v10320_v7 = vld [vmem:[#allocation41_spill] sm:$0xff] }
 0x3eb   : > { %4012 = vmatpush.bf16.msrb.mxu1 %v3928_v61  ;;  %4001 = vmatpush.bf16.msrb.mxu0 %v3908_v37  ;;  %v3843_v33 = vunpack.c.l.b16 %v3488_v55  ;;  %v3844_v1 = vunpack.c.h.b16 %v3488_v55  ;;  %v3803_v21 = vunpack.c.l.b16 %v8116_v43  ;;  %v10319_v15 = vmax.f32 %v10296_v0, %v10295_v38 }
 0x3ec   : > { %v3288_v53 = vadd.f32 %v8064_v50, %v3287_v58  ;;  %v8201_v26 = vpop.f32.mrf.mxu2  ;;  %v2211_v50 = vmax.f32 %v8154_v56, %v10320_v7  ;;  %v3923_v39 = vpack.c.b16 %v3879_v48, %v3877_v60  ;;  %v3924_v22 = vpack.c.b16 %v3880_v49, %v3878_v20  ;;  %v8211_v58 = vpop.f32.mrf.mxu3  ;;  %v10325_v56 = vld [vmem:[#allocation54_spill] sm:$0xff]  ;;  %v10326_v20 = vld [vmem:[#allocation36_spill] sm:$0xff] }
 0x3ed   : > { %v2241_v27 = vmax.f32 %v10319_v15, %v10318_v9  ;;  %v3905_v4 = vpack.c.b16 %v3843_v33, %v3841_v8  ;;  %v3906_v57 = vpack.c.b16 %v3844_v1, %v3842_v35  ;;  %v3873_v61 = vunpack.c.l.b16 %v3503_v6  ;;  %v8205_v31 = vpop.f32.mrf.mxu0  ;;  %3784 = vmatmul.bf16.vlgmr.msra.gmra.mxu0 %v10323_v11  ;;  %10324 = vst [vmem:[#allocation43_spill] sm:$0xff] %v8211_v58  ;;  %v10333_v35 = vld [vmem:[#allocation40_spill] sm:$0xff] }
 0x3ee   : > { %v3289_v5 = vadd.f32 %v8072_v3, %v3288_v53  ;;  %3987 = vmatpush.bf16.msra.mxu3 %v3925_v47  ;;  %10321 = vst [vmem:[#allocation32_spill] sm:$0xff] %v8205_v31  ;;  %v8207_v37 = vpop.f32.mrf.mxu1  ;;  %v3875_v47 = vunpack.c.l.b16 %v3504_v16  ;;  %v3876_v30 = vunpack.c.h.b16 %v3504_v16  ;;  %v3805_v23 = vpack.c.b16 %v3803_v21, %v3803_v21  ;;  %3797 = vmatmul.bf16.vlgmr.msra.gmra.mxu1 %v10325_v56  ;;  %v10332_v53 = vld [vmem:[#allocation83_spill] sm:$0xff]  ;;  %v10335_v21 = vld [vmem:[#allocation84_spill] sm:$0xff] }
 0x3ef   : > { %4013 = vmatpush.bf16.msrb.mxu1 %v3926_v24  ;;  %10322 = vst [vmem:[#allocation39_spill] sm:$0xff] %v8207_v37  ;;  %3976 = vmatpush.bf16.msra.mxu2 %v3905_v4  ;;  %v3874_v24 = vunpack.c.h.b16 %v3503_v6  ;;  %v3804_v48 = vunpack.c.h.b16 %v8116_v43  ;;  %v2212_v29 = vmax.f32 %v2211_v50, %v10326_v20  ;;  %v10338_v50 = vld [vmem:[#allocation103_spill] sm:$0xff]  ;;  %v10343_v56 = vld [vmem:[#allocation88_spill] sm:$0xff]  ;;  %v10352_v37 = vld [vmem:[#allocation105_spill] sm:$0xff] }
 0x3f0   : > { %v3290_v3 = vadd.f32 %v8077_v62, %v3289_v5  ;;  %4002 = vmatpush.bf16.msrb.mxu0 %v3906_v57  ;;  %v10327_v62 = vld [vmem:[#allocation75_spill] sm:$0xff]  ;;  %v3921_v49 = vpack.c.b16 %v3875_v47, %v3873_v61  ;;  %v10336_v5 = vld [vmem:[#allocation57_spill] sm:$0xff]  ;;  %v10340_v61 = vld [vmem:[#allocation82_spill] sm:$0xff] }
 0x3f1   : > { %v2242_v28 = vmax.f32 %v2241_v27, %v10327_v62  ;;  %v3922_v8 = vpack.c.b16 %v3876_v30, %v3874_v24  ;;  %v3806_v6 = vpack.c.b16 %v3804_v48, %v3804_v48  ;;  %v10344_v48 = vld [vmem:[#allocation47_spill] sm:$0xff] }
 0x3f2   : > { %v3291_v60 = vadd.f32 %v8082_v40, %v3290_v3  ;;  %3988 = vmatpush.bf16.msra.mxu3 %v3923_v39  ;;  %3977 = vmatmul.bf16.vlgmr.msra.gmra.mxu2 %v3805_v23  ;;  %v10329_v40 = vld [vmem:[#allocation21_spill] sm:$0xff] }
 0x3f3   : > { %4014 = vmatpush.bf16.msrb.mxu1 %v3924_v22  ;;  %v2213_v32 = vmax.f32 %v2212_v29, %v10329_v40  ;;  %v2243_v33 = vmax.f32 %v2242_v28, %v10332_v53  ;;  %v10341_v3 = vld [vmem:[#allocation69_spill] sm:$0xff]  ;;  %v10345_v28 = vld [vmem:[#allocation104_spill] sm:$0xff] }
 0x3f4   : > { %v8219_v55 = vadd.f32 %v8089_v2, %v3291_v60  ;;  %v8221_v51 = vpop.f32.mrf.mxu2  ;;  %v8230_v2 = vpop.f32.mrf.mxu3 }
 0x3f5   : > { %v8224_v16 = vpop.f32.mrf.mxu0  ;;  %v2214_v1 = vmax.f32 %v2213_v32, %v10333_v35  ;;  %10334 = vst [vmem:[#allocation51_spill] sm:$0xff] %v8230_v2  ;;  %v2244_v15 = vmax.f32 %v2243_v33, %v10335_v21  ;;  %v10347_v32 = vld [vmem:[#allocation65_spill] sm:$0xff] }
 0x3f6   : > { %10328 = vst [vmem:[#allocation27_spill] sm:$0xff] %v8219_v55  ;;  %3989 = vmatpush.bf16.msra.mxu3 %v3921_v49  ;;  %v8226_v43 = vpop.f32.mrf.mxu1 }
 0x3f7   : > { %4015 = vmatpush.bf16.msrb.mxu1 %v3922_v8  ;;  %10330 = vst [vmem:[#allocation72_spill] sm:$0xff] %v8224_v16  ;;  %v2215_v4 = vmax.f32 %v2214_v1, %v10336_v5  ;;  %v2245_v39 = vmax.f32 %v2244_v15, %v10338_v50  ;;  %v10348_v1 = vld [vmem:[#allocation26_spill] sm:$0xff]  ;;  %v10355_v16 = vld [vmem:[#allocation16_spill] sm:$0xff] }
 0x3f8   : > { %10331 = vst [vmem:[#allocation67_spill] sm:$0xff] %v8226_v43 }
 0x3f9   : > { %3990 = vmatmul.bf16.vlgmr.msra.gmra.mxu3 %v3806_v6  ;;  %v2216_v11 = vmax.f32 %v2215_v4, %v10340_v61  ;;  %v2246_v47 = vmax.f32 %v2245_v39, %v10341_v3  ;;  %v10349_v4 = vld [vmem:[#allocation99_spill] sm:$0xff] }
 0x3fb   : > { %v2217_v60 = vmax.f32 %v2216_v11, %v10343_v56  ;;  %v2247_v29 = vmax.f32 %v2246_v47, %v10344_v48 }
 0x3fc   : > { %v8233_v27 = vpop.f32.mrf.mxu2  ;;  %v8243_v24 = vpop.f32.mrf.mxu3 }
 0x3fd   : > { %v8236_v57 = vpop.f32.mrf.mxu0  ;;  %4003 = vmatmul.bf16.vlgmr.msrb.gmra.mxu0 %v3805_v23  ;;  %10342 = vst [vmem:[#allocation48_spill] sm:$0xff] %v8243_v24  ;;  %v2218_v49 = vmax.f32 %v2217_v60, %v10345_v28  ;;  %v10346_v23 = vld [vmem:[#allocation63_spill] sm:$0xff]  ;;  %v2248_v33 = vmax.f32 %v2247_v29, %v10347_v32 }
 0x3fe   : > { %10337 = vst [vmem:[#allocation90_spill] sm:$0xff] %v8236_v57  ;;  %v8239_v22 = vpop.f32.mrf.mxu1  ;;  %4016 = vmatmul.bf16.vlgmr.msrb.gmra.mxu1 %v3806_v6 }
 0x3ff   : > { %10339 = vst [vmem:[#allocation59_spill] sm:$0xff] %v8239_v22  ;;  %v2219_v8 = vmax.f32 %v2218_v49, %v10346_v23  ;;  %v10351_v22 = vld [vmem:[#allocation52_spill] sm:$0xff] }
 0x400   : > { %v2249_v43 = vmax.f32 %v2248_v33, %v10351_v22 }
 0x401   : > { %v2220_v6 = vmax.f32 %v2219_v8, %v10348_v1  ;;  %v10353_v8 = vld [vmem:[#allocation24_spill] sm:$0xff] }
 0x402   : > { %v2250_v60 = vmax.f32 %v2249_v43, %v10352_v37 }
 0x403   : > { %v2221_v39 = vmax.f32 %v2220_v6, %v10349_v4 }
 0x404   : > { %v8245_v30 = vpop.f32.mrf.mxu2  ;;  %v8256_v55 = vpop.f32.mrf.mxu3  ;;  %v2251_v10 = vmax.f32 %v2250_v60, %v10353_v8  ;;  %v10359_v8 = vld [vmem:[#allocation78_spill] sm:$0xff] }
 0x405   : > { %10350 = vst [vmem:[#allocation102_spill] sm:$0xff] %v8256_v55  ;;  %v2222_v11 = vmax.f32 %v2221_v39, %v8028_v17 }
 0x406   : > { %v2252_v39 = vmax.f32 %v2251_v10, %v10355_v16 }
 0x407   : > { %v2223_v47 = vmax.f32 %v2222_v11, %v8103_v12 }
 0x409   : > { %v2224_v49 = vmax.f32 %v2223_v47, %v8141_v13  ;;  %v10356_v47 = vld [vmem:[#allocation86_spill] sm:$0xff] }
 0x40a   : > { %v2253_v36 = vmax.f32 %v2252_v39, %v10356_v47  ;;  %v10360_v39 = vld [vmem:[#allocation96_spill] sm:$0xff] }
 0x40b   : > { %v2225_v29 = vmax.f32 %v2224_v49, %v8178_v19 }
 0x40c   : > { %v8253_v15 = vpop.f32.mrf.mxu2  ;;  %v8268_v57 = vpop.f32.mrf.mxu3 }
 0x40d   : > { %v2226_v6 = vmax.f32 %v2225_v29, %v8201_v26  ;;  %10354 = vst [vmem:[#allocation42_spill] sm:$0xff] %v8268_v57  ;;  %v10357_v29 = vld [vmem:[#allocation18_spill] sm:$0xff] }
 0x40e   : > { %v2254_v14 = vmax.f32 %v2253_v36, %v10357_v29 }
 0x40f   : > { %v2227_v33 = vmax.f32 %v2226_v6, %v8221_v51 }
 0x410   : > { %v2255_v10 = vmax.f32 %v2254_v14, %v10358_v46 }
 0x411   : > { %v2228_v11 = vmax.f32 %v2227_v33, %v8233_v27 }
 0x413   : > { %v2229_v43 = vmax.f32 %v2228_v11, %v8245_v30  ;;  %v2256_v11 = vmax.f32 %v2255_v10, %v10359_v8 }
 0x414   : > { %v8263_v41 = vpop.f32.mrf.mxu2  ;;  %v8278_v42 = vpop.f32.mrf.mxu3 }
 0x415   : > { %v2230_v49 = vmax.f32 %v2229_v43, %v8253_v15  ;;  %v2257_v47 = vmax.f32 %v2256_v11, %v10360_v39 }
 0x417   : > { %v2231_v60 = vmax.f32 %v2230_v49, %v8263_v41  ;;  %v2258_v22 = vmax.f32 %v2257_v47, %v8015_v63 }
 0x419   : > { %v2259_v36 = vmax.f32 %v2258_v22, %v8087_v44  ;;  %v10363_v22 = vld [vmem:[#allocation45_spill] sm:$0xff] }
 0x41b   : > { %v2260_v14 = vmax.f32 %v2259_v36, %v8134_v54  ;;  %v10364_v36 = vld [vmem:[#allocation53_spill] sm:$0xff] }
 0x41c   : > { %v8273_v31 = vpop.f32.mrf.mxu2  ;;  %v8290_v32 = vpop.f32.mrf.mxu3 }
 0x41d   : > { %v2232_v6 = vmax.f32 %v2231_v60, %v8273_v31  ;;  %v2261_v29 = vmax.f32 %v2260_v14, %v8176_v18 }
 0x424   : > { %v8284_v16 = vpop.f32.mrf.mxu2 }
 0x425   : > { %v2233_v33 = vmax.f32 %v2232_v6, %v8284_v16  ;;  %v2262_v6 = vmax.f32 %v2261_v29, %v8211_v58  ;;  %v10365_v29 = vld [vmem:[#allocation68_spill] sm:$0xff] }
 0x427   : > { %v2234_v37 = vrot.slane %v2233_v33, 4  ;;  %v2263_v11 = vmax.f32 %v2262_v6, %v8230_v2  ;;  %v10366_v6 = vld [vmem:[#allocation25_spill] sm:$0xff] }
 0x428   : > { %v3182_v2 = vrot.slane %v10366_v6, 4 }
 0x429   : > { %v2235_v43 = vmax.f32 %v2233_v33, %v2234_v37  ;;  %v8299_v37 = vpop.f32.mrf.mxu3  ;;  %v2264_v47 = vmax.f32 %v2263_v11, %v8243_v24  ;;  %v10362_v33 = vld [vmem:[#allocation101_spill] sm:$0xff] }
 0x42b   : > { %v2236_v49 = vrot.slane %v2235_v43, 2 }
 0x42d   : > { %v2237_v60 = vmax.f32 %v2235_v43, %v2236_v49  ;;  %v2265_v49 = vmax.f32 %v2264_v47, %v8256_v55 }
 0x42f   : > { %v2238_v46 = vrot.slane %v2237_v60, 1 }
 0x431   : > { %v8296_v10 = vmax.f32 %v2237_v60, %v2238_v46  ;;  %v2266_v46 = vmax.f32 %v2265_v49, %v8268_v57  ;;  %v8319_v57 = vpop.f32.mrf.mxu3 }
 0x433   : > { %10361 = vst [vmem:[#allocation17_spill] sm:$0xff] %v8296_v10  ;;  %v2479_v63 = vsub.f32 %v10362_v33, %v8296_v10  ;;  %v2481_v43 = vsub.f32 %v10363_v22, %v8296_v10  ;;  %v2483_v14 = vsub.f32 %v10364_v36, %v8296_v10  ;;  %v2485_v60 = vsub.f32 %v10365_v29, %v8296_v10  ;;  %v10367_v33 = vld [vmem:[#allocation80_spill] sm:$0xff]  ;;  %v10368_v29 = vld [vmem:[#allocation98_spill] sm:$0xff] }
 0x434   : > { %v2267_v24 = vmax.f32 %v2266_v46, %v8278_v42  ;;  %v2487_v18 = vsub.f32 %v10367_v33, %v8296_v10  ;;  %v2489_v36 = vsub.f32 %v7418_v59, %v8296_v10  ;;  %v3119_v55 = vsub.f32 -inf, %v10368_v29 }
 0x435   : > { %v2863_v58 = vmul.f32 1.442695, %v2479_v63  ;;  %v2867_v11 = vmul.f32 1.442695, %v2481_v43  ;;  %v2871_v22 = vmul.f32 1.442695, %v2483_v14  ;;  %v3183_v63 = vadd.f32 %v3182_v2, %v10366_v6 }
 0x436   : > { %v2268_v47 = vmax.f32 %v2267_v24, %v8290_v32  ;;  %v2875_v49 = vmul.f32 1.442695, %v2485_v60  ;;  %v2491_v46 = vsub.f32 %v10286_v45, %v8296_v10  ;;  %v2493_v24 = vsub.f32 %v10292_v25, %v8296_v10 }
 0x437   : > { %5779 = vpow2.f32 %v2863_v58  ;;  %v2879_v58 = vmul.f32 1.442695, %v2487_v18  ;;  %v2883_v59 = vmul.f32 1.442695, %v2489_v36  ;;  %v3184_v33 = vrot.slane %v3183_v63, 2 }
 0x438   : > { %5781 = vpow2.f32 %v2867_v11  ;;  %v2269_v43 = vmax.f32 %v2268_v47, %v8299_v37  ;;  %v3127_v11 = vmul.f32 1.442695, %v3119_v55  ;;  %v2495_v2 = vsub.f32 %v10300_v52, %v8296_v10 }
 0x439   : > { %5783 = vpow2.f32 %v2871_v22  ;;  %v2887_v45 = vmul.f32 1.442695, %v2491_v46  ;;  %v2497_v25 = vsub.f32 %v10320_v7, %v8296_v10  ;;  %v2891_v22 = vmul.f32 1.442695, %v2493_v24 }
 0x43a   : > { %5785 = vpow2.f32 %v2875_v49  ;;  %v2270_v14 = vmax.f32 %v2269_v43, %v8319_v57  ;;  %v3185_v36 = vadd.f32 %v3184_v33, %v3183_v63  ;;  %v2499_v52 = vsub.f32 %v10326_v20, %v8296_v10 }
 0x43b   : > { %5787 = vpow2.f32 %v2879_v58  ;;  %v2895_v43 = vmul.f32 1.442695, %v2495_v2  ;;  %v2501_v7 = vsub.f32 %v10329_v40, %v8296_v10  ;;  %v2899_v24 = vmul.f32 1.442695, %v2497_v25 }
 0x43c   : > { %5789 = vpow2.f32 %v2883_v59  ;;  %v2271_v47 = vrot.slane %v2270_v14, 4  ;;  %v2503_v20 = vsub.f32 %v10333_v35, %v8296_v10  ;;  %v2505_v25 = vsub.f32 %v10336_v5, %v8296_v10 }
 0x43d   : > { %v8329_v60 = vpop.eup %5779  ;;  %5791 = vpow2.f32 %v3127_v11  ;;  %v3186_v11 = vrot.slane %v3185_v36, 1 }
 0x43e   : > { %10369 = vst [vmem:[#allocation20_spill] sm:$0xff] %v8329_v60  ;;  %v8331_v29 = vpop.eup %5781  ;;  %5793 = vpow2.f32 %v2887_v45  ;;  %v2272_v46 = vmax.f32 %v2270_v14, %v2271_v47  ;;  %v2903_v14 = vmul.f32 1.442695, %v2499_v52  ;;  %v8356_v45 = vpop.f32.mrf.mxu0  ;;  %v2907_v47 = vmul.f32 1.442695, %v2501_v7 }
 0x43f   : > { %10370 = vst [vmem:[#allocation61_spill] sm:$0xff] %v8331_v29  ;;  %v3299_v18 = vadd.f32 %v8331_v29, %v8329_v60  ;;  %v8337_v6 = vpop.eup %5783  ;;  %5795 = vpow2.f32 %v2891_v22  ;;  %v3187_v35 = vadd.f32 %v3186_v11, %v3185_v36  ;;  %v2507_v52 = vsub.f32 %v10340_v61, %v8296_v10  ;;  %v10375_v60 = vld [vmem:[#allocation22_spill] sm:$0xff] }
 0x440   : > { %10371 = vst [vmem:[#allocation74_spill] sm:$0xff] %v8337_v6  ;;  %v8342_v49 = vpop.eup %5785  ;;  %v2273_v59 = vrot.slane %v2272_v46, 2  ;;  %5797 = vpow2.f32 %v2895_v43  ;;  %v2915_v36 = vmul.f32 1.442695, %v2505_v25  ;;  %v2517_v25 = vsub.f32 %v10349_v4, %v8296_v10 }
 0x441   : > { %v3300_v55 = vadd.f32 %v8337_v6, %v3299_v18  ;;  %10372 = vst [vmem:[#allocation85_spill] sm:$0xff] %v8342_v49  ;;  %v8347_v29 = vpop.eup %5787  ;;  %v8358_v18 = vpop.f32.mrf.mxu1  ;;  %5799 = vpow2.f32 %v2899_v24  ;;  %v2511_v24 = vsub.f32 %v10345_v28, %v8296_v10  ;;  %v2521_v4 = vsub.f32 %v8103_v12, %v8296_v10 }
 0x442   : > { %v8352_v33 = vpop.eup %5789  ;;  %10373 = vst [vmem:[#allocation79_spill] sm:$0xff] %v8356_v45  ;;  %5801 = vpow2.f32 %v2903_v14  ;;  %v8386_v14 = vpop.f32.mrf.mxu2 }
 0x443   : > { %v3301_v58 = vadd.f32 %v8342_v49, %v3300_v55  ;;  %v5792_v2 = vpop.eup %5791  ;;  %10374 = vst [vmem:[#allocation87_spill] sm:$0xff] %v8358_v18  ;;  %v2274_v55 = vmax.f32 %v2272_v46, %v2273_v59  ;;  %v2911_v18 = vmul.f32 1.442695, %v2503_v20  ;;  %v3121_v49 = vsub.f32 -inf, %v10375_v60 }
 0x444   : > { %v8361_v22 = vpop.eup %5793  ;;  %v8371_v45 = vmul.f32 0.0, %v5792_v2  ;;  %v2509_v46 = vsub.f32 %v10343_v56, %v8296_v10  ;;  %5803 = vpow2.f32 %v2907_v47  ;;  %v2513_v60 = vsub.f32 %v10346_v23, %v8296_v10 }
 0x445   : > { %v3302_v63 = vadd.f32 %v8347_v29, %v3301_v58  ;;  %v8366_v43 = vpop.eup %5795  ;;  %v2275_v7 = vrot.slane %v2274_v55, 1  ;;  %5805 = vpow2.f32 %v2911_v18  ;;  %v2919_v20 = vmul.f32 1.442695, %v2507_v52 }
 0x446   : > { %v8374_v5 = vpop.eup %5797  ;;  %v3447_v59 = vadd.f32 %v3187_v35, %v8371_v45  ;;  %v2515_v56 = vsub.f32 %v10348_v1, %v8296_v10  ;;  %5807 = vpow2.f32 %v2915_v36  ;;  %v2923_v47 = vmul.f32 1.442695, %v2509_v46  ;;  %v8397_v23 = vpop.f32.mrf.mxu0 }
 0x447   : > { %v3303_v40 = vadd.f32 %v8352_v33, %v3302_v63  ;;  %v8382_v11 = vpop.eup %5799  ;;  %10377 = vst [vmem:[#allocation62_spill] sm:$0xff] %v8397_v23  ;;  %v2519_v35 = vsub.f32 %v8028_v17, %v8296_v10  ;;  %v2927_v1 = vmul.f32 1.442695, %v2511_v24 }
 0x448   : > { %v8391_v28 = vpop.eup %5801  ;;  %5809 = vrcp.f32 %v3447_v59 }
 0x449   : > { %v3304_v58 = vadd.f32 %v8361_v22, %v3303_v40  ;;  %v3131_v40 = vmul.f32 1.442695, %v3121_v49  ;;  %v8399_v18 = vpop.f32.mrf.mxu1  ;;  %5811 = vpow2.f32 %v2919_v20  ;;  %v2943_v59 = vmul.f32 1.442695, %v2519_v35 }
 0x44a   : > { %10378 = vst [vmem:[#allocation64_spill] sm:$0xff] %v8399_v18  ;;  %v8404_v49 = vpop.eup %5803  ;;  %v2525_v20 = vsub.f32 %v8178_v19, %v8296_v10 }
 0x44b   : > { %v3305_v63 = vadd.f32 %v8366_v43, %v3304_v58  ;;  %v8395_v58 = vmax.f32 %v2274_v55, %v2275_v7  ;;  %v2935_v55 = vmul.f32 1.442695, %v2515_v56  ;;  %5813 = vpow2.f32 %v3131_v40  ;;  %v8409_v36 = vpop.eup %5805  ;;  %v3761_v56 = vpop.f32.mrf.mxu2 }
 0x44c   : > { %5815 = vpow2.f32 %v2923_v47  ;;  %v2939_v7 = vmul.f32 1.442695, %v2517_v25  ;;  %v2947_v25 = vmul.f32 1.442695, %v2521_v4 }
 0x44d   : > { %v3306_v61 = vadd.f32 %v8374_v5, %v3305_v63  ;;  %10376 = vst [vmem:[#allocation33_spill] sm:$0xff] %v8395_v58  ;;  %v2931_v63 = vmul.f32 1.442695, %v2513_v60  ;;  %v2480_v17 = vsub.f32 %v10296_v0, %v8395_v58  ;;  %v2482_v24 = vsub.f32 %v10295_v38, %v8395_v58  ;;  %v8418_v60 = vpop.eup %5807 }
 0x44e   : > { %5817 = vpow2.f32 %v2927_v1  ;;  %v2527_v0 = vsub.f32 %v8201_v26, %v8296_v10  ;;  %v2486_v26 = vsub.f32 %v10327_v62, %v8395_v58  ;;  %v2488_v62 = vsub.f32 %v10332_v53, %v8395_v58 }
 0x44f   : > { %v3307_v2 = vadd.f32 %v8382_v11, %v3306_v61  ;;  %v2523_v61 = vsub.f32 %v8141_v13, %v8296_v10  ;;  %5819 = vpow2.f32 %v2931_v63  ;;  %v2484_v13 = vsub.f32 %v10318_v9, %v8395_v58 }
 0x450   : > { %5821 = vpow2.f32 %v2935_v55  ;;  %v2865_v47 = vmul.f32 1.442695, %v2480_v17  ;;  %v2869_v35 = vmul.f32 1.442695, %v2482_v24  ;;  %v3256_v55 = vrot.slane %v8067_v34, 4 }
 0x451   : > { %v3308_v52 = vadd.f32 %v8391_v28, %v3307_v2  ;;  %v8422_v2 = vpop.eup %5809  ;;  %5823 = vpow2.f32 %v2939_v7  ;;  %v2951_v1 = vmul.f32 1.442695, %v2523_v61  ;;  %v2529_v9 = vsub.f32 %v8221_v51, %v8296_v10  ;;  %v8443_v7 = vpop.f32.mrf.mxu0 }
 0x452   : > { %v8429_v40 = vpop.eup %5811  ;;  %5825 = vpow2.f32 %v2943_v59  ;;  %10380 = vst [vmem:[#allocation71_spill] sm:$0xff] %v8443_v7  ;;  %v8445_v17 = vpop.f32.mrf.mxu1  ;;  %v2873_v61 = vmul.f32 1.442695, %v2484_v13  ;;  %v2531_v51 = vsub.f32 %v8233_v27, %v8296_v10  ;;  %v2490_v53 = vsub.f32 %v10335_v21, %v8395_v58  ;;  %v10398_v7 = vld [vmem:[#allocation18_spill] sm:$0xff] }
 0x453   : > { %v3309_v46 = vadd.f32 %v8404_v49, %v3308_v52  ;;  %v8431_v19 = vpop.eup %5813  ;;  %5827 = vpow2.f32 %v2865_v47  ;;  %10381 = vst [vmem:[#allocation81_spill] sm:$0xff] %v8445_v17  ;;  %v2877_v47 = vmul.f32 1.442695, %v2486_v26  ;;  %v2537_v27 = vsub.f32 %v8263_v41, %v8296_v10 }
 0x454   : > { %v8436_v63 = vpop.eup %5815  ;;  %5829 = vpow2.f32 %v2869_v35  ;;  %v2535_v35 = vsub.f32 %v8253_v15, %v8296_v10  ;;  %v2881_v21 = vmul.f32 1.442695, %v2488_v62  ;;  %v2539_v26 = vsub.f32 %v8273_v31, %v8296_v10 }
 0x455   : > { %v3310_v12 = vadd.f32 %v8409_v36, %v3309_v46  ;;  %v2955_v46 = vmul.f32 1.442695, %v2525_v20  ;;  %v8441_v4 = vpop.eup %5817  ;;  %5831 = vpow2.f32 %v2947_v25  ;;  %v2959_v20 = vmul.f32 1.442695, %v2527_v0 }
 0x456   : > { %10379 = vst [vmem:[#allocation73_spill] sm:$0xff] %v8441_v4  ;;  %v8450_v59 = vpop.eup %5819  ;;  %5833 = vpow2.f32 %v2951_v1  ;;  %v2492_v1 = vsub.f32 %v10338_v50, %v8395_v58  ;;  %v2541_v15 = vsub.f32 %v8284_v16, %v8296_v10  ;;  %v2967_v41 = vmul.f32 1.442695, %v2531_v51 }
 0x457   : > { %v3311_v38 = vadd.f32 %v8418_v60, %v3310_v12  ;;  %10382 = vst [vmem:[#allocation97_spill] sm:$0xff] %v8450_v59  ;;  %v2533_v12 = vsub.f32 %v8245_v30, %v8296_v10  ;;  %v8456_v56 = vpop.eup %5821  ;;  %5835 = vpow2.f32 %v2955_v46  ;;  %v2963_v30 = vmul.f32 1.442695, %v2529_v9 }
 0x458   : > { %10383 = vst [vmem:[#allocation100_spill] sm:$0xff] %v8456_v56  ;;  %v8461_v13 = vpop.eup %5823  ;;  %5837 = vpow2.f32 %v2873_v61  ;;  %v2885_v50 = vmul.f32 1.442695, %v2490_v53  ;;  %v8486_v31 = vadd.f32 %v3256_v55, %v8067_v34  ;;  %v2979_v53 = vmul.f32 1.442695, %v2537_v27 }
 0x459   : > { %v3312_v52 = vadd.f32 %v8429_v40, %v3311_v38  ;;  %10384 = vst [vmem:[#allocation58_spill] sm:$0xff] %v8461_v13  ;;  %v8467_v0 = vpop.eup %5825  ;;  %5839 = vpow2.f32 %v2959_v20  ;;  %v2971_v61 = vmul.f32 1.442695, %v2533_v12  ;;  %v2496_v20 = vsub.f32 %v10344_v48, %v8395_v58  ;;  %v8499_v34 = vpop.f32.mrf.mxu0  ;;  %v10391_v48 = vld [vmem:[#allocation65_spill] sm:$0xff] }
 0x45a   : > { %5841 = vpow2.f32 %v2877_v47  ;;  %v2983_v47 = vmul.f32 1.442695, %v2539_v26  ;;  %10389 = vst [vmem:[#allocation75_spill] sm:$0xff] %v8499_v34  ;;  %v8501_v55 = vpop.f32.mrf.mxu1  ;;  %v2987_v27 = vmul.f32 1.442695, %v2541_v15  ;;  %v10395_v15 = vld [vmem:[#allocation24_spill] sm:$0xff] }
 0x45b   : > { %v3313_v24 = vadd.f32 %v8436_v63, %v3312_v52  ;;  %v8472_v52 = vpop.eup %5827  ;;  %5843 = vpow2.f32 %v2963_v30  ;;  %10390 = vst [vmem:[#allocation21_spill] sm:$0xff] %v8501_v55  ;;  %v10393_v55 = vld [vmem:[#allocation52_spill] sm:$0xff]  ;;  %v2897_v18 = vmul.f32 1.442695, %v2496_v20 }
 0x45c   : > { %10385 = vst [vmem:[#allocation41_spill] sm:$0xff] %v8472_v52  ;;  %v8478_v9 = vpop.eup %5829  ;;  %5845 = vpow2.f32 %v2881_v21  ;;  %v2498_v21 = vsub.f32 %v10391_v48, %v8395_v58  ;;  %v10396_v34 = vld [vmem:[#allocation16_spill] sm:$0xff] }
 0x45d   : > { %v3314_v38 = vadd.f32 %v8441_v4, %v3313_v24  ;;  %10386 = vst [vmem:[#allocation55_spill] sm:$0xff] %v8478_v9  ;;  %v2494_v24 = vsub.f32 %v10341_v3, %v8395_v58  ;;  %v8483_v62 = vpop.eup %5831  ;;  %5847 = vpow2.f32 %v2967_v41  ;;  %v3336_v12 = vadd.f32 %v8478_v9, %v8472_v52 }
 0x45e   : > { %10387 = vst [vmem:[#allocation54_spill] sm:$0xff] %v8483_v62  ;;  %v8488_v16 = vpop.eup %5833  ;;  %5849 = vpow2.f32 %v2885_v50  ;;  %v2901_v20 = vmul.f32 1.442695, %v2498_v21 }
 0x45f   : > { %v3315_v25 = vadd.f32 %v8450_v59, %v3314_v38  ;;  %v2975_v38 = vmul.f32 1.442695, %v2535_v35  ;;  %v8493_v3 = vpop.eup %5835  ;;  %5851 = vpow2.f32 %v2971_v61  ;;  %v2504_v61 = vsub.f32 %v10395_v15, %v8395_v58  ;;  %v10399_v59 = vld [vmem:[#allocation50_spill] sm:$0xff] }
 0x460   : > { %v8497_v35 = vpop.eup %5837  ;;  %v2510_v15 = vsub.f32 %v10398_v7, %v8395_v58 }
 0x461   : > { %v3316_v46 = vadd.f32 %v8456_v56, %v3315_v25  ;;  %v2889_v25 = vmul.f32 1.442695, %v2492_v1  ;;  %10388 = vst [vmem:[#allocation36_spill] sm:$0xff] %v8497_v35  ;;  %v2893_v1 = vmul.f32 1.442695, %v2494_v24  ;;  %v3337_v26 = vadd.f32 %v8497_v35, %v3336_v12  ;;  %v10394_v24 = vld [vmem:[#allocation105_spill] sm:$0xff] }
 0x462   : > { %v2502_v50 = vsub.f32 %v10394_v24, %v8395_v58  ;;  %v10406_v35 = vld [vmem:[#allocation102_spill] sm:$0xff] }
 0x463   : > { %v3317_v51 = vadd.f32 %v8461_v13, %v3316_v46  ;;  %v8506_v46 = vpop.eup %5839  ;;  %5853 = vpow2.f32 %v2889_v25 }
 0x464   : > { %v8510_v10 = vpop.eup %5841  ;;  %5855 = vpow2.f32 %v2975_v38  ;;  %v10397_v38 = vld [vmem:[#allocation86_spill] sm:$0xff] }
 0x465   : > { %v3318_v30 = vadd.f32 %v8467_v0, %v3317_v51  ;;  %10392 = vst [vmem:[#allocation83_spill] sm:$0xff] %v8510_v10  ;;  %v2500_v51 = vsub.f32 %v10393_v55, %v8395_v58  ;;  %v8515_v48 = vpop.eup %5843  ;;  %v3338_v12 = vadd.f32 %v8510_v10, %v3337_v26  ;;  %v2506_v55 = vsub.f32 %v10396_v34, %v8395_v58 }
 0x466   : > { %v8522_v41 = vpop.eup %5845  ;;  %5857 = vpow2.f32 %v2893_v1  ;;  %v2508_v24 = vsub.f32 %v10397_v38, %v8395_v58  ;;  %v2512_v34 = vsub.f32 %v10399_v59, %v8395_v58  ;;  %v2909_v38 = vmul.f32 1.442695, %v2502_v50 }
 0x467   : > { %v3319_v17 = vadd.f32 %v8483_v62, %v3318_v30  ;;  %v8527_v25 = vpop.eup %5847  ;;  %5859 = vpow2.f32 %v2979_v53  ;;  %v3339_v26 = vadd.f32 %v8522_v41, %v3338_v12  ;;  %v2905_v21 = vmul.f32 1.442695, %v2500_v51 }
 0x468   : > { %v8534_v23 = vpop.eup %5849  ;;  %5861 = vpow2.f32 %v2897_v18  ;;  %v2514_v53 = vsub.f32 %v10359_v8, %v8395_v58  ;;  %v2913_v59 = vmul.f32 1.442695, %v2504_v61  ;;  %v2917_v9 = vmul.f32 1.442695, %v2506_v55  ;;  %v8561_v61 = vpop.f32.mrf.mxu1 }
 0x469   : > { %v3320_v30 = vadd.f32 %v8488_v16, %v3319_v17  ;;  %v8539_v1 = vpop.eup %5851  ;;  %5863 = vpow2.f32 %v2983_v47  ;;  %v3340_v7 = vadd.f32 %v8534_v23, %v3339_v26  ;;  %v10400_v47 = vld [vmem:[#allocation77_spill] sm:$0xff]  ;;  %10402 = vst [vmem:[#allocation84_spill] sm:$0xff] %v8561_v61  ;;  %v2540_v55 = vsub.f32 %v8299_v37, %v8395_v58 }
 0x46a   : > { %v8544_v4 = vpop.eup %5853  ;;  %5865 = vpow2.f32 %v2901_v20  ;;  %v2518_v51 = vsub.f32 %v10400_v47, %v8395_v58  ;;  %v8559_v20 = vpop.f32.mrf.mxu0  ;;  %v2522_v61 = vsub.f32 %v8134_v54, %v8395_v58  ;;  %v2933_v37 = vmul.f32 1.442695, %v2514_v53 }
 0x46b   : > { %v3321_v17 = vadd.f32 %v8493_v3, %v3320_v30  ;;  %v2516_v30 = vsub.f32 %v10360_v39, %v8395_v58  ;;  %v8549_v18 = vpop.eup %5855  ;;  %5867 = vpow2.f32 %v2987_v27  ;;  %v3341_v8 = vadd.f32 %v8544_v4, %v3340_v7  ;;  %10401 = vst [vmem:[#allocation40_spill] sm:$0xff] %v8559_v20 }
 0x46c   : > { %v8554_v50 = vpop.eup %5857  ;;  %5869 = vpow2.f32 %v2905_v21  ;;  %v2921_v39 = vmul.f32 1.442695, %v2508_v24  ;;  %v2925_v7 = vmul.f32 1.442695, %v2510_v15  ;;  %v2929_v24 = vmul.f32 1.442695, %v2512_v34 }
 0x46d   : > { %v3322_v12 = vadd.f32 %v8506_v46, %v3321_v17  ;;  %v2520_v17 = vsub.f32 %v8087_v44, %v8395_v58  ;;  %v8563_v27 = vpop.eup %5859  ;;  %5871 = vpow2.f32 %v2909_v38  ;;  %v3342_v47 = vadd.f32 %v8554_v50, %v3341_v8  ;;  %v10404_v34 = vld [vmem:[#allocation43_spill] sm:$0xff] }
 0x46e   : > { %v8568_v52 = vpop.eup %5861  ;;  %v2542_v44 = vsub.f32 %v8319_v57, %v8395_v58  ;;  %5873 = vpow2.f32 %v2913_v59  ;;  %v2937_v57 = vmul.f32 1.442695, %v2516_v30  ;;  %v2526_v13 = vsub.f32 %v10404_v34, %v8395_v58 }
 0x46f   : > { %v3323_v26 = vadd.f32 %v8515_v48, %v3322_v12  ;;  %v8573_v21 = vpop.eup %5863  ;;  %5875 = vpow2.f32 %v2917_v9  ;;  %v3343_v15 = vadd.f32 %v8568_v52, %v3342_v47  ;;  %v2985_v54 = vmul.f32 1.442695, %v2540_v55 }
 0x470   : > { %v8578_v38 = vpop.eup %5865  ;;  %5877 = vpow2.f32 %v2921_v39  ;;  %v2536_v30 = vsub.f32 %v8278_v42, %v8395_v58  ;;  %v2941_v34 = vmul.f32 1.442695, %v2518_v51  ;;  %v2949_v10 = vmul.f32 1.442695, %v2522_v61 }
 0x471   : > { %v3324_v12 = vadd.f32 %v8527_v25, %v3323_v26  ;;  %v10403_v26 = vld [vmem:[#allocation38_spill] sm:$0xff]  ;;  %v8583_v59 = vpop.eup %5867  ;;  %5879 = vpow2.f32 %v2925_v7  ;;  %v3344_v9 = vadd.f32 %v8578_v38, %v3343_v15 }
 0x472   : > { %v2524_v20 = vsub.f32 %v10403_v26, %v8395_v58  ;;  %v8588_v53 = vpop.eup %5869  ;;  %5881 = vpow2.f32 %v2929_v24  ;;  %v2989_v26 = vmul.f32 1.442695, %v2542_v44  ;;  %v3772_v24 = vpop.f32.mrf.mxu3  ;;  %v2977_v61 = vmul.f32 1.442695, %v2536_v30 }
 0x473   : > { %v3325_v8 = vadd.f32 %v8539_v1, %v3324_v12  ;;  %v10405_v12 = vld [vmem:[#allocation51_spill] sm:$0xff]  ;;  %v8593_v39 = vpop.eup %5871  ;;  %5883 = vpow2.f32 %v2933_v37  ;;  %v3345_v55 = vadd.f32 %v8588_v53, %v3344_v9  ;;  %v3773_v51 = vadd.f32 %v3772_v24, %v8386_v14 }
 0x474   : > { %v2528_v56 = vsub.f32 %v10405_v12, %v8395_v58  ;;  %v8598_v7 = vpop.eup %5873  ;;  %5885 = vpow2.f32 %v2937_v57  ;;  %v2945_v12 = vmul.f32 1.442695, %v2520_v17  ;;  %v2953_v6 = vmul.f32 1.442695, %v2524_v20  ;;  %v8612_v17 = vpop.f32.mrf.mxu1 }
 0x475   : > { %v3326_v47 = vadd.f32 %v8549_v18, %v3325_v8  ;;  %v2538_v8 = vsub.f32 %v8290_v32, %v8395_v58  ;;  %v8603_v44 = vpop.eup %5875  ;;  %5887 = vpow2.f32 %v2985_v54  ;;  %v3346_v42 = vadd.f32 %v8593_v39, %v3345_v55  ;;  %v8610_v32 = vpop.f32.mrf.mxu0  ;;  %10408 = vst [vmem:[#allocation103_spill] sm:$0xff] %v8612_v17 }
 0x476   : > { %v5878_v37 = vpop.eup %5877  ;;  %5889 = vpow2.f32 %v2989_v26  ;;  %10407 = vst [vmem:[#allocation57_spill] sm:$0xff] %v8610_v32  ;;  %v4459_v55 = vadd.f32 %v3773_v51, %v8371_v45  ;;  %v2957_v26 = vmul.f32 1.442695, %v2526_v13  ;;  %v8635_v13 = vpop.permute.xlu2 %799 }
 0x477   : > { %v3327_v15 = vadd.f32 %v8563_v27, %v3326_v47  ;;  %v2532_v47 = vsub.f32 %v10406_v35, %v8395_v58  ;;  %v5880_v57 = vpop.eup %5879  ;;  %5891 = vpow2.f32 %v2941_v34  ;;  %v3347_v54 = vadd.f32 %v8598_v7, %v3346_v42  ;;  %v10411_v35 = vld [vmem:[#allocation42_spill] sm:$0xff] }
 0x478   : > { %v8616_v14 = vpop.eup %5881  ;;  %v2534_v20 = vsub.f32 %v10411_v35, %v8395_v58  ;;  %5893 = vpow2.f32 %v2945_v12  ;;  %v2981_v17 = vmul.f32 1.442695, %v2538_v8  ;;  %v8627_v34 = vmul.f32 %v8422_v2, %v4459_v55 }
 0x479   : > { %v3328_v9 = vadd.f32 %v8573_v21, %v3327_v15  ;;  %10409 = vst [vmem:[#allocation82_spill] sm:$0xff] %v8616_v14  ;;  %v8623_v24 = vpop.eup %5883  ;;  %5895 = vpow2.f32 %v2949_v10  ;;  %v3348_v30 = vadd.f32 %v8603_v44, %v3347_v54  ;;  %v2961_v42 = vmul.f32 1.442695, %v2528_v56  ;;  %v10417_v10 = vld [vmem:[#allocation48_spill] sm:$0xff] }
 0x47a   : > { %10412 = vst [vmem:[#allocation88_spill] sm:$0xff] %v8623_v24  ;;  %v8629_v45 = vpop.eup %5885  ;;  %5897 = vpow2.f32 %v2953_v6  ;;  %v2530_v8 = vsub.f32 %v10417_v10, %v8395_v58  ;;  %v2973_v54 = vmul.f32 1.442695, %v2534_v20  ;;  %v3774_v2 = vpop.f32.mrf.mxu3  ;;  %v10418_v55 = vrot.slane %v8486_v31, 2 }
 0x47b   : > { %v8619_v15 = vadd.f32 %v8583_v59, %v3328_v9  ;;  %10413 = vst [vmem:[#allocation47_spill] sm:$0xff] %v8627_v34  ;;  %v8631_v51 = vpop.eup %5887  ;;  %v2969_v9 = vmul.f32 1.442695, %v2532_v47  ;;  %5899 = vpow2.f32 %v2977_v61  ;;  %v3349_v35 = vadd.f32 %v5878_v37, %v3348_v30 }
 0x47c   : > { %10414 = vst [vmem:[#allocation104_spill] sm:$0xff] %v8629_v45  ;;  %v8633_v12 = vpop.eup %5889  ;;  %5901 = vpow2.f32 %v2957_v26  ;;  %v3259_v6 = vadd.f32 %v10418_v55, %v8486_v31  ;;  %v3533_v61 = vpack.c.bf16 %v5878_v37, %v8429_v40  ;;  %v3549_v30 = vpack.c.bf16 %v8631_v51, %v8573_v21  ;;  %v10420_v31 = vld [vmem:[#allocation29_spill] sm:$0xff]  ;;  %v8660_v37 = vpop.f32.mrf.mxu1 }
 0x47d   : > { %10410 = vst [vmem:[#allocation69_spill] sm:$0xff] %v8619_v15  ;;  %v8642_v56 = vpop.eup %5891  ;;  %5903 = vpow2.f32 %v2981_v17  ;;  %v3350_v47 = vadd.f32 %v5880_v57, %v3349_v35  ;;  %v3550_v20 = vpack.c.bf16 %v8633_v12, %v8583_v59  ;;  %v8651_v26 = vpop.f32.mrf.mxu0  ;;  %v8657_v2 = vadd.f32 %v10420_v31, %v8635_v13 }
 0x47e   : > { %10415 = vst [vmem:[#allocation63_spill] sm:$0xff] %v8631_v51  ;;  %v8647_v34 = vpop.eup %5893  ;;  %5905 = vpow2.f32 %v2961_v42  ;;  %v2965_v17 = vmul.f32 1.442695, %v2530_v8  ;;  %v8665_v42 = vmul.f32 0.0, %v8431_v19  ;;  %v3260_v59 = vrot.slane %v3259_v6, 1 }
 0x47f   : > { %10416 = vst [vmem:[#allocation26_spill] sm:$0xff] %v8633_v12  ;;  %v8653_v10 = vpop.eup %5895  ;;  %5907 = vpow2.f32 %v2969_v9  ;;  %v3351_v40 = vadd.f32 %v8616_v14, %v3350_v47  ;;  %v3534_v31 = vpack.c.bf16 %v5880_v57, %v8436_v63  ;;  %v4088_v58 = vunpack.c.l.b16 %v3533_v61 }
 0x480   : > { %10419 = vst [vmem:[#allocation99_spill] sm:$0xff] %v8651_v26  ;;  %v8662_v21 = vpop.eup %5897  ;;  %5909 = vpow2.f32 %v2973_v54  ;;  %v4120_v9 = vunpack.c.l.b16 %v3549_v30  ;;  %v4122_v47 = vunpack.c.l.b16 %v3550_v20  ;;  %v4121_v26 = vunpack.c.h.b16 %v3549_v30 }
 0x481   : > { %10421 = vst [vmem:[#allocation78_spill] sm:$0xff] %v8660_v37  ;;  %v8667_v35 = vpop.eup %5899  ;;  %v3352_v55 = vadd.f32 %v8623_v24, %v3351_v40  ;;  %v4089_v37 = vunpack.c.h.b16 %v3533_v61  ;;  %v4123_v32 = vunpack.c.h.b16 %v3550_v20  ;;  %v4090_v54 = vunpack.c.l.b16 %v3534_v31 }
 0x482   : > { %v8671_v15 = vpop.eup %5901  ;;  %v4091_v14 = vunpack.c.h.b16 %v3534_v31  ;;  %v3531_v12 = vpack.c.bf16 %v8598_v7, %v8409_v36  ;;  %v4154_v24 = vpack.c.b16 %v4122_v47, %v4120_v9  ;;  %v3532_v57 = vpack.c.bf16 %v8603_v44, %v8418_v60 }
 0x483   : > { %v8673_v8 = vpop.eup %5903  ;;  %v3353_v19 = vadd.f32 %v8629_v45, %v3352_v55  ;;  %v4155_v63 = vpack.c.b16 %v4123_v32, %v4121_v26  ;;  %v3547_v61 = vpack.c.bf16 %v8667_v35, %v8549_v18  ;;  %v4138_v51 = vpack.c.b16 %v4090_v54, %v4088_v58  ;;  %v8692_v32 = vpop.f32.mrf.mxu2 }
 0x484   : > { %v5906_v40 = vpop.eup %5905  ;;  %v4139_v55 = vpack.c.b16 %v4091_v14, %v4089_v37  ;;  %v4084_v45 = vunpack.c.l.b16 %v3531_v12  ;;  %4201 = vmatpush.bf16.msrb.mxu3 %v4154_v24  ;;  %v4086_v36 = vunpack.c.l.b16 %v3532_v57  ;;  %v3548_v60 = vpack.c.bf16 %v8673_v8, %v8563_v27  ;;  %v8694_v26 = vpop.f32.mrf.mxu3 }
 0x485   : > { %v8682_v30 = vpop.eup %5907  ;;  %v3354_v20 = vadd.f32 %v8642_v56, %v3353_v19  ;;  %v8687_v62 = vpop.f32.mrf.mxu0  ;;  %4227 = vmatpush.bf16.msra.mxu1 %v4155_v63  ;;  %v4116_v7 = vunpack.c.l.b16 %v3547_v61  ;;  %v4085_v44 = vunpack.c.h.b16 %v3531_v12  ;;  %5911 = vpow2.f32 %v2965_v17  ;;  %4188 = vmatpush.bf16.msrb.mxu2 %v4138_v51 }
 0x486   : > { %v8685_v31 = vpop.eup %5909  ;;  %4214 = vmatpush.bf16.msra.mxu0 %v4139_v55  ;;  %v4087_v58 = vunpack.c.h.b16 %v3532_v57  ;;  %v3261_v14 = vadd.f32 %v3260_v59, %v3259_v6  ;;  %v4136_v37 = vpack.c.b16 %v4086_v36, %v4084_v45  ;;  %v4118_v24 = vunpack.c.l.b16 %v3548_v60  ;;  %v8697_v27 = vpop.f32.mrf.mxu1 }
 0x487   : > { %v3355_v18 = vadd.f32 %v8647_v34, %v3354_v20  ;;  %v4117_v9 = vunpack.c.h.b16 %v3547_v61  ;;  %v4119_v47 = vunpack.c.h.b16 %v3548_v60  ;;  %v3529_v17 = vpack.c.bf16 %v8588_v53, %v8391_v28 }
 0x488   : > { %v4137_v12 = vpack.c.b16 %v4087_v58, %v4085_v44  ;;  %v3530_v51 = vpack.c.bf16 %v8593_v39, %v8404_v49  ;;  %v4152_v54 = vpack.c.b16 %v4118_v24, %v4116_v7  ;;  %v3545_v6 = vpack.c.bf16 %v8682_v30, %v8527_v25  ;;  %v10422_v24 = vld [vmem:[#allocation30_spill] sm:$0xff] }
 0x489   : > { %v3356_v19 = vadd.f32 %v8653_v10, %v3355_v18  ;;  %v4153_v63 = vpack.c.b16 %v4119_v47, %v4117_v9  ;;  %v3546_v45 = vpack.c.bf16 %v8685_v31, %v8539_v1  ;;  %4189 = vmatpush.bf16.msrb.mxu2 %v4136_v37  ;;  %v4080_v57 = vunpack.c.l.b16 %v3529_v17 }
 0x48a   : > { %4215 = vmatpush.bf16.msra.mxu0 %v4137_v12  ;;  %v4082_v61 = vunpack.c.l.b16 %v3530_v51  ;;  %v4081_v20 = vunpack.c.h.b16 %v3529_v17  ;;  %4202 = vmatpush.bf16.msrb.mxu3 %v4152_v54  ;;  %v4112_v28 = vunpack.c.l.b16 %v3545_v6  ;;  %v4083_v49 = vunpack.c.h.b16 %v3530_v51 }
 0x48b   : > { %v3357_v59 = vadd.f32 %v8662_v21, %v3356_v19  ;;  %4228 = vmatpush.bf16.msra.mxu1 %v4153_v63  ;;  %v4114_v53 = vunpack.c.l.b16 %v3546_v45  ;;  %v4113_v39 = vunpack.c.h.b16 %v3545_v6  ;;  %v5912_v55 = vpop.eup %5911  ;;  %v4115_v60 = vunpack.c.h.b16 %v3546_v45  ;;  %v3980_v17 = vpop.f32.mrf.mxu2 }
 0x48c   : > { %v4134_v25 = vpack.c.b16 %v4082_v61, %v4080_v57  ;;  %v3527_v1 = vpack.c.bf16 %v8568_v52, %v8374_v5  ;;  %v4135_v18 = vpack.c.b16 %v4083_v49, %v4081_v20  ;;  %v3528_v58 = vpack.c.bf16 %v8578_v38, %v8382_v11  ;;  %v3993_v51 = vpop.f32.mrf.mxu3  ;;  %v5113_v5 = vld [vmem:[%s9621_s19] sm:$0xff] }
 0x48d   : > { %v3358_v36 = vadd.f32 %v8671_v15, %v3357_v59  ;;  %v8711_v7 = vpop.f32.mrf.mxu0  ;;  %v4150_v44 = vpack.c.b16 %v4114_v53, %v4112_v28  ;;  %v3543_v37 = vpack.c.bf16 %v5906_v40, %v8506_v46  ;;  %v857_v9 = vadd.f32 %v10422_v24, %v8635_v13  ;;  %5116 = vperm.xlu2 %5522, %v5113_v5   ;;  %v10423_v24 = vld [vmem:[#allocation54_spill] sm:$0xff]  ;;  %v10428_v51 = vld [vmem:[#allocation63_spill] sm:$0xff] }
 0x48e   : > { %4190 = vmatpush.bf16.msrb.mxu2 %v4134_v25  ;;  %v4151_v19 = vpack.c.b16 %v4115_v60, %v4113_v39  ;;  %v3449_v12 = vadd.f32 %v3261_v14, %v8665_v42  ;;  %4216 = vmatpush.bf16.msra.mxu0 %v4135_v18  ;;  %v4076_v52 = vunpack.c.l.b16 %v3527_v1  ;;  %v4078_v11 = vunpack.c.l.b16 %v3528_v58  ;;  %v8726_v61 = vpop.f32.mrf.mxu1 }
 0x48f   : > { %v3359_v47 = vadd.f32 %v5906_v40, %v3358_v36  ;;  %4203 = vmatpush.bf16.msrb.mxu3 %v4150_v44  ;;  %v3544_v46 = vpack.c.bf16 %v5912_v55, %v8515_v48  ;;  %v4108_v38 = vunpack.c.l.b16 %v3543_v37  ;;  %v4077_v13 = vunpack.c.h.b16 %v3527_v1 }
 0x490   : > { %4229 = vmatpush.bf16.msra.mxu1 %v4151_v19  ;;  %v4079_v40 = vunpack.c.h.b16 %v3528_v58  ;;  %v4109_v63 = vunpack.c.h.b16 %v3543_v37  ;;  %v4132_v14 = vpack.c.b16 %v4078_v11, %v4076_v52  ;;  %v3525_v59 = vpack.c.bf16 %v8544_v4, %v8361_v22  ;;  %v10424_v19 = vld [vmem:[#allocation74_spill] sm:$0xff] }
 0x491   : > { %v3360_v54 = vadd.f32 %v5912_v55, %v3359_v47  ;;  %v4110_v6 = vunpack.c.l.b16 %v3544_v46  ;;  %v4111_v45 = vunpack.c.h.b16 %v3544_v46  ;;  %v3526_v48 = vpack.c.bf16 %v8554_v50, %v8366_v43 }
 0x492   : > { %v4133_v20 = vpack.c.b16 %v4079_v40, %v4077_v13  ;;  %v3541_v28 = vpack.c.bf16 %v8662_v21, %v8488_v16  ;;  %4191 = vmatpush.bf16.msrb.mxu2 %v4132_v14  ;;  %v4072_v39 = vunpack.c.l.b16 %v3525_v59  ;;  %v3542_v55 = vpack.c.bf16 %v8671_v15, %v8493_v3 }
 0x493   : > { %v3361_v57 = vadd.f32 %v8682_v30, %v3360_v54  ;;  %v4148_v53 = vpack.c.b16 %v4110_v6, %v4108_v38  ;;  %v4149_v49 = vpack.c.b16 %v4111_v45, %v4109_v63  ;;  %v4074_v4 = vunpack.c.l.b16 %v3526_v48  ;;  %v10429_v38 = vld [vmem:[#allocation26_spill] sm:$0xff] }
 0x494   : > { %4217 = vmatpush.bf16.msra.mxu0 %v4133_v20  ;;  %v4104_v30 = vunpack.c.l.b16 %v3541_v28  ;;  %v4073_v36 = vunpack.c.h.b16 %v3525_v59  ;;  %v4106_v43 = vunpack.c.l.b16 %v3542_v55  ;;  %v4075_v50 = vunpack.c.h.b16 %v3526_v48  ;;  %v10431_v20 = vld [vmem:[#allocation104_spill] sm:$0xff] }
 0x495   : > { %v3362_v22 = vadd.f32 %v8685_v31, %v3361_v57  ;;  %v8735_v25 = vpop.f32.mrf.mxu0  ;;  %4204 = vmatpush.bf16.msrb.mxu3 %v4148_v53  ;;  %4230 = vmatpush.bf16.msra.mxu1 %v4149_v49  ;;  %v4105_v16 = vunpack.c.h.b16 %v3541_v28  ;;  %v4107_v21 = vunpack.c.h.b16 %v3542_v55  ;;  %v8738_v60 = vpack.c.bf16 %v857_v9, %v8657_v2  ;;  %v10430_v57 = vld [vmem:[#allocation100_spill] sm:$0xff]  ;;  %v10432_v28 = vld [vmem:[#allocation58_spill] sm:$0xff] }
 0x496   : > { %v4130_v3 = vpack.c.b16 %v4074_v4, %v4072_v39  ;;  %5913 = vrcp.f32 %v3449_v12  ;;  %v4146_v15 = vpack.c.b16 %v4106_v43, %v4104_v30  ;;  %v4131_v31 = vpack.c.b16 %v4075_v50, %v4073_v36  ;;  %v10425_v12 = vld [vmem:[#allocation36_spill] sm:$0xff]  ;;  %v8758_v13 = vpop.f32.mrf.mxu1 }
 0x497   : > { %v3363_v1 = vadd.f32 %v8667_v35, %v3362_v22  ;;  %v4147_v44 = vpack.c.b16 %v4107_v21, %v4105_v16  ;;  %v3523_v18 = vpack.c.bf16 %v8522_v41, %v8347_v29  ;;  %v3524_v37 = vpack.c.bf16 %v8534_v23, %v8352_v33  ;;  %v10426_v29 = vld [vmem:[#allocation85_spill] sm:$0xff]  ;;  %v10427_v41 = vld [vmem:[#allocation83_spill] sm:$0xff] }
 0x498   : > { %4192 = vmatpush.bf16.msrb.mxu2 %v4130_v3  ;;  %v3539_v2 = vpack.c.bf16 %v8647_v34, %v8467_v0  ;;  %v3540_v35 = vpack.c.bf16 %v8653_v10, %v10423_v24  ;;  %4218 = vmatpush.bf16.msra.mxu0 %v4131_v31  ;;  %v3521_v17 = vpack.c.bf16 %v10425_v12, %v10424_v19  ;;  %v4022_v49 = vunpack.c.l.b16 %v8738_v60  ;;  %v10436_v31 = vld [vmem:[#allocation55_spill] sm:$0xff] }
 0x499   : > { %v3364_v58 = vadd.f32 %v8673_v8, %v3363_v1  ;;  %4205 = vmatpush.bf16.msrb.mxu3 %v4146_v15  ;;  %v4068_v9 = vunpack.c.l.b16 %v3523_v18  ;;  %v4069_v47 = vunpack.c.h.b16 %v3523_v18  ;;  %v3522_v8 = vpack.c.bf16 %v10427_v41, %v10426_v29  ;;  %4231 = vmatpush.bf16.msra.mxu1 %v4147_v44  ;;  %v10433_v1 = vld [vmem:[#allocation20_spill] sm:$0xff]  ;;  %v10435_v15 = vld [vmem:[#allocation61_spill] sm:$0xff] }
 0x49a   : > { %v4070_v33 = vunpack.c.l.b16 %v3524_v37  ;;  %v4100_v23 = vunpack.c.l.b16 %v3539_v2  ;;  %v4102_v52 = vunpack.c.l.b16 %v3540_v35  ;;  %v4071_v0 = vunpack.c.h.b16 %v3524_v37  ;;  %v10437_v37 = vld [vmem:[#allocation73_spill] sm:$0xff] }
 0x49b   : > { %v3365_v5 = vadd.f32 %v10428_v51, %v3364_v58  ;;  %v4101_v34 = vunpack.c.h.b16 %v3539_v2  ;;  %v4103_v11 = vunpack.c.h.b16 %v3540_v35  ;;  %v4064_v10 = vunpack.c.l.b16 %v3521_v17  ;;  %v10438_v2 = vld [vmem:[#allocation82_spill] sm:$0xff]  ;;  %v10439_v35 = vld [vmem:[#allocation97_spill] sm:$0xff] }
 0x49c   : > { %v5914_v46 = vpop.eup %5913  ;;  %v4128_v40 = vpack.c.b16 %v4070_v33, %v4068_v9  ;;  %v4144_v63 = vpack.c.b16 %v4102_v52, %v4100_v23  ;;  %v4066_v14 = vunpack.c.l.b16 %v3522_v8  ;;  %v4129_v45 = vpack.c.b16 %v4071_v0, %v4069_v47  ;;  %v10440_v9 = vld [vmem:[#allocation88_spill] sm:$0xff] }
 0x49d   : > { %v8756_v54 = vadd.f32 %v10429_v38, %v3365_v5  ;;  %v8760_v6 = vpop.f32.mrf.mxu0  ;;  %v4145_v59 = vpack.c.b16 %v4103_v11, %v4101_v34  ;;  %v3537_v48 = vpack.c.bf16 %v10431_v20, %v10430_v57  ;;  %v3538_v53 = vpack.c.bf16 %v8642_v56, %v10432_v28  ;;  %v10434_v56 = vld [vmem:[#allocation41_spill] sm:$0xff]  ;;  %v10446_v57 = vld [vmem:[#allocation28_spill] sm:$0xff]  ;;  %v10448_v28 = vld [vmem:[#allocation31_spill] sm:$0xff] }
 0x49e   : > { %4193 = vmatpush.bf16.msrb.mxu2 %v4128_v40  ;;  %4206 = vmatpush.bf16.msrb.mxu3 %v4144_v63  ;;  %v4065_v22 = vunpack.c.h.b16 %v3521_v17  ;;  %v4067_v4 = vunpack.c.h.b16 %v3522_v8  ;;  %v4126_v30 = vpack.c.b16 %v4066_v14, %v4064_v10  ;;  %v3992_v50 = vadd.f32 %v8694_v26, %v8692_v32  ;;  %v8783_v52 = vpop.f32.mrf.mxu1  ;;  %v10443_v38 = vld [vmem:[#allocation93_spill] sm:$0xff] }
 0x49f   : > { %4219 = vmatpush.bf16.msra.mxu0 %v4129_v45  ;;  %4232 = vmatpush.bf16.msra.mxu1 %v4145_v59  ;;  %v4096_v39 = vunpack.c.l.b16 %v3537_v48  ;;  %v4098_v55 = vunpack.c.l.b16 %v3538_v53  ;;  %v4097_v36 = vunpack.c.h.b16 %v3537_v48  ;;  %v4099_v43 = vunpack.c.h.b16 %v3538_v53  ;;  %v10445_v45 = vld [vmem:[#allocation92_spill] sm:$0xff] }
 0x4a0   : > { %v4127_v21 = vpack.c.b16 %v4067_v4, %v4065_v22  ;;  %v3519_v3 = vpack.c.bf16 %v10434_v56, %v10433_v1  ;;  %v3520_v44 = vpack.c.bf16 %v10436_v31, %v10435_v15  ;;  %v4461_v58 = vadd.f32 %v3992_v50, %v8665_v42  ;;  %v10450_v22 = vld [vmem:[#allocation34_spill] sm:$0xff]  ;;  %v10456_v31 = vld [vmem:[#allocation79_spill] sm:$0xff] }
 0x4a1   : > { %v4142_v16 = vpack.c.b16 %v4098_v55, %v4096_v39  ;;  %v4143_v18 = vpack.c.b16 %v4099_v43, %v4097_v36  ;;  %v3535_v24 = vpack.c.bf16 %v10438_v2, %v10437_v37  ;;  %v3536_v47 = vpack.c.bf16 %v10440_v9, %v10439_v35  ;;  %v10452_v43 = vld [vmem:[#allocation32_spill] sm:$0xff]  ;;  %v10458_v37 = vld [vmem:[#allocation71_spill] sm:$0xff] }
 0x4a2   : > { %4194 = vmatpush.bf16.msrb.mxu2 %v4126_v30  ;;  %v4060_v32 = vunpack.c.l.b16 %v3519_v3  ;;  %v4062_v26 = vunpack.c.l.b16 %v3520_v44  ;;  %v4061_v19 = vunpack.c.h.b16 %v3519_v3  ;;  %v4063_v12 = vunpack.c.h.b16 %v3520_v44  ;;  %v10451_v30 = vld [vmem:[#allocation106_spill] sm:$0xff]  ;;  %v10460_v9 = vld [vmem:[#allocation75_spill] sm:$0xff] }
 0x4a3   : > { %4207 = vmatpush.bf16.msrb.mxu3 %v4142_v16  ;;  %4220 = vmatpush.bf16.msra.mxu0 %v4127_v21  ;;  %v8778_v17 = vmul.f32 %v5914_v46, %v4461_v58  ;;  %v4092_v29 = vunpack.c.l.b16 %v3535_v24  ;;  %v4094_v41 = vunpack.c.l.b16 %v3536_v47  ;;  %v4093_v8 = vunpack.c.h.b16 %v3535_v24  ;;  %v10442_v46 = vld [vmem:[#allocation23_spill] sm:$0xff]  ;;  %v10454_v21 = vld [vmem:[#allocation72_spill] sm:$0xff]  ;;  %v10455_v3 = vld [vmem:[#allocation90_spill] sm:$0xff] }
 0x4a4   : > { %4233 = vmatpush.bf16.msra.mxu1 %v4143_v18  ;;  %v4023_v42 = vunpack.c.h.b16 %v8738_v60  ;;  %v4124_v5 = vpack.c.b16 %v4062_v26, %v4060_v32  ;;  %v4125_v33 = vpack.c.b16 %v4063_v12, %v4061_v19  ;;  %v4095_v23 = vunpack.c.h.b16 %v3536_v47  ;;  %v10444_v60 = vld [vmem:[#allocation66_spill] sm:$0xff]  ;;  %v10461_v32 = vld [vmem:[#allocation56_spill] sm:$0xff]  ;;  %v10462_v26 = vld [vmem:[#allocation95_spill] sm:$0xff] }
 0x4a5   : > { %10441 = vst [vmem:[#allocation96_spill] sm:$0xff] %v8778_v17  ;;  %v8781_v51 = vpop.f32.mrf.mxu0  ;;  %v4140_v0 = vpack.c.b16 %v4094_v41, %v4092_v29  ;;  %v4024_v11 = vpack.c.b16 %v4022_v49, %v4022_v49  ;;  %v2277_v40 = vmax.f32 %v10443_v38, %v10442_v46  ;;  %v10449_v49 = vld [vmem:[#allocation89_spill] sm:$0xff]  ;;  %v10457_v18 = vld [vmem:[#allocation62_spill] sm:$0xff]  ;;  %v2314_v19 = vmax.f32 %v10462_v26, %v10461_v32  ;;  %v10463_v12 = vld [vmem:[#allocation40_spill] sm:$0xff] }
 0x4a6   : > { %4195 = vmatpush.bf16.msrb.mxu2 %v4124_v5  ;;  %v4141_v34 = vpack.c.b16 %v4095_v23, %v4093_v8  ;;  %v4025_v10 = vpack.c.b16 %v4023_v42, %v4023_v42  ;;  %v8792_v48 = vpop.f32.mrf.mxu1  ;;  %v10464_v41 = vld [vmem:[#allocation70_spill] sm:$0xff]  ;;  %v10465_v42 = vld [vmem:[#allocation57_spill] sm:$0xff] }
 0x4a7   : > { %4221 = vmatpush.bf16.msra.mxu0 %v4125_v33  ;;  %4208 = vmatpush.bf16.msrb.mxu3 %v4140_v0  ;;  %v2278_v63 = vmax.f32 %v2277_v40, %v10444_v60  ;;  %10447 = vst [vmem:[#allocation101_spill] sm:$0xff] %v8792_v48  ;;  %v2315_v8 = vmax.f32 %v2314_v19, %v10464_v41  ;;  %v10466_v33 = vld [vmem:[#allocation94_spill] sm:$0xff]  ;;  %v10467_v0 = vld [vmem:[#allocation99_spill] sm:$0xff] }
 0x4a8   : > { %4234 = vmatpush.bf16.msra.mxu1 %v4141_v34 }
 0x4a9   : > { %4196 = vmatmul.bf16.vlgmr.msrb.gmra.mxu2 %v4024_v11  ;;  %v2279_v59 = vmax.f32 %v2278_v63, %v10445_v45  ;;  %v2316_v23 = vmax.f32 %v2315_v8, %v10466_v33 }
 0x4aa   : > { %4222 = vmatmul.bf16.vlgmr.msra.gmra.mxu0 %v4024_v11  ;;  %4209 = vmatmul.bf16.vlgmr.msrb.gmra.mxu3 %v4025_v10  ;;  %v10468_v11 = vld [vmem:[#allocation76_spill] sm:$0xff] }
 0x4ab   : > { %4235 = vmatmul.bf16.vlgmr.msra.gmra.mxu1 %v4025_v10  ;;  %v2280_v20 = vmax.f32 %v2279_v59, %v10446_v57  ;;  %v2317_v10 = vmax.f32 %v2316_v23, %v10468_v11 }
 0x4ad   : > { %v8788_v14 = vpop.f32.mrf.mxu0  ;;  %v2281_v53 = vmax.f32 %v2280_v20, %v10448_v28  ;;  %v10470_v20 = vld [vmem:[#allocation49_spill] sm:$0xff] }
 0x4ae   : > { %v8801_v16 = vpop.f32.mrf.mxu1 }
 0x4af   : > { %v2282_v39 = vmax.f32 %v2281_v53, %v10449_v49  ;;  %10453 = vst [vmem:[#allocation45_spill] sm:$0xff] %v8801_v16  ;;  %v2318_v53 = vmax.f32 %v2317_v10, %v10470_v20 }
 0x4b1   : > { %v2283_v4 = vmax.f32 %v2282_v39, %v10450_v22 }
 0x4b3   : > { %v2284_v36 = vmax.f32 %v2283_v4, %v10451_v30  ;;  %v10471_v4 = vld [vmem:[#allocation44_spill] sm:$0xff] }
 0x4b5   : > { %v8796_v55 = vpop.f32.mrf.mxu0  ;;  %v2285_v50 = vmax.f32 %v2284_v36, %v10452_v43  ;;  %v2319_v36 = vmax.f32 %v2318_v53, %v10471_v4  ;;  %v10476_v53 = vld [vmem:[#allocation59_spill] sm:$0xff] }
 0x4b6   : > { %v8810_v24 = vpop.f32.mrf.mxu1 }
 0x4b7   : > { %v2286_v1 = vmax.f32 %v2285_v50, %v10454_v21  ;;  %10459 = vst [vmem:[#allocation53_spill] sm:$0xff] %v8810_v24 }
 0x4b9   : > { %v2287_v15 = vmax.f32 %v2286_v1, %v10455_v3  ;;  %v10472_v1 = vld [vmem:[#allocation37_spill] sm:$0xff] }
 0x4bb   : > { %v2288_v44 = vmax.f32 %v2287_v15, %v10456_v31  ;;  %v2320_v15 = vmax.f32 %v2319_v36, %v10472_v1  ;;  %v10478_v1 = vld [vmem:[#allocation64_spill] sm:$0xff] }
 0x4bd   : > { %v8804_v56 = vpop.f32.mrf.mxu0  ;;  %v2289_v58 = vmax.f32 %v2288_v44, %v10457_v18 }
 0x4be   : > { %v8826_v59 = vpop.f32.mrf.mxu1 }
 0x4bf   : > { %v2290_v2 = vmax.f32 %v2289_v58, %v10458_v37  ;;  %10469 = vst [vmem:[#allocation68_spill] sm:$0xff] %v8826_v59  ;;  %v10473_v58 = vld [vmem:[#allocation60_spill] sm:$0xff] }
 0x4c1   : > { %v2291_v47 = vmax.f32 %v2290_v2, %v10460_v9  ;;  %v2321_v2 = vmax.f32 %v2320_v15, %v10473_v58 }
 0x4c3   : > { %v2292_v29 = vmax.f32 %v2291_v47, %v10463_v12 }
 0x4c5   : > { %v8812_v35 = vpop.f32.mrf.mxu0  ;;  %v2293_v5 = vmax.f32 %v2292_v29, %v10465_v42  ;;  %v10474_v29 = vld [vmem:[#allocation39_spill] sm:$0xff] }
 0x4c6   : > { %v2322_v8 = vmax.f32 %v2321_v2, %v10474_v29  ;;  %v8840_v23 = vpop.f32.mrf.mxu1  ;;  %v10479_v29 = vld [vmem:[#allocation81_spill] sm:$0xff] }
 0x4c7   : > { %v2294_v34 = vmax.f32 %v2293_v5, %v10467_v0 }
 0x4c9   : > { %v2295_v63 = vmax.f32 %v2294_v34, %v8687_v62  ;;  %v10475_v34 = vld [vmem:[#allocation67_spill] sm:$0xff] }
 0x4ca   : > { %v2323_v10 = vmax.f32 %v2322_v8, %v10475_v34  ;;  %v10483_v34 = vld [vmem:[#allocation103_spill] sm:$0xff] }
 0x4cb   : > { %v2296_v39 = vmax.f32 %v2295_v63, %v8711_v7 }
 0x4cd   : > { %v8823_v40 = vpop.f32.mrf.mxu0  ;;  %v2297_v50 = vmax.f32 %v2296_v39, %v8735_v25  ;;  %v2324_v39 = vmax.f32 %v2323_v10, %v10476_v53  ;;  %v10481_v53 = vld [vmem:[#allocation84_spill] sm:$0xff] }
 0x4ce   : > { %v8853_v20 = vpop.f32.mrf.mxu1 }
 0x4cf   : > { %v2298_v44 = vmax.f32 %v2297_v50, %v8760_v6  ;;  %v10477_v50 = vld [vmem:[#allocation87_spill] sm:$0xff] }
 0x4d0   : > { %v2325_v15 = vmax.f32 %v2324_v39, %v10477_v50 }
 0x4d1   : > { %v2299_v19 = vmax.f32 %v2298_v44, %v8781_v51 }
 0x4d2   : > { %v2326_v2 = vmax.f32 %v2325_v15, %v10478_v1 }
 0x4d3   : > { %v2300_v5 = vmax.f32 %v2299_v19, %v8788_v14 }
 0x4d4   : > { %v2327_v4 = vmax.f32 %v2326_v2, %v10479_v29 }
 0x4d5   : > { %v8835_v47 = vpop.f32.mrf.mxu0  ;;  %v2301_v63 = vmax.f32 %v2300_v5, %v8796_v55  ;;  %v10480_v5 = vld [vmem:[#allocation21_spill] sm:$0xff] }
 0x4d6   : > { %v2328_v10 = vmax.f32 %v2327_v4, %v10480_v5  ;;  %v8865_v33 = vpop.f32.mrf.mxu1 }
 0x4d7   : > { %v2302_v36 = vmax.f32 %v2301_v63, %v8804_v56 }
 0x4d8   : > { %v2329_v39 = vmax.f32 %v2328_v10, %v10481_v53 }
 0x4d9   : > { %v2303_v44 = vmax.f32 %v2302_v36, %v8812_v35 }
 0x4da   : > { %v2330_v15 = vmax.f32 %v2329_v39, %v10483_v34 }
 0x4db   : > { %v2304_v19 = vmax.f32 %v2303_v44, %v8823_v40  ;;  %v10484_v44 = vld [vmem:[#allocation78_spill] sm:$0xff] }
 0x4dc   : > { %v2331_v11 = vmax.f32 %v2330_v15, %v10484_v44  ;;  %v10487_v15 = vld [vmem:[#allocation19_spill] sm:$0xff] }
 0x4dd   : > { %v8847_v58 = vpop.f32.mrf.mxu0  ;;  %v2305_v8 = vmax.f32 %v2304_v19, %v8835_v47 }
 0x4de   : > { %v2332_v29 = vmax.f32 %v2331_v11, %v8697_v27  ;;  %v8875_v11 = vpop.f32.mrf.mxu1 }
 0x4df   : > { %v2306_v63 = vmax.f32 %v2305_v8, %v8847_v58 }
 0x4e0   : > { %v2333_v4 = vmax.f32 %v2332_v29, %v8726_v61  ;;  %v3120_v29 = vsub.f32 -inf, %v10487_v15 }
 0x4e2   : > { %v2334_v10 = vmax.f32 %v2333_v4, %v8758_v13  ;;  %v3129_v15 = vmul.f32 1.442695, %v3120_v29 }
 0x4e4   : > { %v2335_v5 = vmax.f32 %v2334_v10, %v8783_v52 }
 0x4e5   : > { %v8859_v50 = vpop.f32.mrf.mxu0 }
 0x4e6   : > { %10482 = vst [vmem:[#allocation25_spill] sm:$0xff] %v8859_v50  ;;  %v2307_v36 = vmax.f32 %v2306_v63, %v8859_v50  ;;  %v10485_v63 = vld [vmem:[#allocation35_spill] sm:$0xff]  ;;  %v2336_v39 = vmax.f32 %v2335_v5, %v8792_v48 }
 0x4e7   : > { %v3219_v50 = vrot.slane %v10485_v63, 4 }
 0x4e8   : > { %v2308_v1 = vrot.slane %v2307_v36, 4 }
 0x4ea   : > { %v2309_v2 = vmax.f32 %v2307_v36, %v2308_v1  ;;  %v2337_v1 = vmax.f32 %v2336_v39, %v8801_v16  ;;  %v10489_v16 = vld [vmem:[#allocation91_spill] sm:$0xff] }
 0x4eb   : > { %v3122_v48 = vsub.f32 -inf, %v10489_v16 }
 0x4ec   : > { %v2310_v19 = vrot.slane %v2309_v2, 2  ;;  %v2338_v36 = vmax.f32 %v2337_v1, %v8810_v24 }
 0x4ee   : > { %v2311_v8 = vmax.f32 %v2309_v2, %v2310_v19  ;;  %v3220_v2 = vadd.f32 %v3219_v50, %v10485_v63  ;;  %v10488_v19 = vld [vmem:[#allocation27_spill] sm:$0xff] }
 0x4ef   : > { %v3293_v4 = vrot.slane %v10488_v19, 4 }
 0x4f0   : > { %v2312_v53 = vrot.slane %v2311_v8, 1  ;;  %v3221_v50 = vrot.slane %v3220_v2, 2 }
 0x4f2   : > { %v8872_v34 = vmax.f32 %v2311_v8, %v2312_v53  ;;  %v2339_v53 = vmax.f32 %v2338_v36, %v8826_v59  ;;  %v3222_v16 = vadd.f32 %v3221_v50, %v3220_v2 }
 0x4f4   : > { %10486 = vst [vmem:[#allocation80_spill] sm:$0xff] %v8872_v34  ;;  %v2543_v10 = vsub.f32 %v10443_v38, %v8872_v34  ;;  %v2545_v5 = vsub.f32 %v10442_v46, %v8872_v34  ;;  %v2547_v8 = vsub.f32 %v10444_v60, %v8872_v34  ;;  %v2340_v39 = vmax.f32 %v2339_v53, %v8840_v23 }
 0x4f5   : > { %v2549_v1 = vsub.f32 %v10445_v45, %v8872_v34  ;;  %v3294_v38 = vadd.f32 %v3293_v4, %v10488_v19  ;;  %v2551_v36 = vsub.f32 %v10446_v57, %v8872_v34  ;;  %v2553_v45 = vsub.f32 %v10448_v28, %v8872_v34 }
 0x4f6   : > { %v2991_v63 = vmul.f32 1.442695, %v2543_v10  ;;  %v2995_v24 = vmul.f32 1.442695, %v2545_v5  ;;  %v2341_v46 = vmax.f32 %v2340_v39, %v8853_v20  ;;  %v2999_v59 = vmul.f32 1.442695, %v2547_v8  ;;  %v8899_v10 = vpop.f32.mrf.mxu1 }
 0x4f7   : > { %v3003_v29 = vmul.f32 1.442695, %v2549_v1  ;;  %v3133_v5 = vmul.f32 1.442695, %v3122_v48  ;;  %v3295_v19 = vrot.slane %v3294_v38, 2  ;;  %v2555_v57 = vsub.f32 %v10449_v49, %v8872_v34 }
 0x4f8   : > { %5915 = vpow2.f32 %v2991_v63  ;;  %v2342_v60 = vmax.f32 %v2341_v46, %v8865_v33  ;;  %v3007_v53 = vmul.f32 1.442695, %v2551_v36  ;;  %v2557_v8 = vsub.f32 %v10450_v22, %v8872_v34 }
 0x4f9   : > { %5917 = vpow2.f32 %v2995_v24  ;;  %v3011_v28 = vmul.f32 1.442695, %v2553_v45  ;;  %v3223_v1 = vrot.slane %v3222_v16, 1  ;;  %v3296_v48 = vadd.f32 %v3295_v19, %v3294_v38 }
 0x4fa   : > { %5919 = vpow2.f32 %v3129_v15  ;;  %v2343_v4 = vmax.f32 %v2342_v60, %v8875_v11  ;;  %v2559_v15 = vsub.f32 %v10451_v30, %v8872_v34  ;;  %v3015_v49 = vmul.f32 1.442695, %v2555_v57 }
 0x4fb   : > { %5921 = vpow2.f32 %v2999_v59  ;;  %v2561_v63 = vsub.f32 %v10452_v43, %v8872_v34  ;;  %v3019_v46 = vmul.f32 1.442695, %v2557_v8  ;;  %v3224_v60 = vadd.f32 %v3223_v1, %v3222_v16 }
 0x4fc   : > { %5923 = vpow2.f32 %v3003_v29  ;;  %v2344_v24 = vmax.f32 %v2343_v4, %v8899_v10  ;;  %v3297_v45 = vrot.slane %v3296_v48, 1  ;;  %v2563_v30 = vsub.f32 %v10454_v21, %v8872_v34 }
 0x4fd   : > { %5925 = vpow2.f32 %v3133_v5  ;;  %v3023_v5 = vmul.f32 1.442695, %v2559_v15  ;;  %v2565_v8 = vsub.f32 %v10455_v3, %v8872_v34  ;;  %v3027_v16 = vmul.f32 1.442695, %v2561_v63  ;;  %v10497_v63 = vld [vmem:[#allocation33_spill] sm:$0xff] }
 0x4fe   : > { %v8907_v39 = vpop.eup %5915  ;;  %5927 = vpow2.f32 %v3007_v53  ;;  %v2345_v36 = vrot.slane %v2344_v24, 4 }
 0x4ff   : > { %10490 = vst [vmem:[#allocation98_spill] sm:$0xff] %v8907_v39  ;;  %v8909_v2 = vpop.eup %5917  ;;  %5929 = vpow2.f32 %v3011_v28 }
 0x500   : > { %10491 = vst [vmem:[#allocation22_spill] sm:$0xff] %v8909_v2  ;;  %v5920_v59 = vpop.eup %5919  ;;  %v3373_v22 = vadd.f32 %v8909_v2, %v8907_v39  ;;  %5931 = vpow2.f32 %v3015_v49  ;;  %v2346_v19 = vmax.f32 %v2344_v24, %v2345_v36  ;;  %v3298_v49 = vadd.f32 %v3297_v45, %v3296_v48  ;;  %v10496_v24 = vld [vmem:[#allocation69_spill] sm:$0xff] }
 0x501   : > { %v8915_v50 = vpop.eup %5921  ;;  %v8925_v53 = vmul.f32 0.0, %v5920_v59  ;;  %5933 = vpow2.f32 %v3019_v46  ;;  %v2567_v59 = vsub.f32 %v10456_v31, %v8872_v34  ;;  %v3031_v36 = vmul.f32 1.442695, %v2563_v30 }
 0x502   : > { %10492 = vst [vmem:[#allocation65_spill] sm:$0xff] %v8915_v50  ;;  %v3374_v38 = vadd.f32 %v8915_v50, %v3373_v22  ;;  %v8920_v29 = vpop.eup %5923  ;;  %v2347_v28 = vrot.slane %v2346_v19, 2  ;;  %v3330_v22 = vrot.slane %v10496_v24, 4  ;;  %5935 = vpow2.f32 %v3023_v5  ;;  %v10499_v5 = vld [vmem:[#allocation17_spill] sm:$0xff] }
 0x503   : > { %10493 = vst [vmem:[#allocation52_spill] sm:$0xff] %v8920_v29  ;;  %v5926_v4 = vpop.eup %5925  ;;  %v3448_v21 = vadd.f32 %v3224_v60, %v8925_v53  ;;  %v3124_v46 = vsub.f32 -inf, %v10497_v63  ;;  %v2569_v48 = vsub.f32 %v10457_v18, %v8872_v34  ;;  %5937 = vpow2.f32 %v3027_v16 }
 0x504   : > { %v3375_v57 = vadd.f32 %v8920_v29, %v3374_v38  ;;  %v8927_v43 = vpop.eup %5927  ;;  %v8939_v3 = vmul.f32 0.0, %v5926_v4  ;;  %v3035_v45 = vmul.f32 1.442695, %v2565_v8  ;;  %v2348_v39 = vmax.f32 %v2346_v19, %v2347_v28 }
 0x505   : > { %10494 = vst [vmem:[#allocation105_spill] sm:$0xff] %v8927_v43  ;;  %v8933_v15 = vpop.eup %5929  ;;  %5939 = vrcp.f32 %v3448_v21  ;;  %v3123_v4 = vsub.f32 -inf, %v10499_v5  ;;  %v3367_v63 = vrot.slane %v8756_v54, 4  ;;  %v3039_v2 = vmul.f32 1.442695, %v2567_v59 }
 0x506   : > { %v3376_v1 = vadd.f32 %v8927_v43, %v3375_v57  ;;  %10495 = vst [vmem:[#allocation24_spill] sm:$0xff] %v8933_v15  ;;  %v8944_v60 = vpop.eup %5931  ;;  %v3450_v30 = vadd.f32 %v3298_v49, %v8939_v3  ;;  %v2571_v57 = vsub.f32 %v10458_v37, %v8872_v34  ;;  %5941 = vpow2.f32 %v3031_v36 }
 0x507   : > { %v8957_v18 = vadd.f32 %v3330_v22, %v10496_v24  ;;  %v2573_v19 = vsub.f32 %v10460_v9, %v8872_v34  ;;  %v3137_v16 = vmul.f32 1.442695, %v3124_v46  ;;  %v2575_v21 = vsub.f32 %v10463_v12, %v8872_v34  ;;  %v8976_v46 = vpop.f32.mrf.mxu0 }
 0x508   : > { %v3377_v38 = vadd.f32 %v8933_v15, %v3376_v1  ;;  %v8951_v1 = vpop.eup %5933  ;;  %5943 = vpow2.f32 %v3035_v45  ;;  %v3043_v49 = vmul.f32 1.442695, %v2569_v48  ;;  %v2577_v37 = vsub.f32 %v10465_v42, %v8872_v34 }
 0x509   : > { %v8962_v28 = vpop.eup %5935  ;;  %5945 = vrcp.f32 %v3450_v30  ;;  %v3135_v22 = vmul.f32 1.442695, %v3123_v4  ;;  %v8972_v9 = vadd.f32 %v3367_v63, %v8756_v54  ;;  %v2579_v36 = vsub.f32 %v10467_v0, %v8872_v34 }
 0x50a   : > { %v3378_v31 = vadd.f32 %v8944_v60, %v3377_v38  ;;  %v2349_v38 = vrot.slane %v2348_v39, 1  ;;  %v8969_v59 = vpop.eup %5937  ;;  %5947 = vpow2.f32 %v3039_v2  ;;  %v3047_v12 = vmul.f32 1.442695, %v2571_v57 }
 0x50b   : > { %v8978_v48 = vpop.eup %5939  ;;  %v2581_v42 = vsub.f32 %v8687_v62, %v8872_v34  ;;  %v3051_v45 = vmul.f32 1.442695, %v2573_v19  ;;  %5949 = vpow2.f32 %v3137_v16  ;;  %v2583_v54 = vsub.f32 %v8711_v7, %v8872_v34 }
 0x50c   : > { %v3379_v8 = vadd.f32 %v8951_v1, %v3378_v31  ;;  %v8983_v30 = vpop.eup %5941  ;;  %5951 = vpow2.f32 %v3043_v49  ;;  %v3055_v0 = vmul.f32 1.442695, %v2575_v21  ;;  %v8987_v2 = vmax.f32 %v2348_v39, %v2349_v38 }
 0x50d   : > { %v2585_v57 = vsub.f32 %v8735_v25, %v8872_v34  ;;  %v3059_v5 = vmul.f32 1.442695, %v2577_v37  ;;  %5953 = vpow2.f32 %v3135_v22  ;;  %v2587_v63 = vsub.f32 %v8760_v6, %v8872_v34 }
 0x50e   : > { %v3380_v24 = vadd.f32 %v8962_v28, %v3379_v8  ;;  %10500 = vst [vmem:[#allocation16_spill] sm:$0xff] %v8987_v2  ;;  %v8992_v62 = vpop.eup %5943  ;;  %v2589_v19 = vsub.f32 %v8781_v51, %v8872_v34  ;;  %5955 = vpow2.f32 %v3047_v12  ;;  %v3063_v7 = vmul.f32 1.442695, %v2579_v36 }
 0x50f   : > { %v8998_v8 = vpop.eup %5945  ;;  %v2591_v39 = vsub.f32 %v8788_v14, %v8872_v34  ;;  %5957 = vpow2.f32 %v3051_v45  ;;  %v3067_v25 = vmul.f32 1.442695, %v2581_v42  ;;  %v3071_v49 = vmul.f32 1.442695, %v2583_v54  ;;  %v3787_v12 = vpop.f32.mrf.mxu0 }
 0x510   : > { %v3381_v31 = vadd.f32 %v8969_v59, %v3380_v24  ;;  %v9003_v21 = vpop.eup %5947  ;;  %5959 = vpow2.f32 %v3055_v0  ;;  %v2544_v6 = vsub.f32 %v10462_v26, %v8987_v2  ;;  %v2546_v51 = vsub.f32 %v10461_v32, %v8987_v2 }
 0x511   : > { %v9009_v38 = vpop.eup %5949  ;;  %v2593_v37 = vsub.f32 %v8796_v55, %v8872_v34  ;;  %5961 = vpow2.f32 %v3059_v5  ;;  %v3075_v14 = vmul.f32 1.442695, %v2585_v57  ;;  %v2595_v36 = vsub.f32 %v8804_v56, %v8872_v34 }
 0x512   : > { %v3382_v4 = vadd.f32 %v8983_v30, %v3381_v31  ;;  %v9014_v22 = vpop.eup %5951  ;;  %v2597_v26 = vsub.f32 %v8812_v35, %v8872_v34  ;;  %v2599_v32 = vsub.f32 %v8823_v40, %v8872_v34  ;;  %5963 = vpow2.f32 %v3063_v7 }
 0x513   : > { %v9022_v42 = vpop.eup %5953  ;;  %v2601_v55 = vsub.f32 %v8835_v47, %v8872_v34  ;;  %5965 = vpow2.f32 %v3067_v25  ;;  %v2548_v31 = vsub.f32 %v10464_v41, %v8987_v2  ;;  %v3079_v35 = vmul.f32 1.442695, %v2587_v63  ;;  %v10501_v47 = vld [vmem:[#allocation94_spill] sm:$0xff]  ;;  %v10503_v25 = vld [vmem:[#allocation25_spill] sm:$0xff] }
 0x514   : > { %v3383_v16 = vadd.f32 %v8992_v62, %v3382_v4  ;;  %v9029_v56 = vpop.eup %5955  ;;  %5967 = vpow2.f32 %v3071_v49  ;;  %v2993_v54 = vmul.f32 1.442695, %v2544_v6  ;;  %v2997_v0 = vmul.f32 1.442695, %v2546_v51 }
 0x515   : > { %v9031_v40 = vpop.eup %5957  ;;  %5969 = vpow2.f32 %v3075_v14  ;;  %v3083_v57 = vmul.f32 1.442695, %v2589_v19  ;;  %v2550_v4 = vsub.f32 %v10501_v47, %v8987_v2  ;;  %v2603_v41 = vsub.f32 %v8847_v58, %v8872_v34  ;;  %v10505_v19 = vld [vmem:[#allocation76_spill] sm:$0xff] }
 0x516   : > { %v3384_v24 = vadd.f32 %v9003_v21, %v3383_v16  ;;  %v9036_v7 = vpop.eup %5959  ;;  %v2605_v16 = vsub.f32 %v10503_v25, %v8872_v34  ;;  %v3087_v63 = vmul.f32 1.442695, %v2591_v39  ;;  %5971 = vpow2.f32 %v2993_v54  ;;  %v10508_v54 = vld [vmem:[#allocation49_spill] sm:$0xff] }
 0x517   : > { %10502 = vst [vmem:[#allocation86_spill] sm:$0xff] %v9036_v7  ;;  %v9042_v49 = vpop.eup %5961  ;;  %v2552_v51 = vsub.f32 %v10505_v19, %v8987_v2  ;;  %5973 = vpow2.f32 %v2997_v0  ;;  %v3001_v14 = vmul.f32 1.442695, %v2548_v31  ;;  %v3091_v12 = vmul.f32 1.442695, %v2593_v37 }
 0x518   : > { %v3385_v45 = vadd.f32 %v9014_v22, %v3384_v24  ;;  %10504 = vst [vmem:[#allocation18_spill] sm:$0xff] %v9042_v49  ;;  %v9047_v24 = vpop.eup %5963  ;;  %5975 = vpow2.f32 %v3079_v35  ;;  %v3099_v58 = vmul.f32 1.442695, %v2597_v26  ;;  %v2554_v25 = vsub.f32 %v10508_v54, %v8987_v2 }
 0x519   : > { %10506 = vst [vmem:[#allocation50_spill] sm:$0xff] %v9047_v24  ;;  %v9049_v47 = vpop.eup %5965  ;;  %5977 = vpow2.f32 %v3083_v57  ;;  %v3103_v0 = vmul.f32 1.442695, %v2599_v32  ;;  %v3107_v31 = vmul.f32 1.442695, %v2601_v55  ;;  %v10514_v32 = vld [vmem:[#allocation60_spill] sm:$0xff] }
 0x51a   : > { %v3386_v5 = vadd.f32 %v9029_v56, %v3385_v45  ;;  %v3095_v45 = vmul.f32 1.442695, %v2595_v36  ;;  %10507 = vst [vmem:[#allocation77_spill] sm:$0xff] %v9049_v47  ;;  %v9054_v17 = vpop.eup %5967  ;;  %5979 = vpow2.f32 %v3087_v63  ;;  %v3111_v19 = vmul.f32 1.442695, %v2603_v41  ;;  %v10511_v36 = vld [vmem:[#allocation44_spill] sm:$0xff] }
 0x51b   : > { %10509 = vst [vmem:[#allocation38_spill] sm:$0xff] %v9054_v17  ;;  %v9056_v34 = vpop.eup %5969  ;;  %v2556_v26 = vsub.f32 %v10511_v36, %v8987_v2  ;;  %5981 = vpow2.f32 %v3001_v14  ;;  %v3009_v35 = vmul.f32 1.442695, %v2552_v51  ;;  %v2560_v55 = vsub.f32 %v10514_v32, %v8987_v2  ;;  %v10518_v36 = vld [vmem:[#allocation59_spill] sm:$0xff] }
 0x51c   : > { %v3387_v6 = vadd.f32 %v9031_v40, %v3386_v5  ;;  %v3005_v5 = vmul.f32 1.442695, %v2550_v4  ;;  %10510 = vst [vmem:[#allocation43_spill] sm:$0xff] %v9056_v34  ;;  %v9061_v57 = vpop.eup %5971  ;;  %5983 = vpow2.f32 %v3091_v12  ;;  %v10513_v4 = vld [vmem:[#allocation37_spill] sm:$0xff]  ;;  %v3013_v14 = vmul.f32 1.442695, %v2554_v25 }
 0x51d   : > { %10512 = vst [vmem:[#allocation51_spill] sm:$0xff] %v9061_v57  ;;  %v2558_v54 = vsub.f32 %v10513_v4, %v8987_v2  ;;  %v9067_v41 = vpop.eup %5973  ;;  %v2566_v4 = vsub.f32 %v10518_v36, %v8987_v2  ;;  %v10519_v32 = vld [vmem:[#allocation87_spill] sm:$0xff]  ;;  %v3017_v25 = vmul.f32 1.442695, %v2556_v26  ;;  %v10522_v36 = vld [vmem:[#allocation21_spill] sm:$0xff] }
 0x51e   : > { %v3388_v39 = vadd.f32 %v9036_v7, %v3387_v6  ;;  %v3115_v6 = vmul.f32 1.442695, %v2605_v16  ;;  %10515 = vst [vmem:[#allocation102_spill] sm:$0xff] %v9067_v41  ;;  %5985 = vpow2.f32 %v3005_v5  ;;  %v9072_v51 = vpop.eup %5975  ;;  %v10517_v16 = vld [vmem:[#allocation67_spill] sm:$0xff]  ;;  %v2568_v7 = vsub.f32 %v10519_v32, %v8987_v2 }
 0x51f   : > { %5987 = vpow2.f32 %v3095_v45  ;;  %v2564_v12 = vsub.f32 %v10517_v16, %v8987_v2  ;;  %v9080_v29 = vpop.eup %5977  ;;  %v10521_v45 = vld [vmem:[#allocation81_spill] sm:$0xff]  ;;  %v2574_v50 = vsub.f32 %v10522_v36, %v8987_v2  ;;  %v3410_v32 = vadd.f32 %v9067_v41, %v9061_v57  ;;  %v3798_v57 = vpop.f32.mrf.mxu1 }
 0x520   : > { %v3389_v37 = vadd.f32 %v9042_v49, %v3388_v39  ;;  %v10516_v39 = vld [vmem:[#allocation39_spill] sm:$0xff]  ;;  %5989 = vpow2.f32 %v3009_v35  ;;  %v2572_v16 = vsub.f32 %v10521_v45, %v8987_v2  ;;  %v3021_v26 = vmul.f32 1.442695, %v2558_v54 }
 0x521   : > { %v2562_v49 = vsub.f32 %v10516_v39, %v8987_v2  ;;  %v10520_v39 = vld [vmem:[#allocation64_spill] sm:$0xff]  ;;  %5991 = vpow2.f32 %v3099_v58  ;;  %v10525_v58 = vld [vmem:[#allocation103_spill] sm:$0xff]  ;;  %v2580_v36 = vsub.f32 %v10484_v44, %v8987_v2  ;;  %v3799_v54 = vadd.f32 %v3798_v57, %v8976_v46 }
 0x522   : > { %v3390_v63 = vadd.f32 %v9047_v24, %v3389_v37  ;;  %v2570_v5 = vsub.f32 %v10520_v39, %v8987_v2  ;;  %v9085_v24 = vpop.eup %5979  ;;  %v10524_v39 = vld [vmem:[#allocation84_spill] sm:$0xff]  ;;  %5993 = vpow2.f32 %v3013_v14  ;;  %v2578_v45 = vsub.f32 %v10525_v58, %v8987_v2 }
 0x523   : > { %v9093_v15 = vpop.eup %5981  ;;  %v2576_v35 = vsub.f32 %v10524_v39, %v8987_v2  ;;  %5995 = vpow2.f32 %v3103_v0  ;;  %v3025_v39 = vmul.f32 1.442695, %v2560_v55  ;;  %v2582_v0 = vsub.f32 %v8697_v27, %v8987_v2 }
 0x524   : > { %v3391_v37 = vadd.f32 %v9049_v47, %v3390_v63  ;;  %10523 = vst [vmem:[#allocation42_spill] sm:$0xff] %v9093_v15  ;;  %v9098_v47 = vpop.eup %5983  ;;  %v3411_v41 = vadd.f32 %v9093_v15, %v3410_v32  ;;  %5997 = vpow2.f32 %v3017_v25  ;;  %v3029_v25 = vmul.f32 1.442695, %v2562_v49 }
 0x525   : > { %v9105_v43 = vpop.eup %5985  ;;  %5999 = vpow2.f32 %v3107_v31  ;;  %v4460_v55 = vadd.f32 %v3799_v54, %v8925_v53  ;;  %v2586_v31 = vsub.f32 %v8758_v13, %v8987_v2  ;;  %v3033_v27 = vmul.f32 1.442695, %v2564_v12  ;;  %v10530_v54 = vld [vmem:[#allocation45_spill] sm:$0xff] }
 0x526   : > { %v3392_v63 = vadd.f32 %v9054_v17, %v3391_v37  ;;  %10526 = vst [vmem:[#allocation48_spill] sm:$0xff] %v9105_v43  ;;  %v9109_v14 = vpop.eup %5987  ;;  %v3412_v32 = vadd.f32 %v9105_v43, %v3411_v41  ;;  %6001 = vpow2.f32 %v3021_v26  ;;  %v3037_v44 = vmul.f32 1.442695, %v2566_v4 }
 0x527   : > { %v9116_v58 = vpop.eup %5989  ;;  %6003 = vpow2.f32 %v3111_v19  ;;  %v9129_v26 = vmul.f32 %v8978_v48, %v4460_v55  ;;  %v2588_v53 = vsub.f32 %v8783_v52, %v8987_v2  ;;  %v3041_v19 = vmul.f32 1.442695, %v2568_v7  ;;  %v3800_v7 = vpop.f32.mrf.mxu1 }
 0x528   : > { %v3393_v37 = vadd.f32 %v9056_v34, %v3392_v63  ;;  %v9120_v46 = vpop.eup %5991  ;;  %v3413_v57 = vadd.f32 %v9116_v58, %v3412_v32  ;;  %6005 = vpow2.f32 %v3025_v39  ;;  %v3045_v4 = vmul.f32 1.442695, %v2570_v5 }
 0x529   : > { %v9125_v63 = vpop.eup %5993  ;;  %10528 = vst [vmem:[#allocation30_spill] sm:$0xff] %v9129_v26  ;;  %6007 = vpow2.f32 %v3115_v6  ;;  %v2592_v6 = vsub.f32 %v10530_v54, %v8987_v2  ;;  %v3049_v32 = vmul.f32 1.442695, %v2572_v16  ;;  %v2604_v39 = vsub.f32 %v8875_v11, %v8987_v2 }
 0x52a   : > { %v3394_v15 = vadd.f32 %v9072_v51, %v3393_v37  ;;  %10527 = vst [vmem:[#allocation29_spill] sm:$0xff] %v9125_v63  ;;  %v9131_v49 = vpop.eup %5995  ;;  %v3414_v13 = vadd.f32 %v9125_v63, %v3413_v57  ;;  %6009 = vpow2.f32 %v3029_v25  ;;  %v3053_v25 = vmul.f32 1.442695, %v2574_v50 }
 0x52b   : > { %v9136_v12 = vpop.eup %5997  ;;  %6011 = vpow2.f32 %v3033_v27  ;;  %v3057_v27 = vmul.f32 1.442695, %v2576_v35  ;;  %v3061_v7 = vmul.f32 1.442695, %v2578_v45  ;;  %v3065_v50 = vmul.f32 1.442695, %v2580_v36 }
 0x52c   : > { %v3395_v41 = vadd.f32 %v9080_v29, %v3394_v15  ;;  %v10529_v15 = vld [vmem:[#allocation101_spill] sm:$0xff]  ;;  %v9141_v48 = vpop.eup %5999  ;;  %v3415_v52 = vadd.f32 %v9136_v12, %v3414_v13  ;;  %6013 = vpow2.f32 %v3037_v44  ;;  %v10533_v34 = vsub.f32 %v8726_v61, %v8987_v2 }
 0x52d   : > { %v9146_v55 = vpop.eup %6001  ;;  %6015 = vpow2.f32 %v3041_v19  ;;  %v3081_v61 = vmul.f32 1.442695, %v2588_v53  ;;  %v2602_v63 = vsub.f32 %v8865_v33, %v8987_v2 }
 0x52e   : > { %v3396_v37 = vadd.f32 %v9085_v24, %v3395_v41  ;;  %v10531_v41 = vld [vmem:[#allocation53_spill] sm:$0xff]  ;;  %v9151_v5 = vpop.eup %6003  ;;  %v3416_v16 = vadd.f32 %v9146_v55, %v3415_v52  ;;  %6017 = vpow2.f32 %v3045_v4  ;;  %v3369_v52 = vrot.slane %v8972_v9, 2 }
 0x52f   : > { %v2594_v26 = vsub.f32 %v10531_v41, %v8987_v2  ;;  %v9156_v13 = vpop.eup %6005  ;;  %6019 = vpow2.f32 %v3049_v32  ;;  %v3069_v41 = vmul.f32 1.442695, %v2582_v0  ;;  %v3113_v4 = vmul.f32 1.442695, %v2604_v39 }
 0x530   : > { %v3397_v57 = vadd.f32 %v9098_v47, %v3396_v37  ;;  %v2606_v37 = vsub.f32 %v8899_v10, %v8987_v2  ;;  %v9161_v44 = vpop.eup %6007  ;;  %v3417_v11 = vadd.f32 %v9156_v13, %v3416_v16  ;;  %6021 = vpow2.f32 %v3053_v25  ;;  %v10532_v10 = vld [vmem:[#allocation68_spill] sm:$0xff] }
 0x531   : > { %v9164_v19 = vpop.eup %6009  ;;  %v2596_v45 = vsub.f32 %v10532_v10, %v8987_v2  ;;  %6023 = vpow2.f32 %v3057_v27  ;;  %v2598_v25 = vsub.f32 %v8840_v23, %v8987_v2  ;;  %v3073_v10 = vmul.f32 1.442695, %v10533_v34 }
 0x532   : > { %v3398_v54 = vadd.f32 %v9109_v14, %v3397_v57  ;;  %v3332_v57 = vrot.slane %v8957_v18, 2  ;;  %v9169_v43 = vpop.eup %6011  ;;  %v3418_v36 = vadd.f32 %v9164_v19, %v3417_v11  ;;  %6025 = vpow2.f32 %v3061_v7  ;;  %v9185_v11 = vpop.f32.mrf.mxu0 }
 0x533   : > { %v9174_v0 = vpop.eup %6013  ;;  %v3117_v16 = vmul.f32 1.442695, %v2606_v37  ;;  %6027 = vpow2.f32 %v3065_v50  ;;  %v3077_v27 = vmul.f32 1.442695, %v2586_v31  ;;  %v3370_v23 = vadd.f32 %v3369_v52, %v8972_v9 }
 0x534   : > { %v3399_v35 = vadd.f32 %v9120_v46, %v3398_v54  ;;  %v9179_v54 = vpop.eup %6015  ;;  %v3419_v39 = vadd.f32 %v9169_v43, %v3418_v36  ;;  %6029 = vpow2.f32 %v3069_v41  ;;  %v3333_v37 = vadd.f32 %v3332_v57, %v8957_v18 }
 0x535   : > { %v9187_v17 = vpop.eup %6017  ;;  %v2600_v50 = vsub.f32 %v8853_v20, %v8987_v2  ;;  %6031 = vpow2.f32 %v3113_v4  ;;  %v10534_v41 = vsub.f32 %v10529_v15, %v8987_v2  ;;  %v3089_v52 = vmul.f32 1.442695, %v2592_v6 }
 0x536   : > { %v3400_v32 = vadd.f32 %v9131_v49, %v3399_v35  ;;  %v6020_v7 = vpop.eup %6019  ;;  %v3420_v34 = vadd.f32 %v9174_v0, %v3419_v39  ;;  %6033 = vpow2.f32 %v3117_v16  ;;  %v3093_v20 = vmul.f32 1.442695, %v2594_v26 }
 0x537   : > { %v6022_v31 = vpop.eup %6021  ;;  %v3085_v9 = vmul.f32 1.442695, %v10534_v41  ;;  %6035 = vpow2.f32 %v3073_v10  ;;  %v3334_v33 = vrot.slane %v3333_v37, 1  ;;  %v3105_v15 = vmul.f32 1.442695, %v2600_v50 }
 0x538   : > { %v3401_v35 = vadd.f32 %v9141_v48, %v3400_v32  ;;  %v9201_v18 = vpop.eup %6023  ;;  %v3421_v53 = vadd.f32 %v9179_v54, %v3420_v34  ;;  %6037 = vpow2.f32 %v3077_v27  ;;  %v3371_v32 = vrot.slane %v3370_v23, 1 }
 0x539   : > { %v9204_v57 = vpop.eup %6025  ;;  %6039 = vpow2.f32 %v3081_v61  ;;  %v3109_v26 = vmul.f32 1.442695, %v2602_v63  ;;  %v3097_v10 = vmul.f32 1.442695, %v2596_v45  ;;  %v3101_v27 = vmul.f32 1.442695, %v2598_v25 }
 0x53a   : > { %v3402_v36 = vadd.f32 %v9151_v5, %v3401_v35  ;;  %v9209_v39 = vpop.eup %6027  ;;  %v3422_v16 = vadd.f32 %v9187_v17, %v3421_v53  ;;  %6041 = vpow2.f32 %v3085_v9  ;;  %v3335_v2 = vadd.f32 %v3334_v33, %v3333_v37 }
 0x53b   : > { %v9212_v35 = vpop.eup %6029  ;;  %6043 = vpow2.f32 %v3089_v52  ;;  %v3565_v53 = vpack.c.bf16 %v6020_v7, %v9029_v56  ;;  %v9228_v52 = vmul.f32 0.0, %v9009_v38  ;;  %v9231_v25 = vmul.f32 0.0, %v9022_v42 }
 0x53c   : > { %v9207_v4 = vadd.f32 %v9161_v44, %v3402_v36  ;;  %v9214_v6 = vpop.eup %6031  ;;  %v3423_v34 = vadd.f32 %v6020_v7, %v3422_v16  ;;  %v4006_v36 = vpop.f32.mrf.mxu0  ;;  %6045 = vpow2.f32 %v3093_v20  ;;  %v3566_v33 = vpack.c.bf16 %v6022_v31, %v9031_v40 }
 0x53d   : > { %v9216_v41 = vpop.eup %6033  ;;  %6047 = vpow2.f32 %v3105_v15  ;;  %v3581_v63 = vpack.c.bf16 %v9214_v6, %v9151_v5  ;;  %10536 = vst [vmem:[#allocation74_spill] sm:$0xff] %v9228_v52  ;;  %v4307_v15 = vunpack.c.l.b16 %v3565_v53  ;;  %v4308_v36 = vunpack.c.h.b16 %v3565_v53 }
 0x53e   : > { %10535 = vst [vmem:[#allocation54_spill] sm:$0xff] %v9207_v4  ;;  %v3372_v4 = vadd.f32 %v3371_v32, %v3370_v23  ;;  %v9218_v61 = vpop.eup %6035  ;;  %v3424_v50 = vadd.f32 %v6022_v31, %v3423_v34  ;;  %6049 = vpow2.f32 %v3109_v26  ;;  %v3582_v45 = vpack.c.bf16 %v9216_v41, %v9161_v44  ;;  %v4017_v32 = vpop.f32.mrf.mxu1 }
 0x53f   : > { %v9223_v9 = vpop.eup %6037  ;;  %10537 = vst [vmem:[#allocation36_spill] sm:$0xff] %v9231_v25  ;;  %6051 = vpow2.f32 %v3097_v10  ;;  %v9243_v44 = vadd.f32 %v3335_v2, %v9231_v25  ;;  %v4339_v16 = vunpack.c.l.b16 %v3581_v63  ;;  %v4018_v10 = vadd.f32 %v4017_v32, %v9185_v11 }
 0x540   : > { %v9233_v23 = vpop.eup %6039  ;;  %v3425_v56 = vadd.f32 %v9201_v18, %v3424_v50  ;;  %6053 = vpow2.f32 %v3101_v27  ;;  %v9240_v20 = vadd.f32 %v3372_v4, %v9228_v52  ;;  %v4341_v34 = vunpack.c.l.b16 %v3582_v45 }
 0x541   : > { %v9236_v37 = vpop.eup %6041  ;;  %v4340_v4 = vunpack.c.h.b16 %v3581_v63  ;;  %v4309_v50 = vunpack.c.l.b16 %v3566_v33  ;;  %v4310_v7 = vunpack.c.h.b16 %v3566_v33  ;;  %v4342_v25 = vunpack.c.h.b16 %v3582_v45 }
 0x542   : > { %v9245_v38 = vpop.eup %6043  ;;  %v3426_v42 = vadd.f32 %v9204_v57, %v3425_v56  ;;  %v4462_v40 = vadd.f32 %v4018_v10, %v8939_v3  ;;  %v4373_v31 = vpack.c.b16 %v4341_v34, %v4339_v16  ;;  %v3563_v52 = vpack.c.bf16 %v9179_v54, %v9003_v21 }
 0x543   : > { %v9249_v26 = vpop.eup %6045  ;;  %v3564_v11 = vpack.c.bf16 %v9187_v17, %v9014_v22  ;;  %v4357_v32 = vpack.c.b16 %v4309_v50, %v4307_v15  ;;  %v4374_v5 = vpack.c.b16 %v4342_v25, %v4340_v4  ;;  %v3561_v10 = vpack.c.bf16 %v9169_v43, %v8983_v30 }
 0x544   : > { %v9252_v27 = vpop.eup %6047  ;;  %v3427_v2 = vadd.f32 %v9209_v39, %v3426_v42  ;;  %v4358_v42 = vpack.c.b16 %v4310_v7, %v4308_v36  ;;  %v9268_v45 = vmul.f32 %v8998_v8, %v4462_v40  ;;  %4420 = vmatpush.bf16.msra.mxu3 %v4373_v31  ;;  %v4303_v3 = vunpack.c.l.b16 %v3563_v52 }
 0x545   : > { %v9255_v56 = vpop.eup %6049  ;;  %v4305_v16 = vunpack.c.l.b16 %v3564_v11  ;;  %v3579_v21 = vpack.c.bf16 %v9252_v27, %v9131_v49  ;;  %4407 = vmatpush.bf16.msra.mxu2 %v4357_v32  ;;  %v4304_v54 = vunpack.c.h.b16 %v3563_v52  ;;  %v4306_v25 = vunpack.c.h.b16 %v3564_v11  ;;  %4446 = vmatpush.bf16.msrb.mxu1 %v4374_v5  ;;  %v9285_v11 = vpop.f32.mrf.mxu0 }
 0x546   : > { %v9262_v53 = vpop.eup %6051  ;;  %v3428_v63 = vadd.f32 %v9212_v35, %v3427_v2  ;;  %4433 = vmatpush.bf16.msrb.mxu0 %v4358_v42  ;;  %v3580_v22 = vpack.c.bf16 %v9255_v56, %v9141_v48  ;;  %v4019_v36 = vpop.f32.mrf.mxu1  ;;  %v3562_v50 = vpack.c.bf16 %v9174_v0, %v8992_v62  ;;  %v4299_v40 = vunpack.c.l.b16 %v3561_v10 }
 0x547   : > { %v9265_v33 = vpop.eup %6053  ;;  %v4355_v7 = vpack.c.b16 %v4305_v16, %v4303_v3  ;;  %v4335_v15 = vunpack.c.l.b16 %v3579_v21  ;;  %v4336_v8 = vunpack.c.h.b16 %v3579_v21  ;;  %v4356_v4 = vpack.c.b16 %v4306_v25, %v4304_v54  ;;  %v9289_v3 = vpop.f32.mrf.mxu3 }
 0x548   : > { %v3429_v17 = vadd.f32 %v9218_v61, %v3428_v63  ;;  %v4337_v49 = vunpack.c.l.b16 %v3580_v22  ;;  %v4338_v2 = vunpack.c.h.b16 %v3580_v22  ;;  %v3577_v48 = vpack.c.bf16 %v9262_v53, %v9109_v14  ;;  %v9287_v63 = vpop.f32.mrf.mxu2 }
 0x549   : > { %v3578_v52 = vpack.c.bf16 %v9265_v33, %v9120_v46  ;;  %4408 = vmatpush.bf16.msra.mxu2 %v4355_v7  ;;  %v4300_v31 = vunpack.c.h.b16 %v3561_v10  ;;  %v4301_v32 = vunpack.c.l.b16 %v3562_v50  ;;  %v4302_v42 = vunpack.c.h.b16 %v3562_v50 }
 0x54a   : > { %v3430_v34 = vadd.f32 %v9223_v9, %v3429_v17  ;;  %v4371_v43 = vpack.c.b16 %v4337_v49, %v4335_v15  ;;  %4434 = vmatpush.bf16.msrb.mxu0 %v4356_v4  ;;  %v4372_v30 = vpack.c.b16 %v4338_v2, %v4336_v8  ;;  %v4331_v62 = vunpack.c.l.b16 %v3577_v48 }
 0x54b   : > { %v4333_v0 = vunpack.c.l.b16 %v3578_v52  ;;  %v4332_v46 = vunpack.c.h.b16 %v3577_v48  ;;  %v4334_v16 = vunpack.c.h.b16 %v3578_v52  ;;  %v3559_v21 = vpack.c.bf16 %v9156_v13, %v8962_v28 }
 0x54c   : > { %v3431_v5 = vadd.f32 %v9233_v23, %v3430_v34  ;;  %4421 = vmatpush.bf16.msra.mxu3 %v4371_v43  ;;  %4447 = vmatpush.bf16.msrb.mxu1 %v4372_v30  ;;  %v4353_v17 = vpack.c.b16 %v4301_v32, %v4299_v40  ;;  %v4354_v54 = vpack.c.b16 %v4302_v42, %v4300_v31  ;;  %v10539_v42 = vld [vmem:[#allocation105_spill] sm:$0xff]  ;;  %6055 = vrcp.f32 %v9240_v20  ;;  %v10555_v20 = vld [vmem:[#allocation18_spill] sm:$0xff] }
 0x54d   : > { %v4369_v22 = vpack.c.b16 %v4333_v0, %v4331_v62  ;;  %v3560_v25 = vpack.c.bf16 %v9164_v19, %v8969_v59  ;;  %v4370_v15 = vpack.c.b16 %v4334_v16, %v4332_v46  ;;  %v4295_v8 = vunpack.c.l.b16 %v3559_v21 }
 0x54e   : > { %v3432_v14 = vadd.f32 %v9236_v37, %v3431_v5  ;;  %v3575_v10 = vpack.c.bf16 %v9245_v38, %v9085_v24  ;;  %4409 = vmatpush.bf16.msra.mxu2 %v4353_v17  ;;  %4435 = vmatpush.bf16.msrb.mxu0 %v4354_v54  ;;  %v3576_v36 = vpack.c.bf16 %v9249_v26, %v9098_v47  ;;  %v4296_v28 = vunpack.c.h.b16 %v3559_v21  ;;  %v9304_v2 = vpop.f32.mrf.mxu1  ;;  %v4225_v5 = vpop.f32.mrf.mxu0 }
 0x54f   : > { %v4297_v34 = vunpack.c.l.b16 %v3560_v25  ;;  %v4298_v13 = vunpack.c.h.b16 %v3560_v25  ;;  %v3557_v4 = vpack.c.bf16 %v9136_v12, %v8944_v60  ;;  %v3558_v47 = vpack.c.bf16 %v9146_v55, %v8951_v1  ;;  %v4212_v32 = vpop.f32.mrf.mxu3  ;;  %v10542_v25 = vld [vmem:[#allocation38_spill] sm:$0xff] }
 0x550   : > { %v3433_v7 = vadd.f32 %v9245_v38, %v3432_v14  ;;  %4422 = vmatpush.bf16.msra.mxu3 %v4369_v22  ;;  %4448 = vmatpush.bf16.msrb.mxu1 %v4370_v15  ;;  %v4327_v59 = vunpack.c.l.b16 %v3575_v10  ;;  %v4328_v19 = vunpack.c.h.b16 %v3575_v10  ;;  %v4329_v38 = vunpack.c.l.b16 %v3576_v36  ;;  %v4199_v43 = vpop.f32.mrf.mxu2  ;;  %v10543_v10 = vld [vmem:[#allocation43_spill] sm:$0xff] }
 0x551   : > { %v4351_v24 = vpack.c.b16 %v4297_v34, %v4295_v8  ;;  %v4352_v50 = vpack.c.b16 %v4298_v13, %v4296_v28  ;;  %v4330_v40 = vunpack.c.h.b16 %v3576_v36  ;;  %v4291_v52 = vunpack.c.l.b16 %v3557_v4 }
 0x552   : > { %v3434_v49 = vadd.f32 %v9249_v26, %v3433_v7  ;;  %v3573_v26 = vpack.c.bf16 %v9233_v23, %v9072_v51  ;;  %v4367_v30 = vpack.c.b16 %v4329_v38, %v4327_v59  ;;  %v3574_v12 = vpack.c.bf16 %v9236_v37, %v9080_v29  ;;  %v10540_v29 = vld [vmem:[#allocation24_spill] sm:$0xff]  ;;  %v10541_v37 = vld [vmem:[#allocation29_spill] sm:$0xff]  ;;  %v10545_v59 = vld [vmem:[#allocation42_spill] sm:$0xff] }
 0x553   : > { %4410 = vmatpush.bf16.msra.mxu2 %v4351_v24  ;;  %4436 = vmatpush.bf16.msrb.mxu0 %v4352_v50  ;;  %v4368_v60 = vpack.c.b16 %v4330_v40, %v4328_v19  ;;  %v4292_v31 = vunpack.c.h.b16 %v3557_v4  ;;  %v4293_v62 = vunpack.c.l.b16 %v3558_v47  ;;  %v4294_v1 = vunpack.c.h.b16 %v3558_v47  ;;  %v10546_v50 = vld [vmem:[#allocation52_spill] sm:$0xff]  ;;  %v10548_v47 = vld [vmem:[#allocation50_spill] sm:$0xff] }
 0x554   : > { %v3435_v48 = vadd.f32 %v9262_v53, %v3434_v49  ;;  %v4323_v0 = vunpack.c.l.b16 %v3573_v26  ;;  %4423 = vmatpush.bf16.msra.mxu3 %v4367_v30  ;;  %v4325_v55 = vunpack.c.l.b16 %v3574_v12  ;;  %v4324_v51 = vunpack.c.h.b16 %v3573_v26  ;;  %v10544_v49 = vld [vmem:[#allocation65_spill] sm:$0xff]  ;;  %v10547_v40 = vld [vmem:[#allocation48_spill] sm:$0xff] }
 0x555   : > { %4449 = vmatpush.bf16.msrb.mxu1 %v4368_v60  ;;  %v4326_v23 = vunpack.c.h.b16 %v3574_v12  ;;  %v3555_v14 = vpack.c.bf16 %v9116_v58, %v10539_v42  ;;  %v4349_v16 = vpack.c.b16 %v4293_v62, %v4291_v52  ;;  %v4350_v21 = vpack.c.b16 %v4294_v1, %v4292_v31  ;;  %v10549_v30 = vld [vmem:[#allocation77_spill] sm:$0xff]  ;;  %v10550_v1 = vld [vmem:[#allocation98_spill] sm:$0xff] }
 0x556   : > { %v3436_v53 = vadd.f32 %v9265_v33, %v3435_v48  ;;  %v3556_v17 = vpack.c.bf16 %v10541_v37, %v10540_v29  ;;  %v4365_v22 = vpack.c.b16 %v4325_v55, %v4323_v0  ;;  %v3571_v7 = vpack.c.bf16 %v9218_v61, %v10542_v25  ;;  %v4238_v34 = vpop.f32.mrf.mxu1  ;;  %v10551_v55 = vld [vmem:[#allocation51_spill] sm:$0xff]  ;;  %v10553_v42 = vld [vmem:[#allocation102_spill] sm:$0xff] }
 0x557   : > { %v4366_v33 = vpack.c.b16 %v4326_v23, %v4324_v51  ;;  %v4287_v54 = vunpack.c.l.b16 %v3555_v14  ;;  %4411 = vmatpush.bf16.msra.mxu2 %v4349_v16  ;;  %4437 = vmatpush.bf16.msrb.mxu0 %v4350_v21  ;;  %v3572_v58 = vpack.c.bf16 %v9223_v9, %v10543_v10  ;;  %v3553_v19 = vpack.c.bf16 %v10545_v59, %v10544_v49  ;;  %v10552_v23 = vld [vmem:[#allocation22_spill] sm:$0xff]  ;;  %v6056_v10 = vpop.eup %6055  ;;  %v10558_v49 = vld [vmem:[#allocation36_spill] sm:$0xff] }
 0x558   : > { %v3437_v46 = vadd.f32 %v9252_v27, %v3436_v53  ;;  %v4289_v8 = vunpack.c.l.b16 %v3556_v17  ;;  %v4288_v27 = vunpack.c.h.b16 %v3555_v14  ;;  %4424 = vmatpush.bf16.msra.mxu3 %v4365_v22  ;;  %v4319_v36 = vunpack.c.l.b16 %v3571_v7  ;;  %v10554_v16 = vld [vmem:[#allocation86_spill] sm:$0xff] }
 0x559   : > { %4450 = vmatpush.bf16.msrb.mxu1 %v4366_v33  ;;  %v4290_v28 = vunpack.c.h.b16 %v3556_v17  ;;  %v4320_v13 = vunpack.c.h.b16 %v3571_v7  ;;  %v4322_v24 = vunpack.c.h.b16 %v3572_v58  ;;  %v3554_v48 = vpack.c.bf16 %v10547_v40, %v10546_v50  ;;  %v10561_v50 = vld [vmem:[#allocation16_spill] sm:$0xff] }
 0x55a   : > { %v3438_v15 = vadd.f32 %v9255_v56, %v3437_v46  ;;  %v4347_v4 = vpack.c.b16 %v4289_v8, %v4287_v54  ;;  %v4321_v56 = vunpack.c.l.b16 %v3572_v58  ;;  %v4283_v9 = vunpack.c.l.b16 %v3553_v19  ;;  %v10556_v58 = vld [vmem:[#allocation46_spill] sm:$0xff] }
 0x55b   : > { %v4348_v38 = vpack.c.b16 %v4290_v28, %v4288_v27  ;;  %v3569_v52 = vpack.c.bf16 %v9209_v39, %v10548_v47  ;;  %v4364_v43 = vpack.c.b16 %v4322_v24, %v4320_v13  ;;  %v3570_v60 = vpack.c.bf16 %v9212_v35, %v10549_v30 }
 0x55c   : > { %v3439_v61 = vadd.f32 %v9214_v6, %v3438_v15  ;;  %4412 = vmatpush.bf16.msra.mxu2 %v4347_v4  ;;  %v4363_v5 = vpack.c.b16 %v4321_v56, %v4319_v36  ;;  %v4285_v6 = vunpack.c.l.b16 %v3554_v48  ;;  %v4284_v31 = vunpack.c.h.b16 %v3553_v19  ;;  %v10559_v19 = vld [vmem:[#allocation30_spill] sm:$0xff] }
 0x55d   : > { %4438 = vmatpush.bf16.msrb.mxu0 %v4348_v38  ;;  %v4315_v12 = vunpack.c.l.b16 %v3569_v52  ;;  %v4286_v32 = vunpack.c.h.b16 %v3554_v48  ;;  %4451 = vmatpush.bf16.msrb.mxu1 %v4364_v43  ;;  %v4317_v53 = vunpack.c.l.b16 %v3570_v60  ;;  %v4316_v62 = vunpack.c.h.b16 %v3569_v52 }
 0x55e   : > { %v3440_v26 = vadd.f32 %v9216_v41, %v3439_v61  ;;  %4425 = vmatpush.bf16.msra.mxu3 %v4363_v5  ;;  %v4318_v0 = vunpack.c.h.b16 %v3570_v60  ;;  %v4345_v39 = vpack.c.b16 %v4285_v6, %v4283_v9  ;;  %v3551_v51 = vpack.c.bf16 %v10551_v55, %v10550_v1  ;;  %v10563_v5 = vld [vmem:[#allocation80_spill] sm:$0xff] }
 0x55f   : > { %v4346_v41 = vpack.c.b16 %v4286_v32, %v4284_v31  ;;  %v3552_v35 = vpack.c.bf16 %v10553_v42, %v10552_v23  ;;  %v4361_v14 = vpack.c.b16 %v4317_v53, %v4315_v12  ;;  %v3567_v21 = vpack.c.bf16 %v9201_v18, %v10554_v16 }
 0x560   : > { %v4362_v46 = vpack.c.b16 %v4318_v0, %v4316_v62  ;;  %6057 = vrcp.f32 %v9243_v44  ;;  %4413 = vmatpush.bf16.msra.mxu2 %v4345_v39  ;;  %v4279_v29 = vunpack.c.l.b16 %v3551_v51  ;;  %v3568_v17 = vpack.c.bf16 %v9204_v57, %v10555_v20  ;;  %v10557_v57 = vld [vmem:[#allocation74_spill] sm:$0xff] }
 0x561   : > { %4439 = vmatpush.bf16.msrb.mxu0 %v4346_v41  ;;  %v4281_v37 = vunpack.c.l.b16 %v3552_v35  ;;  %v4280_v22 = vunpack.c.h.b16 %v3551_v51  ;;  %v4311_v33 = vunpack.c.l.b16 %v3567_v21  ;;  %v4282_v54 = vunpack.c.h.b16 %v3552_v35 }
 0x562   : > { %4426 = vmatpush.bf16.msra.mxu3 %v4361_v14  ;;  %4452 = vmatpush.bf16.msrb.mxu1 %v4362_v46  ;;  %v4312_v25 = vunpack.c.h.b16 %v3567_v21  ;;  %v4237_v7 = vadd.f32 %v9304_v2, %v9285_v11  ;;  %v4313_v18 = vunpack.c.l.b16 %v3568_v17  ;;  %v4314_v8 = vunpack.c.h.b16 %v3568_v17 }
 0x563   : > { %v4343_v15 = vpack.c.b16 %v4281_v37, %v4279_v29  ;;  %v4211_v44 = vadd.f32 %v9289_v3, %v9287_v63  ;;  %v4242_v27 = vunpack.c.h.b16 %v10556_v58  ;;  %v4344_v34 = vpack.c.b16 %v4282_v54, %v4280_v22 }
 0x564   : > { %v4464_v36 = vadd.f32 %v4237_v7, %v10557_v57  ;;  %v4359_v28 = vpack.c.b16 %v4313_v18, %v4311_v33  ;;  %v4360_v13 = vpack.c.b16 %v4314_v8, %v4312_v25  ;;  %v4488_v11 = vpack.c.bf16 %v9268_v45, %v10559_v19  ;;  %v10562_v45 = vld [vmem:[#allocation54_spill] sm:$0xff]  ;;  %v5458_v7 = vld [vmem:[%s9610_s8] sm:$0xff]  ;;  %v4498_v57 = vpop.permute.xlu0 %4497 }
 0x565   : > { %4414 = vmatpush.bf16.msra.mxu2 %v4343_v15  ;;  %v4463_v59 = vadd.f32 %v4211_v44, %v10558_v49  ;;  %v10560_v61 = vunpack.c.l.b16 %v10556_v58  ;;  %4440 = vmatpush.bf16.msrb.mxu0 %v4344_v34  ;;  %v4244_v56 = vpack.c.b16 %v4242_v27, %v4242_v27  ;;  %v3441_v24 = vrot.slane %v3440_v26, 4  ;;  %v10564_v8 = vld [vmem:[#allocation96_spill] sm:$0xff]  ;;  %v10565_v44 = vld [vmem:[#allocation47_spill] sm:$0xff]  ;;  %v5459_v58 = vld [vmem:[%s9610_s8 + $0x8] sm:$0xff] }
 0x566   : > { %v6058_v2 = vpop.eup %6057  ;;  %v4480_v63 = vmul.f32 %v6056_v10, %v4464_v36  ;;  %4427 = vmatpush.bf16.msra.mxu3 %v4359_v28  ;;  %4453 = vmatpush.bf16.msrb.mxu1 %v4360_v13  ;;  %v3126_v40 = vsub.f32 -inf, %v10561_v50  ;;  %v3404_v48 = vrot.slane %v10562_v45, 4  ;;  %v3125_v43 = vsub.f32 -inf, %v10563_v5  ;;  %v4503_v28 = vpop.permute.xlu1 %4502 }
 0x567   : > { %v4243_v4 = vpack.c.b16 %v10560_v61, %v10560_v61  ;;  %v4479_v3 = vmul.f32 %v6058_v2, %v4463_v59  ;;  %v3442_v38 = vadd.f32 %v3441_v24, %v3440_v26  ;;  %v10566_v10 = vpack.c.bf16 %v10564_v8, %v10565_v44 }
 0x568   : > { %v3141_v47 = vmul.f32 1.442695, %v3126_v40  ;;  %v3405_v52 = vadd.f32 %v3404_v48, %v10562_v45  ;;  %v3139_v6 = vmul.f32 1.442695, %v3125_v43  ;;  %v6170_v36 = vmov 32.0  }
 0x569   : > { %4415 = vmatmul.bf16.vlgmr.msra.gmra.mxu2 %v4243_v4  ;;  %4441 = vmatmul.bf16.vlgmr.msrb.gmra.mxu0 %v4243_v4  ;;  %v3443_v9 = vrot.slane %v3442_v38, 2 }
 0x56a   : > { %4428 = vmatmul.bf16.vlgmr.msra.gmra.mxu3 %v4244_v56  ;;  %4454 = vmatmul.bf16.vlgmr.msrb.gmra.mxu1 %v4244_v56  ;;  %6059 = vpow2.f32 %v3141_v47  ;;  %v3406_v60 = vrot.slane %v3405_v52, 2 }
 0x56b   : > { %v3444_v30 = vadd.f32 %v3443_v9, %v3442_v38  ;;  %6061 = vpow2.f32 %v3139_v6 }
 0x56c   : > { %v3407_v31 = vadd.f32 %v3406_v60, %v3405_v52 }
 0x56d   : > { %v3445_v12 = vrot.slane %v3444_v30, 1 }
 0x56e   : > { %v3408_v62 = vrot.slane %v3407_v31, 1 }
 0x56f   : > { %v3446_v53 = vadd.f32 %v3445_v12, %v3444_v30 }
 0x570   : > { %v6060_v32 = vpop.eup %6059  ;;  %v3409_v41 = vadd.f32 %v3408_v62, %v3407_v31 }
 0x571   : > { %v3150_v26 = vmul.f32 0.0, %v6060_v32  ;;  %v6062_v39 = vpop.eup %6061 }
 0x572   : > { %v3149_v1 = vmul.f32 0.0, %v6062_v39 }
 0x573   : > { %v3454_v0 = vadd.f32 %v3446_v53, %v3150_v26 }
 0x574   : > { %v3453_v23 = vadd.f32 %v3409_v41, %v3149_v1 }
 0x575   : > { %6063 = vrcp.f32 %v3454_v0 }
 0x576   : > { %6065 = vrcp.f32 %v3453_v23 }
 0x577   : > { %6067 = vrcp.f32 %v6170_v36 }
 0x57b   : > { %v6064_v14 = vpop.eup %6063 }
 0x57c   : > { %v6066_v33 = vpop.eup %6065 }
 0x57d   : > { %v6068_v59 = vpop.eup %6067 }
 0x57e   : > { %v4589_v4 = vmul.f32 32.0, %v6068_v59  ;;  %vm4593_vm4 = vweird.f32 %v6068_v59 }
 0x580   : > { %v4590_v40 = vsub.f32 1.0, %v4589_v4 }
 0x582   : > { %v4591_v9 = vmul.f32 %v6068_v59, %v4590_v40 }
 0x584   : > { %v4592_v5 = vadd.f32 %v6068_v59, %v4591_v9 }
 0x586   : > { %v9373_v6 = vsel %vm4593_vm4, %v6068_v59, %v4592_v5 }
 0x5e6   : > { %v4442_v55 = vpop.f32.mrf.mxu0 }
 0x5e7   : > { %v4455_v51 = vpop.f32.mrf.mxu1 }
 0x5e8   : > { %v4456_v42 = vadd.f32 %v4455_v51, %v4442_v55 }
 0x5ea   : > { %v4466_v35 = vadd.f32 %v4456_v42, %v3150_v26 }
 0x5ec   : > { %v4416_v46 = vpop.f32.mrf.mxu2  ;;  %v4482_v16 = vmul.f32 %v6064_v14, %v4466_v35 }
 0x5ed   : > { %v4429_v21 = vpop.f32.mrf.mxu3 }
 0x5ee   : > { %v4490_v29 = vpack.c.bf16 %v4482_v16, %v4480_v63  ;;  %v4430_v37 = vadd.f32 %v4429_v21, %v4416_v46  ;;  %v4444_v20 = vpop.f32.mrf.mxu0 }
 0x5ef   : > { %v4457_v17 = vpop.f32.mrf.mxu1 }
 0x5f0   : > { %v4465_v22 = vadd.f32 %v4430_v37, %v3149_v1  ;;  %4557 = vmatpush.bf16.msrb.mxu3 %v4490_v29 }
 0x5f2   : > { %v4481_v54 = vmul.f32 %v6066_v33, %v4465_v22 }
 0x5f4   : > { %v4418_v25 = vpop.f32.mrf.mxu2  ;;  %v4489_v15 = vpack.c.bf16 %v4481_v54, %v4479_v3  ;;  %4558 = vmatpush.bf16.msrb.mxu3 %v4488_v11  ;;  %v4508_v11 = vpop.permute.xlu0 %4507 }
 0x5f5   : > { %v4431_v18 = vpop.f32.mrf.mxu3  ;;  %v4513_v3 = vpop.permute.xlu1 %4512 }
 0x5f6   : > { %4538 = vmatpush.bf16.msrb.mxu2 %v4489_v15 }
 0x5f7   : > { %5427 = vmatmul.msk.bf16.vlgmr.msrb.gmra.mxu3 %vm4525_vm3, %v5458_v7 }
 0x5fa   : > { %4539 = vmatpush.bf16.msrb.mxu2 %v10566_v10 }
 0x5fd   : > { %5425 = vmatmul.msk.bf16.vlgmr.msrb.gmra.mxu2 %vm4525_vm3, %v5458_v7  ;;  %v9392_v10 = vpop.permute.xlu1 %4684 }
 0x607   : > { %5428 = vmatmul.msk.bf16.gmra.mxu3 %vm4525_vm3, %v5459_v58 }
 0x60d   : > { %5426 = vmatmul.msk.bf16.gmra.mxu2 %vm4525_vm3, %v5459_v58  ;;  %v9394_v58 = vpop.permute.xlu0 %4679 }
 0x67a   : > { %v4560_v27 = vpop.f32.mrf.mxu3 }
 0x67b   : > { %v4561_v2 = vadd.f32 %v4560_v27, %v4498_v57 }
 0x680   : > { %v4541_v13 = vpop.f32.mrf.mxu2 }
 0x681   : > { %v4542_v53 = vadd.f32 %v4541_v13, %v4498_v57 }
 0x682   : > { %v4562_v34 = vpop.f32.mrf.mxu3 }
 0x683   : > { %v4563_v19 = vadd.f32 %v4562_v34, %v4503_v28 }
 0x685   : > { %v4579_v63 = vadd.f32 %v4563_v19, %v4561_v2 }
 0x688   : > { %v4543_v24 = vpop.f32.mrf.mxu2 }
 0x689   : > { %v4544_v31 = vadd.f32 %v4543_v24, %v4503_v28 }
 0x68a   : > { %v4565_v49 = vpop.f32.mrf.mxu3 }
 0x68b   : > { %v4566_v61 = vadd.f32 %v4565_v49, %v4508_v11  ;;  %v4570_v41 = vadd.f32 %v4544_v31, %v4542_v53 }
 0x68d   : > { %v4580_v38 = vadd.f32 %v4579_v63, %v4566_v61 }
 0x690   : > { %v4546_v43 = vpop.f32.mrf.mxu2 }
 0x691   : > { %v4547_v26 = vadd.f32 %v4546_v43, %v4508_v11 }
 0x692   : > { %v4567_v56 = vpop.f32.mrf.mxu3 }
 0x693   : > { %v4568_v50 = vadd.f32 %v4567_v56, %v4513_v3  ;;  %v4571_v42 = vadd.f32 %v4570_v41, %v4547_v26  ;;  %v4712_v56 = vpop.permute.xlu0 %4711 }
 0x695   : > { %v4581_v45 = vadd.f32 %v4580_v38, %v4568_v50 }
 0x697   : > { %v4582_v48 = vrot.slane %v4581_v45, 4 }
 0x698   : > { %v4548_v23 = vpop.f32.mrf.mxu2 }
 0x699   : > { %v4583_v47 = vadd.f32 %v4582_v48, %v4581_v45  ;;  %v4549_v35 = vadd.f32 %v4548_v23, %v4513_v3  ;;  %v4717_v3 = vpop.permute.xlu1 %4716 }
 0x69b   : > { %v4584_v52 = vrot.slane %v4583_v47, 2  ;;  %v4572_v16 = vadd.f32 %v4571_v42, %v4549_v35  ;;  %v4670_v43 = vpop.permute.xlu0 %4669 }
 0x69d   : > { %v4585_v30 = vadd.f32 %v4584_v52, %v4583_v47  ;;  %v4573_v37 = vrot.slane %v4572_v16, 4 }
 0x69f   : > { %v4586_v60 = vrot.slane %v4585_v30, 1  ;;  %v4574_v17 = vadd.f32 %v4573_v37, %v4572_v16 }
 0x6a1   : > { %v4587_v12 = vadd.f32 %v4586_v60, %v4585_v30  ;;  %v4575_v33 = vrot.slane %v4574_v17, 2  ;;  %v4675_v5 = vpop.permute.xlu1 %4674 }
 0x6a3   : > { %v4596_v32 = vmul.f32 %v9373_v6, %v4587_v12  ;;  %v4576_v25 = vadd.f32 %v4575_v33, %v4574_v17 }
 0x6a5   : > { %v9376_v62 = vsub.f32 %v4561_v2, %v4596_v32  ;;  %v9378_v0 = vsub.f32 %v4563_v19, %v4596_v32  ;;  %v9380_v39 = vsub.f32 %v4566_v61, %v4596_v32  ;;  %v9382_v1 = vsub.f32 %v4568_v50, %v4596_v32 }
 0x6a6   : > { %v4577_v15 = vrot.slane %v4576_v25, 1 }
 0x6a7   : > { %v4606_v55 = vmul.f32 %v9376_v62, %v9376_v62  ;;  %v4608_v51 = vmul.f32 %v9378_v0, %v9378_v0  ;;  %v4610_v14 = vmul.f32 %v9380_v39, %v9380_v39  ;;  %v4612_v21 = vmul.f32 %v9382_v1, %v9382_v1 }
 0x6a8   : > { %v4578_v8 = vadd.f32 %v4577_v15, %v4576_v25 }
 0x6a9   : > { %v4622_v46 = vadd.f32 %v4608_v51, %v4606_v55 }
 0x6aa   : > { %v4595_v27 = vmul.f32 %v9373_v6, %v4578_v8 }
 0x6ab   : > { %v4623_v29 = vadd.f32 %v4622_v46, %v4610_v14 }
 0x6ac   : > { %v9397_v57 = vsub.f32 %v4542_v53, %v4595_v27  ;;  %v9399_v36 = vsub.f32 %v4544_v31, %v4595_v27  ;;  %v9401_v28 = vsub.f32 %v4547_v26, %v4595_v27  ;;  %v9404_v49 = vsub.f32 %v4549_v35, %v4595_v27 }
 0x6ad   : > { %v4624_v20 = vadd.f32 %v4623_v29, %v4612_v21  ;;  %v4707_v29 = vpop.permute.xlu1 %4706 }
 0x6ae   : > { %v4605_v59 = vmul.f32 %v9397_v57, %v9397_v57  ;;  %v4607_v19 = vmul.f32 %v9399_v36, %v9399_v36  ;;  %v4609_v2 = vmul.f32 %v9401_v28, %v9401_v28  ;;  %v4611_v4 = vmul.f32 %v9404_v49, %v9404_v49 }
 0x6af   : > { %v4625_v22 = vrot.slane %v4624_v20, 4 }
 0x6b0   : > { %v4613_v61 = vadd.f32 %v4607_v19, %v4605_v59 }
 0x6b1   : > { %v4626_v54 = vadd.f32 %v4625_v22, %v4624_v20  ;;  %v4727_v22 = vld [vmem:[%s9614_s12] sm:$0xf] }
 0x6b2   : > { %v4614_v63 = vadd.f32 %v4613_v61, %v4609_v2 }
 0x6b3   : > { %v4627_v7 = vrot.slane %v4626_v54, 2 }
 0x6b4   : > { %v4615_v24 = vadd.f32 %v4614_v63, %v4611_v4 }
 0x6b5   : > { %v4628_v18 = vadd.f32 %v4627_v7, %v4626_v54 }
 0x6b6   : > { %v4616_v38 = vrot.slane %v4615_v24, 4 }
 0x6b7   : > { %v4629_v44 = vrot.slane %v4628_v18, 1 }
 0x6b8   : > { %v4617_v45 = vadd.f32 %v4616_v38, %v4615_v24 }
 0x6b9   : > { %v4630_v34 = vadd.f32 %v4629_v44, %v4628_v18 }
 0x6ba   : > { %v4618_v9 = vrot.slane %v4617_v45, 2 }
 0x6bb   : > { %v4632_v13 = vmul.f32 %v4630_v34, %v9373_v6 }
 0x6bc   : > { %v4619_v52 = vadd.f32 %v4618_v9, %v4617_v45 }
 0x6bd   : > { %v4634_v11 = vadd.f32 1e-05, %v4632_v13 }
 0x6be   : > { %v4620_v60 = vrot.slane %v4619_v52, 1 }
 0x6bf   : > { %6069 = vrsqrt.f32 %v4634_v11  ;;  %vm4651_vm6 = vweird.f32 %v4634_v11 }
 0x6c0   : > { %v4621_v31 = vadd.f32 %v4620_v60, %v4619_v52  ;;  %v4778_v52 = vpop.permute.xlu1 %4777 }
 0x6c2   : > { %v4631_v53 = vmul.f32 %v4621_v31, %v9373_v6  ;;  %v4702_v6 = vpop.permute.xlu0 %4701 }
 0x6c4   : > { %v4633_v23 = vadd.f32 1e-05, %v4631_v53 }
 0x6c5   : > { %v6070_v50 = vpop.eup %6069 }
 0x6c6   : > { %v4646_v40 = vmul.f32 %v6070_v50, %v4634_v11  ;;  %vm4652_vm5 = vweird.f32 %v6070_v50  ;;  %6071 = vrsqrt.f32 %v4633_v23  ;;  %vm4641_vm9 = vweird.f32 %v4633_v23 }
 0x6c7   : > { %vm4653_vm7 = vmor %vm4651_vm6, %vm4652_vm5 }
 0x6c8   : > { %v4647_v48 = vmul.f32 %v6070_v50, %v4646_v40  ;;  %v6088_v40 = vld [vmem:[%s6351_s16] sm:$0xff] }
 0x6ca   : > { %v4648_v47 = vmul.f32 0.5, %v4647_v48 }
 0x6cc   : > { %v4649_v30 = vsub.f32 1.5, %v4648_v47 }
 0x6ce   : > { %v4650_v12 = vmul.f32 %v6070_v50, %v4649_v30 }
 0x6d0   : > { %v4654_v32 = vsel %vm4653_vm7, %v6070_v50, %v4650_v12 }
 0x6d1   : > { %v4660_v26 = vmul.f32 %v4654_v32, %v9380_v39  ;;  %v4662_v41 = vmul.f32 %v4654_v32, %v9382_v1  ;;  %v4656_v55 = vmul.f32 %v4654_v32, %v9376_v62  ;;  %v4658_v51 = vmul.f32 %v4654_v32, %v9378_v0  ;;  %v6072_v1 = vpop.eup %6071 }
 0x6d2   : > { %v4636_v62 = vmul.f32 %v6072_v1, %v4633_v23  ;;  %vm4642_vm8 = vweird.f32 %v6072_v1 }
 0x6d3   : > { %v4694_v42 = vmul.f32 %v9392_v10, %v4662_v41  ;;  %v4692_v35 = vmul.f32 %v9394_v58, %v4660_v26  ;;  %v4688_v14 = vmul.f32 %v4670_v43, %v4656_v55  ;;  %v4690_v46 = vmul.f32 %v4675_v5, %v4658_v51  ;;  %vm4643_vm10 = vmor %vm4641_vm9, %vm4642_vm8 }
 0x6d4   : > { %v4637_v0 = vmul.f32 %v6072_v1, %v4636_v62 }
 0x6d5   : > { %v4726_v16 = vadd.f32 %v4717_v3, %v4694_v42  ;;  %v4724_v21 = vadd.f32 %v4712_v56, %v4692_v35  ;;  %v4720_v39 = vadd.f32 %v4702_v6, %v4688_v14  ;;  %v4722_v20 = vadd.f32 %v4707_v29, %v4690_v46 }
 0x6d6   : > { %v4638_v33 = vmul.f32 0.5, %v4637_v0 }
 0x6d7   : > { %v4731_v37 = vpack.c.bf16 %v4726_v16, %v4724_v21  ;;  %v4729_v17 = vpack.c.bf16 %v4722_v20, %v4720_v39 }
 0x6d8   : > { %v4639_v54 = vsub.f32 1.5, %v4638_v33 }
 0x6d9   : > { %4760 = vmatpush.bf16.msra.mxu1 %v4731_v37 }
 0x6da   : > { %v4640_v25 = vmul.f32 %v6072_v1, %v4639_v54 }
 0x6dc   : > { %v4644_v7 = vsel %vm4643_vm10, %v6072_v1, %v4640_v25 }
 0x6dd   : > { %4761 = vmatpush.bf16.msra.mxu1 %v4729_v17  ;;  %v4659_v15 = vmul.f32 %v4644_v7, %v9401_v28  ;;  %v4661_v18 = vmul.f32 %v4644_v7, %v9404_v49  ;;  %v4655_v8 = vmul.f32 %v4644_v7, %v9397_v57  ;;  %v4657_v44 = vmul.f32 %v4644_v7, %v9399_v36  ;;  %v4736_v57 = vpop.permute.xlu0 %4735 }
 0x6df   : > { %v4693_v27 = vmul.f32 %v9392_v10, %v4661_v18  ;;  %v4691_v34 = vmul.f32 %v9394_v58, %v4659_v15  ;;  %v4687_v13 = vmul.f32 %v4670_v43, %v4655_v8  ;;  %v4689_v59 = vmul.f32 %v4675_v5, %v4657_v44  ;;  %v6087_v10 = vld [vmem:[%s6351_s16 + $0x8] sm:$0xff]  ;;  %s5141_s16 = sshll.u32 %s662_s29, 4  ;;  %s5142_s16 = int_to_ptr.vmem [resolvable:$true] %s5141_s16 }
 0x6e0   : > { %5430 = vmatmul.msk.bf16.vlgmr.msra.gmra.mxu1 %vm4525_vm3, %v4727_v22 }
 0x6e1   : > { %v4725_v19 = vadd.f32 %v4717_v3, %v4693_v27  ;;  %v4723_v11 = vadd.f32 %v4712_v56, %v4691_v34  ;;  %v4719_v61 = vadd.f32 %v4702_v6, %v4687_v13  ;;  %v4721_v4 = vadd.f32 %v4707_v29, %v4689_v59  ;;  %v5460_v56 = vld [vmem:[%s9616_s14] sm:$0xff] }
 0x6e3   : > { %v4730_v2 = vpack.c.bf16 %v4725_v19, %v4723_v11  ;;  %v4728_v28 = vpack.c.bf16 %v4721_v4, %v4719_v61 }
 0x6e5   : > { %4747 = vmatpush.bf16.msra.mxu0 %v4730_v2  ;;  %v4783_v46 = vpop.permute.xlu0 %4782 }
 0x6e9   : > { %4748 = vmatpush.bf16.msra.mxu0 %v4728_v28 }
 0x6ec   : > { %5429 = vmatmul.msk.bf16.vlgmr.msra.gmra.mxu0 %vm4525_vm3, %v4727_v22 }
 0x75d   : > { %v4763_v36 = vpop.f32.mrf.mxu1 }
 0x75e   : > { %v4764_v49 = vadd.f32 %v4763_v36, %v4736_v57 }
 0x760   : > { %v9433_v63 = vadd.f32 %v6087_v10, %v4764_v49 }
 0x762   : > { %v4772_v58 = vpack.c.bf16 %v9433_v63, %v9433_v63 }
 0x764   : > { %v4797_v3 = vsel %vm926_vm0, %v4772_v58, 0 }
 0x765   : > { %v4765_v24 = vpop.f32.mrf.mxu1  ;;  %4820 = vmatpush.bf16.msra.mxu3 %v4797_v3 }
 0x768   : > { %5436 = vmatmul.msk.bf16.vlgmr.msra.gmra.mxu3 %vm919_vm2, %v5460_v56 }
 0x769   : > { %v4750_v38 = vpop.f32.mrf.mxu0 }
 0x76a   : > { %v4751_v50 = vadd.f32 %v4750_v38, %v4736_v57 }
 0x76c   : > { %v9443_v45 = vadd.f32 %v6088_v40, %v4751_v50 }
 0x76e   : > { %v4771_v48 = vpack.c.bf16 %v9443_v45, %v9443_v45 }
 0x770   : > { %v4794_v9 = vsel %vm926_vm0, %v4771_v48, 0 }
 0x771   : > { %v4752_v47 = vpop.f32.mrf.mxu0  ;;  %4806 = vmatpush.bf16.msra.mxu2 %v4794_v9 }
 0x774   : > { %5435 = vmatmul.msk.bf16.vlgmr.msra.gmra.mxu2 %vm919_vm2, %v5460_v56 }
 0x7eb   : > { %v4822_v5 = vpop.f32.mrf.mxu3 }
 0x7ec   : > { %v9449_v43 = vadd.f32 %v4822_v5, %v4778_v52 }
 0x7ee   : > { %v9452_v30 = vmul.f32 0.70710677, %v9449_v43 }
 0x7f0   : > { %v4875_v60 = vmul.f32 %v9452_v30, %v9452_v30 }
 0x7f2   : > { %v9456_v12 = vmin.f32 %v4875_v60, 16.0 }
 0x7f3   : > { %v4824_v21 = vpop.f32.mrf.mxu3 }
 0x7f4   : > { %v4888_v31 = vmul.f32 3.8918573e-05, %v9456_v12  ;;  %v4877_v55 = vmul.f32 2.1237322e-06, %v9456_v12  ;;  %v9468_v6 = vadd.f32 %v4824_v21, %v4783_v46 }
 0x7f6   : > { %v4889_v32 = vadd.f32 0.001143296, %v4888_v31  ;;  %v4878_v35 = vadd.f32 0.00028619796, %v4877_v55  ;;  %v9475_v1 = vmul.f32 0.70710677, %v9468_v6 }
 0x7f7   : > { %v4808_v42 = vpop.f32.mrf.mxu2 }
 0x7f8   : > { %v4890_v53 = vmul.f32 %v4889_v32, %v9456_v12  ;;  %v9463_v14 = vadd.f32 %v4808_v42, %v4778_v52  ;;  %v4879_v39 = vmul.f32 %v4878_v35, %v9456_v12  ;;  %v4955_v0 = vmul.f32 %v9475_v1, %v9475_v1 }
 0x7fa   : > { %v4891_v26 = vadd.f32 0.014752088, %v4890_v53  ;;  %v9466_v29 = vmul.f32 0.70710677, %v9463_v14  ;;  %v4880_v33 = vadd.f32 0.0036580483, %v4879_v39 }
 0x7fb   : > { %v9485_v25 = vmin.f32 %v4955_v0, 16.0 }
 0x7fc   : > { %v4892_v41 = vmul.f32 %v4891_v26, %v9456_v12  ;;  %v4835_v20 = vmul.f32 %v9466_v29, %v9466_v29  ;;  %v4881_v27 = vmul.f32 %v4880_v33, %v9456_v12 }
 0x7fd   : > { %v4957_v8 = vmul.f32 2.1237322e-06, %v9485_v25  ;;  %v4968_v44 = vmul.f32 3.8918573e-05, %v9485_v25 }
 0x7fe   : > { %v4893_v51 = vadd.f32 0.112945676, %v4892_v41  ;;  %v9479_v17 = vmin.f32 %v4835_v20, 16.0  ;;  %v4882_v36 = vadd.f32 0.05243302, %v4881_v27 }
 0x7ff   : > { %v4810_v22 = vpop.f32.mrf.mxu2  ;;  %v4958_v59 = vadd.f32 0.00028619796, %v4957_v8  ;;  %v4969_v19 = vadd.f32 0.001143296, %v4968_v44 }
 0x800   : > { %v4894_v23 = vmul.f32 %v4893_v51, %v9456_v12  ;;  %v4848_v54 = vmul.f32 3.8918573e-05, %v9479_v17  ;;  %v9487_v7 = vadd.f32 %v4810_v22, %v4783_v46  ;;  %v4837_v18 = vmul.f32 2.1237322e-06, %v9479_v17 }
 0x801   : > { %v4959_v4 = vmul.f32 %v4958_v59, %v9485_v25  ;;  %v4970_v28 = vmul.f32 %v4969_v19, %v9485_v25  ;;  %v4883_v9 = vmul.f32 %v4882_v36, %v9456_v12 }
 0x802   : > { %v4895_v16 = vadd.f32 0.4994258, %v4894_v23  ;;  %v4849_v15 = vadd.f32 0.001143296, %v4848_v54  ;;  %v9495_v13 = vmul.f32 0.70710677, %v9487_v7 }
 0x803   : > { %v4838_v61 = vadd.f32 0.00028619796, %v4837_v18  ;;  %v4971_v58 = vadd.f32 0.014752088, %v4970_v28  ;;  %v4960_v24 = vadd.f32 0.0036580483, %v4959_v4 }
 0x804   : > { %v4896_v37 = vmul.f32 %v4895_v16, %v9456_v12  ;;  %v4850_v34 = vmul.f32 %v4849_v15, %v9479_v17  ;;  %v4915_v57 = vmul.f32 %v9495_v13, %v9495_v13  ;;  %v4884_v55 = vadd.f32 0.18741608, %v4883_v9 }
 0x805   : > { %v4839_v38 = vmul.f32 %v4838_v61, %v9479_v17  ;;  %v4972_v50 = vmul.f32 %v4971_v58, %v9485_v25  ;;  %v4961_v32 = vmul.f32 %v4960_v24, %v9485_v25 }
 0x806   : > { %v9477_v62 = vadd.f32 1.0, %v4896_v37  ;;  %v4851_v2 = vadd.f32 0.014752088, %v4850_v34  ;;  %v9506_v3 = vmin.f32 %v4915_v57, 16.0  ;;  %v4885_v0 = vmul.f32 %v4884_v55, %v9456_v12 }
 0x807   : > { %v4973_v5 = vadd.f32 0.112945676, %v4972_v50  ;;  %v4840_v26 = vadd.f32 0.0036580483, %v4839_v38  ;;  %v4962_v21 = vadd.f32 0.05243302, %v4961_v32 }
 0x808   : > { %6073 = vrcp.f32 %v9477_v62  ;;  %v4852_v49 = vmul.f32 %v4851_v2, %v9479_v17  ;;  %v4917_v40 = vmul.f32 2.1237322e-06, %v9506_v3  ;;  %v4928_v48 = vmul.f32 3.8918573e-05, %v9506_v3 }
 0x809   : > { %v4974_v41 = vmul.f32 %v4973_v5, %v9485_v25  ;;  %v4841_v39 = vmul.f32 %v4840_v26, %v9479_v17  ;;  %v4909_v15 = vand.u32 2147483648, %v9477_v62  ;;  %v4963_v18 = vmul.f32 %v4962_v21, %v9485_v25 }
 0x80a   : > { %v4853_v56 = vadd.f32 0.112945676, %v4852_v49  ;;  %v4918_v60 = vadd.f32 0.00028619796, %v4917_v40  ;;  %v4929_v53 = vadd.f32 0.001143296, %v4928_v48  ;;  %vm4903_vm12 = vweird.f32 %v9477_v62 }
 0x80b   : > { %v4975_v35 = vadd.f32 0.4994258, %v4974_v41  ;;  %v4907_v44 = vand.u32 2147483647, %v9477_v62  ;;  %v4842_v27 = vadd.f32 0.05243302, %v4841_v39 }
 0x80c   : > { %v4854_v47 = vmul.f32 %v4853_v56, %v9479_v17  ;;  %v4930_v23 = vmul.f32 %v4929_v53, %v9506_v3  ;;  %v4919_v46 = vmul.f32 %v4918_v60, %v9506_v3  ;;  %v4886_v12 = vadd.f32 1.1283791, %v4885_v0 }
 0x80d   : > { %v4976_v20 = vmul.f32 %v4975_v35, %v9485_v25  ;;  %v4910_v61 = vor.u32 1.1754944e-38, %v4909_v15  ;;  %v4964_v4 = vadd.f32 0.18741608, %v4963_v18  ;;  %vm4908_vm14 = vcmp.eq.f32.partialorder %v4907_v44, 8.507059e+37 }
 0x80e   : > { %v9497_v11 = vpop.eup %6073  ;;  %v4855_v31 = vadd.f32 0.4994258, %v4854_v47  ;;  %v4931_v37 = vadd.f32 0.014752088, %v4930_v23  ;;  %v4920_v54 = vadd.f32 0.0036580483, %v4919_v46  ;;  %v4843_v28 = vmul.f32 %v4842_v27, %v9479_v17 }
 0x80f   : > { %v4899_v10 = vmul.f32 %v9497_v11, %v9477_v62  ;;  %vm4904_vm11 = vweird.f32 %v9497_v11  ;;  %v4977_v33 = vadd.f32 1.0, %v4976_v20  ;;  %v4965_v24 = vmul.f32 %v4964_v4, %v9485_v25 }
 0x810   : > { %v4856_v51 = vmul.f32 %v4855_v31, %v9479_v17  ;;  %v4932_v8 = vmul.f32 %v4931_v37, %v9506_v3  ;;  %vm4905_vm13 = vmor %vm4903_vm12, %vm4904_vm11  ;;  %v4921_v59 = vmul.f32 %v4920_v54, %v9506_v3  ;;  %v4844_v40 = vadd.f32 0.18741608, %v4843_v28 }
 0x811   : > { %v4900_v52 = vsub.f32 1.0, %v4899_v10  ;;  %v4887_v10 = vmul.f32 %v4886_v12, %v9452_v30  ;;  %v4966_v31 = vadd.f32 1.1283791, %v4965_v24  ;;  %v4987_v30 = vand.u32 2147483647, %v4977_v33 }
 0x812   : > { %v9520_v16 = vadd.f32 1.0, %v4856_v51  ;;  %v4933_v19 = vadd.f32 0.112945676, %v4932_v8  ;;  %v4922_v56 = vadd.f32 0.05243302, %v4921_v59  ;;  %v4845_v26 = vmul.f32 %v4844_v40, %v9479_v17 }
 0x813   : > { %v4901_v42 = vmul.f32 %v9497_v11, %v4900_v52  ;;  %v4989_v52 = vand.u32 2147483648, %v4977_v33  ;;  %vm4983_vm2 = vweird.f32 %v4977_v33  ;;  %v4967_v35 = vmul.f32 %v4966_v31, %v9475_v1 }
 0x814   : > { %6075 = vrcp.f32 %v9520_v16  ;;  %v4934_v36 = vmul.f32 %v4933_v19, %v9506_v3  ;;  %v4923_v5 = vmul.f32 %v4922_v56, %v9506_v3  ;;  %vm4863_vm3 = vweird.f32 %v9520_v16 }
 0x815   : > { %v4902_v22 = vadd.f32 %v9497_v11, %v4901_v42  ;;  %6077 = vrcp.f32 %v4977_v33  ;;  %v4869_v55 = vand.u32 2147483648, %v9520_v16  ;;  %v4990_v51 = vor.u32 1.1754944e-38, %v4989_v52 }
 0x816   : > { %v4924_v23 = vadd.f32 0.18741608, %v4923_v5  ;;  %v4867_v42 = vand.u32 2147483647, %v9520_v16  ;;  %vm4988_vm5 = vcmp.eq.f32.partialorder %v4987_v30, 8.507059e+37  ;;  %v4828_v18 = vmul.f32 0.5, %v9449_v43 }
 0x817   : > { %v4906_v34 = vsel %vm4905_vm13, %v9497_v11, %v4902_v22  ;;  %v4935_v11 = vadd.f32 0.4994258, %v4934_v36  ;;  %v4846_v21 = vadd.f32 1.1283791, %v4845_v26  ;;  %v4870_v22 = vor.u32 1.1754944e-38, %v4869_v55 }
 0x818   : > { %v4911_v62 = vsel %vm4908_vm14, %v4910_v61, %v4906_v34  ;;  %vm4868_vm7 = vcmp.eq.f32.partialorder %v4867_v42, 8.507059e+37  ;;  %v4830_v8 = vmul.f32 0.5, %v9468_v6  ;;  %v5003_v6 = vld [vmem:[%s10567_s22] sm:$0xf]  ;;  %v4827_v56 = vmul.f32 0.5, %v9463_v14  ;;  %s5126_s22 = scalar_lea.sflag [#allocation5], %s660_s0 }
 0x819   : > { %v4912_v50 = vmul.f32 %v4911_v62, %v4887_v10  ;;  %v4936_v48 = vmul.f32 %v4935_v11, %v9506_v3  ;;  %v4847_v1 = vmul.f32 %v4846_v21, %v9466_v29  ;;  %v4829_v11 = vmul.f32 0.5, %v9487_v7 }
 0x81a   : > { %v6076_v2 = vpop.eup %6075  ;;  %v6171_v40 = vmov 8.0  }
 0x81b   : > { %v4859_v57 = vmul.f32 %v6076_v2, %v9520_v16  ;;  %v6078_v49 = vpop.eup %6077  ;;  %v4937_v60 = vadd.f32 1.0, %v4936_v48  ;;  %v5438_v53 = vclamps-f32 %v4912_v50, 1.0  ;;  %vm4864_vm0 = vweird.f32 %v6076_v2 }
 0x81c   : > { %v4979_v38 = vmul.f32 %v6078_v49, %v4977_v33  ;;  %vm4984_vm15 = vweird.f32 %v6078_v49  ;;  %vm4865_vm6 = vmor %vm4863_vm3, %vm4864_vm0  ;;  %v4925_v33 = vmul.f32 %v4924_v23, %v9506_v3 }
 0x81d   : > { %v4860_v58 = vsub.f32 1.0, %v4859_v57  ;;  %6079 = vrcp.f32 %v4937_v60  ;;  %vm4985_vm4 = vmor %vm4983_vm2, %vm4984_vm15  ;;  %v4996_v0 = vadd.f32 1.0, %v5438_v53  ;;  %v4947_v59 = vand.u32 2147483647, %v4937_v60 }
 0x81e   : > { %v4980_v47 = vsub.f32 1.0, %v4979_v38  ;;  %v4926_v34 = vadd.f32 1.1283791, %v4925_v33  ;;  %v4949_v19 = vand.u32 2147483648, %v4937_v60  ;;  %vm4943_vm9 = vweird.f32 %v4937_v60 }
 0x81f   : > { %v4861_v9 = vmul.f32 %v6076_v2, %v4860_v58  ;;  %v5000_v12 = vmul.f32 %v4996_v0, %v4828_v18  ;;  %vm4948_vm11 = vcmp.eq.f32.partialorder %v4947_v59, 8.507059e+37  ;;  %6081 = vrcp.f32 %v6171_v40 }
 0x820   : > { %v4981_v32 = vmul.f32 %v6078_v49, %v4980_v47  ;;  %v4950_v43 = vor.u32 1.1754944e-38, %v4949_v19  ;;  %v4927_v29 = vmul.f32 %v4926_v34, %v9495_v13  ;;  %v5010_v47 = vpop.permute.xlu1 %5009 }
 0x821   : > { %v4862_v25 = vadd.f32 %v6076_v2, %v4861_v9 }
 0x822   : > { %v4982_v41 = vadd.f32 %v6078_v49, %v4981_v32 }
 0x823   : > { %v4866_v37 = vsel %vm4865_vm6, %v6076_v2, %v4862_v25  ;;  %v6080_v20 = vpop.eup %6079 }
 0x824   : > { %v4986_v46 = vsel %vm4985_vm4, %v6078_v49, %v4982_v41  ;;  %v4939_v15 = vmul.f32 %v6080_v20, %v4937_v60  ;;  %v4871_v16 = vsel %vm4868_vm7, %v4870_v22, %v4866_v37  ;;  %vm4944_vm8 = vweird.f32 %v6080_v20 }
 0x825   : > { %v4991_v17 = vsel %vm4988_vm5, %v4990_v51, %v4986_v46  ;;  %v4872_v2 = vmul.f32 %v4871_v16, %v4847_v1  ;;  %vm4945_vm10 = vmor %vm4943_vm9, %vm4944_vm8  ;;  %v6082_v48 = vpop.eup %6081 }
 0x826   : > { %v4992_v39 = vmul.f32 %v4991_v17, %v4967_v35  ;;  %v4940_v27 = vsub.f32 1.0, %v4939_v15  ;;  %v5055_v9 = vmul.f32 8.0, %v6082_v48  ;;  %vm5059_vm12 = vweird.f32 %v6082_v48 }
 0x827   : > { %v5437_v57 = vclamps-f32 %v4872_v2, 1.0 }
 0x828   : > { %v5440_v54 = vclamps-f32 %v4992_v39, 1.0  ;;  %v4941_v4 = vmul.f32 %v6080_v20, %v4940_v27  ;;  %v5056_v5 = vsub.f32 1.0, %v5055_v9 }
 0x829   : > { %v4995_v10 = vadd.f32 1.0, %v5437_v57 }
 0x82a   : > { %v4998_v44 = vadd.f32 1.0, %v5440_v54  ;;  %v4942_v28 = vadd.f32 %v6080_v20, %v4941_v4  ;;  %v5057_v32 = vmul.f32 %v6082_v48, %v5056_v5 }
 0x82b   : > { %v4999_v38 = vmul.f32 %v4995_v10, %v4827_v56 }
 0x82c   : > { %v5002_v61 = vmul.f32 %v4998_v44, %v4830_v8  ;;  %v4946_v36 = vsel %vm4945_vm10, %v6080_v20, %v4942_v28  ;;  %v5058_v7 = vadd.f32 %v6082_v48, %v5057_v32 }
 0x82d   : > { %v4951_v62 = vsel %vm4948_vm11, %v4950_v43, %v4946_v36 }
 0x82e   : > { %v5005_v3 = vpack.c.bf16 %v5002_v61, %v5000_v12  ;;  %v4952_v49 = vmul.f32 %v4951_v62, %v4927_v29  ;;  %v5060_v41 = vsel %vm5059_vm12, %v6082_v48, %v5058_v7 }
 0x830   : > { %5036 = vmatpush.bf16.msrb.mxu1 %v5005_v3  ;;  %v5439_v58 = vclamps-f32 %v4952_v49, 1.0 }
 0x832   : > { %v4997_v24 = vadd.f32 1.0, %v5439_v58 }
 0x833   : > { %5442 = vmatmul.msk.bf16.vlgmr.msrb.gmra.mxu1 %vm734_vm1, %v5003_v6 }
 0x834   : > { %v5001_v13 = vmul.f32 %v4997_v24, %v4829_v11  ;;  %v5109_v11 = vpop.permute.xlu0 %5108 }
 0x836   : > { %v5004_v50 = vpack.c.bf16 %v5001_v13, %v4999_v38  ;;  %v5117_v13 = vpop.permute.xlu2 %5116 }
 0x838   : > { %5023 = vmatpush.bf16.msrb.mxu0 %v5004_v50 }
 0x83b   : > { %5441 = vmatmul.msk.bf16.vlgmr.msrb.gmra.mxu0 %vm734_vm1, %v5003_v6 }
 0x8b0   : > { %v5038_v52 = vpop.f32.mrf.mxu1 }
 0x8b1   : > { %v5039_v60 = vadd.f32 %v5038_v52, %v5010_v47 }
 0x8b3   : > { %v5048_v31 = vrot.slane %v5039_v60, 4 }
 0x8b5   : > { %v5049_v14 = vadd.f32 %v5048_v31, %v5039_v60 }
 0x8b7   : > { %v5050_v30 = vrot.slane %v5049_v14, 2 }
 0x8b8   : > { %v5040_v53 = vpop.f32.mrf.mxu1  ;;  %v5025_v55 = vpop.f32.mrf.mxu0 }
 0x8b9   : > { %v5051_v26 = vadd.f32 %v5050_v30, %v5049_v14  ;;  %v5026_v23 = vadd.f32 %v5025_v55, %v5010_v47 }
 0x8bb   : > { %v5052_v25 = vrot.slane %v5051_v26, 1  ;;  %v5042_v35 = vrot.slane %v5026_v23, 4 }
 0x8bd   : > { %v5053_v51 = vadd.f32 %v5052_v25, %v5051_v26  ;;  %v5043_v17 = vadd.f32 %v5042_v35, %v5026_v23 }
 0x8bf   : > { %v5062_v42 = vmul.f32 %v5060_v41, %v5053_v51  ;;  %v5044_v37 = vrot.slane %v5043_v17, 2 }
 0x8c0   : > { %v5027_v39 = vpop.f32.mrf.mxu0 }
 0x8c1   : > { %v5064_v46 = vsub.f32 %v5039_v60, %v5062_v42  ;;  %v5045_v0 = vadd.f32 %v5044_v37, %v5043_v17 }
 0x8c3   : > { %v5066_v21 = vmul.f32 %v5064_v46, %v5064_v46  ;;  %v5046_v33 = vrot.slane %v5045_v0, 1 }
 0x8c5   : > { %v5073_v20 = vrot.slane %v5066_v21, 4  ;;  %v5047_v15 = vadd.f32 %v5046_v33, %v5045_v0 }
 0x8c7   : > { %v5074_v22 = vadd.f32 %v5073_v20, %v5066_v21  ;;  %v5061_v16 = vmul.f32 %v5060_v41, %v5047_v15 }
 0x8c9   : > { %v5075_v54 = vrot.slane %v5074_v22, 2  ;;  %v5063_v8 = vsub.f32 %v5026_v23, %v5061_v16 }
 0x8cb   : > { %v5076_v18 = vadd.f32 %v5075_v54, %v5074_v22  ;;  %v5065_v27 = vmul.f32 %v5063_v8, %v5063_v8 }
 0x8cd   : > { %v5077_v1 = vrot.slane %v5076_v18, 1  ;;  %v5067_v34 = vrot.slane %v5065_v27, 4 }
 0x8cf   : > { %v5078_v44 = vadd.f32 %v5077_v1, %v5076_v18  ;;  %v5068_v19 = vadd.f32 %v5067_v34, %v5065_v27 }
 0x8d1   : > { %v5080_v12 = vmul.f32 %v5078_v44, %v5060_v41  ;;  %v5069_v2 = vrot.slane %v5068_v19, 2 }
 0x8d3   : > { %v5082_v59 = vadd.f32 1e-05, %v5080_v12  ;;  %v5070_v61 = vadd.f32 %v5069_v2, %v5068_v19 }
 0x8d5   : > { %6083 = vrsqrt.f32 %v5082_v59  ;;  %v5071_v4 = vrot.slane %v5070_v61, 1  ;;  %vm5099_vm13 = vweird.f32 %v5082_v59 }
 0x8d7   : > { %v5072_v28 = vadd.f32 %v5071_v4, %v5070_v61 }
 0x8d9   : > { %v5079_v57 = vmul.f32 %v5072_v28, %v5060_v41 }
 0x8db   : > { %v6084_v3 = vpop.eup %6083  ;;  %v5081_v36 = vadd.f32 1e-05, %v5079_v57 }
 0x8dc   : > { %v5094_v43 = vmul.f32 %v6084_v3, %v5082_v59  ;;  %vm5100_vm1 = vweird.f32 %v6084_v3 }
 0x8dd   : > { %6085 = vrsqrt.f32 %v5081_v36  ;;  %vm5101_vm14 = vmor %vm5099_vm13, %vm5100_vm1  ;;  %vm5089_vm0 = vweird.f32 %v5081_v36 }
 0x8de   : > { %v5095_v29 = vmul.f32 %v6084_v3, %v5094_v43 }
 0x8e0   : > { %v5096_v6 = vmul.f32 0.5, %v5095_v29 }
 0x8e2   : > { %v5097_v62 = vsub.f32 1.5, %v5096_v6 }
 0x8e3   : > { %v6086_v58 = vpop.eup %6085 }
 0x8e4   : > { %v5098_v49 = vmul.f32 %v6084_v3, %v5097_v62  ;;  %v5084_v24 = vmul.f32 %v6086_v58, %v5081_v36  ;;  %vm5090_vm15 = vweird.f32 %v6086_v58 }
 0x8e5   : > { %vm5091_vm2 = vmor %vm5089_vm0, %vm5090_vm15 }
 0x8e6   : > { %v5102_v10 = vsel %vm5101_vm14, %v6084_v3, %v5098_v49  ;;  %v5085_v50 = vmul.f32 %v6086_v58, %v5084_v24 }
 0x8e7   : > { %v5104_v56 = vmul.f32 %v5102_v10, %v5064_v46 }
 0x8e8   : > { %v5086_v48 = vmul.f32 0.5, %v5085_v50 }
 0x8e9   : > { %v5112_v38 = vmul.f32 %v5109_v11, %v5104_v56 }
 0x8ea   : > { %v5087_v47 = vsub.f32 1.5, %v5086_v48 }
 0x8eb   : > { %v5120_v40 = vadd.f32 %v5117_v13, %v5112_v38 }
 0x8ec   : > { %v5088_v52 = vmul.f32 %v6086_v58, %v5087_v47 }
 0x8ed   : > { %v5122_v9 = vadd.f32 %v5120_v40, %v9433_v63 }
 0x8ee   : > { %v5092_v5 = vsel %vm5091_vm2, %v6086_v58, %v5088_v52 }
 0x8ef   : > { %5124 = vst [vmem:[%s662_s29 + $0x8] sm:$0xff] %v5122_v9  ;;  %v5103_v60 = vmul.f32 %v5092_v5, %v5063_v8 }
 0x8f1   : > { %v5111_v31 = vmul.f32 %v5109_v11, %v5103_v60 }
 0x8f3   : > { %v5119_v63 = vadd.f32 %v5117_v13, %v5111_v31 }
 0x8f5   : > { %v5121_v32 = vadd.f32 %v5119_v63, %v9443_v45 }
 0x8f7   : > { %5123 = vst [vmem:[%s662_s29] sm:$0xff] %v5121_v32 }
 0x8f8   : > { %6116 = shalt.err (!%p6113_p5)
}
 0x8f9   : > { %5462 = dma.vmem_to_hbm [thread:$0]  (%p6317_p4), %s5142_s16, 256, %s5144_s1, %s5126_s22  }
 0x8fa PF: > { %s10571_s25 = sld [smem:[#allocation11_spill]] }
 0x8fb   : > { %s10572_s0 = sld [smem:[#allocation7_spill]] }
 0x900   : > { %p5468_p6 = scmp.ge.s32.totalorder %s10571_s25, 2 }
 0x901   : > { %s5155_s5 = sand.u32 1, %s10572_s0  }
 0x902   : > { %p5465_p7 = pnand %p5468_p6, %p6324_p8  ;;  %s5156_s3 = scalar_lea.sflag [#allocation5], %s5155_s5 }
 0x904   : > { %p5466_p9 = pneg %p5465_p7 }
 0x906   : > { %6142 = dma.done.wait (%p5466_p9), %s5156_s3, 256  }
 0x907   : > { %6144 = vsyncadd (%p5466_p9), %s5156_s3, 4294967040  ;;  %s33_s25 = sadd.s32 1, %s10571_s25   ;;  %s10574_s1 = sld [smem:[#allocation8_spill]] }
 0x908   : > { %p30_p10 = scmp.ge.s32.totalorder %s33_s25, 4   ;;  %s10575_s22 = sld [smem:[#allocation9_spill]] }
 0x909   : > { %s10576_s23 = sld [smem:[#allocation15_spill]] }
 0x90a   : > { %s10577_s24 = sld [smem:[#allocation10_spill]]  ;;  %32 = sbr.rel (!%p30_p10) target bundleno = 13 (0xd), region = 142 }
 0x90b   : > { %s10578_s2 = sld [smem:[#allocation12_spill]] }
 0x90f   :  { %5162 = vsyncpa [#allocation5], 1 }
 0x910   :  { %5164 = vsyncpa [#allocation5 + $0x1], 1 }

</bundles_post_ra>
